<compile_context>
chip_gen: v6e
topology: v6e:2x2x1
jax: 0.10.0
libtpu: 0.0.40
codegen_flags: <defaults>
</compile_context>

<pallas_src>
import functools

import jax
import jax.numpy as jnp
from jax.experimental import pallas as pl
from jax.experimental.pallas import tpu as pltpu

MAXPT = 3   # top/bottom halo rows (7x7 depthwise -> pad 3)
PADW = 8    # left/right halo columns; 8 so the interior write starts sublane-aligned


def _hardswish(x):
    return x * jnp.clip(x + 3.0, 0.0, 6.0) * (1.0 / 6.0)


def osblock_kernel(
    x_ref,                                  # (1, H, W, Cin)
    w1d_ref,                                # (Cin, mid [+ Cout])  conv1 | downsample, BN-scaled
    b1_ref,                                 # (1, mid)   conv1 BN bias
    bd_ref,                                 # (1, Cout)  downsample BN bias (unused w/o downsample)
    w2cat_ref,                              # (mid, 3*mid) fused branch 1x1 convs
    da_ref, db_ref, dc_ref,                 # (3,3,mid) (5,5,mid) (7,7,mid) BN-scaled depthwise taps
    b2_ref,                                 # (3, mid)  branch BN biases (a, b, c)
    gw1_ref, gb1_ref, gw2_ref, gb2_ref,     # ChannelGate fc1 / fc2
    w3_ref,                                 # (mid, Cout), BN-scaled
    b3_ref,                                 # (1, Cout)
    o_ref,                                  # (1, H, W, Cout)
    pad_ref,                                # VMEM scratch (H + 2*MAXPT, W + 2*PADW, mid)
    *,
    has_downsample: bool,
):
    _, H, W, Cin = x_ref.shape
    mid = w2cat_ref.shape[0]
    Cout = w3_ref.shape[1]
    Wp = W + 2 * PADW

    # Refresh only the halo strips; the interior is fully overwritten by every branch.
    # Done every grid step (cheap) so correctness holds even when the "parallel" batch axis
    # is sharded across TensorCores and each core owns a private, uninitialized scratch.
    zrow = jnp.zeros((MAXPT, Wp, mid), jnp.float32)
    pad_ref[0:MAXPT, :, :] = zrow
    pad_ref[MAXPT + H:MAXPT + H + MAXPT, :, :] = zrow
    zcol = jnp.zeros((H, PADW, mid), jnp.float32)
    pad_ref[MAXPT:MAXPT + H, 0:PADW, :] = zcol
    pad_ref[MAXPT:MAXPT + H, PADW + W:PADW + W + PADW, :] = zcol

    xf = x_ref[0].reshape(H * W, Cin).astype(jnp.float32)                     # (HW, Cin)

    # ----- conv1 (1x1+BN+ReLU) and downsample (1x1+BN) fused into a single matmul -----
    if has_downsample:
        y = jnp.dot(xf, w1d_ref[...], preferred_element_type=jnp.float32)     # (HW, mid+Cout)
        y1 = jnp.maximum(y[:, :mid] + b1_ref[...], 0.0)
        idn = y[:, mid:] + bd_ref[...]
    else:
        y1 = jnp.maximum(
            jnp.dot(xf, w1d_ref[...], preferred_element_type=jnp.float32) + b1_ref[...], 0.0)
        idn = xf                                                              # Cin == Cout

    # ----- the three branch 1x1 convs as one wide matmul -----
    t_cat = jnp.dot(y1, w2cat_ref[...], preferred_element_type=jnp.float32)   # (HW, 3*mid)

    # ----- depthwise KxK + (folded) BN bias + Hardswish -----
    def depthwise(t, dw, bias, k):
        padg = k // 2
        # Interior write starts at column PADW (sublane-aligned, W multiple of 8 -> unmasked).
        pad_ref[MAXPT:MAXPT + H, PADW:PADW + W, :] = t.reshape(H, W, mid)
        padded = pad_ref[...]                                                 # (H+6, Wp, mid)
        # The sublane-unaligned W-window is sliced once per dx (k slices) instead of once per
        # tap (k*k); per-dy row slices are along the untiled leading axis and are free.
        # TODO(synk): the k W-shifts could also be issued as pltpu.roll (XLU slot) instead of
        # plain slices once sublane-roll of a 3-D operand is verified on all target chips.
        acc = None
        for dx in range(k):
            ox = PADW - padg + dx
            col = padded[:, ox:ox + W, :]                                     # (H+6, W, mid)
            for dy in range(k):
                oy = MAXPT - padg + dy
                term = col[oy:oy + H] * dw[dy, dx, :]
                acc = term if acc is None else acc + term
        acc = acc.reshape(H * W, mid) + bias
        return _hardswish(acc)

    b2 = b2_ref[...]
    y2a = depthwise(t_cat[:, 0 * mid:1 * mid], da_ref[...], b2[0:1, :], 3)
    y2b = depthwise(t_cat[:, 1 * mid:2 * mid], db_ref[...], b2[1:2, :], 5)
    y2c = depthwise(t_cat[:, 2 * mid:3 * mid], dc_ref[...], b2[2:3, :], 7)

    # ----- ChannelGate, batched over the three branches as a single (3, mid) MLP -----
    pa = jnp.mean(y2a, axis=0, keepdims=True)                                 # (1, mid)
    pb = jnp.mean(y2b, axis=0, keepdims=True)
    pc = jnp.mean(y2c, axis=0, keepdims=True)
    row = jax.lax.broadcasted_iota(jnp.int32, (3, mid), 0)
    pooled = jnp.where(row == 0, pa, jnp.where(row == 1, pb, pc))             # (3, mid)

    h = jnp.dot(pooled, gw1_ref[...], preferred_element_type=jnp.float32) + gb1_ref[...]
    h = jnp.maximum(h, 0.0)
    g = jnp.dot(h, gw2_ref[...], preferred_element_type=jnp.float32) + gb2_ref[...]
    g = 1.0 / (1.0 + jnp.exp(-g))                                             # (3, mid)

    # accumulate gated branches into one buffer
    x2 = y2a * g[0:1, :]
    x2 = x2 + y2b * g[1:2, :]
    x2 = x2 + y2c * g[2:3, :]

    # ----- conv3 (1x1 + BN) + residual + Hardswish -----
    y3 = jnp.dot(x2, w3_ref[...], preferred_element_type=jnp.float32) + b3_ref[...]
    out = _hardswish(y3 + idn)
    o_ref[0] = out.reshape(H, W, Cout).astype(o_ref.dtype)


def osblock_pallas(x_nchw, params):
    """OSBlock forward. x_nchw: (N, Cin, H, W) -> (N, Cout, H, W)."""
    N, Cin, H, W = x_nchw.shape
    mid = params['w1'].shape[1]
    Cout = params['w3'].shape[1]
    has_downsample = 'wd' in params

    # ---- host-side BN folding and weight fusing ----
    def fold(w, bn):                      # column-scale a (Cin, Cout) 1x1 weight by BN scale
        return (w * bn[0][None, :]).astype(jnp.float32)

    w1f = fold(params['w1'], params['bn1'])
    b1 = params['bn1'][1][None, :]
    if has_downsample:
        w1d = jnp.concatenate([w1f, fold(params['wd'], params['bnd'])], axis=1)  # (Cin, mid+Cout)
        bd = params['bnd'][1][None, :]
    else:
        w1d = w1f                                                               # (Cin, mid)
        bd = jnp.zeros((1, Cout), jnp.float32)                                  # placeholder

    w2cat = jnp.concatenate([params['w2a'], params['w2b'], params['w2c']], axis=1)  # (mid, 3*mid)
    da = params['da'] * params['bn2a'][0]          # BN scale folded into the depthwise taps
    db = params['db'] * params['bn2b'][0]
    dc = params['dc'] * params['bn2c'][0]
    b2 = jnp.stack([params['bn2a'][1], params['bn2b'][1], params['bn2c'][1]])   # (3, mid)

    w3f = fold(params['w3'], params['bn3'])
    b3 = params['bn3'][1][None, :]

    x = jnp.transpose(x_nchw, (0, 2, 3, 1)).astype(jnp.float32)                 # NHWC

    args = [w1d, b1, bd, w2cat, da, db, dc, b2,
            params['gw1'], params['gb1'], params['gw2'], params['gb2'], w3f, b3]

    def full_spec(a):
        nd = a.ndim
        return pl.BlockSpec(a.shape, lambda n, _nd=nd: (0,) * _nd)

    in_specs = [pl.BlockSpec((1, H, W, Cin), lambda n: (n, 0, 0, 0))]
    in_specs += [full_spec(a) for a in args]

    # TODO(synk): for production OSNet shapes on v7x (64 MiB VMEM) the whole-image body should
    # additionally be tiled over row blocks (two passes due to the gate's global average pool).
    out = pl.pallas_call(
        functools.partial(osblock_kernel, has_downsample=has_downsample),
        out_shape=jax.ShapeDtypeStruct((N, H, W, Cout), jnp.float32),
        grid=(N,),
        in_specs=in_specs,
        out_specs=pl.BlockSpec((1, H, W, Cout), lambda n: (n, 0, 0, 0)),
        scratch_shapes=[pltpu.VMEM((H + 2 * MAXPT, W + 2 * PADW, mid), jnp.float32)],
        compiler_params=pltpu.CompilerParams(dimension_semantics=("parallel",)),
    )(x, *args)

    return jnp.transpose(out, (0, 3, 1, 2))                                     # back to NCHW


def init_osblock_params(key, in_channels, out_channels, gate_reduction=16, eps=1e-5):
    """Deterministic synthetic parameters. 1x1 conv weights stored as (Cin, Cout), depthwise
    weights as (k, k, C); BatchNorm folded to (2, C) = [scale, bias]."""
    mid = out_channels // 2
    midr = max(mid // gate_reduction, 1)
    keys = iter(jax.random.split(key, 64))

    def nrm(shape, scale=0.1):
        return scale * jax.random.normal(next(keys), shape, jnp.float32)

    def bn_fold(c):
        gamma = 1.0 + 0.1 * jax.random.normal(next(keys), (c,), jnp.float32)
        beta = 0.1 * jax.random.normal(next(keys), (c,), jnp.float32)
        mean = 0.1 * jax.random.normal(next(keys), (c,), jnp.float32)
        var = jax.random.uniform(next(keys), (c,), jnp.float32, 0.5, 1.5)
        scale = gamma / jnp.sqrt(var + eps)
        bias = beta - mean * scale
        return jnp.stack([scale, bias])

    p = {}
    p['w1'], p['bn1'] = nrm((in_channels, mid)), bn_fold(mid)
    p['w2a'], p['da'], p['bn2a'] = nrm((mid, mid)), nrm((3, 3, mid)), bn_fold(mid)
    p['w2b'], p['db'], p['bn2b'] = nrm((mid, mid)), nrm((5, 5, mid)), bn_fold(mid)
    p['w2c'], p['dc'], p['bn2c'] = nrm((mid, mid)), nrm((7, 7, mid)), bn_fold(mid)
    p['gw1'], p['gb1'] = nrm((mid, midr)), nrm((1, midr))
    p['gw2'], p['gb2'] = nrm((midr, mid)), nrm((1, mid))
    p['w3'], p['bn3'] = nrm((mid, out_channels)), bn_fold(out_channels)
    if in_channels != out_channels:       # downsample only when shapes differ (as in PyTorch)
        p['wd'], p['bnd'] = nrm((in_channels, out_channels)), bn_fold(out_channels)
    return p


def osblock_ref(x_nchw, p):
    """Pure-JAX reference (NCHW, mirrors the PyTorch forward)."""
    hp = jax.lax.Precision.HIGHEST

    def conv1x1(x, w):  # w: (Cin, Cout)
        return jnp.einsum('nchw,co->nohw', x, w, precision=hp)

    def affine(x, sb):
        return x * sb[0][None, :, None, None] + sb[1][None, :, None, None]

    def dwconv(x, w):   # w: (k, k, C)
        c = x.shape[1]
        wl = jnp.transpose(w, (2, 0, 1))[:, None, :, :]   # (C, 1, k, k)
        return jax.lax.conv_general_dilated(
            x, wl, (1, 1), 'SAME',
            dimension_numbers=('NCHW', 'OIHW', 'NCHW'),
            feature_group_count=c, precision=hp)

    x1 = jnp.maximum(affine(conv1x1(x_nchw, p['w1']), p['bn1']), 0.0)

    def branch(wk, dk, bk):
        return _hardswish(affine(dwconv(conv1x1(x1, p[wk]), p[dk]), p[bk]))

    y2a = branch('w2a', 'da', 'bn2a')
    y2b = branch('w2b', 'db', 'bn2b')
    y2c = branch('w2c', 'dc', 'bn2c')

    def gate(y):
        pooled = jnp.mean(y, axis=(2, 3))                                   # (N, mid)
        h = jnp.maximum(pooled @ p['gw1'] + p['gb1'], 0.0)
        g = jax.nn.sigmoid(h @ p['gw2'] + p['gb2'])
        return y * g[:, :, None, None]

    x2 = gate(y2a) + gate(y2b) + gate(y2c)
    y3 = affine(conv1x1(x2, p['w3']), p['bn3'])
    idn = affine(conv1x1(x_nchw, p['wd']), p['bnd']) if 'wd' in p else x_nchw
    return _hardswish(y3 + idn)


if __name__ == "__main__":
    # OSBlock(in_channels=32, out_channels=64): mid=32, gate hidden=2, downsample active.
    N, Cin, H, W = 2, 32, 8, 8
    Cout = 64

    x = jax.random.normal(jax.random.PRNGKey(0), (N, Cin, H, W), jnp.float32)
    params = init_osblock_params(jax.random.PRNGKey(1), Cin, Cout)

    out = jax.block_until_ready(osblock_pallas(x, params))
    ref = osblock_ref(x, params)

    err = float(jnp.max(jnp.abs(out - ref)))
    assert out.shape == (N, Cout, H, W), out.shape
    assert err < 5e-3, f"max abs error vs reference: {err}"
    print("KERNEL_OK")
</pallas_src>

<mosaic_0001>
module attributes {stable_mosaic.version = 11 : i64} {
  func.func @osblock_kernel(%arg0: i32, %arg1: memref<1x8x8x32xf32, #tpu.memory_space<vmem>>, %arg2: memref<32x96xf32, #tpu.memory_space<vmem>>, %arg3: memref<1x32xf32, #tpu.memory_space<vmem>>, %arg4: memref<1x64xf32, #tpu.memory_space<vmem>>, %arg5: memref<32x96xf32, #tpu.memory_space<vmem>>, %arg6: memref<3x3x32xf32, #tpu.memory_space<vmem>>, %arg7: memref<5x5x32xf32, #tpu.memory_space<vmem>>, %arg8: memref<7x7x32xf32, #tpu.memory_space<vmem>>, %arg9: memref<3x32xf32, #tpu.memory_space<vmem>>, %arg10: memref<32x2xf32, #tpu.memory_space<vmem>>, %arg11: memref<1x2xf32, #tpu.memory_space<vmem>>, %arg12: memref<2x32xf32, #tpu.memory_space<vmem>>, %arg13: memref<1x32xf32, #tpu.memory_space<vmem>>, %arg14: memref<32x64xf32, #tpu.memory_space<vmem>>, %arg15: memref<1x64xf32, #tpu.memory_space<vmem>>, %arg16: memref<1x8x8x64xf32, #tpu.memory_space<vmem>>, %arg17: memref<14x24x32xf32, #tpu.memory_space<vmem>>) attributes {dimension_semantics = [#tpu.dimension_semantics<parallel>], iteration_bounds = array<i64: 2>, scalar_prefetch = 0 : i64, scratch_operands = 1 : i64, tpu.core_type = #tpu.core_type<tc>, window_params = [{transform_indices = @transform_0, window_bounds = array<i64: 1, 8, 8, 32>}, {pipeline_mode = #tpu.pipeline_mode<synchronous>, transform_indices = @transform_1, window_bounds = array<i64: 32, 96>}, {pipeline_mode = #tpu.pipeline_mode<synchronous>, transform_indices = @transform_2, window_bounds = array<i64: 1, 32>}, {pipeline_mode = #tpu.pipeline_mode<synchronous>, transform_indices = @transform_3, window_bounds = array<i64: 1, 64>}, {pipeline_mode = #tpu.pipeline_mode<synchronous>, transform_indices = @transform_4, window_bounds = array<i64: 32, 96>}, {pipeline_mode = #tpu.pipeline_mode<synchronous>, transform_indices = @transform_5, window_bounds = array<i64: 3, 3, 32>}, {pipeline_mode = #tpu.pipeline_mode<synchronous>, transform_indices = @transform_6, window_bounds = array<i64: 5, 5, 32>}, {pipeline_mode = #tpu.pipeline_mode<synchronous>, transform_indices = @transform_7, window_bounds = array<i64: 7, 7, 32>}, {pipeline_mode = #tpu.pipeline_mode<synchronous>, transform_indices = @transform_8, window_bounds = array<i64: 3, 32>}, {pipeline_mode = #tpu.pipeline_mode<synchronous>, transform_indices = @transform_9, window_bounds = array<i64: 32, 2>}, {pipeline_mode = #tpu.pipeline_mode<synchronous>, transform_indices = @transform_10, window_bounds = array<i64: 1, 2>}, {pipeline_mode = #tpu.pipeline_mode<synchronous>, transform_indices = @transform_11, window_bounds = array<i64: 2, 32>}, {pipeline_mode = #tpu.pipeline_mode<synchronous>, transform_indices = @transform_12, window_bounds = array<i64: 1, 32>}, {pipeline_mode = #tpu.pipeline_mode<synchronous>, transform_indices = @transform_13, window_bounds = array<i64: 32, 64>}, {pipeline_mode = #tpu.pipeline_mode<synchronous>, transform_indices = @transform_14, window_bounds = array<i64: 1, 64>}, {transform_indices = @transform_15, window_bounds = array<i64: 1, 8, 8, 64>}]} {
    %cst = arith.constant 0.000000e+00 : f32
    %0 = vector.broadcast %cst : f32 to vector<3x24x32xf32>
    %c0 = arith.constant 0 : index
    %c0_0 = arith.constant 0 : index
    %c0_1 = arith.constant 0 : index
    %1 = vector.load %arg17[%c0, %c0_0, %c0_1] : memref<14x24x32xf32, #tpu.memory_space<vmem>>, vector<3x24x32xf32>
    tpu.vector_store %arg17[%c0, %c0_0, %c0_1], %0 {strides = array<i32>} : memref<14x24x32xf32, #tpu.memory_space<vmem>>, vector<3x24x32xf32>,
    %c11 = arith.constant 11 : index
    %c0_2 = arith.constant 0 : index
    %c0_3 = arith.constant 0 : index
    %2 = vector.load %arg17[%c11, %c0_2, %c0_3] : memref<14x24x32xf32, #tpu.memory_space<vmem>>, vector<3x24x32xf32>
    tpu.vector_store %arg17[%c11, %c0_2, %c0_3], %0 {strides = array<i32>} : memref<14x24x32xf32, #tpu.memory_space<vmem>>, vector<3x24x32xf32>,
    %cst_4 = arith.constant 0.000000e+00 : f32
    %3 = vector.broadcast %cst_4 : f32 to vector<8x8x32xf32>
    %c3 = arith.constant 3 : index
    %c0_5 = arith.constant 0 : index
    %c0_6 = arith.constant 0 : index
    %4 = vector.load %arg17[%c3, %c0_5, %c0_6] : memref<14x24x32xf32, #tpu.memory_space<vmem>>, vector<8x8x32xf32>
    tpu.vector_store %arg17[%c3, %c0_5, %c0_6], %3 {strides = array<i32>} : memref<14x24x32xf32, #tpu.memory_space<vmem>>, vector<8x8x32xf32>,
    %c3_7 = arith.constant 3 : index
    %c16 = arith.constant 16 : index
    %c0_8 = arith.constant 0 : index
    %5 = vector.load %arg17[%c3_7, %c16, %c0_8] : memref<14x24x32xf32, #tpu.memory_space<vmem>>, vector<8x8x32xf32>
    tpu.vector_store %arg17[%c3_7, %c16, %c0_8], %3 {strides = array<i32>} : memref<14x24x32xf32, #tpu.memory_space<vmem>>, vector<8x8x32xf32>,
    %c0_9 = arith.constant 0 : index
    %c0_10 = arith.constant 0 : index
    %c0_11 = arith.constant 0 : index
    %c0_12 = arith.constant 0 : index
    %6 = vector.load %arg1[%c0_9, %c0_10, %c0_11, %c0_12] : memref<1x8x8x32xf32, #tpu.memory_space<vmem>>, vector<1x8x8x32xf32>
    %7 = vector.shape_cast %6 : vector<1x8x8x32xf32> to vector<8x8x32xf32>
    %8 = vector.shape_cast %7 : vector<8x8x32xf32> to vector<64x32xf32>
    %c0_13 = arith.constant 0 : index
    %c0_14 = arith.constant 0 : index
    %9 = vector.load %arg2[%c0_13, %c0_14] : memref<32x96xf32, #tpu.memory_space<vmem>>, vector<32x96xf32>
    %cst_15 = arith.constant dense<0.000000e+00> : vector<64x96xf32>
    %10 = tpu.matmul %8, %9, %cst_15 {dimension_numbers = #tpu.dot_dimension_numbers<[1], [0], [0], [1], [0, 0, 1, 1], [], []>} : vector<64x32xf32>, vector<32x96xf32>, vector<64x96xf32> -> vector<64x96xf32>
    %11 = vector.extract_strided_slice %10 {offsets = [0, 0], sizes = [64, 32], strides = [1, 1]} : vector<64x96xf32> to vector<64x32xf32>
    %c0_16 = arith.constant 0 : index
    %c0_17 = arith.constant 0 : index
    %12 = vector.load %arg3[%c0_16, %c0_17] : memref<1x32xf32, #tpu.memory_space<vmem>>, vector<1x32xf32>
    %13 = vector.broadcast %12 : vector<1x32xf32> to vector<64x32xf32>
    %14 = arith.addf %11, %13 : vector<64x32xf32>
    %cst_18 = arith.constant 0.000000e+00 : f32
    %15 = vector.broadcast %cst_18 : f32 to vector<64x32xf32>
    %16 = arith.maximumf %14, %15 : vector<64x32xf32>
    %17 = vector.extract_strided_slice %10 {offsets = [0, 32], sizes = [64, 64], strides = [1, 1]} : vector<64x96xf32> to vector<64x64xf32>
    %c0_19 = arith.constant 0 : index
    %c0_20 = arith.constant 0 : index
    %18 = vector.load %arg4[%c0_19, %c0_20] : memref<1x64xf32, #tpu.memory_space<vmem>>, vector<1x64xf32>
    %19 = vector.broadcast %18 : vector<1x64xf32> to vector<64x64xf32>
    %20 = arith.addf %17, %19 : vector<64x64xf32>
    %c0_21 = arith.constant 0 : index
    %c0_22 = arith.constant 0 : index
    %21 = vector.load %arg5[%c0_21, %c0_22] : memref<32x96xf32, #tpu.memory_space<vmem>>, vector<32x96xf32>
    %cst_23 = arith.constant dense<0.000000e+00> : vector<64x96xf32>
    %22 = tpu.matmul %16, %21, %cst_23 {dimension_numbers = #tpu.dot_dimension_numbers<[1], [0], [0], [1], [0, 0, 1, 1], [], []>} : vector<64x32xf32>, vector<32x96xf32>, vector<64x96xf32> -> vector<64x96xf32>
    %c0_24 = arith.constant 0 : index
    %c0_25 = arith.constant 0 : index
    %23 = vector.load %arg9[%c0_24, %c0_25] : memref<3x32xf32, #tpu.memory_space<vmem>>, vector<3x32xf32>
    %24 = vector.extract_strided_slice %22 {offsets = [0, 0], sizes = [64, 32], strides = [1, 1]} : vector<64x96xf32> to vector<64x32xf32>
    %c0_26 = arith.constant 0 : index
    %c0_27 = arith.constant 0 : index
    %c0_28 = arith.constant 0 : index
    %25 = vector.load %arg6[%c0_26, %c0_27, %c0_28] : memref<3x3x32xf32, #tpu.memory_space<vmem>>, vector<3x3x32xf32>
    %26 = vector.extract_strided_slice %23 {offsets = [0, 0], sizes = [1, 32], strides = [1, 1]} : vector<3x32xf32> to vector<1x32xf32>
    %27 = vector.shape_cast %24 : vector<64x32xf32> to vector<8x8x32xf32>
    %c3_29 = arith.constant 3 : index
    %c8 = arith.constant 8 : index
    %c0_30 = arith.constant 0 : index
    %28 = vector.load %arg17[%c3_29, %c8, %c0_30] : memref<14x24x32xf32, #tpu.memory_space<vmem>>, vector<8x8x32xf32>
    tpu.vector_store %arg17[%c3_29, %c8, %c0_30], %27 {strides = array<i32>} : memref<14x24x32xf32, #tpu.memory_space<vmem>>, vector<8x8x32xf32>,
    %c0_31 = arith.constant 0 : index
    %c0_32 = arith.constant 0 : index
    %c0_33 = arith.constant 0 : index
    %29 = vector.load %arg17[%c0_31, %c0_32, %c0_33] : memref<14x24x32xf32, #tpu.memory_space<vmem>>, vector<14x24x32xf32>
    %30 = vector.extract_strided_slice %29 {offsets = [0, 7, 0], sizes = [14, 8, 32], strides = [1, 1, 1]} : vector<14x24x32xf32> to vector<14x8x32xf32>
    %31 = vector.extract_strided_slice %30 {offsets = [2, 0, 0], sizes = [8, 8, 32], strides = [1, 1, 1]} : vector<14x8x32xf32> to vector<8x8x32xf32>
    %32 = vector.extract_strided_slice %25 {offsets = [0, 0, 0], sizes = [1, 1, 32], strides = [1, 1, 1]} : vector<3x3x32xf32> to vector<1x1x32xf32>
    %33 = vector.shape_cast %32 : vector<1x1x32xf32> to vector<32xf32>
    %34 = vector.shape_cast %33 : vector<32xf32> to vector<1x1x32xf32>
    %35 = vector.broadcast %34 : vector<1x1x32xf32> to vector<8x8x32xf32>
    %36 = arith.mulf %31, %35 : vector<8x8x32xf32>
    %37 = vector.extract_strided_slice %30 {offsets = [3, 0, 0], sizes = [8, 8, 32], strides = [1, 1, 1]} : vector<14x8x32xf32> to vector<8x8x32xf32>
    %38 = vector.extract_strided_slice %25 {offsets = [1, 0, 0], sizes = [1, 1, 32], strides = [1, 1, 1]} : vector<3x3x32xf32> to vector<1x1x32xf32>
    %39 = vector.shape_cast %38 : vector<1x1x32xf32> to vector<32xf32>
    %40 = vector.shape_cast %39 : vector<32xf32> to vector<1x1x32xf32>
    %41 = vector.broadcast %40 : vector<1x1x32xf32> to vector<8x8x32xf32>
    %42 = arith.mulf %37, %41 : vector<8x8x32xf32>
    %43 = arith.addf %36, %42 : vector<8x8x32xf32>
    %44 = vector.extract_strided_slice %30 {offsets = [4, 0, 0], sizes = [8, 8, 32], strides = [1, 1, 1]} : vector<14x8x32xf32> to vector<8x8x32xf32>
    %45 = vector.extract_strided_slice %25 {offsets = [2, 0, 0], sizes = [1, 1, 32], strides = [1, 1, 1]} : vector<3x3x32xf32> to vector<1x1x32xf32>
    %46 = vector.shape_cast %45 : vector<1x1x32xf32> to vector<32xf32>
    %47 = vector.shape_cast %46 : vector<32xf32> to vector<1x1x32xf32>
    %48 = vector.broadcast %47 : vector<1x1x32xf32> to vector<8x8x32xf32>
    %49 = arith.mulf %44, %48 : vector<8x8x32xf32>
    %50 = arith.addf %43, %49 : vector<8x8x32xf32>
    %51 = vector.extract_strided_slice %29 {offsets = [0, 8, 0], sizes = [14, 8, 32], strides = [1, 1, 1]} : vector<14x24x32xf32> to vector<14x8x32xf32>
    %52 = vector.extract_strided_slice %51 {offsets = [2, 0, 0], sizes = [8, 8, 32], strides = [1, 1, 1]} : vector<14x8x32xf32> to vector<8x8x32xf32>
    %53 = vector.extract_strided_slice %25 {offsets = [0, 1, 0], sizes = [1, 1, 32], strides = [1, 1, 1]} : vector<3x3x32xf32> to vector<1x1x32xf32>
    %54 = vector.shape_cast %53 : vector<1x1x32xf32> to vector<32xf32>
    %55 = vector.shape_cast %54 : vector<32xf32> to vector<1x1x32xf32>
    %56 = vector.broadcast %55 : vector<1x1x32xf32> to vector<8x8x32xf32>
    %57 = arith.mulf %52, %56 : vector<8x8x32xf32>
    %58 = arith.addf %50, %57 : vector<8x8x32xf32>
    %59 = vector.extract_strided_slice %51 {offsets = [3, 0, 0], sizes = [8, 8, 32], strides = [1, 1, 1]} : vector<14x8x32xf32> to vector<8x8x32xf32>
    %60 = vector.extract_strided_slice %25 {offsets = [1, 1, 0], sizes = [1, 1, 32], strides = [1, 1, 1]} : vector<3x3x32xf32> to vector<1x1x32xf32>
    %61 = vector.shape_cast %60 : vector<1x1x32xf32> to vector<32xf32>
    %62 = vector.shape_cast %61 : vector<32xf32> to vector<1x1x32xf32>
    %63 = vector.broadcast %62 : vector<1x1x32xf32> to vector<8x8x32xf32>
    %64 = arith.mulf %59, %63 : vector<8x8x32xf32>
    %65 = arith.addf %58, %64 : vector<8x8x32xf32>
    %66 = vector.extract_strided_slice %51 {offsets = [4, 0, 0], sizes = [8, 8, 32], strides = [1, 1, 1]} : vector<14x8x32xf32> to vector<8x8x32xf32>
    %67 = vector.extract_strided_slice %25 {offsets = [2, 1, 0], sizes = [1, 1, 32], strides = [1, 1, 1]} : vector<3x3x32xf32> to vector<1x1x32xf32>
    %68 = vector.shape_cast %67 : vector<1x1x32xf32> to vector<32xf32>
    %69 = vector.shape_cast %68 : vector<32xf32> to vector<1x1x32xf32>
    %70 = vector.broadcast %69 : vector<1x1x32xf32> to vector<8x8x32xf32>
    %71 = arith.mulf %66, %70 : vector<8x8x32xf32>
    %72 = arith.addf %65, %71 : vector<8x8x32xf32>
    %73 = vector.extract_strided_slice %29 {offsets = [0, 9, 0], sizes = [14, 8, 32], strides = [1, 1, 1]} : vector<14x24x32xf32> to vector<14x8x32xf32>
    %74 = vector.extract_strided_slice %73 {offsets = [2, 0, 0], sizes = [8, 8, 32], strides = [1, 1, 1]} : vector<14x8x32xf32> to vector<8x8x32xf32>
    %75 = vector.extract_strided_slice %25 {offsets = [0, 2, 0], sizes = [1, 1, 32], strides = [1, 1, 1]} : vector<3x3x32xf32> to vector<1x1x32xf32>
    %76 = vector.shape_cast %75 : vector<1x1x32xf32> to vector<32xf32>
    %77 = vector.shape_cast %76 : vector<32xf32> to vector<1x1x32xf32>
    %78 = vector.broadcast %77 : vector<1x1x32xf32> to vector<8x8x32xf32>
    %79 = arith.mulf %74, %78 : vector<8x8x32xf32>
    %80 = arith.addf %72, %79 : vector<8x8x32xf32>
    %81 = vector.extract_strided_slice %73 {offsets = [3, 0, 0], sizes = [8, 8, 32], strides = [1, 1, 1]} : vector<14x8x32xf32> to vector<8x8x32xf32>
    %82 = vector.extract_strided_slice %25 {offsets = [1, 2, 0], sizes = [1, 1, 32], strides = [1, 1, 1]} : vector<3x3x32xf32> to vector<1x1x32xf32>
    %83 = vector.shape_cast %82 : vector<1x1x32xf32> to vector<32xf32>
    %84 = vector.shape_cast %83 : vector<32xf32> to vector<1x1x32xf32>
    %85 = vector.broadcast %84 : vector<1x1x32xf32> to vector<8x8x32xf32>
    %86 = arith.mulf %81, %85 : vector<8x8x32xf32>
    %87 = arith.addf %80, %86 : vector<8x8x32xf32>
    %88 = vector.extract_strided_slice %73 {offsets = [4, 0, 0], sizes = [8, 8, 32], strides = [1, 1, 1]} : vector<14x8x32xf32> to vector<8x8x32xf32>
    %89 = vector.extract_strided_slice %25 {offsets = [2, 2, 0], sizes = [1, 1, 32], strides = [1, 1, 1]} : vector<3x3x32xf32> to vector<1x1x32xf32>
    %90 = vector.shape_cast %89 : vector<1x1x32xf32> to vector<32xf32>
    %91 = vector.shape_cast %90 : vector<32xf32> to vector<1x1x32xf32>
    %92 = vector.broadcast %91 : vector<1x1x32xf32> to vector<8x8x32xf32>
    %93 = arith.mulf %88, %92 : vector<8x8x32xf32>
    %94 = arith.addf %87, %93 : vector<8x8x32xf32>
    %95 = vector.shape_cast %94 : vector<8x8x32xf32> to vector<64x32xf32>
    %96 = vector.broadcast %26 : vector<1x32xf32> to vector<64x32xf32>
    %97 = arith.addf %95, %96 : vector<64x32xf32>
    %cst_34 = arith.constant 3.000000e+00 : f32
    %98 = vector.broadcast %cst_34 : f32 to vector<64x32xf32>
    %99 = arith.addf %97, %98 : vector<64x32xf32>
    %cst_35 = arith.constant 0.000000e+00 : f32
    %cst_36 = arith.constant 6.000000e+00 : f32
    %100 = vector.broadcast %cst_35 : f32 to vector<64x32xf32>
    %101 = arith.maximumf %100, %99 : vector<64x32xf32>
    %102 = vector.broadcast %cst_36 : f32 to vector<64x32xf32>
    %103 = arith.minimumf %102, %101 : vector<64x32xf32>
    %104 = arith.mulf %97, %103 : vector<64x32xf32>
    %cst_37 = arith.constant 0.166666672 : f32
    %105 = vector.broadcast %cst_37 : f32 to vector<64x32xf32>
    %106 = arith.mulf %104, %105 : vector<64x32xf32>
    %107 = vector.extract_strided_slice %22 {offsets = [0, 32], sizes = [64, 32], strides = [1, 1]} : vector<64x96xf32> to vector<64x32xf32>
    %c0_38 = arith.constant 0 : index
    %c0_39 = arith.constant 0 : index
    %c0_40 = arith.constant 0 : index
    %108 = vector.load %arg7[%c0_38, %c0_39, %c0_40] : memref<5x5x32xf32, #tpu.memory_space<vmem>>, vector<5x5x32xf32>
    %109 = vector.extract_strided_slice %23 {offsets = [1, 0], sizes = [1, 32], strides = [1, 1]} : vector<3x32xf32> to vector<1x32xf32>
    %110 = vector.shape_cast %107 : vector<64x32xf32> to vector<8x8x32xf32>
    %c3_41 = arith.constant 3 : index
    %c8_42 = arith.constant 8 : index
    %c0_43 = arith.constant 0 : index
    %111 = vector.load %arg17[%c3_41, %c8_42, %c0_43] : memref<14x24x32xf32, #tpu.memory_space<vmem>>, vector<8x8x32xf32>
    tpu.vector_store %arg17[%c3_41, %c8_42, %c0_43], %110 {strides = array<i32>} : memref<14x24x32xf32, #tpu.memory_space<vmem>>, vector<8x8x32xf32>,
    %c0_44 = arith.constant 0 : index
    %c0_45 = arith.constant 0 : index
    %c0_46 = arith.constant 0 : index
    %112 = vector.load %arg17[%c0_44, %c0_45, %c0_46] : memref<14x24x32xf32, #tpu.memory_space<vmem>>, vector<14x24x32xf32>
    %113 = vector.extract_strided_slice %112 {offsets = [0, 6, 0], sizes = [14, 8, 32], strides = [1, 1, 1]} : vector<14x24x32xf32> to vector<14x8x32xf32>
    %114 = vector.extract_strided_slice %113 {offsets = [1, 0, 0], sizes = [8, 8, 32], strides = [1, 1, 1]} : vector<14x8x32xf32> to vector<8x8x32xf32>
    %115 = vector.extract_strided_slice %108 {offsets = [0, 0, 0], sizes = [1, 1, 32], strides = [1, 1, 1]} : vector<5x5x32xf32> to vector<1x1x32xf32>
    %116 = vector.shape_cast %115 : vector<1x1x32xf32> to vector<32xf32>
    %117 = vector.shape_cast %116 : vector<32xf32> to vector<1x1x32xf32>
    %118 = vector.broadcast %117 : vector<1x1x32xf32> to vector<8x8x32xf32>
    %119 = arith.mulf %114, %118 : vector<8x8x32xf32>
    %120 = vector.extract_strided_slice %113 {offsets = [2, 0, 0], sizes = [8, 8, 32], strides = [1, 1, 1]} : vector<14x8x32xf32> to vector<8x8x32xf32>
    %121 = vector.extract_strided_slice %108 {offsets = [1, 0, 0], sizes = [1, 1, 32], strides = [1, 1, 1]} : vector<5x5x32xf32> to vector<1x1x32xf32>
    %122 = vector.shape_cast %121 : vector<1x1x32xf32> to vector<32xf32>
    %123 = vector.shape_cast %122 : vector<32xf32> to vector<1x1x32xf32>
    %124 = vector.broadcast %123 : vector<1x1x32xf32> to vector<8x8x32xf32>
    %125 = arith.mulf %120, %124 : vector<8x8x32xf32>
    %126 = arith.addf %119, %125 : vector<8x8x32xf32>
    %127 = vector.extract_strided_slice %113 {offsets = [3, 0, 0], sizes = [8, 8, 32], strides = [1, 1, 1]} : vector<14x8x32xf32> to vector<8x8x32xf32>
    %128 = vector.extract_strided_slice %108 {offsets = [2, 0, 0], sizes = [1, 1, 32], strides = [1, 1, 1]} : vector<5x5x32xf32> to vector<1x1x32xf32>
    %129 = vector.shape_cast %128 : vector<1x1x32xf32> to vector<32xf32>
    %130 = vector.shape_cast %129 : vector<32xf32> to vector<1x1x32xf32>
    %131 = vector.broadcast %130 : vector<1x1x32xf32> to vector<8x8x32xf32>
    %132 = arith.mulf %127, %131 : vector<8x8x32xf32>
    %133 = arith.addf %126, %132 : vector<8x8x32xf32>
    %134 = vector.extract_strided_slice %113 {offsets = [4, 0, 0], sizes = [8, 8, 32], strides = [1, 1, 1]} : vector<14x8x32xf32> to vector<8x8x32xf32>
    %135 = vector.extract_strided_slice %108 {offsets = [3, 0, 0], sizes = [1, 1, 32], strides = [1, 1, 1]} : vector<5x5x32xf32> to vector<1x1x32xf32>
    %136 = vector.shape_cast %135 : vector<1x1x32xf32> to vector<32xf32>
    %137 = vector.shape_cast %136 : vector<32xf32> to vector<1x1x32xf32>
    %138 = vector.broadcast %137 : vector<1x1x32xf32> to vector<8x8x32xf32>
    %139 = arith.mulf %134, %138 : vector<8x8x32xf32>
    %140 = arith.addf %133, %139 : vector<8x8x32xf32>
    %141 = vector.extract_strided_slice %113 {offsets = [5, 0, 0], sizes = [8, 8, 32], strides = [1, 1, 1]} : vector<14x8x32xf32> to vector<8x8x32xf32>
    %142 = vector.extract_strided_slice %108 {offsets = [4, 0, 0], sizes = [1, 1, 32], strides = [1, 1, 1]} : vector<5x5x32xf32> to vector<1x1x32xf32>
    %143 = vector.shape_cast %142 : vector<1x1x32xf32> to vector<32xf32>
    %144 = vector.shape_cast %143 : vector<32xf32> to vector<1x1x32xf32>
    %145 = vector.broadcast %144 : vector<1x1x32xf32> to vector<8x8x32xf32>
    %146 = arith.mulf %141, %145 : vector<8x8x32xf32>
    %147 = arith.addf %140, %146 : vector<8x8x32xf32>
    %148 = vector.extract_strided_slice %112 {offsets = [0, 7, 0], sizes = [14, 8, 32], strides = [1, 1, 1]} : vector<14x24x32xf32> to vector<14x8x32xf32>
    %149 = vector.extract_strided_slice %148 {offsets = [1, 0, 0], sizes = [8, 8, 32], strides = [1, 1, 1]} : vector<14x8x32xf32> to vector<8x8x32xf32>
    %150 = vector.extract_strided_slice %108 {offsets = [0, 1, 0], sizes = [1, 1, 32], strides = [1, 1, 1]} : vector<5x5x32xf32> to vector<1x1x32xf32>
    %151 = vector.shape_cast %150 : vector<1x1x32xf32> to vector<32xf32>
    %152 = vector.shape_cast %151 : vector<32xf32> to vector<1x1x32xf32>
    %153 = vector.broadcast %152 : vector<1x1x32xf32> to vector<8x8x32xf32>
    %154 = arith.mulf %149, %153 : vector<8x8x32xf32>
    %155 = arith.addf %147, %154 : vector<8x8x32xf32>
    %156 = vector.extract_strided_slice %148 {offsets = [2, 0, 0], sizes = [8, 8, 32], strides = [1, 1, 1]} : vector<14x8x32xf32> to vector<8x8x32xf32>
    %157 = vector.extract_strided_slice %108 {offsets = [1, 1, 0], sizes = [1, 1, 32], strides = [1, 1, 1]} : vector<5x5x32xf32> to vector<1x1x32xf32>
    %158 = vector.shape_cast %157 : vector<1x1x32xf32> to vector<32xf32>
    %159 = vector.shape_cast %158 : vector<32xf32> to vector<1x1x32xf32>
    %160 = vector.broadcast %159 : vector<1x1x32xf32> to vector<8x8x32xf32>
    %161 = arith.mulf %156, %160 : vector<8x8x32xf32>
    %162 = arith.addf %155, %161 : vector<8x8x32xf32>
    %163 = vector.extract_strided_slice %148 {offsets = [3, 0, 0], sizes = [8, 8, 32], strides = [1, 1, 1]} : vector<14x8x32xf32> to vector<8x8x32xf32>
    %164 = vector.extract_strided_slice %108 {offsets = [2, 1, 0], sizes = [1, 1, 32], strides = [1, 1, 1]} : vector<5x5x32xf32> to vector<1x1x32xf32>
    %165 = vector.shape_cast %164 : vector<1x1x32xf32> to vector<32xf32>
    %166 = vector.shape_cast %165 : vector<32xf32> to vector<1x1x32xf32>
    %167 = vector.broadcast %166 : vector<1x1x32xf32> to vector<8x8x32xf32>
    %168 = arith.mulf %163, %167 : vector<8x8x32xf32>
    %169 = arith.addf %162, %168 : vector<8x8x32xf32>
    %170 = vector.extract_strided_slice %148 {offsets = [4, 0, 0], sizes = [8, 8, 32], strides = [1, 1, 1]} : vector<14x8x32xf32> to vector<8x8x32xf32>
    %171 = vector.extract_strided_slice %108 {offsets = [3, 1, 0], sizes = [1, 1, 32], strides = [1, 1, 1]} : vector<5x5x32xf32> to vector<1x1x32xf32>
    %172 = vector.shape_cast %171 : vector<1x1x32xf32> to vector<32xf32>
    %173 = vector.shape_cast %172 : vector<32xf32> to vector<1x1x32xf32>
    %174 = vector.broadcast %173 : vector<1x1x32xf32> to vector<8x8x32xf32>
    %175 = arith.mulf %170, %174 : vector<8x8x32xf32>
    %176 = arith.addf %169, %175 : vector<8x8x32xf32>
    %177 = vector.extract_strided_slice %148 {offsets = [5, 0, 0], sizes = [8, 8, 32], strides = [1, 1, 1]} : vector<14x8x32xf32> to vector<8x8x32xf32>
    %178 = vector.extract_strided_slice %108 {offsets = [4, 1, 0], sizes = [1, 1, 32], strides = [1, 1, 1]} : vector<5x5x32xf32> to vector<1x1x32xf32>
    %179 = vector.shape_cast %178 : vector<1x1x32xf32> to vector<32xf32>
    %180 = vector.shape_cast %179 : vector<32xf32> to vector<1x1x32xf32>
    %181 = vector.broadcast %180 : vector<1x1x32xf32> to vector<8x8x32xf32>
    %182 = arith.mulf %177, %181 : vector<8x8x32xf32>
    %183 = arith.addf %176, %182 : vector<8x8x32xf32>
    %184 = vector.extract_strided_slice %112 {offsets = [0, 8, 0], sizes = [14, 8, 32], strides = [1, 1, 1]} : vector<14x24x32xf32> to vector<14x8x32xf32>
    %185 = vector.extract_strided_slice %184 {offsets = [1, 0, 0], sizes = [8, 8, 32], strides = [1, 1, 1]} : vector<14x8x32xf32> to vector<8x8x32xf32>
    %186 = vector.extract_strided_slice %108 {offsets = [0, 2, 0], sizes = [1, 1, 32], strides = [1, 1, 1]} : vector<5x5x32xf32> to vector<1x1x32xf32>
    %187 = vector.shape_cast %186 : vector<1x1x32xf32> to vector<32xf32>
    %188 = vector.shape_cast %187 : vector<32xf32> to vector<1x1x32xf32>
    %189 = vector.broadcast %188 : vector<1x1x32xf32> to vector<8x8x32xf32>
    %190 = arith.mulf %185, %189 : vector<8x8x32xf32>
    %191 = arith.addf %183, %190 : vector<8x8x32xf32>
    %192 = vector.extract_strided_slice %184 {offsets = [2, 0, 0], sizes = [8, 8, 32], strides = [1, 1, 1]} : vector<14x8x32xf32> to vector<8x8x32xf32>
    %193 = vector.extract_strided_slice %108 {offsets = [1, 2, 0], sizes = [1, 1, 32], strides = [1, 1, 1]} : vector<5x5x32xf32> to vector<1x1x32xf32>
    %194 = vector.shape_cast %193 : vector<1x1x32xf32> to vector<32xf32>
    %195 = vector.shape_cast %194 : vector<32xf32> to vector<1x1x32xf32>
    %196 = vector.broadcast %195 : vector<1x1x32xf32> to vector<8x8x32xf32>
    %197 = arith.mulf %192, %196 : vector<8x8x32xf32>
    %198 = arith.addf %191, %197 : vector<8x8x32xf32>
    %199 = vector.extract_strided_slice %184 {offsets = [3, 0, 0], sizes = [8, 8, 32], strides = [1, 1, 1]} : vector<14x8x32xf32> to vector<8x8x32xf32>
    %200 = vector.extract_strided_slice %108 {offsets = [2, 2, 0], sizes = [1, 1, 32], strides = [1, 1, 1]} : vector<5x5x32xf32> to vector<1x1x32xf32>
    %201 = vector.shape_cast %200 : vector<1x1x32xf32> to vector<32xf32>
    %202 = vector.shape_cast %201 : vector<32xf32> to vector<1x1x32xf32>
    %203 = vector.broadcast %202 : vector<1x1x32xf32> to vector<8x8x32xf32>
    %204 = arith.mulf %199, %203 : vector<8x8x32xf32>
    %205 = arith.addf %198, %204 : vector<8x8x32xf32>
    %206 = vector.extract_strided_slice %184 {offsets = [4, 0, 0], sizes = [8, 8, 32], strides = [1, 1, 1]} : vector<14x8x32xf32> to vector<8x8x32xf32>
    %207 = vector.extract_strided_slice %108 {offsets = [3, 2, 0], sizes = [1, 1, 32], strides = [1, 1, 1]} : vector<5x5x32xf32> to vector<1x1x32xf32>
    %208 = vector.shape_cast %207 : vector<1x1x32xf32> to vector<32xf32>
    %209 = vector.shape_cast %208 : vector<32xf32> to vector<1x1x32xf32>
    %210 = vector.broadcast %209 : vector<1x1x32xf32> to vector<8x8x32xf32>
    %211 = arith.mulf %206, %210 : vector<8x8x32xf32>
    %212 = arith.addf %205, %211 : vector<8x8x32xf32>
    %213 = vector.extract_strided_slice %184 {offsets = [5, 0, 0], sizes = [8, 8, 32], strides = [1, 1, 1]} : vector<14x8x32xf32> to vector<8x8x32xf32>
    %214 = vector.extract_strided_slice %108 {offsets = [4, 2, 0], sizes = [1, 1, 32], strides = [1, 1, 1]} : vector<5x5x32xf32> to vector<1x1x32xf32>
    %215 = vector.shape_cast %214 : vector<1x1x32xf32> to vector<32xf32>
    %216 = vector.shape_cast %215 : vector<32xf32> to vector<1x1x32xf32>
    %217 = vector.broadcast %216 : vector<1x1x32xf32> to vector<8x8x32xf32>
    %218 = arith.mulf %213, %217 : vector<8x8x32xf32>
    %219 = arith.addf %212, %218 : vector<8x8x32xf32>
    %220 = vector.extract_strided_slice %112 {offsets = [0, 9, 0], sizes = [14, 8, 32], strides = [1, 1, 1]} : vector<14x24x32xf32> to vector<14x8x32xf32>
    %221 = vector.extract_strided_slice %220 {offsets = [1, 0, 0], sizes = [8, 8, 32], strides = [1, 1, 1]} : vector<14x8x32xf32> to vector<8x8x32xf32>
    %222 = vector.extract_strided_slice %108 {offsets = [0, 3, 0], sizes = [1, 1, 32], strides = [1, 1, 1]} : vector<5x5x32xf32> to vector<1x1x32xf32>
    %223 = vector.shape_cast %222 : vector<1x1x32xf32> to vector<32xf32>
    %224 = vector.shape_cast %223 : vector<32xf32> to vector<1x1x32xf32>
    %225 = vector.broadcast %224 : vector<1x1x32xf32> to vector<8x8x32xf32>
    %226 = arith.mulf %221, %225 : vector<8x8x32xf32>
    %227 = arith.addf %219, %226 : vector<8x8x32xf32>
    %228 = vector.extract_strided_slice %220 {offsets = [2, 0, 0], sizes = [8, 8, 32], strides = [1, 1, 1]} : vector<14x8x32xf32> to vector<8x8x32xf32>
    %229 = vector.extract_strided_slice %108 {offsets = [1, 3, 0], sizes = [1, 1, 32], strides = [1, 1, 1]} : vector<5x5x32xf32> to vector<1x1x32xf32>
    %230 = vector.shape_cast %229 : vector<1x1x32xf32> to vector<32xf32>
    %231 = vector.shape_cast %230 : vector<32xf32> to vector<1x1x32xf32>
    %232 = vector.broadcast %231 : vector<1x1x32xf32> to vector<8x8x32xf32>
    %233 = arith.mulf %228, %232 : vector<8x8x32xf32>
    %234 = arith.addf %227, %233 : vector<8x8x32xf32>
    %235 = vector.extract_strided_slice %220 {offsets = [3, 0, 0], sizes = [8, 8, 32], strides = [1, 1, 1]} : vector<14x8x32xf32> to vector<8x8x32xf32>
    %236 = vector.extract_strided_slice %108 {offsets = [2, 3, 0], sizes = [1, 1, 32], strides = [1, 1, 1]} : vector<5x5x32xf32> to vector<1x1x32xf32>
    %237 = vector.shape_cast %236 : vector<1x1x32xf32> to vector<32xf32>
    %238 = vector.shape_cast %237 : vector<32xf32> to vector<1x1x32xf32>
    %239 = vector.broadcast %238 : vector<1x1x32xf32> to vector<8x8x32xf32>
    %240 = arith.mulf %235, %239 : vector<8x8x32xf32>
    %241 = arith.addf %234, %240 : vector<8x8x32xf32>
    %242 = vector.extract_strided_slice %220 {offsets = [4, 0, 0], sizes = [8, 8, 32], strides = [1, 1, 1]} : vector<14x8x32xf32> to vector<8x8x32xf32>
    %243 = vector.extract_strided_slice %108 {offsets = [3, 3, 0], sizes = [1, 1, 32], strides = [1, 1, 1]} : vector<5x5x32xf32> to vector<1x1x32xf32>
    %244 = vector.shape_cast %243 : vector<1x1x32xf32> to vector<32xf32>
    %245 = vector.shape_cast %244 : vector<32xf32> to vector<1x1x32xf32>
    %246 = vector.broadcast %245 : vector<1x1x32xf32> to vector<8x8x32xf32>
    %247 = arith.mulf %242, %246 : vector<8x8x32xf32>
    %248 = arith.addf %241, %247 : vector<8x8x32xf32>
    %249 = vector.extract_strided_slice %220 {offsets = [5, 0, 0], sizes = [8, 8, 32], strides = [1, 1, 1]} : vector<14x8x32xf32> to vector<8x8x32xf32>
    %250 = vector.extract_strided_slice %108 {offsets = [4, 3, 0], sizes = [1, 1, 32], strides = [1, 1, 1]} : vector<5x5x32xf32> to vector<1x1x32xf32>
    %251 = vector.shape_cast %250 : vector<1x1x32xf32> to vector<32xf32>
    %252 = vector.shape_cast %251 : vector<32xf32> to vector<1x1x32xf32>
    %253 = vector.broadcast %252 : vector<1x1x32xf32> to vector<8x8x32xf32>
    %254 = arith.mulf %249, %253 : vector<8x8x32xf32>
    %255 = arith.addf %248, %254 : vector<8x8x32xf32>
    %256 = vector.extract_strided_slice %112 {offsets = [0, 10, 0], sizes = [14, 8, 32], strides = [1, 1, 1]} : vector<14x24x32xf32> to vector<14x8x32xf32>
    %257 = vector.extract_strided_slice %256 {offsets = [1, 0, 0], sizes = [8, 8, 32], strides = [1, 1, 1]} : vector<14x8x32xf32> to vector<8x8x32xf32>
    %258 = vector.extract_strided_slice %108 {offsets = [0, 4, 0], sizes = [1, 1, 32], strides = [1, 1, 1]} : vector<5x5x32xf32> to vector<1x1x32xf32>
    %259 = vector.shape_cast %258 : vector<1x1x32xf32> to vector<32xf32>
    %260 = vector.shape_cast %259 : vector<32xf32> to vector<1x1x32xf32>
    %261 = vector.broadcast %260 : vector<1x1x32xf32> to vector<8x8x32xf32>
    %262 = arith.mulf %257, %261 : vector<8x8x32xf32>
    %263 = arith.addf %255, %262 : vector<8x8x32xf32>
    %264 = vector.extract_strided_slice %256 {offsets = [2, 0, 0], sizes = [8, 8, 32], strides = [1, 1, 1]} : vector<14x8x32xf32> to vector<8x8x32xf32>
    %265 = vector.extract_strided_slice %108 {offsets = [1, 4, 0], sizes = [1, 1, 32], strides = [1, 1, 1]} : vector<5x5x32xf32> to vector<1x1x32xf32>
    %266 = vector.shape_cast %265 : vector<1x1x32xf32> to vector<32xf32>
    %267 = vector.shape_cast %266 : vector<32xf32> to vector<1x1x32xf32>
    %268 = vector.broadcast %267 : vector<1x1x32xf32> to vector<8x8x32xf32>
    %269 = arith.mulf %264, %268 : vector<8x8x32xf32>
    %270 = arith.addf %263, %269 : vector<8x8x32xf32>
    %271 = vector.extract_strided_slice %256 {offsets = [3, 0, 0], sizes = [8, 8, 32], strides = [1, 1, 1]} : vector<14x8x32xf32> to vector<8x8x32xf32>
    %272 = vector.extract_strided_slice %108 {offsets = [2, 4, 0], sizes = [1, 1, 32], strides = [1, 1, 1]} : vector<5x5x32xf32> to vector<1x1x32xf32>
    %273 = vector.shape_cast %272 : vector<1x1x32xf32> to vector<32xf32>
    %274 = vector.shape_cast %273 : vector<32xf32> to vector<1x1x32xf32>
    %275 = vector.broadcast %274 : vector<1x1x32xf32> to vector<8x8x32xf32>
    %276 = arith.mulf %271, %275 : vector<8x8x32xf32>
    %277 = arith.addf %270, %276 : vector<8x8x32xf32>
    %278 = vector.extract_strided_slice %256 {offsets = [4, 0, 0], sizes = [8, 8, 32], strides = [1, 1, 1]} : vector<14x8x32xf32> to vector<8x8x32xf32>
    %279 = vector.extract_strided_slice %108 {offsets = [3, 4, 0], sizes = [1, 1, 32], strides = [1, 1, 1]} : vector<5x5x32xf32> to vector<1x1x32xf32>
    %280 = vector.shape_cast %279 : vector<1x1x32xf32> to vector<32xf32>
    %281 = vector.shape_cast %280 : vector<32xf32> to vector<1x1x32xf32>
    %282 = vector.broadcast %281 : vector<1x1x32xf32> to vector<8x8x32xf32>
    %283 = arith.mulf %278, %282 : vector<8x8x32xf32>
    %284 = arith.addf %277, %283 : vector<8x8x32xf32>
    %285 = vector.extract_strided_slice %256 {offsets = [5, 0, 0], sizes = [8, 8, 32], strides = [1, 1, 1]} : vector<14x8x32xf32> to vector<8x8x32xf32>
    %286 = vector.extract_strided_slice %108 {offsets = [4, 4, 0], sizes = [1, 1, 32], strides = [1, 1, 1]} : vector<5x5x32xf32> to vector<1x1x32xf32>
    %287 = vector.shape_cast %286 : vector<1x1x32xf32> to vector<32xf32>
    %288 = vector.shape_cast %287 : vector<32xf32> to vector<1x1x32xf32>
    %289 = vector.broadcast %288 : vector<1x1x32xf32> to vector<8x8x32xf32>
    %290 = arith.mulf %285, %289 : vector<8x8x32xf32>
    %291 = arith.addf %284, %290 : vector<8x8x32xf32>
    %292 = vector.shape_cast %291 : vector<8x8x32xf32> to vector<64x32xf32>
    %293 = vector.broadcast %109 : vector<1x32xf32> to vector<64x32xf32>
    %294 = arith.addf %292, %293 : vector<64x32xf32>
    %cst_47 = arith.constant 3.000000e+00 : f32
    %295 = vector.broadcast %cst_47 : f32 to vector<64x32xf32>
    %296 = arith.addf %294, %295 : vector<64x32xf32>
    %cst_48 = arith.constant 0.000000e+00 : f32
    %cst_49 = arith.constant 6.000000e+00 : f32
    %297 = vector.broadcast %cst_48 : f32 to vector<64x32xf32>
    %298 = arith.maximumf %297, %296 : vector<64x32xf32>
    %299 = vector.broadcast %cst_49 : f32 to vector<64x32xf32>
    %300 = arith.minimumf %299, %298 : vector<64x32xf32>
    %301 = arith.mulf %294, %300 : vector<64x32xf32>
    %cst_50 = arith.constant 0.166666672 : f32
    %302 = vector.broadcast %cst_50 : f32 to vector<64x32xf32>
    %303 = arith.mulf %301, %302 : vector<64x32xf32>
    %304 = vector.extract_strided_slice %22 {offsets = [0, 64], sizes = [64, 32], strides = [1, 1]} : vector<64x96xf32> to vector<64x32xf32>
    %c0_51 = arith.constant 0 : index
    %c0_52 = arith.constant 0 : index
    %c0_53 = arith.constant 0 : index
    %305 = vector.load %arg8[%c0_51, %c0_52, %c0_53] : memref<7x7x32xf32, #tpu.memory_space<vmem>>, vector<7x7x32xf32>
    %306 = vector.extract_strided_slice %23 {offsets = [2, 0], sizes = [1, 32], strides = [1, 1]} : vector<3x32xf32> to vector<1x32xf32>
    %307 = vector.shape_cast %304 : vector<64x32xf32> to vector<8x8x32xf32>
    %c3_54 = arith.constant 3 : index
    %c8_55 = arith.constant 8 : index
    %c0_56 = arith.constant 0 : index
    %308 = vector.load %arg17[%c3_54, %c8_55, %c0_56] : memref<14x24x32xf32, #tpu.memory_space<vmem>>, vector<8x8x32xf32>
    tpu.vector_store %arg17[%c3_54, %c8_55, %c0_56], %307 {strides = array<i32>} : memref<14x24x32xf32, #tpu.memory_space<vmem>>, vector<8x8x32xf32>,
    %c0_57 = arith.constant 0 : index
    %c0_58 = arith.constant 0 : index
    %c0_59 = arith.constant 0 : index
    %309 = vector.load %arg17[%c0_57, %c0_58, %c0_59] : memref<14x24x32xf32, #tpu.memory_space<vmem>>, vector<14x24x32xf32>
    %310 = vector.extract_strided_slice %309 {offsets = [0, 5, 0], sizes = [14, 8, 32], strides = [1, 1, 1]} : vector<14x24x32xf32> to vector<14x8x32xf32>
    %311 = vector.extract_strided_slice %310 {offsets = [0, 0, 0], sizes = [8, 8, 32], strides = [1, 1, 1]} : vector<14x8x32xf32> to vector<8x8x32xf32>
    %312 = vector.extract_strided_slice %305 {offsets = [0, 0, 0], sizes = [1, 1, 32], strides = [1, 1, 1]} : vector<7x7x32xf32> to vector<1x1x32xf32>
    %313 = vector.shape_cast %312 : vector<1x1x32xf32> to vector<32xf32>
    %314 = vector.shape_cast %313 : vector<32xf32> to vector<1x1x32xf32>
    %315 = vector.broadcast %314 : vector<1x1x32xf32> to vector<8x8x32xf32>
    %316 = arith.mulf %311, %315 : vector<8x8x32xf32>
    %317 = vector.extract_strided_slice %310 {offsets = [1, 0, 0], sizes = [8, 8, 32], strides = [1, 1, 1]} : vector<14x8x32xf32> to vector<8x8x32xf32>
    %318 = vector.extract_strided_slice %305 {offsets = [1, 0, 0], sizes = [1, 1, 32], strides = [1, 1, 1]} : vector<7x7x32xf32> to vector<1x1x32xf32>
    %319 = vector.shape_cast %318 : vector<1x1x32xf32> to vector<32xf32>
    %320 = vector.shape_cast %319 : vector<32xf32> to vector<1x1x32xf32>
    %321 = vector.broadcast %320 : vector<1x1x32xf32> to vector<8x8x32xf32>
    %322 = arith.mulf %317, %321 : vector<8x8x32xf32>
    %323 = arith.addf %316, %322 : vector<8x8x32xf32>
    %324 = vector.extract_strided_slice %310 {offsets = [2, 0, 0], sizes = [8, 8, 32], strides = [1, 1, 1]} : vector<14x8x32xf32> to vector<8x8x32xf32>
    %325 = vector.extract_strided_slice %305 {offsets = [2, 0, 0], sizes = [1, 1, 32], strides = [1, 1, 1]} : vector<7x7x32xf32> to vector<1x1x32xf32>
    %326 = vector.shape_cast %325 : vector<1x1x32xf32> to vector<32xf32>
    %327 = vector.shape_cast %326 : vector<32xf32> to vector<1x1x32xf32>
    %328 = vector.broadcast %327 : vector<1x1x32xf32> to vector<8x8x32xf32>
    %329 = arith.mulf %324, %328 : vector<8x8x32xf32>
    %330 = arith.addf %323, %329 : vector<8x8x32xf32>
    %331 = vector.extract_strided_slice %310 {offsets = [3, 0, 0], sizes = [8, 8, 32], strides = [1, 1, 1]} : vector<14x8x32xf32> to vector<8x8x32xf32>
    %332 = vector.extract_strided_slice %305 {offsets = [3, 0, 0], sizes = [1, 1, 32], strides = [1, 1, 1]} : vector<7x7x32xf32> to vector<1x1x32xf32>
    %333 = vector.shape_cast %332 : vector<1x1x32xf32> to vector<32xf32>
    %334 = vector.shape_cast %333 : vector<32xf32> to vector<1x1x32xf32>
    %335 = vector.broadcast %334 : vector<1x1x32xf32> to vector<8x8x32xf32>
    %336 = arith.mulf %331, %335 : vector<8x8x32xf32>
    %337 = arith.addf %330, %336 : vector<8x8x32xf32>
    %338 = vector.extract_strided_slice %310 {offsets = [4, 0, 0], sizes = [8, 8, 32], strides = [1, 1, 1]} : vector<14x8x32xf32> to vector<8x8x32xf32>
    %339 = vector.extract_strided_slice %305 {offsets = [4, 0, 0], sizes = [1, 1, 32], strides = [1, 1, 1]} : vector<7x7x32xf32> to vector<1x1x32xf32>
    %340 = vector.shape_cast %339 : vector<1x1x32xf32> to vector<32xf32>
    %341 = vector.shape_cast %340 : vector<32xf32> to vector<1x1x32xf32>
    %342 = vector.broadcast %341 : vector<1x1x32xf32> to vector<8x8x32xf32>
    %343 = arith.mulf %338, %342 : vector<8x8x32xf32>
    %344 = arith.addf %337, %343 : vector<8x8x32xf32>
    %345 = vector.extract_strided_slice %310 {offsets = [5, 0, 0], sizes = [8, 8, 32], strides = [1, 1, 1]} : vector<14x8x32xf32> to vector<8x8x32xf32>
    %346 = vector.extract_strided_slice %305 {offsets = [5, 0, 0], sizes = [1, 1, 32], strides = [1, 1, 1]} : vector<7x7x32xf32> to vector<1x1x32xf32>
    %347 = vector.shape_cast %346 : vector<1x1x32xf32> to vector<32xf32>
    %348 = vector.shape_cast %347 : vector<32xf32> to vector<1x1x32xf32>
    %349 = vector.broadcast %348 : vector<1x1x32xf32> to vector<8x8x32xf32>
    %350 = arith.mulf %345, %349 : vector<8x8x32xf32>
    %351 = arith.addf %344, %350 : vector<8x8x32xf32>
    %352 = vector.extract_strided_slice %310 {offsets = [6, 0, 0], sizes = [8, 8, 32], strides = [1, 1, 1]} : vector<14x8x32xf32> to vector<8x8x32xf32>
    %353 = vector.extract_strided_slice %305 {offsets = [6, 0, 0], sizes = [1, 1, 32], strides = [1, 1, 1]} : vector<7x7x32xf32> to vector<1x1x32xf32>
    %354 = vector.shape_cast %353 : vector<1x1x32xf32> to vector<32xf32>
    %355 = vector.shape_cast %354 : vector<32xf32> to vector<1x1x32xf32>
    %356 = vector.broadcast %355 : vector<1x1x32xf32> to vector<8x8x32xf32>
    %357 = arith.mulf %352, %356 : vector<8x8x32xf32>
    %358 = arith.addf %351, %357 : vector<8x8x32xf32>
    %359 = vector.extract_strided_slice %309 {offsets = [0, 6, 0], sizes = [14, 8, 32], strides = [1, 1, 1]} : vector<14x24x32xf32> to vector<14x8x32xf32>
    %360 = vector.extract_strided_slice %359 {offsets = [0, 0, 0], sizes = [8, 8, 32], strides = [1, 1, 1]} : vector<14x8x32xf32> to vector<8x8x32xf32>
    %361 = vector.extract_strided_slice %305 {offsets = [0, 1, 0], sizes = [1, 1, 32], strides = [1, 1, 1]} : vector<7x7x32xf32> to vector<1x1x32xf32>
    %362 = vector.shape_cast %361 : vector<1x1x32xf32> to vector<32xf32>
    %363 = vector.shape_cast %362 : vector<32xf32> to vector<1x1x32xf32>
    %364 = vector.broadcast %363 : vector<1x1x32xf32> to vector<8x8x32xf32>
    %365 = arith.mulf %360, %364 : vector<8x8x32xf32>
    %366 = arith.addf %358, %365 : vector<8x8x32xf32>
    %367 = vector.extract_strided_slice %359 {offsets = [1, 0, 0], sizes = [8, 8, 32], strides = [1, 1, 1]} : vector<14x8x32xf32> to vector<8x8x32xf32>
    %368 = vector.extract_strided_slice %305 {offsets = [1, 1, 0], sizes = [1, 1, 32], strides = [1, 1, 1]} : vector<7x7x32xf32> to vector<1x1x32xf32>
    %369 = vector.shape_cast %368 : vector<1x1x32xf32> to vector<32xf32>
    %370 = vector.shape_cast %369 : vector<32xf32> to vector<1x1x32xf32>
    %371 = vector.broadcast %370 : vector<1x1x32xf32> to vector<8x8x32xf32>
    %372 = arith.mulf %367, %371 : vector<8x8x32xf32>
    %373 = arith.addf %366, %372 : vector<8x8x32xf32>
    %374 = vector.extract_strided_slice %359 {offsets = [2, 0, 0], sizes = [8, 8, 32], strides = [1, 1, 1]} : vector<14x8x32xf32> to vector<8x8x32xf32>
    %375 = vector.extract_strided_slice %305 {offsets = [2, 1, 0], sizes = [1, 1, 32], strides = [1, 1, 1]} : vector<7x7x32xf32> to vector<1x1x32xf32>
    %376 = vector.shape_cast %375 : vector<1x1x32xf32> to vector<32xf32>
    %377 = vector.shape_cast %376 : vector<32xf32> to vector<1x1x32xf32>
    %378 = vector.broadcast %377 : vector<1x1x32xf32> to vector<8x8x32xf32>
    %379 = arith.mulf %374, %378 : vector<8x8x32xf32>
    %380 = arith.addf %373, %379 : vector<8x8x32xf32>
    %381 = vector.extract_strided_slice %359 {offsets = [3, 0, 0], sizes = [8, 8, 32], strides = [1, 1, 1]} : vector<14x8x32xf32> to vector<8x8x32xf32>
    %382 = vector.extract_strided_slice %305 {offsets = [3, 1, 0], sizes = [1, 1, 32], strides = [1, 1, 1]} : vector<7x7x32xf32> to vector<1x1x32xf32>
    %383 = vector.shape_cast %382 : vector<1x1x32xf32> to vector<32xf32>
    %384 = vector.shape_cast %383 : vector<32xf32> to vector<1x1x32xf32>
    %385 = vector.broadcast %384 : vector<1x1x32xf32> to vector<8x8x32xf32>
    %386 = arith.mulf %381, %385 : vector<8x8x32xf32>
    %387 = arith.addf %380, %386 : vector<8x8x32xf32>
    %388 = vector.extract_strided_slice %359 {offsets = [4, 0, 0], sizes = [8, 8, 32], strides = [1, 1, 1]} : vector<14x8x32xf32> to vector<8x8x32xf32>
    %389 = vector.extract_strided_slice %305 {offsets = [4, 1, 0], sizes = [1, 1, 32], strides = [1, 1, 1]} : vector<7x7x32xf32> to vector<1x1x32xf32>
    %390 = vector.shape_cast %389 : vector<1x1x32xf32> to vector<32xf32>
    %391 = vector.shape_cast %390 : vector<32xf32> to vector<1x1x32xf32>
    %392 = vector.broadcast %391 : vector<1x1x32xf32> to vector<8x8x32xf32>
    %393 = arith.mulf %388, %392 : vector<8x8x32xf32>
    %394 = arith.addf %387, %393 : vector<8x8x32xf32>
    %395 = vector.extract_strided_slice %359 {offsets = [5, 0, 0], sizes = [8, 8, 32], strides = [1, 1, 1]} : vector<14x8x32xf32> to vector<8x8x32xf32>
    %396 = vector.extract_strided_slice %305 {offsets = [5, 1, 0], sizes = [1, 1, 32], strides = [1, 1, 1]} : vector<7x7x32xf32> to vector<1x1x32xf32>
    %397 = vector.shape_cast %396 : vector<1x1x32xf32> to vector<32xf32>
    %398 = vector.shape_cast %397 : vector<32xf32> to vector<1x1x32xf32>
    %399 = vector.broadcast %398 : vector<1x1x32xf32> to vector<8x8x32xf32>
    %400 = arith.mulf %395, %399 : vector<8x8x32xf32>
    %401 = arith.addf %394, %400 : vector<8x8x32xf32>
    %402 = vector.extract_strided_slice %359 {offsets = [6, 0, 0], sizes = [8, 8, 32], strides = [1, 1, 1]} : vector<14x8x32xf32> to vector<8x8x32xf32>
    %403 = vector.extract_strided_slice %305 {offsets = [6, 1, 0], sizes = [1, 1, 32], strides = [1, 1, 1]} : vector<7x7x32xf32> to vector<1x1x32xf32>
    %404 = vector.shape_cast %403 : vector<1x1x32xf32> to vector<32xf32>
    %405 = vector.shape_cast %404 : vector<32xf32> to vector<1x1x32xf32>
    %406 = vector.broadcast %405 : vector<1x1x32xf32> to vector<8x8x32xf32>
    %407 = arith.mulf %402, %406 : vector<8x8x32xf32>
    %408 = arith.addf %401, %407 : vector<8x8x32xf32>
    %409 = vector.extract_strided_slice %309 {offsets = [0, 7, 0], sizes = [14, 8, 32], strides = [1, 1, 1]} : vector<14x24x32xf32> to vector<14x8x32xf32>
    %410 = vector.extract_strided_slice %409 {offsets = [0, 0, 0], sizes = [8, 8, 32], strides = [1, 1, 1]} : vector<14x8x32xf32> to vector<8x8x32xf32>
    %411 = vector.extract_strided_slice %305 {offsets = [0, 2, 0], sizes = [1, 1, 32], strides = [1, 1, 1]} : vector<7x7x32xf32> to vector<1x1x32xf32>
    %412 = vector.shape_cast %411 : vector<1x1x32xf32> to vector<32xf32>
    %413 = vector.shape_cast %412 : vector<32xf32> to vector<1x1x32xf32>
    %414 = vector.broadcast %413 : vector<1x1x32xf32> to vector<8x8x32xf32>
    %415 = arith.mulf %410, %414 : vector<8x8x32xf32>
    %416 = arith.addf %408, %415 : vector<8x8x32xf32>
    %417 = vector.extract_strided_slice %409 {offsets = [1, 0, 0], sizes = [8, 8, 32], strides = [1, 1, 1]} : vector<14x8x32xf32> to vector<8x8x32xf32>
    %418 = vector.extract_strided_slice %305 {offsets = [1, 2, 0], sizes = [1, 1, 32], strides = [1, 1, 1]} : vector<7x7x32xf32> to vector<1x1x32xf32>
    %419 = vector.shape_cast %418 : vector<1x1x32xf32> to vector<32xf32>
    %420 = vector.shape_cast %419 : vector<32xf32> to vector<1x1x32xf32>
    %421 = vector.broadcast %420 : vector<1x1x32xf32> to vector<8x8x32xf32>
    %422 = arith.mulf %417, %421 : vector<8x8x32xf32>
    %423 = arith.addf %416, %422 : vector<8x8x32xf32>
    %424 = vector.extract_strided_slice %409 {offsets = [2, 0, 0], sizes = [8, 8, 32], strides = [1, 1, 1]} : vector<14x8x32xf32> to vector<8x8x32xf32>
    %425 = vector.extract_strided_slice %305 {offsets = [2, 2, 0], sizes = [1, 1, 32], strides = [1, 1, 1]} : vector<7x7x32xf32> to vector<1x1x32xf32>
    %426 = vector.shape_cast %425 : vector<1x1x32xf32> to vector<32xf32>
    %427 = vector.shape_cast %426 : vector<32xf32> to vector<1x1x32xf32>
    %428 = vector.broadcast %427 : vector<1x1x32xf32> to vector<8x8x32xf32>
    %429 = arith.mulf %424, %428 : vector<8x8x32xf32>
    %430 = arith.addf %423, %429 : vector<8x8x32xf32>
    %431 = vector.extract_strided_slice %409 {offsets = [3, 0, 0], sizes = [8, 8, 32], strides = [1, 1, 1]} : vector<14x8x32xf32> to vector<8x8x32xf32>
    %432 = vector.extract_strided_slice %305 {offsets = [3, 2, 0], sizes = [1, 1, 32], strides = [1, 1, 1]} : vector<7x7x32xf32> to vector<1x1x32xf32>
    %433 = vector.shape_cast %432 : vector<1x1x32xf32> to vector<32xf32>
    %434 = vector.shape_cast %433 : vector<32xf32> to vector<1x1x32xf32>
    %435 = vector.broadcast %434 : vector<1x1x32xf32> to vector<8x8x32xf32>
    %436 = arith.mulf %431, %435 : vector<8x8x32xf32>
    %437 = arith.addf %430, %436 : vector<8x8x32xf32>
    %438 = vector.extract_strided_slice %409 {offsets = [4, 0, 0], sizes = [8, 8, 32], strides = [1, 1, 1]} : vector<14x8x32xf32> to vector<8x8x32xf32>
    %439 = vector.extract_strided_slice %305 {offsets = [4, 2, 0], sizes = [1, 1, 32], strides = [1, 1, 1]} : vector<7x7x32xf32> to vector<1x1x32xf32>
    %440 = vector.shape_cast %439 : vector<1x1x32xf32> to vector<32xf32>
    %441 = vector.shape_cast %440 : vector<32xf32> to vector<1x1x32xf32>
    %442 = vector.broadcast %441 : vector<1x1x32xf32> to vector<8x8x32xf32>
    %443 = arith.mulf %438, %442 : vector<8x8x32xf32>
    %444 = arith.addf %437, %443 : vector<8x8x32xf32>
    %445 = vector.extract_strided_slice %409 {offsets = [5, 0, 0], sizes = [8, 8, 32], strides = [1, 1, 1]} : vector<14x8x32xf32> to vector<8x8x32xf32>
    %446 = vector.extract_strided_slice %305 {offsets = [5, 2, 0], sizes = [1, 1, 32], strides = [1, 1, 1]} : vector<7x7x32xf32> to vector<1x1x32xf32>
    %447 = vector.shape_cast %446 : vector<1x1x32xf32> to vector<32xf32>
    %448 = vector.shape_cast %447 : vector<32xf32> to vector<1x1x32xf32>
    %449 = vector.broadcast %448 : vector<1x1x32xf32> to vector<8x8x32xf32>
    %450 = arith.mulf %445, %449 : vector<8x8x32xf32>
    %451 = arith.addf %444, %450 : vector<8x8x32xf32>
    %452 = vector.extract_strided_slice %409 {offsets = [6, 0, 0], sizes = [8, 8, 32], strides = [1, 1, 1]} : vector<14x8x32xf32> to vector<8x8x32xf32>
    %453 = vector.extract_strided_slice %305 {offsets = [6, 2, 0], sizes = [1, 1, 32], strides = [1, 1, 1]} : vector<7x7x32xf32> to vector<1x1x32xf32>
    %454 = vector.shape_cast %453 : vector<1x1x32xf32> to vector<32xf32>
    %455 = vector.shape_cast %454 : vector<32xf32> to vector<1x1x32xf32>
    %456 = vector.broadcast %455 : vector<1x1x32xf32> to vector<8x8x32xf32>
    %457 = arith.mulf %452, %456 : vector<8x8x32xf32>
    %458 = arith.addf %451, %457 : vector<8x8x32xf32>
    %459 = vector.extract_strided_slice %309 {offsets = [0, 8, 0], sizes = [14, 8, 32], strides = [1, 1, 1]} : vector<14x24x32xf32> to vector<14x8x32xf32>
    %460 = vector.extract_strided_slice %459 {offsets = [0, 0, 0], sizes = [8, 8, 32], strides = [1, 1, 1]} : vector<14x8x32xf32> to vector<8x8x32xf32>
    %461 = vector.extract_strided_slice %305 {offsets = [0, 3, 0], sizes = [1, 1, 32], strides = [1, 1, 1]} : vector<7x7x32xf32> to vector<1x1x32xf32>
    %462 = vector.shape_cast %461 : vector<1x1x32xf32> to vector<32xf32>
    %463 = vector.shape_cast %462 : vector<32xf32> to vector<1x1x32xf32>
    %464 = vector.broadcast %463 : vector<1x1x32xf32> to vector<8x8x32xf32>
    %465 = arith.mulf %460, %464 : vector<8x8x32xf32>
    %466 = arith.addf %458, %465 : vector<8x8x32xf32>
    %467 = vector.extract_strided_slice %459 {offsets = [1, 0, 0], sizes = [8, 8, 32], strides = [1, 1, 1]} : vector<14x8x32xf32> to vector<8x8x32xf32>
    %468 = vector.extract_strided_slice %305 {offsets = [1, 3, 0], sizes = [1, 1, 32], strides = [1, 1, 1]} : vector<7x7x32xf32> to vector<1x1x32xf32>
    %469 = vector.shape_cast %468 : vector<1x1x32xf32> to vector<32xf32>
    %470 = vector.shape_cast %469 : vector<32xf32> to vector<1x1x32xf32>
    %471 = vector.broadcast %470 : vector<1x1x32xf32> to vector<8x8x32xf32>
    %472 = arith.mulf %467, %471 : vector<8x8x32xf32>
    %473 = arith.addf %466, %472 : vector<8x8x32xf32>
    %474 = vector.extract_strided_slice %459 {offsets = [2, 0, 0], sizes = [8, 8, 32], strides = [1, 1, 1]} : vector<14x8x32xf32> to vector<8x8x32xf32>
    %475 = vector.extract_strided_slice %305 {offsets = [2, 3, 0], sizes = [1, 1, 32], strides = [1, 1, 1]} : vector<7x7x32xf32> to vector<1x1x32xf32>
    %476 = vector.shape_cast %475 : vector<1x1x32xf32> to vector<32xf32>
    %477 = vector.shape_cast %476 : vector<32xf32> to vector<1x1x32xf32>
    %478 = vector.broadcast %477 : vector<1x1x32xf32> to vector<8x8x32xf32>
    %479 = arith.mulf %474, %478 : vector<8x8x32xf32>
    %480 = arith.addf %473, %479 : vector<8x8x32xf32>
    %481 = vector.extract_strided_slice %459 {offsets = [3, 0, 0], sizes = [8, 8, 32], strides = [1, 1, 1]} : vector<14x8x32xf32> to vector<8x8x32xf32>
    %482 = vector.extract_strided_slice %305 {offsets = [3, 3, 0], sizes = [1, 1, 32], strides = [1, 1, 1]} : vector<7x7x32xf32> to vector<1x1x32xf32>
    %483 = vector.shape_cast %482 : vector<1x1x32xf32> to vector<32xf32>
    %484 = vector.shape_cast %483 : vector<32xf32> to vector<1x1x32xf32>
    %485 = vector.broadcast %484 : vector<1x1x32xf32> to vector<8x8x32xf32>
    %486 = arith.mulf %481, %485 : vector<8x8x32xf32>
    %487 = arith.addf %480, %486 : vector<8x8x32xf32>
    %488 = vector.extract_strided_slice %459 {offsets = [4, 0, 0], sizes = [8, 8, 32], strides = [1, 1, 1]} : vector<14x8x32xf32> to vector<8x8x32xf32>
    %489 = vector.extract_strided_slice %305 {offsets = [4, 3, 0], sizes = [1, 1, 32], strides = [1, 1, 1]} : vector<7x7x32xf32> to vector<1x1x32xf32>
    %490 = vector.shape_cast %489 : vector<1x1x32xf32> to vector<32xf32>
    %491 = vector.shape_cast %490 : vector<32xf32> to vector<1x1x32xf32>
    %492 = vector.broadcast %491 : vector<1x1x32xf32> to vector<8x8x32xf32>
    %493 = arith.mulf %488, %492 : vector<8x8x32xf32>
    %494 = arith.addf %487, %493 : vector<8x8x32xf32>
    %495 = vector.extract_strided_slice %459 {offsets = [5, 0, 0], sizes = [8, 8, 32], strides = [1, 1, 1]} : vector<14x8x32xf32> to vector<8x8x32xf32>
    %496 = vector.extract_strided_slice %305 {offsets = [5, 3, 0], sizes = [1, 1, 32], strides = [1, 1, 1]} : vector<7x7x32xf32> to vector<1x1x32xf32>
    %497 = vector.shape_cast %496 : vector<1x1x32xf32> to vector<32xf32>
    %498 = vector.shape_cast %497 : vector<32xf32> to vector<1x1x32xf32>
    %499 = vector.broadcast %498 : vector<1x1x32xf32> to vector<8x8x32xf32>
    %500 = arith.mulf %495, %499 : vector<8x8x32xf32>
    %501 = arith.addf %494, %500 : vector<8x8x32xf32>
    %502 = vector.extract_strided_slice %459 {offsets = [6, 0, 0], sizes = [8, 8, 32], strides = [1, 1, 1]} : vector<14x8x32xf32> to vector<8x8x32xf32>
    %503 = vector.extract_strided_slice %305 {offsets = [6, 3, 0], sizes = [1, 1, 32], strides = [1, 1, 1]} : vector<7x7x32xf32> to vector<1x1x32xf32>
    %504 = vector.shape_cast %503 : vector<1x1x32xf32> to vector<32xf32>
    %505 = vector.shape_cast %504 : vector<32xf32> to vector<1x1x32xf32>
    %506 = vector.broadcast %505 : vector<1x1x32xf32> to vector<8x8x32xf32>
    %507 = arith.mulf %502, %506 : vector<8x8x32xf32>
    %508 = arith.addf %501, %507 : vector<8x8x32xf32>
    %509 = vector.extract_strided_slice %309 {offsets = [0, 9, 0], sizes = [14, 8, 32], strides = [1, 1, 1]} : vector<14x24x32xf32> to vector<14x8x32xf32>
    %510 = vector.extract_strided_slice %509 {offsets = [0, 0, 0], sizes = [8, 8, 32], strides = [1, 1, 1]} : vector<14x8x32xf32> to vector<8x8x32xf32>
    %511 = vector.extract_strided_slice %305 {offsets = [0, 4, 0], sizes = [1, 1, 32], strides = [1, 1, 1]} : vector<7x7x32xf32> to vector<1x1x32xf32>
    %512 = vector.shape_cast %511 : vector<1x1x32xf32> to vector<32xf32>
    %513 = vector.shape_cast %512 : vector<32xf32> to vector<1x1x32xf32>
    %514 = vector.broadcast %513 : vector<1x1x32xf32> to vector<8x8x32xf32>
    %515 = arith.mulf %510, %514 : vector<8x8x32xf32>
    %516 = arith.addf %508, %515 : vector<8x8x32xf32>
    %517 = vector.extract_strided_slice %509 {offsets = [1, 0, 0], sizes = [8, 8, 32], strides = [1, 1, 1]} : vector<14x8x32xf32> to vector<8x8x32xf32>
    %518 = vector.extract_strided_slice %305 {offsets = [1, 4, 0], sizes = [1, 1, 32], strides = [1, 1, 1]} : vector<7x7x32xf32> to vector<1x1x32xf32>
    %519 = vector.shape_cast %518 : vector<1x1x32xf32> to vector<32xf32>
    %520 = vector.shape_cast %519 : vector<32xf32> to vector<1x1x32xf32>
    %521 = vector.broadcast %520 : vector<1x1x32xf32> to vector<8x8x32xf32>
    %522 = arith.mulf %517, %521 : vector<8x8x32xf32>
    %523 = arith.addf %516, %522 : vector<8x8x32xf32>
    %524 = vector.extract_strided_slice %509 {offsets = [2, 0, 0], sizes = [8, 8, 32], strides = [1, 1, 1]} : vector<14x8x32xf32> to vector<8x8x32xf32>
    %525 = vector.extract_strided_slice %305 {offsets = [2, 4, 0], sizes = [1, 1, 32], strides = [1, 1, 1]} : vector<7x7x32xf32> to vector<1x1x32xf32>
    %526 = vector.shape_cast %525 : vector<1x1x32xf32> to vector<32xf32>
    %527 = vector.shape_cast %526 : vector<32xf32> to vector<1x1x32xf32>
    %528 = vector.broadcast %527 : vector<1x1x32xf32> to vector<8x8x32xf32>
    %529 = arith.mulf %524, %528 : vector<8x8x32xf32>
    %530 = arith.addf %523, %529 : vector<8x8x32xf32>
    %531 = vector.extract_strided_slice %509 {offsets = [3, 0, 0], sizes = [8, 8, 32], strides = [1, 1, 1]} : vector<14x8x32xf32> to vector<8x8x32xf32>
    %532 = vector.extract_strided_slice %305 {offsets = [3, 4, 0], sizes = [1, 1, 32], strides = [1, 1, 1]} : vector<7x7x32xf32> to vector<1x1x32xf32>
    %533 = vector.shape_cast %532 : vector<1x1x32xf32> to vector<32xf32>
    %534 = vector.shape_cast %533 : vector<32xf32> to vector<1x1x32xf32>
    %535 = vector.broadcast %534 : vector<1x1x32xf32> to vector<8x8x32xf32>
    %536 = arith.mulf %531, %535 : vector<8x8x32xf32>
    %537 = arith.addf %530, %536 : vector<8x8x32xf32>
    %538 = vector.extract_strided_slice %509 {offsets = [4, 0, 0], sizes = [8, 8, 32], strides = [1, 1, 1]} : vector<14x8x32xf32> to vector<8x8x32xf32>
    %539 = vector.extract_strided_slice %305 {offsets = [4, 4, 0], sizes = [1, 1, 32], strides = [1, 1, 1]} : vector<7x7x32xf32> to vector<1x1x32xf32>
    %540 = vector.shape_cast %539 : vector<1x1x32xf32> to vector<32xf32>
    %541 = vector.shape_cast %540 : vector<32xf32> to vector<1x1x32xf32>
    %542 = vector.broadcast %541 : vector<1x1x32xf32> to vector<8x8x32xf32>
    %543 = arith.mulf %538, %542 : vector<8x8x32xf32>
    %544 = arith.addf %537, %543 : vector<8x8x32xf32>
    %545 = vector.extract_strided_slice %509 {offsets = [5, 0, 0], sizes = [8, 8, 32], strides = [1, 1, 1]} : vector<14x8x32xf32> to vector<8x8x32xf32>
    %546 = vector.extract_strided_slice %305 {offsets = [5, 4, 0], sizes = [1, 1, 32], strides = [1, 1, 1]} : vector<7x7x32xf32> to vector<1x1x32xf32>
    %547 = vector.shape_cast %546 : vector<1x1x32xf32> to vector<32xf32>
    %548 = vector.shape_cast %547 : vector<32xf32> to vector<1x1x32xf32>
    %549 = vector.broadcast %548 : vector<1x1x32xf32> to vector<8x8x32xf32>
    %550 = arith.mulf %545, %549 : vector<8x8x32xf32>
    %551 = arith.addf %544, %550 : vector<8x8x32xf32>
    %552 = vector.extract_strided_slice %509 {offsets = [6, 0, 0], sizes = [8, 8, 32], strides = [1, 1, 1]} : vector<14x8x32xf32> to vector<8x8x32xf32>
    %553 = vector.extract_strided_slice %305 {offsets = [6, 4, 0], sizes = [1, 1, 32], strides = [1, 1, 1]} : vector<7x7x32xf32> to vector<1x1x32xf32>
    %554 = vector.shape_cast %553 : vector<1x1x32xf32> to vector<32xf32>
    %555 = vector.shape_cast %554 : vector<32xf32> to vector<1x1x32xf32>
    %556 = vector.broadcast %555 : vector<1x1x32xf32> to vector<8x8x32xf32>
    %557 = arith.mulf %552, %556 : vector<8x8x32xf32>
    %558 = arith.addf %551, %557 : vector<8x8x32xf32>
    %559 = vector.extract_strided_slice %309 {offsets = [0, 10, 0], sizes = [14, 8, 32], strides = [1, 1, 1]} : vector<14x24x32xf32> to vector<14x8x32xf32>
    %560 = vector.extract_strided_slice %559 {offsets = [0, 0, 0], sizes = [8, 8, 32], strides = [1, 1, 1]} : vector<14x8x32xf32> to vector<8x8x32xf32>
    %561 = vector.extract_strided_slice %305 {offsets = [0, 5, 0], sizes = [1, 1, 32], strides = [1, 1, 1]} : vector<7x7x32xf32> to vector<1x1x32xf32>
    %562 = vector.shape_cast %561 : vector<1x1x32xf32> to vector<32xf32>
    %563 = vector.shape_cast %562 : vector<32xf32> to vector<1x1x32xf32>
    %564 = vector.broadcast %563 : vector<1x1x32xf32> to vector<8x8x32xf32>
    %565 = arith.mulf %560, %564 : vector<8x8x32xf32>
    %566 = arith.addf %558, %565 : vector<8x8x32xf32>
    %567 = vector.extract_strided_slice %559 {offsets = [1, 0, 0], sizes = [8, 8, 32], strides = [1, 1, 1]} : vector<14x8x32xf32> to vector<8x8x32xf32>
    %568 = vector.extract_strided_slice %305 {offsets = [1, 5, 0], sizes = [1, 1, 32], strides = [1, 1, 1]} : vector<7x7x32xf32> to vector<1x1x32xf32>
    %569 = vector.shape_cast %568 : vector<1x1x32xf32> to vector<32xf32>
    %570 = vector.shape_cast %569 : vector<32xf32> to vector<1x1x32xf32>
    %571 = vector.broadcast %570 : vector<1x1x32xf32> to vector<8x8x32xf32>
    %572 = arith.mulf %567, %571 : vector<8x8x32xf32>
    %573 = arith.addf %566, %572 : vector<8x8x32xf32>
    %574 = vector.extract_strided_slice %559 {offsets = [2, 0, 0], sizes = [8, 8, 32], strides = [1, 1, 1]} : vector<14x8x32xf32> to vector<8x8x32xf32>
    %575 = vector.extract_strided_slice %305 {offsets = [2, 5, 0], sizes = [1, 1, 32], strides = [1, 1, 1]} : vector<7x7x32xf32> to vector<1x1x32xf32>
    %576 = vector.shape_cast %575 : vector<1x1x32xf32> to vector<32xf32>
    %577 = vector.shape_cast %576 : vector<32xf32> to vector<1x1x32xf32>
    %578 = vector.broadcast %577 : vector<1x1x32xf32> to vector<8x8x32xf32>
    %579 = arith.mulf %574, %578 : vector<8x8x32xf32>
    %580 = arith.addf %573, %579 : vector<8x8x32xf32>
    %581 = vector.extract_strided_slice %559 {offsets = [3, 0, 0], sizes = [8, 8, 32], strides = [1, 1, 1]} : vector<14x8x32xf32> to vector<8x8x32xf32>
    %582 = vector.extract_strided_slice %305 {offsets = [3, 5, 0], sizes = [1, 1, 32], strides = [1, 1, 1]} : vector<7x7x32xf32> to vector<1x1x32xf32>
    %583 = vector.shape_cast %582 : vector<1x1x32xf32> to vector<32xf32>
    %584 = vector.shape_cast %583 : vector<32xf32> to vector<1x1x32xf32>
    %585 = vector.broadcast %584 : vector<1x1x32xf32> to vector<8x8x32xf32>
    %586 = arith.mulf %581, %585 : vector<8x8x32xf32>
    %587 = arith.addf %580, %586 : vector<8x8x32xf32>
    %588 = vector.extract_strided_slice %559 {offsets = [4, 0, 0], sizes = [8, 8, 32], strides = [1, 1, 1]} : vector<14x8x32xf32> to vector<8x8x32xf32>
    %589 = vector.extract_strided_slice %305 {offsets = [4, 5, 0], sizes = [1, 1, 32], strides = [1, 1, 1]} : vector<7x7x32xf32> to vector<1x1x32xf32>
    %590 = vector.shape_cast %589 : vector<1x1x32xf32> to vector<32xf32>
    %591 = vector.shape_cast %590 : vector<32xf32> to vector<1x1x32xf32>
    %592 = vector.broadcast %591 : vector<1x1x32xf32> to vector<8x8x32xf32>
    %593 = arith.mulf %588, %592 : vector<8x8x32xf32>
    %594 = arith.addf %587, %593 : vector<8x8x32xf32>
    %595 = vector.extract_strided_slice %559 {offsets = [5, 0, 0], sizes = [8, 8, 32], strides = [1, 1, 1]} : vector<14x8x32xf32> to vector<8x8x32xf32>
    %596 = vector.extract_strided_slice %305 {offsets = [5, 5, 0], sizes = [1, 1, 32], strides = [1, 1, 1]} : vector<7x7x32xf32> to vector<1x1x32xf32>
    %597 = vector.shape_cast %596 : vector<1x1x32xf32> to vector<32xf32>
    %598 = vector.shape_cast %597 : vector<32xf32> to vector<1x1x32xf32>
    %599 = vector.broadcast %598 : vector<1x1x32xf32> to vector<8x8x32xf32>
    %600 = arith.mulf %595, %599 : vector<8x8x32xf32>
    %601 = arith.addf %594, %600 : vector<8x8x32xf32>
    %602 = vector.extract_strided_slice %559 {offsets = [6, 0, 0], sizes = [8, 8, 32], strides = [1, 1, 1]} : vector<14x8x32xf32> to vector<8x8x32xf32>
    %603 = vector.extract_strided_slice %305 {offsets = [6, 5, 0], sizes = [1, 1, 32], strides = [1, 1, 1]} : vector<7x7x32xf32> to vector<1x1x32xf32>
    %604 = vector.shape_cast %603 : vector<1x1x32xf32> to vector<32xf32>
    %605 = vector.shape_cast %604 : vector<32xf32> to vector<1x1x32xf32>
    %606 = vector.broadcast %605 : vector<1x1x32xf32> to vector<8x8x32xf32>
    %607 = arith.mulf %602, %606 : vector<8x8x32xf32>
    %608 = arith.addf %601, %607 : vector<8x8x32xf32>
    %609 = vector.extract_strided_slice %309 {offsets = [0, 11, 0], sizes = [14, 8, 32], strides = [1, 1, 1]} : vector<14x24x32xf32> to vector<14x8x32xf32>
    %610 = vector.extract_strided_slice %609 {offsets = [0, 0, 0], sizes = [8, 8, 32], strides = [1, 1, 1]} : vector<14x8x32xf32> to vector<8x8x32xf32>
    %611 = vector.extract_strided_slice %305 {offsets = [0, 6, 0], sizes = [1, 1, 32], strides = [1, 1, 1]} : vector<7x7x32xf32> to vector<1x1x32xf32>
    %612 = vector.shape_cast %611 : vector<1x1x32xf32> to vector<32xf32>
    %613 = vector.shape_cast %612 : vector<32xf32> to vector<1x1x32xf32>
    %614 = vector.broadcast %613 : vector<1x1x32xf32> to vector<8x8x32xf32>
    %615 = arith.mulf %610, %614 : vector<8x8x32xf32>
    %616 = arith.addf %608, %615 : vector<8x8x32xf32>
    %617 = vector.extract_strided_slice %609 {offsets = [1, 0, 0], sizes = [8, 8, 32], strides = [1, 1, 1]} : vector<14x8x32xf32> to vector<8x8x32xf32>
    %618 = vector.extract_strided_slice %305 {offsets = [1, 6, 0], sizes = [1, 1, 32], strides = [1, 1, 1]} : vector<7x7x32xf32> to vector<1x1x32xf32>
    %619 = vector.shape_cast %618 : vector<1x1x32xf32> to vector<32xf32>
    %620 = vector.shape_cast %619 : vector<32xf32> to vector<1x1x32xf32>
    %621 = vector.broadcast %620 : vector<1x1x32xf32> to vector<8x8x32xf32>
    %622 = arith.mulf %617, %621 : vector<8x8x32xf32>
    %623 = arith.addf %616, %622 : vector<8x8x32xf32>
    %624 = vector.extract_strided_slice %609 {offsets = [2, 0, 0], sizes = [8, 8, 32], strides = [1, 1, 1]} : vector<14x8x32xf32> to vector<8x8x32xf32>
    %625 = vector.extract_strided_slice %305 {offsets = [2, 6, 0], sizes = [1, 1, 32], strides = [1, 1, 1]} : vector<7x7x32xf32> to vector<1x1x32xf32>
    %626 = vector.shape_cast %625 : vector<1x1x32xf32> to vector<32xf32>
    %627 = vector.shape_cast %626 : vector<32xf32> to vector<1x1x32xf32>
    %628 = vector.broadcast %627 : vector<1x1x32xf32> to vector<8x8x32xf32>
    %629 = arith.mulf %624, %628 : vector<8x8x32xf32>
    %630 = arith.addf %623, %629 : vector<8x8x32xf32>
    %631 = vector.extract_strided_slice %609 {offsets = [3, 0, 0], sizes = [8, 8, 32], strides = [1, 1, 1]} : vector<14x8x32xf32> to vector<8x8x32xf32>
    %632 = vector.extract_strided_slice %305 {offsets = [3, 6, 0], sizes = [1, 1, 32], strides = [1, 1, 1]} : vector<7x7x32xf32> to vector<1x1x32xf32>
    %633 = vector.shape_cast %632 : vector<1x1x32xf32> to vector<32xf32>
    %634 = vector.shape_cast %633 : vector<32xf32> to vector<1x1x32xf32>
    %635 = vector.broadcast %634 : vector<1x1x32xf32> to vector<8x8x32xf32>
    %636 = arith.mulf %631, %635 : vector<8x8x32xf32>
    %637 = arith.addf %630, %636 : vector<8x8x32xf32>
    %638 = vector.extract_strided_slice %609 {offsets = [4, 0, 0], sizes = [8, 8, 32], strides = [1, 1, 1]} : vector<14x8x32xf32> to vector<8x8x32xf32>
    %639 = vector.extract_strided_slice %305 {offsets = [4, 6, 0], sizes = [1, 1, 32], strides = [1, 1, 1]} : vector<7x7x32xf32> to vector<1x1x32xf32>
    %640 = vector.shape_cast %639 : vector<1x1x32xf32> to vector<32xf32>
    %641 = vector.shape_cast %640 : vector<32xf32> to vector<1x1x32xf32>
    %642 = vector.broadcast %641 : vector<1x1x32xf32> to vector<8x8x32xf32>
    %643 = arith.mulf %638, %642 : vector<8x8x32xf32>
    %644 = arith.addf %637, %643 : vector<8x8x32xf32>
    %645 = vector.extract_strided_slice %609 {offsets = [5, 0, 0], sizes = [8, 8, 32], strides = [1, 1, 1]} : vector<14x8x32xf32> to vector<8x8x32xf32>
    %646 = vector.extract_strided_slice %305 {offsets = [5, 6, 0], sizes = [1, 1, 32], strides = [1, 1, 1]} : vector<7x7x32xf32> to vector<1x1x32xf32>
    %647 = vector.shape_cast %646 : vector<1x1x32xf32> to vector<32xf32>
    %648 = vector.shape_cast %647 : vector<32xf32> to vector<1x1x32xf32>
    %649 = vector.broadcast %648 : vector<1x1x32xf32> to vector<8x8x32xf32>
    %650 = arith.mulf %645, %649 : vector<8x8x32xf32>
    %651 = arith.addf %644, %650 : vector<8x8x32xf32>
    %652 = vector.extract_strided_slice %609 {offsets = [6, 0, 0], sizes = [8, 8, 32], strides = [1, 1, 1]} : vector<14x8x32xf32> to vector<8x8x32xf32>
    %653 = vector.extract_strided_slice %305 {offsets = [6, 6, 0], sizes = [1, 1, 32], strides = [1, 1, 1]} : vector<7x7x32xf32> to vector<1x1x32xf32>
    %654 = vector.shape_cast %653 : vector<1x1x32xf32> to vector<32xf32>
    %655 = vector.shape_cast %654 : vector<32xf32> to vector<1x1x32xf32>
    %656 = vector.broadcast %655 : vector<1x1x32xf32> to vector<8x8x32xf32>
    %657 = arith.mulf %652, %656 : vector<8x8x32xf32>
    %658 = arith.addf %651, %657 : vector<8x8x32xf32>
    %659 = vector.shape_cast %658 : vector<8x8x32xf32> to vector<64x32xf32>
    %660 = vector.broadcast %306 : vector<1x32xf32> to vector<64x32xf32>
    %661 = arith.addf %659, %660 : vector<64x32xf32>
    %cst_60 = arith.constant 3.000000e+00 : f32
    %662 = vector.broadcast %cst_60 : f32 to vector<64x32xf32>
    %663 = arith.addf %661, %662 : vector<64x32xf32>
    %cst_61 = arith.constant 0.000000e+00 : f32
    %cst_62 = arith.constant 6.000000e+00 : f32
    %664 = vector.broadcast %cst_61 : f32 to vector<64x32xf32>
    %665 = arith.maximumf %664, %663 : vector<64x32xf32>
    %666 = vector.broadcast %cst_62 : f32 to vector<64x32xf32>
    %667 = arith.minimumf %666, %665 : vector<64x32xf32>
    %668 = arith.mulf %661, %667 : vector<64x32xf32>
    %cst_63 = arith.constant 0.166666672 : f32
    %669 = vector.broadcast %cst_63 : f32 to vector<64x32xf32>
    %670 = arith.mulf %668, %669 : vector<64x32xf32>
    %cst_64 = arith.constant dense<0.000000e+00> : vector<32xf32>
    %671 = vector.multi_reduction <add>, %106, %cst_64 [0] : vector<64x32xf32> to vector<32xf32>
    %672 = vector.shape_cast %671 : vector<32xf32> to vector<1x32xf32>
    %cst_65 = arith.constant 6.400000e+01 : f32
    %673 = vector.broadcast %cst_65 : f32 to vector<1x32xf32>
    %674 = arith.divf %672, %673 : vector<1x32xf32>
    %cst_66 = arith.constant dense<0.000000e+00> : vector<32xf32>
    %675 = vector.multi_reduction <add>, %303, %cst_66 [0] : vector<64x32xf32> to vector<32xf32>
    %676 = vector.shape_cast %675 : vector<32xf32> to vector<1x32xf32>
    %cst_67 = arith.constant 6.400000e+01 : f32
    %677 = vector.broadcast %cst_67 : f32 to vector<1x32xf32>
    %678 = arith.divf %676, %677 : vector<1x32xf32>
    %cst_68 = arith.constant dense<0.000000e+00> : vector<32xf32>
    %679 = vector.multi_reduction <add>, %670, %cst_68 [0] : vector<64x32xf32> to vector<32xf32>
    %680 = vector.shape_cast %679 : vector<32xf32> to vector<1x32xf32>
    %cst_69 = arith.constant 6.400000e+01 : f32
    %681 = vector.broadcast %cst_69 : f32 to vector<1x32xf32>
    %682 = arith.divf %680, %681 : vector<1x32xf32>
    %683 = tpu.iota {dimensions = array<i32: 0>} : vector<3x32xi32>
    %c0_i32 = arith.constant 0 : i32
    %684 = vector.broadcast %c0_i32 : i32 to vector<3x32xi32>
    %685 = arith.cmpi eq, %683, %684 : vector<3x32xi32>
    %c1_i32 = arith.constant 1 : i32
    %686 = vector.broadcast %c1_i32 : i32 to vector<3x32xi32>
    %687 = arith.cmpi eq, %683, %686 : vector<3x32xi32>
    %688 = vector.shape_cast %678 : vector<1x32xf32> to vector<1x32xf32>
    %689 = vector.broadcast %688 : vector<1x32xf32> to vector<3x32xf32>
    %690 = vector.shape_cast %682 : vector<1x32xf32> to vector<1x32xf32>
    %691 = vector.broadcast %690 : vector<1x32xf32> to vector<3x32xf32>
    %692 = arith.select %687, %689, %691 : vector<3x32xi1>, vector<3x32xf32>
    %693 = vector.shape_cast %674 : vector<1x32xf32> to vector<1x32xf32>
    %694 = vector.broadcast %693 : vector<1x32xf32> to vector<3x32xf32>
    %695 = arith.select %685, %694, %692 : vector<3x32xi1>, vector<3x32xf32>
    %c0_70 = arith.constant 0 : index
    %c0_71 = arith.constant 0 : index
    %696 = vector.load %arg10[%c0_70, %c0_71] : memref<32x2xf32, #tpu.memory_space<vmem>>, vector<32x2xf32>
    %cst_72 = arith.constant dense<0.000000e+00> : vector<3x2xf32>
    %697 = tpu.matmul %695, %696, %cst_72 {dimension_numbers = #tpu.dot_dimension_numbers<[1], [0], [0], [1], [0, 0, 1, 1], [], []>} : vector<3x32xf32>, vector<32x2xf32>, vector<3x2xf32> -> vector<3x2xf32>
    %c0_73 = arith.constant 0 : index
    %c0_74 = arith.constant 0 : index
    %698 = vector.load %arg11[%c0_73, %c0_74] : memref<1x2xf32, #tpu.memory_space<vmem>>, vector<1x2xf32>
    %699 = vector.broadcast %698 : vector<1x2xf32> to vector<3x2xf32>
    %700 = arith.addf %697, %699 : vector<3x2xf32>
    %cst_75 = arith.constant 0.000000e+00 : f32
    %701 = vector.broadcast %cst_75 : f32 to vector<3x2xf32>
    %702 = arith.maximumf %700, %701 : vector<3x2xf32>
    %c0_76 = arith.constant 0 : index
    %c0_77 = arith.constant 0 : index
    %703 = vector.load %arg12[%c0_76, %c0_77] : memref<2x32xf32, #tpu.memory_space<vmem>>, vector<2x32xf32>
    %cst_78 = arith.constant dense<0.000000e+00> : vector<3x32xf32>
    %704 = tpu.matmul %702, %703, %cst_78 {dimension_numbers = #tpu.dot_dimension_numbers<[1], [0], [0], [1], [0, 0, 1, 1], [], []>} : vector<3x2xf32>, vector<2x32xf32>, vector<3x32xf32> -> vector<3x32xf32>
    %c0_79 = arith.constant 0 : index
    %c0_80 = arith.constant 0 : index
    %705 = vector.load %arg13[%c0_79, %c0_80] : memref<1x32xf32, #tpu.memory_space<vmem>>, vector<1x32xf32>
    %706 = vector.broadcast %705 : vector<1x32xf32> to vector<3x32xf32>
    %707 = arith.addf %704, %706 : vector<3x32xf32>
    %cst_81 = arith.constant 0.000000e+00 : f32
    %708 = vector.broadcast %cst_81 : f32 to vector<3x32xf32>
    %709 = arith.subf %708, %707 : vector<3x32xf32>
    %710 = math.exp %709 : vector<3x32xf32>
    %cst_82 = arith.constant 1.000000e+00 : f32
    %711 = vector.broadcast %cst_82 : f32 to vector<3x32xf32>
    %712 = arith.addf %711, %710 : vector<3x32xf32>
    %cst_83 = arith.constant 1.000000e+00 : f32
    %713 = vector.broadcast %cst_83 : f32 to vector<3x32xf32>
    %714 = arith.divf %713, %712 : vector<3x32xf32>
    %715 = vector.extract_strided_slice %714 {offsets = [0, 0], sizes = [1, 32], strides = [1, 1]} : vector<3x32xf32> to vector<1x32xf32>
    %716 = vector.broadcast %715 : vector<1x32xf32> to vector<64x32xf32>
    %717 = arith.mulf %106, %716 : vector<64x32xf32>
    %718 = vector.extract_strided_slice %714 {offsets = [1, 0], sizes = [1, 32], strides = [1, 1]} : vector<3x32xf32> to vector<1x32xf32>
    %719 = vector.broadcast %718 : vector<1x32xf32> to vector<64x32xf32>
    %720 = arith.mulf %303, %719 : vector<64x32xf32>
    %721 = arith.addf %717, %720 : vector<64x32xf32>
    %722 = vector.extract_strided_slice %714 {offsets = [2, 0], sizes = [1, 32], strides = [1, 1]} : vector<3x32xf32> to vector<1x32xf32>
    %723 = vector.broadcast %722 : vector<1x32xf32> to vector<64x32xf32>
    %724 = arith.mulf %670, %723 : vector<64x32xf32>
    %725 = arith.addf %721, %724 : vector<64x32xf32>
    %c0_84 = arith.constant 0 : index
    %c0_85 = arith.constant 0 : index
    %726 = vector.load %arg14[%c0_84, %c0_85] : memref<32x64xf32, #tpu.memory_space<vmem>>, vector<32x64xf32>
    %cst_86 = arith.constant dense<0.000000e+00> : vector<64x64xf32>
    %727 = tpu.matmul %725, %726, %cst_86 {dimension_numbers = #tpu.dot_dimension_numbers<[1], [0], [0], [1], [0, 0, 1, 1], [], []>} : vector<64x32xf32>, vector<32x64xf32>, vector<64x64xf32> -> vector<64x64xf32>
    %c0_87 = arith.constant 0 : index
    %c0_88 = arith.constant 0 : index
    %728 = vector.load %arg15[%c0_87, %c0_88] : memref<1x64xf32, #tpu.memory_space<vmem>>, vector<1x64xf32>
    %729 = vector.broadcast %728 : vector<1x64xf32> to vector<64x64xf32>
    %730 = arith.addf %727, %729 : vector<64x64xf32>
    %731 = arith.addf %730, %20 : vector<64x64xf32>
    %cst_89 = arith.constant 3.000000e+00 : f32
    %732 = vector.broadcast %cst_89 : f32 to vector<64x64xf32>
    %733 = arith.addf %731, %732 : vector<64x64xf32>
    %cst_90 = arith.constant 0.000000e+00 : f32
    %cst_91 = arith.constant 6.000000e+00 : f32
    %734 = vector.broadcast %cst_90 : f32 to vector<64x64xf32>
    %735 = arith.maximumf %734, %733 : vector<64x64xf32>
    %736 = vector.broadcast %cst_91 : f32 to vector<64x64xf32>
    %737 = arith.minimumf %736, %735 : vector<64x64xf32>
    %738 = arith.mulf %731, %737 : vector<64x64xf32>
    %cst_92 = arith.constant 0.166666672 : f32
    %739 = vector.broadcast %cst_92 : f32 to vector<64x64xf32>
    %740 = arith.mulf %738, %739 : vector<64x64xf32>
    %741 = vector.shape_cast %740 : vector<64x64xf32> to vector<8x8x64xf32>
    %c0_93 = arith.constant 0 : index
    %c0_94 = arith.constant 0 : index
    %c0_95 = arith.constant 0 : index
    %c0_96 = arith.constant 0 : index
    %742 = vector.load %arg16[%c0_93, %c0_94, %c0_95, %c0_96] : memref<1x8x8x64xf32, #tpu.memory_space<vmem>>, vector<1x8x8x64xf32>
    %743 = vector.shape_cast %742 : vector<1x8x8x64xf32> to vector<8x8x64xf32>
    %744 = vector.shape_cast %741 : vector<8x8x64xf32> to vector<1x8x8x64xf32>
    tpu.vector_store %arg16[%c0_93, %c0_94, %c0_95, %c0_96], %744 {strides = array<i32>} : memref<1x8x8x64xf32, #tpu.memory_space<vmem>>, vector<1x8x8x64xf32>,
    return
  }
  func.func @transform_0(%arg0: i32) -> (i32, i32, i32, i32) {
    %c0_i32 = arith.constant 0 : i32
    %c0_i32_0 = arith.constant 0 : i32
    %c0_i32_1 = arith.constant 0 : i32
    %c0_i32_2 = arith.constant 0 : i32
    return %arg0, %c0_i32, %c0_i32_0, %c0_i32_1 : i32, i32, i32, i32
  }
  func.func @transform_1(%arg0: i32) -> (i32, i32) {
    %c0_i32 = arith.constant 0 : i32
    %c0_i32_0 = arith.constant 0 : i32
    %c0_i32_1 = arith.constant 0 : i32
    return %c0_i32, %c0_i32_0 : i32, i32
  }
  func.func @transform_2(%arg0: i32) -> (i32, i32) {
    %c0_i32 = arith.constant 0 : i32
    %c0_i32_0 = arith.constant 0 : i32
    %c0_i32_1 = arith.constant 0 : i32
    return %c0_i32, %c0_i32_0 : i32, i32
  }
  func.func @transform_3(%arg0: i32) -> (i32, i32) {
    %c0_i32 = arith.constant 0 : i32
    %c0_i32_0 = arith.constant 0 : i32
    %c0_i32_1 = arith.constant 0 : i32
    return %c0_i32, %c0_i32_0 : i32, i32
  }
  func.func @transform_4(%arg0: i32) -> (i32, i32) {
    %c0_i32 = arith.constant 0 : i32
    %c0_i32_0 = arith.constant 0 : i32
    %c0_i32_1 = arith.constant 0 : i32
    return %c0_i32, %c0_i32_0 : i32, i32
  }
  func.func @transform_5(%arg0: i32) -> (i32, i32, i32) {
    %c0_i32 = arith.constant 0 : i32
    %c0_i32_0 = arith.constant 0 : i32
    %c0_i32_1 = arith.constant 0 : i32
    %c0_i32_2 = arith.constant 0 : i32
    return %c0_i32, %c0_i32_0, %c0_i32_1 : i32, i32, i32
  }
  func.func @transform_6(%arg0: i32) -> (i32, i32, i32) {
    %c0_i32 = arith.constant 0 : i32
    %c0_i32_0 = arith.constant 0 : i32
    %c0_i32_1 = arith.constant 0 : i32
    %c0_i32_2 = arith.constant 0 : i32
    return %c0_i32, %c0_i32_0, %c0_i32_1 : i32, i32, i32
  }
  func.func @transform_7(%arg0: i32) -> (i32, i32, i32) {
    %c0_i32 = arith.constant 0 : i32
    %c0_i32_0 = arith.constant 0 : i32
    %c0_i32_1 = arith.constant 0 : i32
    %c0_i32_2 = arith.constant 0 : i32
    return %c0_i32, %c0_i32_0, %c0_i32_1 : i32, i32, i32
  }
  func.func @transform_8(%arg0: i32) -> (i32, i32) {
    %c0_i32 = arith.constant 0 : i32
    %c0_i32_0 = arith.constant 0 : i32
    %c0_i32_1 = arith.constant 0 : i32
    return %c0_i32, %c0_i32_0 : i32, i32
  }
  func.func @transform_9(%arg0: i32) -> (i32, i32) {
    %c0_i32 = arith.constant 0 : i32
    %c0_i32_0 = arith.constant 0 : i32
    %c0_i32_1 = arith.constant 0 : i32
    return %c0_i32, %c0_i32_0 : i32, i32
  }
  func.func @transform_10(%arg0: i32) -> (i32, i32) {
    %c0_i32 = arith.constant 0 : i32
    %c0_i32_0 = arith.constant 0 : i32
    %c0_i32_1 = arith.constant 0 : i32
    return %c0_i32, %c0_i32_0 : i32, i32
  }
  func.func @transform_11(%arg0: i32) -> (i32, i32) {
    %c0_i32 = arith.constant 0 : i32
    %c0_i32_0 = arith.constant 0 : i32
    %c0_i32_1 = arith.constant 0 : i32
    return %c0_i32, %c0_i32_0 : i32, i32
  }
  func.func @transform_12(%arg0: i32) -> (i32, i32) {
    %c0_i32 = arith.constant 0 : i32
    %c0_i32_0 = arith.constant 0 : i32
    %c0_i32_1 = arith.constant 0 : i32
    return %c0_i32, %c0_i32_0 : i32, i32
  }
  func.func @transform_13(%arg0: i32) -> (i32, i32) {
    %c0_i32 = arith.constant 0 : i32
    %c0_i32_0 = arith.constant 0 : i32
    %c0_i32_1 = arith.constant 0 : i32
    return %c0_i32, %c0_i32_0 : i32, i32
  }
  func.func @transform_14(%arg0: i32) -> (i32, i32) {
    %c0_i32 = arith.constant 0 : i32
    %c0_i32_0 = arith.constant 0 : i32
    %c0_i32_1 = arith.constant 0 : i32
    return %c0_i32, %c0_i32_0 : i32, i32
  }
  func.func @transform_15(%arg0: i32) -> (i32, i32, i32, i32) {
    %c0_i32 = arith.constant 0 : i32
    %c0_i32_0 = arith.constant 0 : i32
    %c0_i32_1 = arith.constant 0 : i32
    %c0_i32_2 = arith.constant 0 : i32
    return %arg0, %c0_i32, %c0_i32_0, %c0_i32_1 : i32, i32, i32, i32
  }
}

</mosaic_0001>

<bundles_post_ra>
// kernel: tpu_custom_call.1
= control target key start
LH: loop header
LB: loop body
LE: loop exit
PB: predicated region body
PF: predicated region fallthrough
CT: control target
= control target key end

     0   :  { %s14457_s0 = inlined_call_operand.hbm [shape: f32[2,8,8,32], index: 0, kind: input, shape index: {}]   ;;  %s14458_s1 = inlined_call_operand.hbm [shape: f32[32,96], index: 1, kind: input, shape index: {}]   ;;  %s14459_s2 = inlined_call_operand.hbm [shape: f32[1,32], index: 2, kind: input, shape index: {}]   ;;  %s14460_s3 = inlined_call_operand.hbm [shape: f32[1,64], index: 3, kind: input, shape index: {}]   ;;  %s14461_s4 = inlined_call_operand.hbm [shape: f32[32,96], index: 4, kind: input, shape index: {}]   ;;  %s14462_s5 = inlined_call_operand.hbm [shape: f32[3,3,32], index: 5, kind: input, shape index: {}]   ;;  %s14463_s6 = inlined_call_operand.vmem [shape: f32[5,5,32], index: 6, kind: input, shape index: {}]   ;;  %s14464_s7 = inlined_call_operand.hbm [shape: f32[7,7,32], index: 7, kind: input, shape index: {}]   ;;  %s14465_s8 = inlined_call_operand.vmem [shape: f32[3,32], index: 8, kind: input, shape index: {}]   ;;  %s14466_s9 = inlined_call_operand.vmem [shape: f32[32,2], index: 9, kind: input, shape index: {}]   ;;  %s14467_s10 = inlined_call_operand.vmem [shape: f32[1,2], index: 10, kind: input, shape index: {}]   ;;  %s14468_s11 = inlined_call_operand.vmem [shape: f32[2,32], index: 11, kind: input, shape index: {}]   ;;  %s14469_s12 = inlined_call_operand.vmem [shape: f32[1,32], index: 12, kind: input, shape index: {}]   ;;  %s14470_s13 = inlined_call_operand.hbm [shape: f32[32,64], index: 13, kind: input, shape index: {}]   ;;  %s14471_s14 = inlined_call_operand.vmem [shape: f32[1,64], index: 14, kind: input, shape index: {}]   ;;  %s14472_s15 = inlined_call_operand.hbm [shape: f32[2,8,8,64], index: 15, kind: output, shape index: {}]  }
   0x1   :  { %14847 = sst [smem:[#allocation100_spill]] %s14458_s1 }
   0x2   :  { %14848 = sst [smem:[#allocation101_spill]] %s14459_s2 }
   0x3   :  { %14849 = sst [smem:[#allocation102_spill]] %s14460_s3 }
   0x4   :  { %14850 = sst [smem:[#allocation103_spill]] %s14461_s4 }
   0x5   :  { %14851 = sst [smem:[#allocation104_spill]] %s14462_s5 }
   0x6   :  { %14852 = sst [smem:[#allocation105_spill]] %s14464_s7 }
   0x7   :  { %14853 = sst [smem:[#allocation106_spill]] %s14467_s10 }
   0x8   :  { %14854 = sst [smem:[#allocation107_spill]] %s14469_s12 }
   0x9   :  { %14855 = sst [smem:[#allocation108_spill]] %s14470_s13 }
   0xa   :  { %14856 = sst [smem:[#allocation109_spill]] %s14471_s14 }
   0xb   :  { %14857 = sst [smem:[#allocation110_spill]] %s14472_s15 }
   0xc   :  { %20 = vsyncpa [#allocation4], 0 }
   0xd   :  { %22 = vsyncpa [#allocation4 + $0x1], 0 }
   0xe   :  { %23 = vsyncpa [#allocation7], 0 }
   0xf   :  { %24 = vsyncpa [#allocation10], 0 }
  0x10   :  { %25 = vsyncpa [#allocation13], 0 }
  0x11   :  { %26 = vsyncpa [#allocation16], 0 }
  0x12   :  { %27 = vsyncpa [#allocation5], 0 }
  0x13   :  { %29 = vsyncpa [#allocation5 + $0x1], 0  ;;  %s9157_s18 = smov 0   ;;  %s9159_s19 = smov 0  }
  0x14   :  { %s9161_s20 = smov 0   ;;  %s9163_s21 = smov 0  }
  0x15 LB: > { %s9057_s22 = smov [#allocation6]   ;;  %s9178_s24 = sadd.s32 4294967295, %s9055_s21   ;;  %s9055_s21 = sphi %s9163_s21, %s15547_s21   ;;  %s9051_s20 = sphi %s9161_s20, %s15546_s20   ;;  %s9047_s19 = sphi %s9159_s19, %s15545_s19   ;;  %s9043_s18 = sphi %s9157_s18, %s15544_s18  }
  0x16   : > { %s398_s23 = sshll.u32 %s9057_s22, 4  ;;  %p8306_p0 = scmp.ge.s32.totalorder %s9055_s21, 1  ;;  %s399_s23 = int_to_ptr.vmem [resolvable:$true] %s398_s23 }
  0x17   : > { %p14478_p1 = scmp.eq.s32.totalorder %s9178_s24, 0  ;;  %p386_p2 = scmp.lt.s32.totalorder %s9055_s21, 3 }
  0x18   : > { %s9058_s26 = smov [#allocation9]   ;;  %s9059_s29 = smov [#allocation12]  }
  0x19   : > { %p9183_p3 = pnand %p8306_p0, %p386_p2  ;;  %s423_s27 = sshll.u32 %s9058_s26, 4  ;;  %s424_s27 = int_to_ptr.vmem [resolvable:$true] %s423_s27 }
  0x1a   : > { %s446_s30 = sshll.u32 %s9059_s29, 4  ;;  %s8776_s17 = scalar_lea.vmem %s399_s23, 512  ;;  %s9196_s30 = int_to_ptr.vmem [resolvable:$true] %s446_s30 }
  0x1b   : > { %s14858_s25 = scalar_select %p9183_p3, 1, 0 }
  0x1c   : > { %p8526_p5 = pneg %p9183_p3  ;;  %p8777_p8 = scmp.ne.s32.totalorder %s399_s23, %s8776_s17 }
  0x1d   : > { %p8784_p11 = scmp.lt.s32.totalorder %s399_s23, %s399_s23  ;;  %p8785_p12 = scmp.lt.s32.totalorder %s8776_s17, %s8776_s17 }
  0x1e   : > { %p9192_p6 = pnand %p8526_p5, %p14478_p1 }
  0x1f   : > { %p8786_p13 = por %p8785_p12, %p8784_p11 }
  0x20   : > { %p9200_p7 = pneg %p9192_p6 }
  0x22   : > { %p8779_p9 = pnand %p8777_p8, %p9200_p7 }
  0x24   : > { %p8780_p10 = pneg %p8779_p9 }
  0x26   : > { %p8787_p0 = pnand %p8786_p13, %p8780_p10 }
  0x28   : > { %8790 = shalt.err (!%p8787_p0)
}
  0x29   : > { %s14474_s22 = smov 128   ;;  %s14476_s26 = smov 8  }
  0x2a   : > { %s14861_s1 = sld [smem:[#allocation100_spill]]  ;;  %s8802_s14 = scalar_lea.vmem %s424_s27, 16 }
  0x2b   : > { %p8803_p2 = scmp.ne.s32.totalorder %s424_s27, %s8802_s14  ;;  %s8809_s17 = scalar_lea.vmem %s424_s27, 32 }
  0x2c   : > { %p8810_p9 = scmp.lt.s32.totalorder %s424_s27, %s424_s27  ;;  %p8811_p10 = scmp.lt.s32.totalorder %s8809_s17, %s8802_s14 }
  0x2d   : > { %p8805_p5 = pnand %p8803_p2, %p9200_p7 }
  0x2e   : > { %p8812_p11 = por %p8811_p10, %p8810_p9 }
  0x2f   : > { %p8806_p8 = pneg %p8805_p5 }
  0x30   : > { %8529 = dma.hbm_to_vmem [thread:$0]  (!%p9192_p6), %s14861_s1, 512, %s399_s23, [#allocation7], %s14474_s22, %s14474_s22, %s14476_s26  }
  0x31   : > { %p8813_p12 = pnand %p8812_p11, %p8806_p8 }
  0x33   : > { %8816 = shalt.err (!%p8813_p12)
}
  0x34   : > { %s14862_s3 = sld [smem:[#allocation102_spill]]  ;;  %s8828_s15 = scalar_lea.vmem %s9196_s30, 192 }
  0x35   : > { %p8829_p13 = scmp.ne.s32.totalorder %s9196_s30, %s8828_s15  ;;  %p8836_p5 = scmp.lt.s32.totalorder %s9196_s30, %s9196_s30 }
  0x36   : > { %p8837_p9 = scmp.lt.s32.totalorder %s8828_s15, %s8828_s15 }
  0x37   : > { %p8831_p0 = pnand %p8829_p13, %p9200_p7 }
  0x38   : > { %p8838_p8 = por %p8837_p9, %p8836_p5 }
  0x39   : > { %p8832_p2 = pneg %p8831_p0 }
  0x3a   : > { %8535 = dma.hbm_to_vmem [thread:$0]  (!%p9192_p6), %s14862_s3, 16, %s424_s27, [#allocation10]  }
  0x3b   : > { %p8839_p10 = pnand %p8838_p8, %p8832_p2 }
  0x3d   : > { %8842 = shalt.err (!%p8839_p10)
}
  0x3e   : > { %s9062_s14 = smov 64   ;;  %s9063_s10 = smov 4  }
  0x3f   : > { %s14863_s5 = sld [smem:[#allocation104_spill]]  ;;  %s9064_s27 = smov [#allocation8]  }
  0x40   : > { %s412_s29 = sshll.u32 %s9064_s27, 4  ;;  %s9065_s17 = smov [#allocation11]   ;;  %s413_s29 = int_to_ptr.vmem [resolvable:$true] %s412_s29 }
  0x41   : > { %s433_s22 = sshll.u32 %s9065_s17, 4  ;;  %s8854_s26 = scalar_lea.vmem %s413_s29, 16  ;;  %s434_s22 = int_to_ptr.vmem [resolvable:$true] %s433_s22 }
  0x42   : > { %p8855_p11 = scmp.ne.s32.totalorder %s413_s29, %s8854_s26  ;;  %s8861_s15 = scalar_lea.vmem %s413_s29, 32 }
  0x43   : > { %p8862_p0 = scmp.lt.s32.totalorder %s413_s29, %s413_s29  ;;  %p8863_p2 = scmp.lt.s32.totalorder %s8861_s15, %s8854_s26 }
  0x44   : > { %p8857_p12 = pnand %p8855_p11, %p9200_p7 }
  0x45   : > { %8541 = dma.hbm_to_vmem [thread:$0]  (!%p9192_p6), %s14863_s5, 192, %s9196_s30, [#allocation13], %s9062_s14, %s9062_s14, %s9063_s10  }
  0x46   : > { %p8858_p13 = pneg %p8857_p12  ;;  %p8864_p5 = por %p8863_p2, %p8862_p0 }
  0x48   : > { %p8865_p9 = pnand %p8864_p5, %p8858_p13 }
  0x4a   : > { %8868 = shalt.err (!%p8865_p9)
}
  0x4b   : > { %s14864_s2 = sld [smem:[#allocation101_spill]]  ;;  %s8880_s14 = scalar_lea.vmem %s434_s22, 512 }
  0x4c   : > { %p8881_p8 = scmp.ne.s32.totalorder %s434_s22, %s8880_s14  ;;  %p8888_p12 = scmp.lt.s32.totalorder %s434_s22, %s434_s22 }
  0x4d   : > { %p8889_p4 = scmp.lt.s32.totalorder %s8880_s14, %s8880_s14 }
  0x4e   : > { %p8883_p10 = pnand %p8881_p8, %p9200_p7 }
  0x4f   : > { %p8890_p1 = por %p8889_p4, %p8888_p12 }
  0x50   : > { %p8884_p11 = pneg %p8883_p10 }
  0x51   : > { %8532 = dma.hbm_to_vmem [thread:$0]  (!%p9192_p6), %s14864_s2, 16, %s413_s29, [#allocation7]  }
  0x52   : > { %p8891_p3 = pnand %p8890_p1, %p8884_p11 }
  0x54   : > { %8894 = shalt.err (!%p8891_p3)
}
  0x55   : > { %s14865_s26 = smov 8   ;;  %s14866_s10 = smov 128  }
  0x56   : > { %s14867_s4 = sld [smem:[#allocation103_spill]]  ;;  %s9066_s29 = smov [#allocation14]  }
  0x57   : > { %s462_s17 = sshll.u32 %s9066_s29, 4  ;;  %s9067_s15 = smov [#allocation15]   ;;  %s463_s17 = int_to_ptr.vmem [resolvable:$true] %s462_s17 }
  0x58   : > { %s490_s12 = sshll.u32 %s9067_s15, 4  ;;  %s8906_s30 = scalar_lea.vmem %s463_s17, 896  ;;  %s491_s12 = int_to_ptr.vmem [resolvable:$true] %s490_s12 }
  0x59   : > { %p8907_p13 = scmp.ne.s32.totalorder %s463_s17, %s8906_s30  ;;  %p8914_p4 = scmp.lt.s32.totalorder %s463_s17, %s463_s17 }
  0x5a   : > { %p8915_p0 = scmp.lt.s32.totalorder %s8906_s30, %s8906_s30 }
  0x5b   : > { %p8909_p1 = pnand %p8907_p13, %p9200_p7 }
  0x5c   : > { %8538 = dma.hbm_to_vmem [thread:$0]  (!%p9192_p6), %s14867_s4, 512, %s434_s22, [#allocation10], %s14866_s10, %s14866_s10, %s14865_s26  }
  0x5d   : > { %p8910_p3 = pneg %p8909_p1  ;;  %p8916_p2 = por %p8915_p0, %p8914_p4 }
  0x5f   : > { %p8917_p5 = pnand %p8916_p2, %p8910_p3 }
  0x61   : > { %8920 = shalt.err (!%p8917_p5)
}
  0x62   : > { %s14868_s7 = sld [smem:[#allocation105_spill]]  ;;  %s8932_s23 = scalar_lea.vmem %s491_s12, 512 }
  0x63   : > { %p8933_p9 = scmp.ne.s32.totalorder %s491_s12, %s8932_s23  ;;  %p8940_p11 = scmp.lt.s32.totalorder %s491_s12, %s491_s12 }
  0x64   : > { %p8941_p12 = scmp.lt.s32.totalorder %s8932_s23, %s8932_s23 }
  0x65   : > { %p8935_p8 = pnand %p8933_p9, %p9200_p7 }
  0x66   : > { %p8942_p13 = por %p8941_p12, %p8940_p11 }
  0x67   : > { %p8936_p10 = pneg %p8935_p8 }
  0x68   : > { %8544 = dma.hbm_to_vmem [thread:$0]  (!%p9192_p6), %s14868_s7, 896, %s463_s17, [#allocation13], %s14866_s10, %s14866_s10, %s14865_s26  }
  0x69   : > { %p8943_p1 = pnand %p8942_p13, %p8936_p10 }
  0x6b   : > { %8946 = shalt.err (!%p8943_p1)
}
  0x6c   : > { %s14869_s13 = sld [smem:[#allocation108_spill]]  ;;  %s8305_s28 = sadd.s32 4294967294, %s9055_s21  }
  0x6d   : > { %s9272_s16 = sadd.s32 1, %s9055_s21   ;;  %s42_s17 = sadd.s32 1, %s9051_s20 }
  0x6e   : > { %s39_s15 = ssub.s32 %s9055_s21, %s9272_s16  ;;  %p49_p7 = scmp.ne.s32.totalorder %s9051_s20, %s9047_s19 }
  0x6f   : > { %p40_p3 = scmp.eq.s32.totalorder %s39_s15, 0  ;;  %p50_p4 = scmp.eq.s32.totalorder %s9055_s21, 0 }
  0x70   : > { %p55_p0 = scmp.ne.s32.totalorder %s9047_s19, %s9043_s18  ;;  %p373_p2 = scmp.eq.s32.totalorder %s9178_s24, 1 }
  0x71   : > { %s9284_s30 = scalar_select %p40_p3, %s9051_s20, %s42_s17  }
  0x72   : > { %8547 = dma.hbm_to_vmem [thread:$0]  (!%p9192_p6), %s14869_s13, 512, %s491_s12, [#allocation16], %s14866_s10, %s14866_s10, %s14865_s26  }
  0x73   : > { %p51_p5 = por %p50_p4, %p49_p7  ;;  %p14870_p9 = scmp.eq.s32.totalorder %s9178_s24, 0 }
  0x74   : > { %p9292_p6 = por %p373_p2, %p49_p7  ;;  %p379_p10 = scmp.eq.s32.totalorder %s8305_s28, 1 }
  0x75   : > { %p9288_p8 = por %p14870_p9, %p55_p0  ;;  %p8563_p11 = scmp.lt.s32.totalorder %s9055_s21, 2 }
  0x76   : > { %s14872_s12 = scalar_select %p9292_p6, 1, 0 }
  0x77   : > { %s14871_s22 = scalar_select %p9288_p8, 1, 0 }
  0x78   : > { %s507_s14 = sand.u32 1, %s9051_s20   ;;  %p9298_p12 = por %p379_p10, %p55_p0 }
  0x79   : > { %s8315_s27 = sshll.u32 %s507_s14, 6  ;;  %s8365_s29 = sshll.u32 %s9055_s21, 10 }
  0x7a   : > { %s14873_s23 = scalar_select %p9298_p12, 1, 0 }
  0x7b   : > { %s9306_s1 = scalar_lea.hbm %s14457_s0, %s8365_s29  ;;  %s511_s2 = scalar_lea.vmem [#allocation3], %s8315_s27 }
  0x7c   : > { %s518_s3 = sshll.u32 %s511_s2, 4  ;;  %p9308_p13 = pnand %p8563_p11, %p51_p5  ;;  %s9312_s3 = int_to_ptr.vmem [resolvable:$true] %s518_s3 }
  0x7d   : > { %s9314_s4 = scalar_lea.sflag [#allocation4], %s507_s14  ;;  %s8947_s5 = scalar_lea.hbm %s9306_s1, 1024 }
  0x7e   : > { %p8948_p1 = scmp.ne.s32.totalorder %s9306_s1, %s8947_s5  ;;  %p8949_p7 = pneg %p9308_p13 }
  0x7f   : > { %s8952_s27 = scalar_lea.hbm %s14457_s0, 2048  ;;  %p8953_p0 = scmp.lt.s32.totalorder %s9306_s1, %s14457_s0 }
  0x80   : > { %p8950_p3 = pnand %p8949_p7, %p8948_p1  ;;  %p8954_p2 = scmp.lt.s32.totalorder %s8952_s27, %s8947_s5 }
  0x82   : > { %p8951_p4 = pneg %p8950_p3  ;;  %p8955_p5 = por %p8954_p2, %p8953_p0 }
  0x84   : > { %p8956_p9 = pnand %p8955_p5, %p8951_p4 }
  0x86   : > { %8959 = shalt.err (!%p8956_p9)
}
  0x87   : > { %s8960_s14 = scalar_lea.vmem %s9312_s3, 1024  ;;  %s9068_s7 = smov [#allocation3]  }
  0x88   : > { %p8961_p10 = scmp.ne.s32.totalorder %s9312_s3, %s8960_s14  ;;  %s8965_s13 = sshll.u32 %s9068_s7, 4  ;;  %s8966_s13 = int_to_ptr.vmem [resolvable:$false] %s8965_s13 }
  0x89   : > { %s8967_s29 = scalar_lea.vmem %s8966_s13, 2048  ;;  %p8968_p3 = scmp.lt.s32.totalorder %s9312_s3, %s8966_s13 }
  0x8a   : > { %p8963_p11 = pnand %p8961_p10, %p8949_p7  ;;  %p8969_p12 = scmp.lt.s32.totalorder %s8967_s29, %s8960_s14 }
  0x8c   : > { %p8964_p1 = pneg %p8963_p11  ;;  %p8970_p6 = por %p8969_p12, %p8968_p3 }
  0x8e   : > { %p8971_p8 = pnand %p8970_p6, %p8964_p1 }
  0x90   : > { %8974 = shalt.err (!%p8971_p8)
}
  0x91   : > { %8551 = dma.hbm_to_vmem [thread:$0]  (!%p9308_p13), %s9306_s1, 1024, %s9312_s3, %s9314_s4, %s14866_s10, %s14866_s10, %s14865_s26  }
  0x92   : > { %p14875_p7 = scmp.ne.s32.totalorder %s14858_s25, 0 }
  0x94   : > { %530 = sbr.rel (%p14875_p7) target bundleno = 2325 (0x915), region = 80 }
  0x99   : > { %s9341_s5 = sand.u32 1, %s9047_s19   ;;  %p14876_p8 = scmp.ne.s32.totalorder %s14871_s22, 0 }
  0x9a   : > { %s8319_s7 = sshll.u32 %s9341_s5, 6  ;;  %s533_s13 = scalar_lea.sflag [#allocation4], %s9341_s5 }
  0x9b   : > { %s9347_s28 = scalar_lea.vmem [#allocation3], %s8319_s7 }
  0x9c   : > { %9018 = dma.done.wait (%p14876_p8), %s533_s13, 1024  }
  0x9d   : > { %9020 = vsyncadd (%p14876_p8), %s533_s13, 4294966272  ;;  %p14877_p6 = scmp.eq.s32.totalorder %s9178_s24, 0 }
  0x9f   : > { %9022 = dma.done.wait (%p14877_p6), [#allocation7], 528   ;;  %p14878_p12 = pmov %p14877_p6 }
  0xa0   : > { %p14879_p13 = pmov %p14877_p6 }
  0xa1   : > { %9024 = vsyncadd (%p14878_p12), [#allocation7], 4294966768 }
  0xa2   : > { %9026 = dma.done.wait (%p14879_p13), [#allocation10], 528   ;;  %p14880_p4 = pmov %p14877_p6 }
  0xa4   : > { %9028 = vsyncadd (%p14880_p4), [#allocation10], 4294966768  ;;  %p14881_p0 = pmov %p14880_p4 }
  0xa6   : > { %9030 = dma.done.wait (%p14881_p0), [#allocation13], 1088   ;;  %p14882_p2 = pmov %p14881_p0 }
  0xa7   : > { %p14883_p5 = pmov %p14881_p0 }
  0xa8   : > { %9032 = vsyncadd (%p14882_p2), [#allocation13], 4294966208 }
  0xa9   : > { %9034 = dma.done.wait (%p14883_p5), [#allocation16], 512   ;;  %p14884_p9 = pmov %p14881_p0 }
  0xaa   : > { %v659_v0 = vld [vmem:[#allocation6 + $0x18] sm:$0xff]  ;;  %v658_v1 = vld [vmem:[#allocation6 + $0x10] sm:$0xff]  ;;  %vm611_vm0 = vcmask 261120   ;;  %v648_v2 = vld [vmem:[%s9347_s28] sm:$0xff]  ;;  %v14482_v41 = vmov 0.0   ;;  %v1004_v42 = vlaneseq  ;;  %vm1288_vm1 = vcmask 1045504  }
  0xab   : > { %9036 = vsyncadd (%p14884_p9), [#allocation16], 4294966784  ;;  %8410 = vmatprep.subr.mxu0 %v659_v0  ;;  %8486 = vmatprep.subr.mxu1 %v659_v0  ;;  %v657_v3 = vld [vmem:[#allocation6 + $0x8] sm:$0xff]  ;;  %v656_v4 = vld [vmem:[#allocation6] sm:$0xff]  ;;  %618 = vst.msk [vmem:[#allocation2 + $0x30] sm:$0xff] %vm611_vm0, %v14482_v41  ;;  %s9070_s1 = smov 96  }
  0xac   : > { %8411 = vmatpush3.msra.mxu0 %v659_v0  ;;  %8490 = vmatpush3.msra.mxu1 %v659_v0  ;;  %v649_v5 = vld [vmem:[%s9347_s28 + $0x8] sm:$0xff]  ;;  %v650_v6 = vld [vmem:[%s9347_s28 + $0x10] sm:$0xff]  ;;  %v652_v7 = vld [vmem:[%s9347_s28 + $0x20] sm:$0xff]  ;;  %619 = vst.msk [vmem:[#allocation2 + $0x38] sm:$0xff] %vm611_vm0, %v14482_v41  ;;  %v9487_v43 = vshrl.u32 %v1004_v42, 7  ;;  %s9071_s3 = smov 64  }
  0xad   : > { %8412 = vmatprep.subr.mxu0 %v658_v1  ;;  %8418 = vmatprep.mubr.msk.f32.mxu0 %vm611_vm0, %v648_v2  ;;  %v653_v8 = vld [vmem:[%s9347_s28 + $0x28] sm:$0xff]  ;;  %v832_v9 = vld [vmem:[#allocation11 + $0x18] sm:$0xff]  ;;  %v654_v10 = vld [vmem:[%s9347_s28 + $0x30] sm:$0xff]  ;;  %620 = vst.msk [vmem:[#allocation2 + $0x40] sm:$0xff] %vm611_vm0, %v14482_v41  ;;  %s9072_s26 = smov 32   ;;  %vm1545_vm2 = vcmask 1040384  }
  0xae   : > { %8413 = vmatpush3.msra.mxu0 %v658_v1  ;;  %8487 = vmatprep.subr.mxu1 %v658_v1  ;;  %v651_v11 = vld [vmem:[%s9347_s28 + $0x18] sm:$0xff]  ;;  %v830_v14 = vld [vmem:[#allocation11 + $0x8] sm:$0xff]  ;;  %v829_v15 = vld [vmem:[#allocation11] sm:$0xff]  ;;  %632 = vst.msk [vmem:[#allocation2 + $0x48] sm:$0xff] %vm611_vm0, %v14482_v41  ;;  %v9490_v44 = vsub.s32 0, %v9487_v43  ;;  %v9501_v51 = vsub.s32 1, %v9487_v43 }
  0xaf   : > { %8414 = vmatprep.subr.mxu0 %v657_v3  ;;  %8491 = vmatpush3.msra.mxu1 %v658_v1  ;;  %v655_v12 = vld [vmem:[%s9347_s28 + $0x38] sm:$0xff]  ;;  %v8336_v16 = vld [vmem:[#allocation8] ss:$0 sm:$0xff]  ;;  %633 = vst.msk [vmem:[#allocation2 + $0x60] sm:$0xff] %vm611_vm0, %v14482_v41  ;;  %634 = vst.msk [vmem:[#allocation2 + $0x78] sm:$0xff] %vm611_vm0, %v14482_v41  ;;  %v9528_v0 = vsub.s32 2, %v9487_v43 }
  0xb0   : > { %8415 = vmatpush3.msra.mxu0 %v657_v3  ;;  %8488 = vmatprep.subr.mxu1 %v657_v3  ;;  %v831_v13 = vld [vmem:[#allocation11 + $0x10] sm:$0xff]  ;;  %635 = vst.msk [vmem:[#allocation2 + $0x90] sm:$0xff] %vm611_vm0, %v14482_v41  ;;  %636 = vst.msk [vmem:[#allocation2 + $0xa8] sm:$0xff] %vm611_vm0, %v14482_v41  ;;  %v963_v45 = vld [vmem:[#allocation12] sm:$0x7]  ;;  %vm1911_vm3 = vcmask 1046528  }
  0xb1   : > { %8416 = vmatprep.subr.mxu0 %v656_v4  ;;  %8492 = vmatpush3.msra.mxu1 %v657_v3  ;;  %640 = vst.msk [vmem:[#allocation2 + $0x58] sm:$0xff] %vm611_vm0, %v14482_v41  ;;  %641 = vst.msk [vmem:[#allocation2 + $0x70] sm:$0xff] %vm611_vm0, %v14482_v41  ;;  %v964_v46 = vld [vmem:[#allocation12 + $0x4] sm:$0x7]  ;;  %v9493_v47 = vrot.slane %v963_v45, %v9490_v44  ;;  %v965_v48 = vld [vmem:[#allocation12 + $0x8] sm:$0x7]  ;;  %v9521_v60 = vrot.slane %v963_v45, %v9501_v51 }
  0xb2   : > { %8417 = vmatpush3.msra.mxu0 %v656_v4  ;;  %8489 = vmatprep.subr.mxu1 %v656_v4  ;;  %612 = vst.msk [vmem:[#allocation2] sm:$0xff] %vm611_vm0, %v14482_v41  ;;  %613 = vst.msk [vmem:[#allocation2 + $0x8] sm:$0xff] %vm611_vm0, %v14482_v41  ;;  %v9496_v49 = vrot.slane %v964_v46, %v9490_v44  ;;  %v9498_v50 = vld [vmem:[#allocation2 + $0x30] sm:$0xff]  ;;  %v9510_v55 = vrot.slane %v965_v48, %v9490_v44  ;;  %vm9073_vm4 = vmmov 0   ;;  %vm2632_vm5 = vcmask 1044480   ;;  %s15534_s14 = sld [smem:[#allocation106_spill]] }
  0xb3   : > { %8419 = vmatmul.mubr.msk.f32.vlgmr.msra.gmra.mxu0 %vm611_vm0, %v649_v5  ;;  %8493 = vmatpush3.msra.mxu1 %v656_v4  ;;  %614 = vst.msk [vmem:[#allocation2 + $0x10] sm:$0xff] %vm611_vm0, %v14482_v41  ;;  %615 = vst.msk [vmem:[#allocation2 + $0x18] sm:$0xff] %vm611_vm0, %v14482_v41  ;;  %v1008_v56 = vmul.f32 %v9493_v47, %v9498_v50  ;;  %v975_v1 = vld [vmem:[#allocation2 + $0x38] sm:$0xff]  ;;  %vm3093_vm6 = vcmask 1043456   ;;  %vm3534_vm7 = vcmask 1041408   ;;  %vm6268_vm8 = vcmask 1042432  }
  0xb4   : > { %8421 = vmatprep.mubr.msk.f32.mxu0 %vm611_vm0, %v650_v6  ;;  %8424 = vmatprep.mubr.msk.f32.mxu1 %vm611_vm0, %v652_v7  ;;  %616 = vst.msk [vmem:[#allocation2 + $0x20] sm:$0xff] %vm611_vm0, %v14482_v41  ;;  %617 = vst.msk [vmem:[#allocation2 + $0x28] sm:$0xff] %vm611_vm0, %v14482_v41  ;;  %vm7787_vm11 = vcmask 15360   ;;  %s15535_s28 = sld [smem:[#allocation107_spill]]  ;;  %vm8142_vm12 = vcmask 523264   ;;  %p15541_p11 = scmp.ne.s32.totalorder %s14872_s12, 0 }
  0xb5   : > { %8425 = vmatmul.mubr.msk.f32.vlgmr.msra.gmra.mxu1 %vm611_vm0, %v653_v8  ;;  %8430 = vmatprep.subr.mxu1 %v832_v9  ;;  %622 = vst.msk [vmem:[#allocation2 + $0x108] sm:$0xff] %vm611_vm0, %v14482_v41  ;;  %623 = vst.msk [vmem:[#allocation2 + $0x110] sm:$0xff] %vm611_vm0, %v14482_v41  ;;  %v9503_v52 = vld [vmem:[#allocation2 + $0x48] sm:$0xff]  ;;  %s15539_s25 = sld [smem:[#allocation109_spill]]  ;;  %s9074_s15 = smov [#allocation17]  }
  0xb6   : > { %8427 = vmatprep.mubr.msk.f32.mxu1 %vm611_vm0, %v654_v10  ;;  %8431 = vmatpush3.msra.mxu1 %v832_v9  ;;  %624 = vst.msk [vmem:[#allocation2 + $0x118] sm:$0xff] %vm611_vm0, %v14482_v41  ;;  %625 = vst.msk [vmem:[#allocation2 + $0x120] sm:$0xff] %vm611_vm0, %v14482_v41  ;;  %v9505_v53 = vld [vmem:[#allocation2 + $0x60] sm:$0xff]  ;;  %v9507_v54 = vld [vmem:[#allocation2 + $0x78] sm:$0xff]  ;;  %v1028_v58 = vmul.f32 %v9496_v49, %v9503_v52  ;;  %v1010_v62 = vmul.f32 %v9493_v47, %v9503_v52  ;;  %s15540_s27 = sld [smem:[#allocation110_spill]] }
  0xb7   : > { %8422 = vmatmul.mubr.msk.f32.gmra.mxu0 %vm611_vm0, %v651_v11  ;;  %8432 = vmatprep.subr.mxu1 %v831_v13  ;;  %626 = vst.msk [vmem:[#allocation2 + $0x128] sm:$0xff] %vm611_vm0, %v14482_v41  ;;  %627 = vst.msk [vmem:[#allocation2 + $0x130] sm:$0xff] %vm611_vm0, %v14482_v41  ;;  %v1012_v57 = vmul.f32 %v9493_v47, %v9505_v53  ;;  %v1032_v59 = vmul.f32 %v9496_v49, %v9507_v54  ;;  %v986_v61 = vld [vmem:[#allocation2 + $0x90] sm:$0xff]  ;;  %v989_v2 = vld [vmem:[#allocation2 + $0xa8] sm:$0xff] }
  0xb8   : > { %8433 = vmatpush3.msra.mxu1 %v831_v13  ;;  %628 = vst.msk [vmem:[#allocation2 + $0x138] sm:$0xff] %vm611_vm0, %v14482_v41  ;;  %629 = vst.msk [vmem:[#allocation2 + $0x140] sm:$0xff] %vm611_vm0, %v14482_v41  ;;  %8450 = vmatprep.subr.mxu0 %v14482_v41  ;;  %v1030_v63 = vmul.f32 %v9496_v49, %v9505_v53  ;;  %v1044_v3 = vadd.f32 %v1028_v58, %v1008_v56 }
  0xb9   : > { %8428 = vmatmul.mubr.msk.f32.gmra.mxu1 %vm611_vm0, %v655_v12  ;;  %8434 = vmatprep.subr.mxu1 %v830_v14  ;;  %630 = vst.msk [vmem:[#allocation2 + $0x148] sm:$0xff] %vm611_vm0, %v14482_v41  ;;  %637 = vst.msk [vmem:[#allocation2 + $0xc0] sm:$0xff] %vm611_vm0, %v14482_v41  ;;  %v1048_v4 = vadd.f32 %v1032_v59, %v1012_v57  ;;  %v1064_v5 = vmul.f32 %v9510_v55, %v9505_v53 }
  0xba   : > { %8435 = vmatpush3.msra.mxu1 %v830_v14  ;;  %638 = vst.msk [vmem:[#allocation2 + $0xd8] sm:$0xff] %vm611_vm0, %v14482_v41  ;;  %639 = vst.msk [vmem:[#allocation2 + $0xf0] sm:$0xff] %vm611_vm0, %v14482_v41  ;;  %v1068_v6 = vmul.f32 %v9510_v55, %v986_v61  ;;  %v1046_v7 = vadd.f32 %v1030_v63, %v1010_v62  ;;  %v1066_v8 = vmul.f32 %v9510_v55, %v9507_v54  ;;  %v976_v14 = vld [vmem:[#allocation2 + $0x40] sm:$0xff] }
  0xbb   : > { %8436 = vmatprep.subr.mxu1 %v829_v15  ;;  %642 = vst.msk [vmem:[#allocation2 + $0x88] sm:$0xff] %vm611_vm0, %v14482_v41  ;;  %643 = vst.msk [vmem:[#allocation2 + $0xa0] sm:$0xff] %vm611_vm0, %v14482_v41  ;;  %v9536_v9 = vmul.f32 %v9521_v60, %v975_v1  ;;  %v9539_v10 = vrot.slane %v964_v46, %v9501_v51  ;;  %v9542_v11 = vrot.slane %v965_v48, %v9501_v51 }
  0xbc   : > { %8437 = vmatpush3.msra.mxu1 %v829_v15  ;;  %644 = vst.msk [vmem:[#allocation2 + $0xb8] sm:$0xff] %vm611_vm0, %v14482_v41  ;;  %645 = vst.msk [vmem:[#allocation2 + $0xd0] sm:$0xff] %vm611_vm0, %v14482_v41  ;;  %v9545_v12 = vrot.slane %v963_v45, %v9528_v0  ;;  %v9548_v13 = vrot.slane %v964_v46, %v9528_v0  ;;  %v979_v15 = vld [vmem:[#allocation2 + $0x58] sm:$0xff] }
  0xbd   : > { %646 = vst.msk [vmem:[#allocation2 + $0xe8] sm:$0xff] %vm611_vm0, %v14482_v41  ;;  %647 = vst.msk [vmem:[#allocation2 + $0x100] sm:$0xff] %vm611_vm0, %v14482_v41  ;;  %8461 = vmatprep.subr.mxu1 %v14482_v41 }
  0xbe   : > { %14893 = vst [vmem:[#allocation32_spill] sm:$0xff] %v9487_v43  ;;  %14894 = vst [vmem:[#allocation33_spill] sm:$0xff] %v9490_v44  ;;  %v9587_v56 = vmul.f32 %v9548_v13, %v979_v15  ;;  %v9595_v62 = vmul.f32 %v9545_v12, %v975_v1 }
  0xbf   : > { %14895 = vst [vmem:[#allocation34_spill] sm:$0xff] %v9498_v50  ;;  %14896 = vst [vmem:[#allocation35_spill] sm:$0xff] %v9501_v51 }
  0xc0   : > { %14897 = vst [vmem:[#allocation36_spill] sm:$0xff] %v9505_v53  ;;  %14898 = vst [vmem:[#allocation37_spill] sm:$0xff] %v9507_v54 }
  0xc1   : > { %14899 = vst [vmem:[#allocation38_spill] sm:$0xff] %v9528_v0  ;;  %14900 = vst [vmem:[#allocation39_spill] sm:$0xff] %v9548_v13 }
 0x173   : > { %v9385_v17 = vpop.f32.mrf.mxu0 }
 0x174   : > { %14885 = vst [vmem:[#allocation24_spill] sm:$0xff] %v9385_v17  ;;  %v797_v18 = vadd.f32 %v9385_v17, %v8336_v16 }
 0x175   : > { %v9388_v19 = vpop.f32.mrf.mxu0  ;;  %v9390_v20 = vpop.f32.mrf.mxu1 }
 0x176   : > { %14886 = vst [vmem:[#allocation25_spill] sm:$0xff] %v9388_v19  ;;  %14887 = vst [vmem:[#allocation26_spill] sm:$0xff] %v9390_v20  ;;  %v796_v21 = vadd.f32 %v8336_v16, %v9388_v19  ;;  %v805_v26 = vmax.f32 %v797_v18, 0.0  ;;  %v801_v36 = vadd.f32 %v9390_v20, %v8336_v16  ;;  %v9554_v18 = vmul.f32 %v9493_v47, %v975_v1 }
 0x177   : > { %v9393_v22 = vpop.f32.mrf.mxu0  ;;  %v9395_v23 = vpop.f32.mrf.mxu1 }
 0x178   : > { %14888 = vst [vmem:[#allocation27_spill] sm:$0xff] %v9393_v22  ;;  %14889 = vst [vmem:[#allocation28_spill] sm:$0xff] %v9395_v23  ;;  %v804_v24 = vmax.f32 %v796_v21, 0.0  ;;  %v800_v25 = vadd.f32 %v8336_v16, %v9395_v23  ;;  %v799_v27 = vadd.f32 %v9393_v22, %v8336_v16  ;;  %v809_v39 = vmax.f32 %v801_v36, 0.0 }
 0x179   : > { %v9399_v28 = vpop.f32.mrf.mxu0  ;;  %v9401_v29 = vpop.f32.mrf.mxu1  ;;  %v1016_v21 = vmul.f32 %v9493_v47, %v986_v61  ;;  %v1257_v36 = vmul.f32 %v9545_v12, %v976_v14 }
 0x17a   : > { %14890 = vst [vmem:[#allocation29_spill] sm:$0xff] %v9399_v28  ;;  %14891 = vst [vmem:[#allocation30_spill] sm:$0xff] %v9401_v29  ;;  %v798_v30 = vadd.f32 %v8336_v16, %v9399_v28  ;;  %8438 = vmatprep.mubr.msk.f32.mxu1 %vm611_vm0, %v804_v24  ;;  %v808_v33 = vmax.f32 %v800_v25, 0.0  ;;  %v807_v35 = vmax.f32 %v799_v27, 0.0  ;;  %v803_v37 = vadd.f32 %v9401_v29, %v8336_v16  ;;  %v9558_v25 = vld [vmem:[#allocation2 + $0xd8] sm:$0xff] }
 0x17b   : > { %8439 = vmatmul.mubr.msk.f32.vlgmr.msra.gmra.mxu1 %vm611_vm0, %v805_v26  ;;  %v9406_v31 = vpop.f32.mrf.mxu1  ;;  %v1036_v24 = vmul.f32 %v9496_v49, %v989_v2  ;;  %14902 = vst [vmem:[#allocation41_spill] sm:$0xff] %v9558_v25  ;;  %v982_v26 = vld [vmem:[#allocation2 + $0x70] sm:$0xff]  ;;  %v1014_v27 = vmul.f32 %v9493_v47, %v9507_v54  ;;  %v1040_v46 = vmul.f32 %v9496_v49, %v9558_v25 }
 0x17c   : > { %14892 = vst [vmem:[#allocation31_spill] sm:$0xff] %v9406_v31  ;;  %v806_v32 = vmax.f32 %v798_v30, 0.0  ;;  %v802_v34 = vadd.f32 %v8336_v16, %v9406_v31  ;;  %v811_v40 = vmax.f32 %v803_v37, 0.0  ;;  %v9551_v16 = vrot.slane %v965_v48, %v9528_v0 }
 0x17d   : > { %v1034_v30 = vmul.f32 %v9496_v49, %v986_v61  ;;  %v9570_v37 = vmul.f32 %v9545_v12, %v979_v15  ;;  %v9584_v48 = vmul.f32 %v9545_v12, %v982_v26  ;;  %v1022_v57 = vmul.f32 %v9493_v47, %v9558_v25  ;;  %v994_v15 = vld [vmem:[#allocation2 + $0xd0] sm:$0xff] }
 0x17e   : > { %8441 = vmatprep.mubr.msk.f32.mxu1 %vm611_vm0, %v806_v32  ;;  %v810_v38 = vmax.f32 %v802_v34, 0.0  ;;  %14901 = vst [vmem:[#allocation40_spill] sm:$0xff] %v9551_v16  ;;  %v1080_v32 = vadd.f32 %v1064_v5, %v1044_v3  ;;  %v9565_v34 = vadd.f32 %v1066_v8, %v1046_v7  ;;  %v1070_v61 = vmul.f32 %v9510_v55, %v989_v2  ;;  %v1001_v3 = vld [vmem:[#allocation2 + $0x108] sm:$0xff]  ;;  %v988_v8 = vld [vmem:[#allocation2 + $0xa0] sm:$0xff] }
 0x17f   : > { %8442 = vmatmul.mubr.msk.f32.gmra.mxu1 %vm611_vm0, %v807_v35  ;;  %v14484_v35 = vrot.slane %v9536_v9, 1  ;;  %14905 = vst [vmem:[#allocation44_spill] sm:$0xff] %v9584_v48  ;;  %v1050_v59 = vadd.f32 %v1034_v30, %v1014_v27  ;;  %v9598_v63 = vmul.f32 %v9548_v13, %v982_v26  ;;  %v985_v7 = vld [vmem:[#allocation2 + $0x88] sm:$0xff]  ;;  %v1052_v14 = vadd.f32 %v1036_v24, %v1016_v21  ;;  %v9617_v24 = vld [vmem:[#allocation2 + $0x110] sm:$0xff] }
 0x180   : > { %8444 = vmatprep.mubr.msk.f32.mxu1 %vm611_vm0, %v808_v33  ;;  %v9563_v33 = vadd.f32 %v1068_v6, %v1048_v4  ;;  %v9606_v6 = vmul.f32 %v9551_v16, %v982_v26  ;;  %v1078_v26 = vmul.f32 %v9510_v55, %v1001_v3  ;;  %14907 = vst [vmem:[#allocation46_spill] sm:$0xff] %v9617_v24 }
 0x181   : > { %14906 = vst [vmem:[#allocation45_spill] sm:$0xff] %v9598_v63  ;;  %v9602_v4 = vadd.f32 %v14484_v35, %v1080_v32  ;;  %v1074_v32 = vmul.f32 %v9510_v55, %v9558_v25  ;;  %v14492_v35 = vrot.slane %v9595_v62, 2  ;;  %v9634_v3 = vadd.f32 %v1070_v61, %v1050_v59  ;;  %v1000_v61 = vld [vmem:[#allocation2 + $0x100] sm:$0xff] }
 0x182   : > { %v9646_v31 = vmul.f32 %v9510_v55, %v9617_v24  ;;  %v9694_v20 = vmul.f32 %v9551_v16, %v985_v7  ;;  %v9697_v28 = vmul.f32 %v9551_v16, %v994_v15  ;;  %v9719_v25 = vmul.f32 %v9551_v16, %v1000_v61 }
 0x183   : > { %8445 = vmatmul.mubr.msk.f32.gmra.mxu1 %vm611_vm0, %v809_v39  ;;  %v9574_v39 = vld [vmem:[#allocation2 + $0xf0] sm:$0xff] }
 0x184   : > { %8447 = vmatprep.mubr.msk.f32.mxu1 %vm611_vm0, %v810_v38  ;;  %v9572_v38 = vld [vmem:[#allocation2 + $0xc0] sm:$0xff]  ;;  %14904 = vst [vmem:[#allocation43_spill] sm:$0xff] %v9574_v39  ;;  %v1042_v58 = vmul.f32 %v9496_v49, %v9574_v39  ;;  %v1076_v5 = vmul.f32 %v9510_v55, %v9574_v39  ;;  %14920 = vst [vmem:[#allocation59_spill] sm:$0xff] %v9694_v20 }
 0x185   : > { %14903 = vst [vmem:[#allocation42_spill] sm:$0xff] %v9572_v38  ;;  %v1020_v42 = vmul.f32 %v9493_v47, %v9572_v38  ;;  %v1038_v45 = vmul.f32 %v9496_v49, %v9572_v38  ;;  %v1072_v30 = vmul.f32 %v9510_v55, %v9572_v38  ;;  %14921 = vst [vmem:[#allocation60_spill] sm:$0xff] %v9697_v28 }
 0x186   : > { %v1058_v41 = vadd.f32 %v1042_v58, %v1022_v57  ;;  %v9629_v57 = vmul.f32 %v9542_v11, %v9617_v24  ;;  %v9632_v58 = vmul.f32 %v9545_v12, %v994_v15  ;;  %14927 = vst [vmem:[#allocation66_spill] sm:$0xff] %v9719_v25 }
 0x187   : > { %8448 = vmatmul.mubr.msk.f32.gmra.mxu1 %vm611_vm0, %v811_v40  ;;  %v1018_v40 = vmul.f32 %v9493_v47, %v989_v2  ;;  %v1290_v2 = vrot.slane %v1257_v36, 2  ;;  %v1056_v27 = vadd.f32 %v1040_v46, %v1020_v42  ;;  %v9620_v36 = vmul.f32 %v9545_v12, %v985_v7  ;;  %v991_v46 = vld [vmem:[#allocation2 + $0xb8] sm:$0xff] }
 0x188   : > { %14910 = vst [vmem:[#allocation49_spill] sm:$0xff] %v9632_v58  ;;  %v1003_v42 = vld [vmem:[#allocation2 + $0x118] sm:$0xff]  ;;  %v9642_v43 = vadd.f32 %v1072_v30, %v1052_v14  ;;  %v9652_v59 = vadd.f32 %v1078_v26, %v1058_v41  ;;  %v9660_v30 = vmul.f32 %v9548_v13, %v988_v8  ;;  %v9668_v41 = vmul.f32 %v9551_v16, %v9617_v24  ;;  %v9711_v24 = vld [vmem:[#allocation14] sm:$0x7f] }
 0x189   : > { %v1054_v1 = vadd.f32 %v1038_v45, %v1018_v40  ;;  %14908 = vst [vmem:[#allocation47_spill] sm:$0xff] %v9620_v36  ;;  %v9623_v40 = vmul.f32 %v9545_v12, %v988_v8  ;;  %v9639_v21 = vsel %vm1288_vm1, %v14492_v35, %v1290_v2  ;;  %v997_v45 = vld [vmem:[#allocation2 + $0xe8] sm:$0xff]  ;;  %v9650_v23 = vadd.f32 %v1076_v5, %v1056_v27 }
 0x18a   : > { %v9655_v2 = vmul.f32 %v9545_v12, %v991_v46  ;;  %14912 = vst [vmem:[#allocation51_spill] sm:$0xff] %v9660_v30  ;;  %14913 = vst [vmem:[#allocation52_spill] sm:$0xff] %v9668_v41  ;;  %v1456_v27 = vmul.f32 %v9551_v16, %v1003_v42  ;;  %v9679_v26 = vmul.f32 %v9548_v13, %v985_v7  ;;  %v14930_v28 = vrot.slane %v9668_v41, 2 }
 0x18b   : > { %14909 = vst [vmem:[#allocation48_spill] sm:$0xff] %v9623_v40  ;;  %v9648_v29 = vadd.f32 %v1074_v32, %v1054_v1  ;;  %v9676_v32 = vmul.f32 %v9545_v12, %v997_v45  ;;  %v9682_v5 = vmul.f32 %v9548_v13, %v994_v15  ;;  %v9685_v14 = vmul.f32 %v9551_v16, %v988_v8  ;;  %v9713_v15 = vld [vmem:[#allocation14 + $0x8] sm:$0x7f] }
 0x18c   : > { %14911 = vst [vmem:[#allocation50_spill] sm:$0xff] %v9655_v2  ;;  %14915 = vst [vmem:[#allocation54_spill] sm:$0xff] %v9679_v26  ;;  %v9688_v35 = vmul.f32 %v9548_v13, %v991_v46  ;;  %v9691_v1 = vmul.f32 %v9548_v13, %v1000_v61  ;;  %v9703_v22 = vmul.f32 %v9548_v13, %v997_v45  ;;  %v1495_v38 = vrot.slane %v1456_v27, 2 }
 0x18d   : > { %14914 = vst [vmem:[#allocation53_spill] sm:$0xff] %v9676_v32  ;;  %14916 = vst [vmem:[#allocation55_spill] sm:$0xff] %v9682_v5  ;;  %v9707_v17 = vmul.f32 %v9551_v16, %v991_v46  ;;  %v9716_v39 = vmul.f32 %v9551_v16, %v997_v45  ;;  %v962_v46 = vld [vmem:[%s14465_s8] sm:$0x7]  ;;  %v9744_v54 = vrot.slane %v9711_v24, %v9490_v44 }
 0x18e   : > { %14917 = vst [vmem:[#allocation56_spill] sm:$0xff] %v9685_v14  ;;  %14918 = vst [vmem:[#allocation57_spill] sm:$0xff] %v9688_v35  ;;  %v9748_v61 = vrot.slane %v9713_v15, %v9490_v44 }
 0x18f   : > { %14919 = vst [vmem:[#allocation58_spill] sm:$0xff] %v9691_v1  ;;  %14922 = vst [vmem:[#allocation61_spill] sm:$0xff] %v9703_v22 }
 0x190   : > { %14923 = vst [vmem:[#allocation62_spill] sm:$0xff] %v9707_v17  ;;  %14924 = vst [vmem:[#allocation63_spill] sm:$0xff] %v9711_v24  ;;  %v9761_v24 = vsel %vm1288_vm1, %v14930_v28, %v1495_v38  ;;  %v9780_v28 = vmul.f32 %v9744_v54, %v9498_v50  ;;  %v9784_v38 = vmul.f32 %v9748_v61, %v9503_v52 }
 0x191   : > { %14925 = vst [vmem:[#allocation64_spill] sm:$0xff] %v9713_v15  ;;  %14926 = vst [vmem:[#allocation65_spill] sm:$0xff] %v9716_v39  ;;  %v9764_v15 = vrot.slane %v962_v46, %v9490_v44 }
 0x192   : > { %14928 = vst [vmem:[#allocation67_spill] sm:$0xff] %v9744_v54  ;;  %14929 = vst [vmem:[#allocation68_spill] sm:$0xff] %v9748_v61 }
 0x193   : > { %14931 = vst [vmem:[#allocation69_spill] sm:$0xff] %v9761_v24  ;;  %14932 = vst [vmem:[#allocation70_spill] sm:$0xff] %v9764_v15 }
 0x194   : > { %14933 = vst [vmem:[#allocation71_spill] sm:$0xff] %v9780_v28  ;;  %14934 = vst [vmem:[#allocation72_spill] sm:$0xff] %v9784_v38 }
 0x23b   : > { %v9662_v0 = vpop.f32.mrf.mxu1 }
 0x23c   : > { %967 = vst.msk [vmem:[#allocation2 + $0x68] sm:$0xff] %vm611_vm0, %v9662_v0  ;;  %1645 = vrot.lane.b32.xlu0 %v9662_v0, %s9070_s1 }
 0x23d   : > { %v923_v42 = vpop.f32.mrf.mxu1 }
 0x23e   : > { %966 = vst.msk [vmem:[#allocation2 + $0x50] sm:$0xff] %vm611_vm0, %v923_v42  ;;  %3626 = vrot.lane.b32.xlu1 %v923_v42, %s9071_s3 }
 0x23f   : > { %v9709_v7 = vpop.f32.mrf.mxu1 }
 0x240   : > { %969 = vst.msk [vmem:[#allocation2 + $0x98] sm:$0xff] %vm611_vm0, %v9709_v7  ;;  %1643 = vrot.lane.b32.xlu0 %v923_v42, %s9070_s1 }
 0x241   : > { %v9732_v53 = vpop.f32.mrf.mxu1 }
 0x242   : > { %968 = vst.msk [vmem:[#allocation2 + $0x80] sm:$0xff] %vm611_vm0, %v9732_v53  ;;  %1649 = vrot.lane.b32.xlu1 %v9709_v7, %s9070_s1 }
 0x243   : > { %v9752_v45 = vpop.f32.mrf.mxu1  ;;  %v9754_v51 = vld [vmem:[#allocation2 + $0x68] sm:$0xff] }
 0x244   : > { %971 = vst.msk [vmem:[#allocation2 + $0xc8] sm:$0xff] %vm611_vm0, %v9752_v45  ;;  %1653 = vrot.lane.b32.xlu0 %v9752_v45, %s9070_s1  ;;  %v9772_v42 = vmul.f32 %v9493_v47, %v9754_v51  ;;  %v9776_v8 = vmul.f32 %v9521_v60, %v9754_v51  ;;  %v1031_v19 = vmul.f32 %v9496_v49, %v9754_v51 }
 0x245   : > { %v9786_v46 = vpop.f32.mrf.mxu1  ;;  %v9792_v27 = vmul.f32 %v9539_v10, %v9754_v51  ;;  %v1204_v44 = vmul.f32 %v9542_v11, %v9754_v51  ;;  %v9798_v54 = vmul.f32 %v9551_v16, %v9754_v51  ;;  %v978_v50 = vld [vmem:[#allocation2 + $0x50] sm:$0xff]  ;;  %v1065_v24 = vmul.f32 %v9510_v55, %v9754_v51 }
 0x246   : > { %970 = vst.msk [vmem:[#allocation2 + $0xb0] sm:$0xff] %vm611_vm0, %v9786_v46  ;;  %1647 = vrot.lane.b32.xlu1 %v9732_v53, %s9070_s1  ;;  %v1011_v61 = vmul.f32 %v9493_v47, %v978_v50  ;;  %v1029_v38 = vmul.f32 %v9496_v49, %v978_v50  ;;  %v9808_v28 = vmul.f32 %v9521_v60, %v978_v50 }
 0x247   : > { %v9810_v15 = vpop.f32.mrf.mxu1  ;;  %v1473_v39 = vrot.slane %v9798_v54, 2  ;;  %v1152_v17 = vmul.f32 %v9539_v10, %v978_v50  ;;  %v1220_v52 = vrot.slane %v1204_v44, 1  ;;  %v14935_v54 = vrot.slane %v9776_v8, 1  ;;  %v9836_v44 = vld [vmem:[#allocation2 + $0x98] sm:$0xff] }
 0x248   : > { %973 = vst.msk [vmem:[#allocation2 + $0xf8] sm:$0xff] %vm611_vm0, %v9810_v15  ;;  %1651 = vrot.lane.b32.xlu0 %v9786_v46, %s9070_s1  ;;  %v1045_v14 = vadd.f32 %v1029_v38, %v9554_v18  ;;  %v9822_v20 = vadd.f32 %v1031_v19, %v1011_v61  ;;  %v14531_v25 = vrot.slane %v9808_v28, 1  ;;  %v9833_v35 = vmul.f32 %v9545_v12, %v978_v50 }
 0x249   : > { %v9825_v22 = vpop.f32.mrf.mxu1  ;;  %v9830_v41 = vadd.f32 %v14935_v54, %v9563_v33  ;;  %v1168_v5 = vrot.slane %v1152_v17, 1  ;;  %v1349_v30 = vmul.f32 %v9548_v13, %v978_v50  ;;  %v9838_v18 = vld [vmem:[#allocation2 + $0x80] sm:$0xff]  ;;  %v14936_v33 = vrot.slane %v9606_v6, 2 }
 0x24a   : > { %972 = vst.msk [vmem:[#allocation2 + $0xe0] sm:$0xff] %vm611_vm0, %v9825_v22  ;;  %3628 = vrot.lane.b32.xlu1 %v9662_v0, %s9071_s3  ;;  %v1081_v19 = vadd.f32 %v1065_v24, %v1045_v14  ;;  %v1134_v17 = vadd.f32 %v14531_v25, %v9565_v34  ;;  %v1033_v50 = vmul.f32 %v9496_v49, %v9838_v18  ;;  %v14533_v54 = vrot.slane %v9833_v35, 2 }
 0x24b   : > { %v1475_v61 = vsel %vm1288_vm1, %v1473_v39, %v14936_v33  ;;  %v1184_v38 = vadd.f32 %v1168_v5, %v9602_v4  ;;  %v1381_v26 = vrot.slane %v1349_v30, 2  ;;  %v9854_v63 = vld [vmem:[#allocation2 + $0xc8] sm:$0xff]  ;;  %v1067_v0 = vmul.f32 %v9510_v55, %v9838_v18 }
 0x24c   : > { %1657 = vrot.lane.b32.xlu0 %v9810_v15, %s9070_s1  ;;  %v14937_v34 = vrot.slane %v9536_v9, 1  ;;  %v14938_v24 = vrot.slane %v9792_v27, 1  ;;  %v1015_v4 = vmul.f32 %v9493_v47, %v9838_v18  ;;  %v1017_v30 = vmul.f32 %v9493_v47, %v9836_v44 }
 0x24d   : > { %v1236_v33 = vadd.f32 %v1220_v52, %v1184_v38  ;;  %v14939_v25 = vrot.slane %v9570_v37, 2  ;;  %v14941_v9 = vrot.slane %v9587_v56, 2  ;;  %v1039_v32 = vmul.f32 %v9496_v49, %v9854_v63 }
 0x24e   : > { %v1133_v6 = vadd.f32 %v14937_v34, %v1081_v19  ;;  %v9864_v14 = vadd.f32 %v14938_v24, %v1134_v17  ;;  %v9880_v17 = vld [vmem:[#allocation2 + $0xb0] sm:$0xff]  ;;  %v1021_v34 = vmul.f32 %v9493_v47, %v9854_v63  ;;  %3630 = vrot.lane.b32.xlu1 %v9732_v53, %s9071_s3  ;;  %v14942_v24 = vrot.slane %v9595_v62, 2 }
 0x24f   : > { %v9875_v1 = vsel %vm1288_vm1, %v14533_v54, %v14939_v25  ;;  %v1383_v19 = vsel %vm1288_vm1, %v1381_v26, %v14941_v9  ;;  %v1019_v37 = vmul.f32 %v9493_v47, %v9880_v17  ;;  %v1035_v25 = vmul.f32 %v9496_v49, %v9836_v44  ;;  %v999_v54 = vld [vmem:[#allocation2 + $0xf8] sm:$0xff] }
 0x250   : > { %14940 = vst [vmem:[#allocation73_spill] sm:$0xff] %v9875_v1  ;;  %v1185_v38 = vadd.f32 %v1168_v5, %v1133_v6  ;;  %v1037_v56 = vmul.f32 %v9496_v49, %v9880_v17  ;;  %v1329_v9 = vadd.f32 %v14942_v24, %v1236_v33  ;;  %v1049_v58 = vadd.f32 %v1033_v50, %v9772_v42 }
 0x251   : > { %v1069_v53 = vmul.f32 %v9510_v55, %v9836_v44  ;;  %1655 = vrot.lane.b32.xlu0 %v9825_v22, %s9070_s1  ;;  %v1043_v6 = vmul.f32 %v9496_v49, %v999_v54  ;;  %v1077_v2 = vmul.f32 %v9510_v55, %v999_v54  ;;  %v9904_v62 = vmul.f32 %v9539_v10, %v999_v54  ;;  %v9915_v40 = vld [vmem:[#allocation2 + $0xe0] sm:$0xff] }
 0x252   : > { %v1237_v5 = vadd.f32 %v1220_v52, %v1185_v38  ;;  %v1421_v33 = vadd.f32 %v1381_v26, %v1329_v9  ;;  %v9907_v24 = vmul.f32 %v9542_v11, %v999_v54  ;;  %v9910_v42 = vmul.f32 %v9548_v13, %v999_v54  ;;  %3632 = vrot.lane.b32.xlu1 %v9709_v7, %s9071_s3 }
 0x253   : > { %v9913_v50 = vmul.f32 %v9551_v16, %v999_v54  ;;  %v1023_v26 = vmul.f32 %v9493_v47, %v9915_v40  ;;  %v1041_v9 = vmul.f32 %v9496_v49, %v9915_v40  ;;  %v1051_v7 = vadd.f32 %v1035_v25, %v1015_v4 }
 0x254   : > { %v1330_v52 = vadd.f32 %v9639_v21, %v1237_v5  ;;  %v9925_v13 = vadd.f32 %v1473_v39, %v1421_v33  ;;  %v1226_v54 = vrot.slane %v9907_v24, 1  ;;  %v1402_v16 = vrot.slane %v9910_v42, 2  ;;  %v14972_v42 = vld [vmem:[#allocation51_spill] sm:$0xff] }
 0x255   : > { %v1491_v36 = vrot.slane %v9913_v50, 2  ;;  %3634 = vrot.lane.b32.xlu0 %v9786_v46, %s9071_s3  ;;  %v1053_v5 = vadd.f32 %v1037_v56, %v1017_v30  ;;  %v1055_v38 = vadd.f32 %v1039_v32, %v1019_v37  ;;  %v1057_v48 = vadd.f32 %v1041_v9, %v1021_v34  ;;  %v8337_v56 = vld [vmem:[#allocation9] ss:$0 sm:$0xff]  ;;  %v14988_v50 = vld [vmem:[#allocation60_spill] sm:$0xff] }
 0x256   : > { %v1422_v21 = vadd.f32 %v1383_v19, %v1330_v52  ;;  %v1546_v47 = vrot.slane %v9925_v13, 7  ;;  %v1059_v1 = vadd.f32 %v1043_v6, %v1023_v26  ;;  %v1071_v49 = vmul.f32 %v9510_v55, %v9880_v17  ;;  %3636 = vrot.lane.b32.xlu1 %v9752_v45, %s9071_s3 }
 0x257   : > { %v1073_v33 = vmul.f32 %v9510_v55, %v9854_v63  ;;  %v1075_v46 = vmul.f32 %v9510_v55, %v9915_v40  ;;  %v1083_v32 = vadd.f32 %v1067_v0, %v9822_v20  ;;  %v1085_v4 = vadd.f32 %v1069_v53, %v1049_v58 }
 0x258   : > { %v9937_v39 = vadd.f32 %v1475_v61, %v1422_v21  ;;  %v1087_v30 = vadd.f32 %v1071_v49, %v1051_v7  ;;  %v1093_v19 = vadd.f32 %v1077_v2, %v1057_v48  ;;  %v1095_v34 = vadd.f32 %v9646_v31, %v1059_v1 }
 0x259   : > { %3638 = vrot.lane.b32.xlu0 %v9825_v22, %s9071_s3  ;;  %v1089_v61 = vadd.f32 %v1073_v33, %v1053_v5  ;;  %v1091_v37 = vadd.f32 %v1075_v46, %v1055_v38  ;;  %v1103_v25 = vmul.f32 %v9521_v60, %v9838_v18  ;;  %v1104_v55 = vmul.f32 %v9521_v60, %v9836_v44 }
 0x25a   : > { %v1547_v45 = vrot.slane %v9937_v39, 7  ;;  %v1105_v20 = vmul.f32 %v9521_v60, %v9880_v17  ;;  %v1106_v31 = vmul.f32 %v9521_v60, %v9854_v63  ;;  %v1107_v22 = vmul.f32 %v9521_v60, %v9915_v40  ;;  %3640 = vrot.lane.b32.xlu1 %v9810_v15, %s9071_s3 }
 0x25b   : > { %v1119_v48 = vrot.slane %v1103_v25, 1  ;;  %v14943_v58 = vrot.slane %v9808_v28, 1  ;;  %v14944_v1 = vrot.slane %v9776_v8, 1  ;;  %v1154_v53 = vmul.f32 %v9539_v10, %v9838_v18 }
 0x25c   : > { %v1120_v6 = vrot.slane %v1104_v55, 1  ;;  %v1121_v52 = vrot.slane %v1105_v20, 1  ;;  %v1122_v38 = vrot.slane %v1106_v31, 1  ;;  %v1123_v26 = vrot.slane %v1107_v22, 1 }
 0x25d   : > { %v1135_v2 = vadd.f32 %v14943_v58, %v1083_v32  ;;  %v1137_v0 = vadd.f32 %v14944_v1, %v1085_v4  ;;  %818 = vrot.lane.b32.xlu0 %v8337_v56, %s9072_s26  ;;  %v1138_v60 = vadd.f32 %v1119_v48, %v9634_v3  ;;  %v1139_v9 = vadd.f32 %v1119_v48, %v1087_v30  ;;  %s14389_s26 = scalar_lea.vmem [#allocation17], %s8319_s7  ;;  %s8366_s7 = sshll.u32 %s9178_s24, 10 }
 0x25e   : > { %v1155_v15 = vmul.f32 %v9539_v10, %v9836_v44  ;;  %v1156_v28 = vmul.f32 %v9539_v10, %v9880_v17  ;;  %v1140_v8 = vadd.f32 %v1120_v6, %v9642_v43  ;;  %v1141_v21 = vadd.f32 %v1120_v6, %v1089_v61  ;;  %s8165_s10 = sshll.u32 %s14389_s26, 4  ;;  %s8152_s24 = scalar_lea.sflag [#allocation5], %s9341_s5  ;;  %s14410_s10 = int_to_ptr.vmem [resolvable:$true] %s8165_s10 }
 0x25f   : > { %v1142_v7 = vadd.f32 %v1121_v52, %v9648_v29  ;;  %v1143_v5 = vadd.f32 %v1121_v52, %v1091_v37  ;;  %v1144_v49 = vadd.f32 %v1122_v38, %v9650_v23  ;;  %v1145_v33 = vadd.f32 %v1122_v38, %v1093_v19  ;;  %s8975_s2 = scalar_lea.vmem %s14410_s10, 1024 }
 0x260   : > { %v1146_v46 = vadd.f32 %v1123_v26, %v9652_v59  ;;  %v1147_v32 = vadd.f32 %v1123_v26, %v1095_v34  ;;  %v1157_v3 = vmul.f32 %v9539_v10, %v9854_v63  ;;  %v1158_v4 = vmul.f32 %v9539_v10, %v9915_v40  ;;  %p8976_p10 = scmp.ne.s32.totalorder %s14410_s10, %s8975_s2 }
 0x261   : > { %v1170_v30 = vrot.slane %v1154_v53, 1  ;;  %v1171_v25 = vrot.slane %v1155_v15, 1  ;;  %v1172_v56 = vrot.slane %v1156_v28, 1  ;;  %v14945_v43 = vrot.slane %v9792_v27, 1 }
 0x262   : > { %v14946_v29 = vrot.slane %v9904_v62, 1  ;;  %v1173_v59 = vrot.slane %v1157_v3, 1  ;;  %v1174_v34 = vrot.slane %v1158_v4, 1  ;;  %v1206_v62 = vmul.f32 %v9542_v11, %v9836_v44  ;;  %p8977_p1 = pnand %p8976_p10, %p15541_p11 }
 0x263   : > { %v1187_v61 = vadd.f32 %v14945_v43, %v1135_v2  ;;  %v1188_v55 = vadd.f32 %v1170_v30, %v9830_v41  ;;  %v1189_v20 = vadd.f32 %v1170_v30, %v1137_v0  ;;  %v1190_v31 = vadd.f32 %v1171_v25, %v1138_v60 }
 0x264   : > { %v1198_v37 = vadd.f32 %v14946_v29, %v1146_v46  ;;  %v14947_v23 = vmov %v14946_v29  ;;  %v1191_v22 = vadd.f32 %v1171_v25, %v1139_v9  ;;  %v1192_v10 = vadd.f32 %v1172_v56, %v1140_v8  ;;  %p8978_p3 = pneg %p8977_p1 }
 0x265   : > { %v1199_v19 = vadd.f32 %v14947_v23, %v1147_v32  ;;  %v1193_v48 = vadd.f32 %v1172_v56, %v1141_v21  ;;  %v1194_v58 = vadd.f32 %v1173_v59, %v1142_v7  ;;  %v1195_v1 = vadd.f32 %v1173_v59, %v1143_v5 }
 0x266   : > { %v1196_v53 = vadd.f32 %v1174_v34, %v1144_v49  ;;  %v1197_v27 = vadd.f32 %v1174_v34, %v1145_v33  ;;  %v1205_v2 = vmul.f32 %v9542_v11, %v9838_v18  ;;  %v1207_v6 = vmul.f32 %v9542_v11, %v9880_v17 }
 0x267   : > { %v1208_v41 = vmul.f32 %v9542_v11, %v9854_v63  ;;  %v1209_v0 = vmul.f32 %v9542_v11, %v9915_v40  ;;  %v14948_v26 = vrot.slane %v9629_v57, 1  ;;  %v1222_v15 = vrot.slane %v1206_v62, 1 }
 0x268   : > { %v1248_v52 = vadd.f32 %v1226_v54, %v1196_v53  ;;  %v1249_v38 = vadd.f32 %v1226_v54, %v1197_v27  ;;  %v1221_v9 = vrot.slane %v1205_v2, 1  ;;  %v1223_v28 = vrot.slane %v1207_v6, 1  ;;  %v14958_v6 = vld [vmem:[#allocation50_spill] sm:$0xff] }
 0x269   : > { %v1250_v60 = vadd.f32 %v14948_v26, %v1198_v37  ;;  %v1224_v8 = vrot.slane %v1208_v41, 1  ;;  %v1225_v21 = vrot.slane %v1209_v0, 1  ;;  %v14949_v7 = vmov %v14948_v26 }
 0x26a   : > { %v1251_v5 = vadd.f32 %v14949_v7, %v1199_v19  ;;  %v1260_v11 = vmul.f32 %v9545_v12, %v9754_v51  ;;  %v1262_v49 = vmul.f32 %v9545_v12, %v9838_v18  ;;  %v1238_v24 = vadd.f32 %v1221_v9, %v9864_v14 }
 0x26b   : > { %v1239_v54 = vadd.f32 %v1221_v9, %v1187_v61  ;;  %v1240_v33 = vadd.f32 %v1222_v15, %v1188_v55  ;;  %v1241_v46 = vadd.f32 %v1222_v15, %v1189_v20  ;;  %v1242_v32 = vadd.f32 %v1223_v28, %v1190_v31  ;;  %v14951_v55 = vld [vmem:[#allocation73_spill] sm:$0xff]  ;;  %v14952_v31 = vld [vmem:[#allocation44_spill] sm:$0xff] }
 0x26c   : > { %v1243_v3 = vadd.f32 %v1223_v28, %v1191_v22  ;;  %v1244_v4 = vadd.f32 %v1224_v8, %v1192_v10  ;;  %v1245_v30 = vadd.f32 %v1224_v8, %v1193_v48  ;;  %v1246_v25 = vadd.f32 %v1225_v21, %v1194_v58  ;;  %v14954_v48 = vld [vmem:[#allocation47_spill] sm:$0xff]  ;;  %v14960_v9 = vld [vmem:[#allocation49_spill] sm:$0xff] }
 0x26d   : > { %v1247_v56 = vadd.f32 %v1225_v21, %v1195_v1  ;;  %v1264_v57 = vmul.f32 %v9545_v12, %v9836_v44  ;;  %v1266_v43 = vmul.f32 %v9545_v12, %v9880_v17  ;;  %v1268_v29 = vmul.f32 %v9545_v12, %v9854_v63  ;;  %v14962_v8 = vld [vmem:[#allocation53_spill] sm:$0xff] }
 0x26e   : > { %v1270_v14 = vmul.f32 %v9545_v12, %v9915_v40  ;;  %v1295_v61 = vrot.slane %v1260_v11, 2  ;;  %v1298_v37 = vrot.slane %v1262_v49, 2  ;;  %v14950_v59 = vrot.slane %v9833_v35, 2  ;;  %v14956_v12 = vld [vmem:[#allocation48_spill] sm:$0xff] }
 0x26f   : > { %v1301_v23 = vrot.slane %v1264_v57, 2  ;;  %v1304_v19 = vrot.slane %v1266_v43, 2  ;;  %v1332_v20 = vadd.f32 %v14951_v55, %v1239_v54  ;;  %v14953_v22 = vrot.slane %v14952_v31, 2 }
 0x270   : > { %v1331_v34 = vadd.f32 %v14950_v59, %v1238_v24  ;;  %v14955_v58 = vrot.slane %v14954_v48, 2  ;;  %v1307_v53 = vrot.slane %v1268_v29, 2  ;;  %v1310_v27 = vrot.slane %v1270_v14, 2  ;;  %v14968_v48 = vld [vmem:[#allocation45_spill] sm:$0xff] }
 0x271   : > { %v1297_v10 = vsel %vm1288_vm1, %v1295_v61, %v14953_v22  ;;  %v14957_v2 = vrot.slane %v14956_v12, 2  ;;  %v14959_v41 = vrot.slane %v14958_v6, 2  ;;  %v1333_v0 = vadd.f32 %v1295_v61, %v1240_v33  ;;  %v14964_v33 = vld [vmem:[#allocation39_spill] sm:$0xff]  ;;  %v14967_v22 = vld [vmem:[#allocation40_spill] sm:$0xff] }
 0x272   : > { %v1300_v1 = vsel %vm1288_vm1, %v1298_v37, %v14955_v58  ;;  %v1334_v26 = vadd.f32 %v1297_v10, %v1241_v46  ;;  %v14961_v15 = vrot.slane %v14960_v9, 2  ;;  %v14963_v21 = vrot.slane %v14962_v8, 2 }
 0x273   : > { %v1303_v62 = vsel %vm1288_vm1, %v1301_v23, %v14957_v2  ;;  %v1306_v35 = vsel %vm1288_vm1, %v1304_v19, %v14959_v41  ;;  %v1335_v11 = vadd.f32 %v1298_v37, %v1242_v32  ;;  %v1336_v49 = vadd.f32 %v1300_v1, %v1243_v3 }
 0x274   : > { %v1309_v28 = vsel %vm1288_vm1, %v1307_v53, %v14961_v15  ;;  %v1312_v7 = vsel %vm1288_vm1, %v1310_v27, %v14963_v21  ;;  %v1337_v24 = vadd.f32 %v1301_v23, %v1244_v4  ;;  %v1338_v54 = vadd.f32 %v1303_v62, %v1245_v30  ;;  %v14974_v62 = vld [vmem:[#allocation57_spill] sm:$0xff] }
 0x275   : > { %v1339_v57 = vadd.f32 %v1304_v19, %v1246_v25  ;;  %v1340_v43 = vadd.f32 %v1306_v35, %v1247_v56  ;;  %v1341_v29 = vadd.f32 %v1307_v53, %v1248_v52  ;;  %v1342_v14 = vadd.f32 %v1309_v28, %v1249_v38  ;;  %v14965_v38 = vld [vmem:[#allocation58_spill] sm:$0xff]  ;;  %v14976_v35 = vld [vmem:[#allocation55_spill] sm:$0xff]  ;;  %v14978_v15 = vld [vmem:[#allocation61_spill] sm:$0xff] }
 0x276   : > { %v1343_v59 = vadd.f32 %v1310_v27, %v1250_v60  ;;  %v1344_v55 = vadd.f32 %v1312_v7, %v1251_v5  ;;  %v1351_v46 = vmul.f32 %v14964_v33, %v9754_v51  ;;  %v1353_v61 = vmul.f32 %v14964_v33, %v9838_v18  ;;  %v14970_v53 = vld [vmem:[#allocation54_spill] sm:$0xff] }
 0x277   : > { %v1355_v31 = vmul.f32 %v14964_v33, %v9836_v44  ;;  %v1357_v32 = vmul.f32 %v14964_v33, %v9880_v17  ;;  %v1359_v3 = vmul.f32 %v14964_v33, %v9854_v63  ;;  %v1361_v52 = vmul.f32 %v14964_v33, %v9915_v40 }
 0x278   : > { %v14966_v60 = vrot.slane %v14965_v38, 2  ;;  %v1435_v5 = vadd.f32 %v1402_v16, %v1343_v59  ;;  %v1384_v4 = vrot.slane %v1351_v46, 2  ;;  %v1387_v30 = vrot.slane %v1353_v61, 2 }
 0x279   : > { %v1390_v25 = vrot.slane %v1355_v31, 2  ;;  %v1393_v56 = vrot.slane %v1357_v32, 2  ;;  %v1396_v37 = vrot.slane %v1359_v3, 2  ;;  %v1399_v23 = vrot.slane %v1361_v52, 2 }
 0x27a   : > { %v1404_v51 = vsel %vm1288_vm1, %v1402_v16, %v14966_v60  ;;  %v1443_v10 = vmul.f32 %v14967_v22, %v9838_v18  ;;  %v14969_v58 = vrot.slane %v14968_v48, 2  ;;  %v14971_v27 = vrot.slane %v14970_v53, 2 }
 0x27b   : > { %v1436_v19 = vadd.f32 %v1404_v51, %v1344_v55  ;;  %v14973_v16 = vrot.slane %v14972_v42, 2  ;;  %v14975_v6 = vrot.slane %v14974_v62, 2  ;;  %v14977_v9 = vrot.slane %v14976_v35, 2 }
 0x27c   : > { %v1386_v1 = vsel %vm1288_vm1, %v1384_v4, %v14969_v58  ;;  %v1389_v12 = vsel %vm1288_vm1, %v1387_v30, %v14971_v27  ;;  %v14979_v28 = vrot.slane %v14978_v15, 2  ;;  %v1423_v21 = vadd.f32 %v1384_v4, %v1331_v34  ;;  %v14984_v4 = vld [vmem:[#allocation56_spill] sm:$0xff]  ;;  %v14990_v58 = vld [vmem:[#allocation65_spill] sm:$0xff] }
 0x27d   : > { %v1392_v2 = vsel %vm1288_vm1, %v1390_v25, %v14973_v16  ;;  %v1395_v41 = vsel %vm1288_vm1, %v1393_v56, %v14975_v6  ;;  %v1398_v18 = vsel %vm1288_vm1, %v1396_v37, %v14977_v9  ;;  %v1424_v7 = vadd.f32 %v1386_v1, %v1332_v20 }
 0x27e   : > { %v1401_v8 = vsel %vm1288_vm1, %v1399_v23, %v14979_v28  ;;  %v1425_v59 = vadd.f32 %v1387_v30, %v1333_v0  ;;  %v1426_v55 = vadd.f32 %v1389_v12, %v1334_v26  ;;  %v1427_v33 = vadd.f32 %v1390_v25, %v1335_v11  ;;  %v14980_v26 = vld [vmem:[#allocation66_spill] sm:$0xff] }
 0x27f   : > { %v1428_v46 = vadd.f32 %v1392_v2, %v1336_v49  ;;  %v1429_v61 = vadd.f32 %v1393_v56, %v1337_v24  ;;  %v1430_v31 = vadd.f32 %v1395_v41, %v1338_v54  ;;  %v1431_v32 = vadd.f32 %v1396_v37, %v1339_v57  ;;  %v14986_v56 = vld [vmem:[#allocation62_spill] sm:$0xff]  ;;  %v14992_v41 = vld [vmem:[#allocation52_spill] sm:$0xff] }
 0x280   : > { %v1432_v3 = vadd.f32 %v1398_v18, %v1340_v43  ;;  %v1433_v52 = vadd.f32 %v1399_v23, %v1341_v29  ;;  %v1434_v38 = vadd.f32 %v1401_v8, %v1342_v14  ;;  %v1445_v60 = vmul.f32 %v14967_v22, %v9836_v44  ;;  %v14994_v18 = vld [vmem:[#allocation69_spill] sm:$0xff] }
 0x281   : > { %v1447_v51 = vmul.f32 %v14967_v22, %v9880_v17  ;;  %v1449_v34 = vmul.f32 %v14967_v22, %v9854_v63  ;;  %v1451_v20 = vmul.f32 %v14967_v22, %v9915_v40  ;;  %v1476_v0 = vrot.slane %v1443_v10, 2  ;;  %v14982_v17 = vld [vmem:[#allocation59_spill] sm:$0xff] }
 0x282   : > { %v14981_v11 = vrot.slane %v14980_v26, 2  ;;  %v1479_v24 = vrot.slane %v1445_v60, 2  ;;  %v1525_v44 = vadd.f32 %v1491_v36, %v1433_v52  ;;  %v14983_v43 = vrot.slane %v14982_v17, 2  ;;  %v14995_v60 = vld [vmem:[#allocation70_spill] sm:$0xff] }
 0x283   : > { %v1482_v54 = vrot.slane %v1447_v51, 2  ;;  %v1485_v29 = vrot.slane %v1449_v34, 2  ;;  %v1488_v14 = vrot.slane %v1451_v20, 2  ;;  %v1515_v40 = vadd.f32 %v1476_v0, %v1423_v21  ;;  %v3621_v34 = vld [vmem:[#allocation14 + $0x10] sm:$0x7f] }
 0x284   : > { %v1493_v49 = vsel %vm1288_vm1, %v1491_v36, %v14981_v11  ;;  %v1478_v63 = vsel %vm1288_vm1, %v1476_v0, %v14983_v43  ;;  %v14985_v30 = vrot.slane %v14984_v4, 2  ;;  %v14987_v37 = vrot.slane %v14986_v56, 2  ;;  %v15002_v56 = vld [vmem:[#allocation63_spill] sm:$0xff] }
 0x285   : > { %v1526_v57 = vadd.f32 %v1493_v49, %v1434_v38  ;;  %v1516_v22 = vadd.f32 %v1478_v63, %v1424_v7  ;;  %v1517_v10 = vadd.f32 %v1479_v24, %v1425_v59  ;;  %v14989_v36 = vrot.slane %v14988_v50, 2  ;;  %v3622_v50 = vld [vmem:[#allocation14 + $0x18] sm:$0x7f] }
 0x286   : > { %v1481_v25 = vsel %vm1288_vm1, %v1479_v24, %v14985_v30  ;;  %v1484_v23 = vsel %vm1288_vm1, %v1482_v54, %v14987_v37  ;;  %v14991_v1 = vrot.slane %v14990_v58, 2  ;;  %v1519_v12 = vadd.f32 %v1482_v54, %v1427_v33 }
 0x287   : > { %v1487_v48 = vsel %vm1288_vm1, %v1485_v29, %v14989_v36  ;;  %v1518_v27 = vadd.f32 %v1481_v25, %v1426_v55  ;;  %v1520_v42 = vadd.f32 %v1484_v23, %v1428_v46  ;;  %v1521_v16 = vadd.f32 %v1485_v29, %v1429_v61  ;;  %v14999_v29 = vld [vmem:[#allocation33_spill] sm:$0xff]  ;;  %v15001_v25 = vld [vmem:[#allocation35_spill] sm:$0xff] }
 0x288   : > { %v1490_v53 = vsel %vm1288_vm1, %v1488_v14, %v14991_v1  ;;  %v1522_v2 = vadd.f32 %v1487_v48, %v1430_v31  ;;  %v1523_v62 = vadd.f32 %v1488_v14, %v1431_v32  ;;  %v14993_v35 = vrot.slane %v14992_v41, 2  ;;  %v15004_v36 = vld [vmem:[#allocation71_spill] sm:$0xff]  ;;  %v15005_v48 = vld [vmem:[#allocation72_spill] sm:$0xff] }
 0x289   : > { %v1524_v6 = vadd.f32 %v1490_v53, %v1432_v3  ;;  %v1528_v15 = vadd.f32 %v14994_v18, %v1436_v19  ;;  %v1548_v28 = vsel %vm1545_vm2, %v1546_v47, %v1547_v45  ;;  %v1549_v8 = vrot.slane %v1515_v40, 7  ;;  %v15006_v1 = vld [vmem:[#allocation36_spill] sm:$0xff] }
 0x28a   : > { %v1527_v9 = vadd.f32 %v14993_v35, %v1435_v5  ;;  %v1550_v21 = vrot.slane %v1516_v22, 7  ;;  %v1552_v7 = vrot.slane %v1517_v10, 7  ;;  %v1553_v59 = vrot.slane %v1518_v27, 7 }
 0x28b   : > { %v1555_v55 = vrot.slane %v1519_v12, 7  ;;  %v1556_v33 = vrot.slane %v1520_v42, 7  ;;  %v1558_v46 = vrot.slane %v1521_v16, 7  ;;  %v1559_v61 = vrot.slane %v1522_v2, 7  ;;  %v15007_v12 = vld [vmem:[#allocation34_spill] sm:$0xff]  ;;  %v15009_v2 = vld [vmem:[#allocation64_spill] sm:$0xff] }
 0x28c   : > { %v1551_v31 = vsel %vm1545_vm2, %v1549_v8, %v1550_v21  ;;  %v1554_v5 = vsel %vm1545_vm2, %v1552_v7, %v1553_v59  ;;  %v1561_v32 = vrot.slane %v1523_v62, 7  ;;  %v1562_v19 = vrot.slane %v1524_v6, 7  ;;  %v10173_v8 = vld [vmem:[%s14463_s6] sm:$0x1f]  ;;  %v10180_v59 = vld [vmem:[%s14463_s6 + $0x8] sm:$0x1f] }
 0x28d   : > { %v1557_v39 = vsel %vm1545_vm2, %v1555_v55, %v1556_v33  ;;  %v1560_v13 = vsel %vm1545_vm2, %v1558_v46, %v1559_v61  ;;  %v1564_v3 = vrot.slane %v1525_v44, 7  ;;  %v1565_v47 = vrot.slane %v1526_v57, 7  ;;  %v15013_v55 = vld [vmem:[#allocation37_spill] sm:$0xff] }
 0x28e   : > { %v1563_v45 = vsel %vm1545_vm2, %v1561_v32, %v1562_v19  ;;  %v1567_v52 = vrot.slane %v1527_v9, 7  ;;  %v1568_v38 = vrot.slane %v1528_v15, 7  ;;  %v1582_v51 = vadd.f32 %v14995_v60, %v1548_v28  ;;  %v10196_v32 = vld [vmem:[#allocation2 + $0x18] sm:$0xff] }
 0x28f   : > { %v1566_v20 = vsel %vm1545_vm2, %v1564_v3, %v1565_v47  ;;  %v1583_v0 = vadd.f32 %v14995_v60, %v1551_v31  ;;  %v10124_v26 = vadd.f32 %v14995_v60, %v1554_v5  ;;  %v10127_v11 = vadd.f32 %v14995_v60, %v1557_v39  ;;  %v10194_v5 = vld [vmem:[%s14463_s6 + $0x10] sm:$0x1f]  ;;  %v10200_v3 = vld [vmem:[#allocation2 + $0x60] sm:$0xff] }
 0x290   : > { %v1569_v49 = vsel %vm1545_vm2, %v1567_v52, %v1568_v38  ;;  %v10131_v24 = vadd.f32 %v14995_v60, %v1560_v13  ;;  %v10134_v54 = vadd.f32 %v14995_v60, %v1563_v45  ;;  %v10137_v44 = vadd.f32 %v14995_v60, %v1566_v20  ;;  %15017 = vst [vmem:[#allocation51_spill] sm:$0xff] %v10200_v3 }
 0x291   : > { %v10140_v57 = vadd.f32 %v14995_v60, %v1569_v49  ;;  %v1590_v17 = vadd.f32 3.0, %v1582_v51  ;;  %v1591_v43 = vadd.f32 3.0, %v1583_v0  ;;  %v1592_v63 = vadd.f32 3.0, %v10124_v26  ;;  %v10212_v60 = vld [vmem:[#allocation2 + $0x20] sm:$0xff] }
 0x292   : > { %14996 = vst [vmem:[#allocation73_spill] sm:$0xff] %v10134_v54  ;;  %14997 = vst [vmem:[#allocation44_spill] sm:$0xff] %v10137_v44  ;;  %v10144_v14 = vrot.slane %v3621_v34, %v14999_v29  ;;  %v1593_v40 = vadd.f32 3.0, %v10127_v11  ;;  %v1594_v4 = vadd.f32 3.0, %v10131_v24  ;;  %v1595_v30 = vadd.f32 3.0, %v10134_v54  ;;  %v10214_v34 = vld [vmem:[#allocation2 + $0x30] sm:$0xff] }
 0x293   : > { %14998 = vst [vmem:[#allocation47_spill] sm:$0xff] %v10140_v57  ;;  %v10151_v37 = vrot.slane %v15002_v56, %v15001_v25  ;;  %v1596_v23 = vadd.f32 3.0, %v10137_v44  ;;  %v1597_v22 = vadd.f32 3.0, %v10140_v57  ;;  %v1598_v10 = vmax.f32 %v1590_v17, 0.0  ;;  %v10222_v17 = vld [vmem:[#allocation2 + $0x48] sm:$0xff] }
 0x294   : > { %15000 = vst [vmem:[#allocation48_spill] sm:$0xff] %v10144_v14  ;;  %v3744_v58 = vadd.f32 %v15005_v48, %v15004_v36  ;;  %v3764_v53 = vmul.f32 %v10144_v14, %v15006_v1  ;;  %v1599_v27 = vmax.f32 %v1591_v43, 0.0  ;;  %v1600_v16 = vmax.f32 %v1592_v63, 0.0  ;;  %v15025_v48 = vld [vmem:[#allocation42_spill] sm:$0xff] }
 0x295   : > { %15003 = vst [vmem:[#allocation50_spill] sm:$0xff] %v10151_v37  ;;  %v10161_v42 = vmul.f32 %v10151_v37, %v15007_v12  ;;  %v10165_v62 = vrot.slane %v15009_v2, %v15001_v25  ;;  %v1601_v6 = vmax.f32 %v1593_v40, 0.0  ;;  %v1602_v41 = vmax.f32 %v1594_v4, 0.0  ;;  %v10232_v40 = vld [vmem:[#allocation2 + $0x38] sm:$0xff]  ;;  %v10234_v4 = vld [vmem:[#allocation2 + $0x90] sm:$0xff] }
 0x296   : > { %v1603_v35 = vmax.f32 %v1595_v30, 0.0  ;;  %v10168_v9 = vrot.slane %v3622_v50, %v14999_v29  ;;  %v1604_v18 = vmax.f32 %v1596_v23, 0.0  ;;  %v1605_v15 = vmax.f32 %v1597_v22, 0.0  ;;  %15022 = vst [vmem:[#allocation59_spill] sm:$0xff] %v10234_v4  ;;  %v10236_v30 = vld [vmem:[#allocation2 + $0xa8] sm:$0xff]  ;;  %v10244_v22 = vld [vmem:[#allocation2 + $0x78] sm:$0xff] }
 0x297   : > { %15008 = vst [vmem:[#allocation49_spill] sm:$0xff] %v10161_v42  ;;  %15010 = vst [vmem:[#allocation53_spill] sm:$0xff] %v10165_v62  ;;  %v1606_v28 = vmin.f32 %v1598_v10, 6.0  ;;  %v10175_v21 = vadd.f32 %v3764_v53, %v3744_v58  ;;  %v1607_v7 = vmin.f32 %v1599_v27, 6.0  ;;  %v10189_v61 = vmul.f32 %v10165_v62, %v15007_v12 }
 0x298   : > { %15011 = vst [vmem:[#allocation39_spill] sm:$0xff] %v10168_v9  ;;  %v10184_v33 = vmul.f32 %v10168_v9, %v15013_v55  ;;  %v1608_v31 = vmin.f32 %v1600_v16, 6.0  ;;  %v1609_v19 = vmin.f32 %v1601_v6, 6.0  ;;  %v1610_v39 = vmin.f32 %v1602_v41, 6.0  ;;  %15023 = vst [vmem:[#allocation56_spill] sm:$0xff] %v10236_v30 }
 0x299   : > { %15012 = vst [vmem:[#allocation58_spill] sm:$0xff] %v10175_v21  ;;  %15015 = vst [vmem:[#allocation45_spill] sm:$0xff] %v10189_v61  ;;  %v10198_v13 = vmin.f32 %v1603_v35, 6.0  ;;  %v10204_v47 = vrot.slane %v10173_v8, %v14999_v29  ;;  %v10206_v45 = vmin.f32 %v1604_v18, 6.0  ;;  %v10208_v52 = vmin.f32 %v1605_v15, 6.0  ;;  %v15026_v35 = vld [vmem:[#allocation41_spill] sm:$0xff] }
 0x29a   : > { %15014 = vst [vmem:[#allocation40_spill] sm:$0xff] %v10184_v33  ;;  %v10210_v38 = vmul.f32 %v1606_v28, %v1582_v51  ;;  %v10218_v20 = vrot.slane %v10180_v59, %v14999_v29  ;;  %v10220_v49 = vmul.f32 %v1607_v7, %v1583_v0  ;;  %v10230_v51 = vrot.slane %v10194_v5, %v14999_v29 }
 0x29b   : > { %15016 = vst [vmem:[#allocation54_spill] sm:$0xff] %v10198_v13  ;;  %15018 = vst [vmem:[#allocation57_spill] sm:$0xff] %v10206_v45  ;;  %v1715_v43 = vmul.f32 %v10204_v47, %v10196_v32  ;;  %v1716_v63 = vmul.f32 %v10204_v47, %v10212_v60  ;;  %v1717_v0 = vmul.f32 %v10204_v47, %v10214_v34 }
 0x29c   : > { %15019 = vst [vmem:[#allocation55_spill] sm:$0xff] %v10208_v52  ;;  %15020 = vst [vmem:[#allocation61_spill] sm:$0xff] %v10210_v38  ;;  %v1719_v56 = vmul.f32 %v10204_v47, %v10222_v17  ;;  %v1721_v23 = vmul.f32 %v10204_v47, %v10200_v3  ;;  %v1723_v10 = vmul.f32 %v10244_v22, %v10204_v47 }
 0x29d   : > { %15021 = vst [vmem:[#allocation66_spill] sm:$0xff] %v10220_v49  ;;  %15024 = vst [vmem:[#allocation62_spill] sm:$0xff] %v10244_v22  ;;  %v1725_v50 = vmul.f32 %v10204_v47, %v10234_v4  ;;  %v1727_v36 = vmul.f32 %v10204_v47, %v10236_v30  ;;  %v1729_v58 = vmul.f32 %v10204_v47, %v15025_v48 }
 0x29e   : > { %v1735_v1 = vmul.f32 %v10218_v20, %v10214_v34  ;;  %v1737_v53 = vmul.f32 %v10218_v20, %v10222_v17  ;;  %v1739_v27 = vmul.f32 %v10218_v20, %v10200_v3  ;;  %v1741_v12 = vmul.f32 %v10244_v22, %v10218_v20 }
 0x29f   : > { %v1743_v16 = vmul.f32 %v10218_v20, %v10234_v4  ;;  %v1736_v2 = vmul.f32 %v10218_v20, %v10232_v40  ;;  %v1745_v6 = vmul.f32 %v10218_v20, %v10236_v30  ;;  %v1747_v41 = vmul.f32 %v10218_v20, %v15025_v48 }
 0x2a0   : > { %v1749_v18 = vmul.f32 %v10218_v20, %v15026_v35  ;;  %v1751_v15 = vadd.f32 %v1735_v1, %v1715_v43  ;;  %v1753_v28 = vadd.f32 %v1737_v53, %v1717_v0  ;;  %v1755_v7 = vadd.f32 %v1739_v27, %v1719_v56  ;;  %v10283_v43 = vld [vmem:[%s14463_s6 + $0x18] sm:$0x1f] }
 0x2a1   : > { %v1757_v55 = vadd.f32 %v1741_v12, %v1721_v23  ;;  %v1759_v46 = vadd.f32 %v1743_v16, %v1723_v10  ;;  %v1761_v62 = vadd.f32 %v1745_v6, %v1725_v50  ;;  %v1763_v42 = vadd.f32 %v1747_v41, %v1727_v36  ;;  %15027 = vst [vmem:[#allocation60_spill] sm:$0xff] %v10283_v43  ;;  %v10289_v23 = vld [vmem:[#allocation2 + $0xd8] sm:$0xff]  ;;  %v15029_v50 = vld [vmem:[#allocation43_spill] sm:$0xff] }
 0x2a2   : > { %v1765_v37 = vadd.f32 %v1749_v18, %v1729_v58  ;;  %v1771_v9 = vmul.f32 %v10230_v51, %v10222_v17  ;;  %v1773_v14 = vmul.f32 %v10230_v51, %v10200_v3  ;;  %v1775_v61 = vmul.f32 %v10244_v22, %v10230_v51  ;;  %15028 = vst [vmem:[#allocation65_spill] sm:$0xff] %v10289_v23 }
 0x2a3   : > { %v1777_v35 = vmul.f32 %v10230_v51, %v10234_v4  ;;  %v1779_v0 = vmul.f32 %v10230_v51, %v10236_v30  ;;  %v1781_v56 = vmul.f32 %v10230_v51, %v15025_v48  ;;  %v1783_v10 = vmul.f32 %v10289_v23, %v10230_v51  ;;  %v10307_v48 = vld [vmem:[%s14463_s6 + $0x20] sm:$0x1f] }
 0x2a4   : > { %v1785_v36 = vmul.f32 %v10230_v51, %v15029_v50  ;;  %v10296_v58 = vmul.f32 %v1608_v31, %v10124_v26  ;;  %v10299_v1 = vmul.f32 %v1609_v19, %v10127_v11  ;;  %v10302_v53 = vmul.f32 %v1610_v39, %v10131_v24  ;;  %15033 = vst [vmem:[#allocation63_spill] sm:$0xff] %v10307_v48 }
 0x2a5   : > { %v10311_v27 = vmul.f32 %v10204_v47, %v10232_v40  ;;  %v10313_v12 = vadd.f32 %v1736_v2, %v1716_v63  ;;  %v1787_v16 = vadd.f32 %v1771_v9, %v1751_v15  ;;  %v1789_v26 = vadd.f32 %v1773_v14, %v1753_v28  ;;  %v10349_v28 = vld [vmem:[#allocation2 + $0x108] sm:$0xff] }
 0x2a6   : > { %15030 = vst [vmem:[#allocation52_spill] sm:$0xff] %v10296_v58  ;;  %15031 = vst [vmem:[#allocation69_spill] sm:$0xff] %v10299_v1  ;;  %v1791_v31 = vadd.f32 %v1775_v61, %v1755_v7  ;;  %v1793_v6 = vadd.f32 %v1777_v35, %v1757_v55  ;;  %v1795_v11 = vadd.f32 %v1779_v0, %v1759_v46  ;;  %v10341_v61 = vld [vmem:[#allocation2 + $0xf0] sm:$0xff] }
 0x2a7   : > { %15032 = vst [vmem:[#allocation70_spill] sm:$0xff] %v10302_v53  ;;  %v1797_v19 = vadd.f32 %v1781_v56, %v1761_v62  ;;  %v10317_v24 = vrot.slane %v10283_v43, %v14999_v29  ;;  %v1799_v39 = vadd.f32 %v1783_v10, %v1763_v42  ;;  %v1801_v41 = vadd.f32 %v1785_v36, %v1765_v37  ;;  %v10335_v42 = vld [vmem:[#allocation2 + $0xc0] sm:$0xff]  ;;  %v15040_v56 = vld [vmem:[#allocation46_spill] sm:$0xff] }
 0x2a8   : > { %v10321_v18 = vrot.slane %v10307_v48, %v14999_v29  ;;  %v10325_v63 = vrot.slane %v10173_v8, %v15001_v25  ;;  %15034 = vst [vmem:[#allocation71_spill] sm:$0xff] %v10335_v42  ;;  %15035 = vst [vmem:[#allocation72_spill] sm:$0xff] %v10341_v61  ;;  %v10347_v15 = vrot.slane %v10180_v59, %v15001_v25  ;;  %v10369_v29 = vld [vmem:[#allocation2 + $0x120] sm:$0xff] }
 0x2a9   : > { %v1807_v14 = vmul.f32 %v10317_v24, %v10200_v3  ;;  %v1809_v62 = vmul.f32 %v10244_v22, %v10317_v24  ;;  %v1811_v9 = vmul.f32 %v10317_v24, %v10234_v4  ;;  %v1813_v37 = vmul.f32 %v10317_v24, %v10236_v30  ;;  %15036 = vst [vmem:[#allocation36_spill] sm:$0xff] %v10349_v28 }
 0x2aa   : > { %v1815_v46 = vmul.f32 %v10335_v42, %v10317_v24  ;;  %v1817_v8 = vmul.f32 %v10289_v23, %v10317_v24  ;;  %v1819_v2 = vmul.f32 %v10341_v61, %v10317_v24  ;;  %v1821_v7 = vmul.f32 %v10349_v28, %v10317_v24  ;;  %15041 = vst [vmem:[#allocation42_spill] sm:$0xff] %v10369_v29 }
 0x2ab   : > { %v10355_v55 = vrot.slane %v10194_v5, %v15001_v25  ;;  %v10359_v35 = vrot.slane %v10283_v43, %v15001_v25  ;;  %v10363_v0 = vrot.slane %v10307_v48, %v15001_v25  ;;  %v10367_v59 = vmul.f32 %v10317_v24, %v15040_v56  ;;  %v10371_v5 = vld [vmem:[#allocation2 + $0x128] sm:$0xff] }
 0x2ac   : > { %v1823_v10 = vadd.f32 %v1807_v14, %v1787_v16  ;;  %v1825_v50 = vadd.f32 %v1809_v62, %v1789_v26  ;;  %v1827_v36 = vadd.f32 %v1811_v9, %v1791_v31  ;;  %15042 = vst [vmem:[#allocation41_spill] sm:$0xff] %v10371_v5  ;;  %v1829_v33 = vadd.f32 %v1813_v37, %v1793_v6  ;;  %v10387_v9 = vld [vmem:[#allocation2 + $0x110] sm:$0xff] }
 0x2ad   : > { %15037 = vst [vmem:[#allocation34_spill] sm:$0xff] %v10355_v55  ;;  %15038 = vst [vmem:[#allocation64_spill] sm:$0xff] %v10359_v35  ;;  %v1843_v21 = vmul.f32 %v10244_v22, %v10321_v18  ;;  %v1845_v53 = vmul.f32 %v10321_v18, %v10234_v4  ;;  %v1847_v1 = vmul.f32 %v10321_v18, %v10236_v30 }
 0x2ae   : > { %15039 = vst [vmem:[#allocation37_spill] sm:$0xff] %v10363_v0  ;;  %v1831_v56 = vadd.f32 %v1815_v46, %v1795_v11  ;;  %v1833_v58 = vadd.f32 %v1817_v8, %v1797_v19  ;;  %v1835_v16 = vadd.f32 %v1819_v2, %v1799_v39  ;;  %v1849_v26 = vmul.f32 %v10335_v42, %v10321_v18  ;;  %v1646_v38 = vpop.permute.xlu0 %1645 }
 0x2af   : > { %v1837_v31 = vadd.f32 %v1821_v7, %v1801_v41  ;;  %v1851_v14 = vmul.f32 %v10289_v23, %v10321_v18  ;;  %v1853_v6 = vmul.f32 %v10341_v61, %v10321_v18  ;;  %v1855_v62 = vmul.f32 %v10349_v28, %v10321_v18  ;;  %15043 = vst [vmem:[#allocation43_spill] sm:$0xff] %v10387_v9 }
 0x2b0   : > { %v10391_v11 = vmul.f32 %v10387_v9, %v10321_v18  ;;  %v1857_v19 = vmul.f32 %v10321_v18, %v10369_v29  ;;  %v10397_v39 = vmul.f32 %v10321_v18, %v10371_v5  ;;  %v1859_v41 = vadd.f32 %v1843_v21, %v1823_v10  ;;  %1668 = vst.msk [vmem:[#allocation2 + $0x68] sm:$0xff] %vm611_vm0, %v1646_v38 }
 0x2b1   : > { %v1861_v37 = vadd.f32 %v1845_v53, %v1825_v50  ;;  %v10399_v46 = vadd.f32 %v1847_v1, %v1827_v36  ;;  %v10401_v8 = vadd.f32 %v1849_v26, %v1829_v33  ;;  %v1879_v2 = vmul.f32 %v10325_v63, %v10196_v32 }
 0x2b2   : > { %v10407_v7 = vmul.f32 %v10325_v63, %v10212_v60  ;;  %v1881_v52 = vmul.f32 %v10325_v63, %v10214_v34  ;;  %v10413_v57 = vmul.f32 %v10325_v63, %v10232_v40  ;;  %v10417_v21 = vmul.f32 %v10325_v63, %v10222_v17 }
 0x2b3   : > { %v10419_v33 = vadd.f32 %v1851_v14, %v1831_v56  ;;  %v10423_v32 = vmul.f32 %v10325_v63, %v10200_v3  ;;  %v10427_v60 = vmul.f32 %v10244_v22, %v10325_v63  ;;  %v10431_v1 = vmul.f32 %v10325_v63, %v10234_v4 }
 0x2b4   : > { %v10433_v53 = vadd.f32 %v1853_v6, %v1833_v58  ;;  %v1912_v10 = vrot.slane %v1879_v2, 1  ;;  %v14556_v50 = vrot.slane %v10407_v7, 1  ;;  %v1915_v36 = vrot.slane %v1881_v52, 1  ;;  %v3627_v2 = vpop.permute.xlu1 %3626 }
 0x2b5   : > { %v10436_v56 = vadd.f32 %v1855_v62, %v1835_v16  ;;  %v10438_v26 = vadd.f32 %v1857_v19, %v1837_v31  ;;  %v10442_v14 = vmul.f32 %v10325_v63, %v10236_v30  ;;  %v14557_v49 = vrot.slane %v10413_v57, 1  ;;  %v1644_v31 = vpop.permute.xlu0 %1643 }
 0x2b6   : > { %v10447_v45 = vmul.f32 %v10335_v42, %v10325_v63  ;;  %v1914_v16 = vsel %vm1911_vm3, %v1912_v10, %v14556_v50  ;;  %v1972_v62 = vmul.f32 %v10347_v15, %v10214_v34  ;;  %v10461_v19 = vmul.f32 %v10347_v15, %v10232_v40  ;;  %1667 = vst.msk [vmem:[#allocation2 + $0x50] sm:$0xff] %vm611_vm0, %v1644_v31 }
 0x2b7   : > { %15044 = vst [vmem:[#allocation46_spill] sm:$0xff] %v10436_v56  ;;  %15045 = vst [vmem:[#allocation74_spill] sm:$0xff] %v10438_v26  ;;  %v1917_v52 = vsel %vm1911_vm3, %v1915_v36, %v14557_v49  ;;  %v10468_v38 = vmul.f32 %v10347_v15, %v10222_v17  ;;  %v10472_v10 = vmul.f32 %v10347_v15, %v10200_v3 }
 0x2b8   : > { %15046 = vst [vmem:[#allocation75_spill] sm:$0xff] %v10461_v19  ;;  %v10476_v34 = vmul.f32 %v10244_v22, %v10347_v15  ;;  %v10480_v40 = vmul.f32 %v10347_v15, %v10234_v4  ;;  %v10484_v50 = vmul.f32 %v10347_v15, %v10236_v30  ;;  %v10488_v36 = vmul.f32 %v10335_v42, %v10347_v15  ;;  %v1650_v5 = vpop.permute.xlu1 %1649 }
 0x2b9   : > { %15047 = vst [vmem:[#allocation76_spill] sm:$0xff] %v10468_v38  ;;  %v10492_v49 = vmul.f32 %v10289_v23, %v10347_v15  ;;  %v1952_v6 = vadd.f32 %v1914_v16, %v1859_v41  ;;  %v2004_v44 = vrot.slane %v1972_v62, 1  ;;  %v14565_v13 = vrot.slane %v10461_v19, 1  ;;  %1670 = vst.msk [vmem:[#allocation2 + $0x98] sm:$0xff] %vm611_vm0, %v1650_v5 }
 0x2ba   : > { %15048 = vst [vmem:[#allocation77_spill] sm:$0xff] %v10476_v34  ;;  %15049 = vst [vmem:[#allocation78_spill] sm:$0xff] %v10480_v40  ;;  %v10498_v25 = vadd.f32 %v1917_v52, %v1861_v37  ;;  %v2010_v43 = vrot.slane %v10472_v10, 1  ;;  %v10509_v31 = vmul.f32 %v10355_v55, %v10222_v17  ;;  %v10517_v10 = vmul.f32 %v10355_v55, %v10200_v3 }
 0x2bb   : > { %15050 = vst [vmem:[#allocation79_spill] sm:$0xff] %v10484_v50  ;;  %15051 = vst [vmem:[#allocation80_spill] sm:$0xff] %v10488_v36  ;;  %v2006_v29 = vsel %vm1911_vm3, %v2004_v44, %v14565_v13  ;;  %v10519_v44 = vld [vmem:[#allocation2 + $0x68] sm:$0xff]  ;;  %v1654_v13 = vpop.permute.xlu0 %1653  ;;  %v10525_v17 = vmul.f32 %v10244_v22, %v10355_v55  ;;  %v10529_v5 = vmul.f32 %v10355_v55, %v10234_v4 }
 0x2bc   : > { %15052 = vst [vmem:[#allocation81_spill] sm:$0xff] %v10492_v49  ;;  %15053 = vst [vmem:[#allocation82_spill] sm:$0xff] %v10498_v25  ;;  %v10521_v16 = vadd.f32 %v2006_v29, %v1952_v6  ;;  %v10533_v62 = vmul.f32 %v10355_v55, %v10236_v30  ;;  %v10538_v52 = vmul.f32 %v10335_v42, %v10355_v55  ;;  %v1648_v41 = vpop.permute.xlu1 %1647 }
 0x2bd   : > { %15054 = vst [vmem:[#allocation83_spill] sm:$0xff] %v10509_v31  ;;  %15055 = vst [vmem:[#allocation84_spill] sm:$0xff] %v10517_v10  ;;  %v10542_v29 = vmul.f32 %v10289_v23, %v10355_v55  ;;  %v10546_v6 = vmul.f32 %v10341_v61, %v10355_v55  ;;  %v10551_v48 = vmul.f32 %v10204_v47, %v10519_v44  ;;  %v10573_v61 = vld [vmem:[#allocation2 + $0x50] sm:$0xff] }
 0x2be   : > { %15056 = vst [vmem:[#allocation85_spill] sm:$0xff] %v10519_v44  ;;  %15057 = vst [vmem:[#allocation86_spill] sm:$0xff] %v10521_v16  ;;  %v10557_v54 = vmul.f32 %v10325_v63, %v10519_v44  ;;  %v10561_v58 = vmul.f32 %v10347_v15, %v10519_v44  ;;  %v1774_v37 = vmul.f32 %v10230_v51, %v10519_v44 }
 0x2bf   : > { %15058 = vst [vmem:[#allocation87_spill] sm:$0xff] %v10525_v17  ;;  %15059 = vst [vmem:[#allocation88_spill] sm:$0xff] %v10529_v5  ;;  %v1808_v0 = vmul.f32 %v10317_v24, %v10519_v44  ;;  %v10570_v9 = vmul.f32 %v10355_v55, %v10519_v44  ;;  %v1652_v23 = vpop.permute.xlu0 %1651  ;;  %v1720_v22 = vmul.f32 %v10204_v47, %v10573_v61 }
 0x2c0   : > { %15060 = vst [vmem:[#allocation89_spill] sm:$0xff] %v10533_v62  ;;  %1672 = vst.msk [vmem:[#allocation2 + $0xc8] sm:$0xff] %vm611_vm0, %v1654_v13  ;;  %v1740_v13 = vmul.f32 %v10218_v20, %v10519_v44  ;;  %v1738_v28 = vmul.f32 %v10218_v20, %v10573_v61  ;;  %v1772_v44 = vmul.f32 %v10230_v51, %v10573_v61  ;;  %v10588_v30 = vld [vmem:[#allocation2 + $0x98] sm:$0xff]  ;;  %v15067_v5 = vrot.slane %v10561_v58, 1 }
 0x2c1   : > { %15061 = vst [vmem:[#allocation90_spill] sm:$0xff] %v10538_v52  ;;  %15062 = vst [vmem:[#allocation91_spill] sm:$0xff] %v10546_v6  ;;  %v10592_v4 = vmul.f32 %v10325_v63, %v10573_v61  ;;  %v10603_v3 = vmul.f32 %v10347_v15, %v10573_v61  ;;  %v1726_v62 = vmul.f32 %v10204_v47, %v10588_v30 }
 0x2c2   : > { %15063 = vst [vmem:[#allocation92_spill] sm:$0xff] %v10561_v58  ;;  %1669 = vst.msk [vmem:[#allocation2 + $0x80] sm:$0xff] %vm611_vm0, %v1648_v41  ;;  %v3629_v41 = vpop.permute.xlu1 %3628  ;;  %v1754_v16 = vadd.f32 %v1738_v28, %v10311_v27  ;;  %v1756_v42 = vadd.f32 %v1740_v13, %v1720_v22  ;;  %v1778_v52 = vmul.f32 %v10230_v51, %v10588_v30 }
 0x2c3   : > { %15064 = vst [vmem:[#allocation93_spill] sm:$0xff] %v10573_v61  ;;  %3650 = vst.msk [vmem:[#allocation2 + $0x50] sm:$0xff] %vm611_vm0, %v3627_v2  ;;  %v15066_v2 = vrot.slane %v10423_v32, 1  ;;  %v10613_v32 = vsel %vm1911_vm3, %v2010_v43, %v15067_v5  ;;  %v1658_v10 = vpop.permute.xlu0 %1657  ;;  %v1788_v27 = vadd.f32 %v1772_v44, %v10313_v12  ;;  %v1812_v5 = vmul.f32 %v10317_v24, %v10588_v30 }
 0x2c4   : > { %1671 = vst.msk [vmem:[#allocation2 + $0xb0] sm:$0xff] %vm611_vm0, %v1652_v23  ;;  %v15065_v23 = vrot.slane %v10557_v54, 1  ;;  %3651 = vst.msk [vmem:[#allocation2 + $0x68] sm:$0xff] %vm611_vm0, %v3629_v41  ;;  %v1744_v41 = vmul.f32 %v10218_v20, %v10588_v30  ;;  %v1846_v22 = vmul.f32 %v10321_v18, %v10588_v30 }
 0x2c5   : > { %15068 = vst [vmem:[#allocation94_spill] sm:$0xff] %v10613_v32  ;;  %1674 = vst.msk [vmem:[#allocation2 + $0xf8] sm:$0xff] %vm611_vm0, %v1658_v10  ;;  %v1790_v10 = vadd.f32 %v1774_v37, %v1754_v16  ;;  %v1824_v17 = vadd.f32 %v1808_v0, %v1788_v27  ;;  %v10664_v27 = vmul.f32 %v10325_v63, %v10588_v30 }
 0x2c6   : > { %v10599_v35 = vsel %vm1911_vm3, %v15066_v2, %v15065_v23  ;;  %v10617_v23 = vmul.f32 %v10355_v55, %v10573_v61  ;;  %v3631_v61 = vpop.permute.xlu1 %3630 }
 0x2c7   : > { %v10619_v2 = vld [vmem:[#allocation2 + $0xc8] sm:$0xff]  ;;  %v1656_v16 = vpop.permute.xlu0 %1655 }
 0x2c8   : > { %15069 = vst [vmem:[#allocation95_spill] sm:$0xff] %v10617_v23  ;;  %15070 = vst [vmem:[#allocation96_spill] sm:$0xff] %v10619_v2  ;;  %v10629_v43 = vmul.f32 %v10204_v47, %v10619_v2  ;;  %v1748_v28 = vmul.f32 %v10218_v20, %v10619_v2  ;;  %v1782_v12 = vmul.f32 %v10230_v51, %v10619_v2 }
 0x2c9   : > { %v10637_v13 = vld [vmem:[#allocation2 + $0x80] sm:$0xff]  ;;  %v1816_v44 = vmul.f32 %v10317_v24, %v10619_v2  ;;  %1673 = vst.msk [vmem:[#allocation2 + $0xe0] sm:$0xff] %vm611_vm0, %v1656_v16  ;;  %v10676_v38 = vmul.f32 %v10325_v63, %v10619_v2 }
 0x2ca   : > { %3652 = vst.msk [vmem:[#allocation2 + $0x80] sm:$0xff] %vm611_vm0, %v3631_v61  ;;  %v1724_v31 = vmul.f32 %v10204_v47, %v10637_v13  ;;  %v1742_v6 = vmul.f32 %v10218_v20, %v10637_v13  ;;  %v1776_v55 = vmul.f32 %v10230_v51, %v10637_v13  ;;  %v1810_v58 = vmul.f32 %v10317_v24, %v10637_v13  ;;  %v3633_v19 = vpop.permute.xlu1 %3632 }
 0x2cb   : > { %v10652_v32 = vld [vmem:[#allocation2 + $0xb0] sm:$0xff]  ;;  %v1844_v0 = vmul.f32 %v10321_v18, %v10637_v13  ;;  %v1850_v61 = vmul.f32 %v10321_v18, %v10619_v2  ;;  %v10660_v37 = vmul.f32 %v10325_v63, %v10637_v13  ;;  %3653 = vst.msk [vmem:[#allocation2 + $0x98] sm:$0xff] %vm611_vm0, %v3633_v19 }
 0x2cc   : > { %15071 = vst [vmem:[#allocation97_spill] sm:$0xff] %v10652_v32  ;;  %v1728_v25 = vmul.f32 %v10204_v47, %v10652_v32  ;;  %v1746_v49 = vmul.f32 %v10218_v20, %v10652_v32  ;;  %v1758_v36 = vadd.f32 %v1742_v6, %v10551_v48  ;;  %v1760_v23 = vadd.f32 %v1744_v41, %v1724_v31  ;;  %v10682_v31 = vld [vmem:[#allocation2 + $0xf8] sm:$0xff]  ;;  %v3635_v6 = vpop.permute.xlu0 %3634 }
 0x2cd   : > { %v1780_v50 = vmul.f32 %v10230_v51, %v10652_v32  ;;  %v1792_v40 = vadd.f32 %v1776_v55, %v1756_v42  ;;  %v1826_v34 = vadd.f32 %v1810_v58, %v1790_v10  ;;  %v1814_v26 = vmul.f32 %v10317_v24, %v10652_v32  ;;  %15072 = vst [vmem:[#allocation98_spill] sm:$0xff] %v10682_v31 }
 0x2ce   : > { %v1762_v16 = vadd.f32 %v1746_v49, %v1726_v62  ;;  %v1794_v47 = vadd.f32 %v1778_v52, %v1758_v36  ;;  %v1919_v48 = vrot.slane %v10592_v4, 1  ;;  %v1764_v41 = vadd.f32 %v1748_v28, %v1728_v25  ;;  %3654 = vst.msk [vmem:[#allocation2 + $0xb0] sm:$0xff] %vm611_vm0, %v3635_v6  ;;  %v3637_v52 = vpop.permute.xlu1 %3636 }
 0x2cf   : > { %v1796_v56 = vadd.f32 %v1780_v50, %v1760_v23  ;;  %v1828_v42 = vadd.f32 %v1812_v5, %v1792_v40  ;;  %v1848_v55 = vmul.f32 %v10321_v18, %v10652_v32  ;;  %v1786_v49 = vmul.f32 %v10230_v51, %v10682_v31  ;;  %3655 = vst.msk [vmem:[#allocation2 + $0xc8] sm:$0xff] %vm611_vm0, %v3637_v52 }
 0x2d0   : > { %v1830_v58 = vadd.f32 %v1814_v26, %v1794_v47  ;;  %v1860_v19 = vadd.f32 %v1844_v0, %v1824_v17  ;;  %v1862_v36 = vadd.f32 %v1846_v22, %v1826_v34  ;;  %v1798_v62 = vadd.f32 %v1782_v12, %v1762_v16  ;;  %v10700_v17 = vld [vmem:[#allocation2 + $0xe0] sm:$0xff]  ;;  %v3639_v23 = vpop.permute.xlu0 %3638  ;;  %v7697_v12 = vld [vmem:[%s14466_s9 + $0x18] sm:$0xff] }
 0x2d1   : > { %v1820_v4 = vmul.f32 %v10317_v24, %v10682_v31  ;;  %v1832_v10 = vadd.f32 %v1816_v44, %v1796_v56  ;;  %v10693_v25 = vmul.f32 %v10325_v63, %v10652_v32  ;;  %v1854_v50 = vmul.f32 %v10321_v18, %v10682_v31  ;;  %15073 = vst [vmem:[#allocation99_spill] sm:$0xff] %v10700_v17  ;;  %v7696_v44 = vld [vmem:[%s14466_s9 + $0x10] sm:$0xff] }
 0x2d2   : > { %v1864_v40 = vadd.f32 %v1848_v55, %v1828_v42  ;;  %v1925_v26 = vrot.slane %v10660_v37, 1  ;;  %v1928_v34 = vrot.slane %v10664_v27, 1  ;;  %v1866_v28 = vadd.f32 %v1850_v61, %v1830_v58  ;;  %3656 = vst.msk [vmem:[#allocation2 + $0xe0] sm:$0xff] %vm611_vm0, %v3639_v23  ;;  %v3641_v16 = vpop.permute.xlu1 %3640  ;;  %8451 = vmatpush3.msra.mxu0 %v7697_v12 }
 0x2d3   : > { %v15074_v56 = vrot.slane %v10417_v21, 1  ;;  %v1931_v63 = vrot.slane %v10693_v25, 1  ;;  %v1934_v22 = vrot.slane %v10676_v38, 1  ;;  %v1750_v0 = vmul.f32 %v10218_v20, %v10700_v17  ;;  %3657 = vst.msk [vmem:[#allocation2 + $0xf8] sm:$0xff] %vm611_vm0, %v3641_v16  ;;  %v15088_v16 = vld [vmem:[#allocation28_spill] sm:$0xff]  ;;  %v15101_v38 = vld [vmem:[#allocation75_spill] sm:$0xff] }
 0x2d4   : > { %v1784_v21 = vmul.f32 %v10230_v51, %v10700_v17  ;;  %v1818_v61 = vmul.f32 %v10317_v24, %v10700_v17  ;;  %v1852_v37 = vmul.f32 %v10321_v18, %v10700_v17  ;;  %v15075_v47 = vrot.slane %v10427_v60, 1 }
 0x2d5   : > { %v1920_v5 = vsel %vm1911_vm3, %v15074_v56, %v1919_v48  ;;  %v15076_v42 = vrot.slane %v10431_v1, 1  ;;  %v15077_v51 = vrot.slane %v10407_v7, 1  ;;  %v15078_v24 = vrot.slane %v10413_v57, 1 }
 0x2d6   : > { %v1926_v6 = vsel %vm1911_vm3, %v15075_v47, %v1925_v26  ;;  %v15079_v18 = vmov 0.0   ;;  %v1766_v60 = vadd.f32 %v1750_v0, %v10629_v43  ;;  %v1800_v52 = vadd.f32 %v1784_v21, %v1764_v41  ;;  %v15082_v41 = vld [vmem:[#allocation24_spill] sm:$0xff]  ;;  %v15083_v0 = vld [vmem:[#allocation25_spill] sm:$0xff] }
 0x2d7   : > { %v1929_v20 = vsel %vm1911_vm3, %v15076_v42, %v1928_v34  ;;  %v10732_v55 = vadd.f32 %v15077_v51, %v1860_v19  ;;  %v10736_v58 = vadd.f32 %v15078_v24, %v1862_v36  ;;  %8452 = vmatprep.subr.mxu0 %v15079_v18  ;;  %v1834_v23 = vadd.f32 %v1818_v61, %v1798_v62  ;;  %v819_v19 = vpop.permute.xlu0 %818  ;;  %v15087_v61 = vld [vmem:[#allocation26_spill] sm:$0xff]  ;;  %v7694_v42 = vld [vmem:[%s14466_s9] sm:$0xff]  ;;  %v15090_v24 = vld [vmem:[#allocation31_spill] sm:$0xff] }
 0x2d8   : > { %v15080_v1 = vrot.slane %v10442_v14, 1  ;;  %8453 = vmatpush3.msra.mxu0 %v7696_v44  ;;  %v1868_v56 = vadd.f32 %v1852_v37, %v1832_v10  ;;  %v15081_v57 = vrot.slane %v10447_v45, 1  ;;  %v10752_v12 = vadd.f32 %v1920_v5, %v10399_v46  ;;  %v7695_v10 = vld [vmem:[%s14466_s9 + $0x8] sm:$0xff]  ;;  %v15085_v46 = vld [vmem:[#allocation27_spill] sm:$0xff]  ;;  %8458 = vmatprep.mubr.msk.f32.mxu0 %vm9073_vm4, %v15079_v18 }
 0x2d9   : > { %v10754_v43 = vadd.f32 %v1919_v48, %v1864_v40  ;;  %v822_v62 = vadd.f32 %v15082_v41, %v819_v19  ;;  %v821_v14 = vadd.f32 %v819_v19, %v15083_v0  ;;  %8454 = vmatprep.subr.mxu0 %v15079_v18  ;;  %v1958_v45 = vadd.f32 %v10599_v35, %v10401_v8  ;;  %v15086_v48 = vld [vmem:[#allocation29_spill] sm:$0xff] }
 0x2da   : > { %v1932_v7 = vsel %vm1911_vm3, %v15080_v1, %v1931_v63  ;;  %v1935_v36 = vsel %vm1911_vm3, %v15081_v57, %v1934_v22  ;;  %v15084_v44 = vrot.slane %v10557_v54, 1  ;;  %v824_v5 = vadd.f32 %v15085_v46, %v819_v19  ;;  %8455 = vmatpush3.msra.mxu0 %v7695_v10  ;;  %8463 = vmatprep.mubr.msk.f32.mxu1 %vm9073_vm4, %v15079_v18 }
 0x2db   : > { %v823_v40 = vadd.f32 %v819_v19, %v15086_v48  ;;  %v826_v37 = vadd.f32 %v15087_v61, %v819_v19  ;;  %v825_v47 = vadd.f32 %v819_v19, %v15088_v16  ;;  %8072 = vrot.lane.b32.xlu0 %v822_v62, %s9070_s1  ;;  %8070 = vrot.lane.b32.xlu1 %v821_v14, %s9070_s1  ;;  %v2100_v41 = vrot.slane %v10570_v9, 1  ;;  %v15093_v14 = vld [vmem:[#allocation76_spill] sm:$0xff]  ;;  %v15099_v61 = vld [vmem:[#allocation79_spill] sm:$0xff] }
 0x2dc   : > { %v1959_v21 = vadd.f32 %v15084_v44, %v1866_v28  ;;  %v1802_v35 = vadd.f32 %v1786_v49, %v1766_v60  ;;  %v1836_v54 = vadd.f32 %v1820_v4, %v1800_v52  ;;  %v1870_v8 = vadd.f32 %v1854_v50, %v1834_v23  ;;  %v15089_v28 = vld [vmem:[#allocation30_spill] sm:$0xff]  ;;  %8456 = vmatprep.subr.mxu0 %v15079_v18 }
 0x2dd   : > { %v828_v51 = vadd.f32 %v15089_v28, %v819_v19  ;;  %v827_v1 = vadd.f32 %v819_v19, %v15090_v24  ;;  %v1960_v57 = vadd.f32 %v1926_v6, %v10419_v33  ;;  %8457 = vmatpush3.msra.mxu0 %v7694_v42  ;;  %v1961_v0 = vadd.f32 %v1925_v26, %v1868_v56  ;;  %v15091_v26 = vld [vmem:[#allocation46_spill] sm:$0xff]  ;;  %v15103_v42 = vld [vmem:[#allocation95_spill] sm:$0xff]  ;;  %v15106_v28 = vld [vmem:[#allocation81_spill] sm:$0xff] }
 0x2de   : > { %v1838_v62 = vadd.f32 %v10367_v59, %v1802_v35  ;;  %v1962_v49 = vadd.f32 %v1929_v20, %v10433_v53  ;;  %v2008_v4 = vrot.slane %v10603_v3, 1  ;;  %v1872_v50 = vadd.f32 %v10391_v11, %v1836_v54  ;;  %v15092_v19 = vld [vmem:[#allocation74_spill] sm:$0xff]  ;;  %v15104_v54 = vld [vmem:[#allocation80_spill] sm:$0xff] }
 0x2df   : > { %v1979_v60 = vmul.f32 %v10347_v15, %v10637_v13  ;;  %v1981_v52 = vmul.f32 %v10347_v15, %v10588_v30  ;;  %v1983_v33 = vmul.f32 %v10347_v15, %v10652_v32  ;;  %8076 = vrot.lane.b32.xlu0 %v824_v5, %s9070_s1  ;;  %8074 = vrot.lane.b32.xlu1 %v823_v40, %s9070_s1  ;;  %v2114_v53 = vrot.slane %v10542_v29, 1 }
 0x2e0   : > { %v1874_v59 = vadd.f32 %v10397_v39, %v1838_v62  ;;  %v1963_v3 = vadd.f32 %v1928_v34, %v1870_v8  ;;  %v1985_v11 = vmul.f32 %v10347_v15, %v10619_v2  ;;  %v1964_v6 = vadd.f32 %v1932_v7, %v15091_v26  ;;  %v15095_v7 = vld [vmem:[#allocation77_spill] sm:$0xff]  ;;  %v15108_v62 = vld [vmem:[#allocation82_spill] sm:$0xff] }
 0x2e1   : > { %v1987_v20 = vmul.f32 %v10347_v15, %v10700_v17  ;;  %v2014_v18 = vrot.slane %v1979_v60, 1  ;;  %v2017_v23 = vrot.slane %v1981_v52, 1  ;;  %v1966_v56 = vadd.f32 %v1935_v36, %v15092_v19  ;;  %v15097_v36 = vld [vmem:[#allocation78_spill] sm:$0xff] }
 0x2e2   : > { %v15094_v10 = vrot.slane %v15093_v14, 1  ;;  %v2020_v27 = vrot.slane %v1983_v33, 1  ;;  %v2023_v34 = vrot.slane %v1985_v11, 1  ;;  %v1965_v44 = vadd.f32 %v1931_v63, %v1872_v50  ;;  %v15109_v52 = vld [vmem:[#allocation94_spill] sm:$0xff] }
 0x2e3   : > { %v1967_v29 = vadd.f32 %v1934_v22, %v1874_v59  ;;  %v15096_v46 = vrot.slane %v15095_v7, 1  ;;  %v2026_v5 = vrot.slane %v1987_v20, 1  ;;  %8080 = vrot.lane.b32.xlu0 %v826_v37, %s9070_s1  ;;  %8078 = vrot.lane.b32.xlu1 %v825_v47, %s9070_s1  ;;  %v15098_v48 = vrot.slane %v15097_v36, 1  ;;  %v15110_v59 = vld [vmem:[#allocation92_spill] sm:$0xff] }
 0x2e4   : > { %v2009_v39 = vsel %vm1911_vm3, %v15094_v10, %v2008_v4  ;;  %v15100_v16 = vrot.slane %v15099_v61, 1  ;;  %v15102_v63 = vrot.slane %v15101_v38, 1  ;;  %v2097_v35 = vrot.slane %v15103_v42, 1  ;;  %v15116_v61 = vld [vmem:[#allocation87_spill] sm:$0xff]  ;;  %v15118_v38 = vld [vmem:[#allocation32_spill] sm:$0xff] }
 0x2e5   : > { %v2015_v15 = vsel %vm1911_vm3, %v15096_v46, %v2014_v18  ;;  %v2018_v40 = vsel %vm1911_vm3, %v15098_v48, %v2017_v23  ;;  %v15105_v8 = vrot.slane %v15104_v54, 1  ;;  %v15107_v47 = vrot.slane %v15106_v28, 1  ;;  %v15113_v46 = vld [vmem:[#allocation91_spill] sm:$0xff]  ;;  %v15122_v54 = vld [vmem:[#allocation88_spill] sm:$0xff]  ;;  %v15124_v28 = vld [vmem:[#allocation86_spill] sm:$0xff] }
 0x2e6   : > { %v2021_v25 = vsel %vm1911_vm3, %v15100_v16, %v2020_v27  ;;  %v2045_v22 = vadd.f32 %v15102_v63, %v10732_v55  ;;  %v2046_v50 = vadd.f32 %v2009_v39, %v15108_v62  ;;  %v2047_v60 = vadd.f32 %v2008_v4, %v10736_v58  ;;  %v15112_v58 = vld [vmem:[#allocation34_spill] sm:$0xff] }
 0x2e7   : > { %v2024_v37 = vsel %vm1911_vm3, %v15105_v8, %v2023_v34  ;;  %v2027_v24 = vsel %vm1911_vm3, %v15107_v47, %v2026_v5  ;;  %v2048_v33 = vadd.f32 %v15109_v52, %v10752_v12  ;;  %v15111_v55 = vrot.slane %v15110_v59, 1  ;;  %8084 = vrot.lane.b32.xlu0 %v828_v51, %s9070_s1  ;;  %8082 = vrot.lane.b32.xlu1 %v827_v1, %s9070_s1  ;;  %v15127_v62 = vld [vmem:[#allocation90_spill] sm:$0xff]  ;;  %s14408_s1 = scalar_lea.hbm %s15540_s27, %s8366_s7 }
 0x2e8   : > { %v2050_v26 = vadd.f32 %v2015_v15, %v1958_v45  ;;  %v2051_v20 = vadd.f32 %v2014_v18, %v1959_v21  ;;  %v2052_v19 = vadd.f32 %v2018_v40, %v1960_v57  ;;  %v2053_v14 = vadd.f32 %v2017_v23, %v1961_v0  ;;  %v15114_v57 = vld [vmem:[#allocation83_spill] sm:$0xff] }
 0x2e9   : > { %v2049_v11 = vadd.f32 %v15111_v55, %v10754_v43  ;;  %v2054_v10 = vadd.f32 %v2021_v25, %v1962_v49  ;;  %v2055_v7 = vadd.f32 %v2020_v27, %v1963_v3  ;;  %v2056_v39 = vadd.f32 %v2024_v37, %v1964_v6 }
 0x2ea   : > { %v2069_v4 = vmul.f32 %v15112_v58, %v10637_v13  ;;  %v2071_v12 = vmul.f32 %v15112_v58, %v10588_v30  ;;  %v2117_v36 = vrot.slane %v15113_v46, 1  ;;  %v2073_v43 = vmul.f32 %v15112_v58, %v10652_v32 }
 0x2eb   : > { %v2075_v45 = vmul.f32 %v15112_v58, %v10619_v2  ;;  %v2077_v21 = vmul.f32 %v15112_v58, %v10700_v17  ;;  %v10854_v51 = vmul.f32 %v15112_v58, %v10682_v31  ;;  %v2057_v1 = vadd.f32 %v2023_v34, %v1965_v44  ;;  %v15120_v34 = vld [vmem:[#allocation84_spill] sm:$0xff] }
 0x2ec   : > { %v15115_v0 = vrot.slane %v15114_v57, 1  ;;  %v2103_v3 = vrot.slane %v2069_v4, 1  ;;  %v2106_v6 = vrot.slane %v2071_v12, 1  ;;  %v2109_v18 = vrot.slane %v2073_v43, 1 }
 0x2ed   : > { %v2112_v23 = vrot.slane %v2075_v45, 1  ;;  %v2115_v27 = vrot.slane %v2077_v21, 1  ;;  %v2118_v15 = vrot.slane %v10854_v51, 1  ;;  %v2058_v48 = vadd.f32 %v2027_v24, %v1966_v56 }
 0x2ee   : > { %v2098_v49 = vsel %vm1911_vm3, %v15115_v0, %v2097_v35  ;;  %v2059_v40 = vadd.f32 %v2026_v5, %v1967_v29  ;;  %v15117_v16 = vrot.slane %v15116_v61, 1  ;;  %v10864_v63 = vsub.s32 3, %v15118_v38  ;;  %v15125_v5 = vld [vmem:[#allocation89_spill] sm:$0xff]  ;;  %v15130_v61 = vld [vmem:[#allocation64_spill] sm:$0xff] }
 0x2ef   : > { %v15121_v44 = vrot.slane %v15120_v34, 1  ;;  %v15123_v8 = vrot.slane %v15122_v54, 1  ;;  %v2136_v56 = vadd.f32 %v2098_v49, %v15124_v28  ;;  %v2137_v29 = vadd.f32 %v2097_v35, %v2045_v22  ;;  %v15129_v49 = vld [vmem:[#allocation51_spill] sm:$0xff]  ;;  %v15131_v34 = vld [vmem:[#allocation85_spill] sm:$0xff] }
 0x2f0   : > { %v2104_v25 = vsel %vm1911_vm3, %v15117_v16, %v2103_v3  ;;  %15119 = vst [vmem:[#allocation24_spill] sm:$0xff] %v10864_v63  ;;  %v15126_v47 = vrot.slane %v15125_v5, 1  ;;  %v15128_v52 = vrot.slane %v15127_v62, 1  ;;  %v2116_v55 = vsel %vm1911_vm3, %v2114_v53, %v2115_v27 }
 0x2f1   : > { %v2101_v42 = vsel %vm1911_vm3, %v15121_v44, %v2100_v41  ;;  %v2107_v37 = vsel %vm1911_vm3, %v15123_v8, %v2106_v6  ;;  %v2119_v58 = vsel %vm1911_vm3, %v2117_v36, %v2118_v15  ;;  %v2139_v12 = vadd.f32 %v2100_v41, %v2047_v60  ;;  %v15133_v41 = vld [vmem:[#allocation59_spill] sm:$0xff] }
 0x2f2   : > { %v2110_v24 = vsel %vm1911_vm3, %v15126_v47, %v2109_v18  ;;  %v2113_v59 = vsel %vm1911_vm3, %v15128_v52, %v2112_v23  ;;  %v2138_v4 = vadd.f32 %v2101_v42, %v2046_v50  ;;  %v2140_v46 = vadd.f32 %v2104_v25, %v2048_v33  ;;  %v15132_v50 = vld [vmem:[#allocation62_spill] sm:$0xff]  ;;  %v15138_v25 = vld [vmem:[#allocation36_spill] sm:$0xff]  ;;  %v15139_v42 = vld [vmem:[#allocation43_spill] sm:$0xff] }
 0x2f3   : > { %v2141_v43 = vadd.f32 %v2103_v3, %v2049_v11  ;;  %v2142_v45 = vadd.f32 %v2107_v37, %v2050_v26  ;;  %v2143_v22 = vadd.f32 %v2106_v6, %v2051_v20  ;;  %v2144_v35 = vadd.f32 %v2110_v24, %v2052_v19  ;;  %v15134_v11 = vld [vmem:[#allocation56_spill] sm:$0xff]  ;;  %v15135_v19 = vld [vmem:[#allocation71_spill] sm:$0xff] }
 0x2f4   : > { %v2145_v21 = vadd.f32 %v2109_v18, %v2053_v14  ;;  %v2146_v51 = vadd.f32 %v2113_v59, %v2054_v10  ;;  %v2147_v57 = vadd.f32 %v2112_v23, %v2055_v7  ;;  %v2148_v0 = vadd.f32 %v2116_v55, %v2056_v39  ;;  %v15136_v7 = vld [vmem:[#allocation65_spill] sm:$0xff]  ;;  %v15137_v6 = vld [vmem:[#allocation72_spill] sm:$0xff] }
 0x2f5   : > { %v2156_v16 = vmul.f32 %v15130_v61, %v15129_v49  ;;  %v2157_v53 = vmul.f32 %v15130_v61, %v15131_v34  ;;  %v2158_v36 = vmul.f32 %v15132_v50, %v15130_v61  ;;  %v2159_v9 = vmul.f32 %v15130_v61, %v10637_v13 }
 0x2f6   : > { %v2160_v60 = vmul.f32 %v15130_v61, %v15133_v41  ;;  %v2161_v33 = vmul.f32 %v15130_v61, %v10588_v30  ;;  %v2162_v26 = vmul.f32 %v15130_v61, %v15134_v11  ;;  %v2163_v20 = vmul.f32 %v15130_v61, %v10652_v32 }
 0x2f7   : > { %v2164_v14 = vmul.f32 %v15135_v19, %v15130_v61  ;;  %v2165_v10 = vmul.f32 %v15130_v61, %v10619_v2  ;;  %v2166_v39 = vmul.f32 %v15136_v7, %v15130_v61  ;;  %v2167_v3 = vmul.f32 %v15130_v61, %v10700_v17 }
 0x2f8   : > { %v2168_v18 = vmul.f32 %v15137_v6, %v15130_v61  ;;  %v10913_v23 = vmul.f32 %v15130_v61, %v10682_v31  ;;  %v2170_v44 = vmul.f32 %v15138_v25, %v15130_v61  ;;  %v10919_v54 = vmul.f32 %v15139_v42, %v15130_v61 }
 0x2f9   : > { %v2188_v8 = vrot.slane %v2156_v16, 1  ;;  %v2189_v37 = vrot.slane %v2157_v53, 1  ;;  %v2191_v28 = vrot.slane %v2158_v36, 1  ;;  %v2192_v5 = vrot.slane %v2159_v9, 1 }
 0x2fa   : > { %v2194_v47 = vrot.slane %v2160_v60, 1  ;;  %v2195_v24 = vrot.slane %v2161_v33, 1  ;;  %v2197_v62 = vrot.slane %v2162_v26, 1  ;;  %v2198_v52 = vrot.slane %v2163_v20, 1 }
 0x2fb   : > { %v2200_v59 = vrot.slane %v2164_v14, 1  ;;  %v2149_v55 = vadd.f32 %v2115_v27, %v2057_v1  ;;  %v2150_v49 = vadd.f32 %v2119_v58, %v2058_v48  ;;  %v2201_v38 = vrot.slane %v2165_v10, 1 }
 0x2fc   : > { %v2203_v63 = vrot.slane %v2166_v39, 1  ;;  %v2193_v34 = vsel %vm1911_vm3, %v2191_v28, %v2192_v5  ;;  %v2204_v25 = vrot.slane %v2167_v3, 1  ;;  %v2206_v31 = vrot.slane %v2168_v18, 1 }
 0x2fd   : > { %v2207_v61 = vrot.slane %v10913_v23, 1  ;;  %v2151_v42 = vadd.f32 %v2118_v15, %v2059_v40  ;;  %v2190_v16 = vsel %vm1911_vm3, %v2188_v8, %v2189_v37  ;;  %v2209_v53 = vrot.slane %v2170_v44, 1 }
 0x2fe   : > { %v2210_v36 = vrot.slane %v10919_v54, 1  ;;  %v2196_v9 = vsel %vm1911_vm3, %v2194_v47, %v2195_v24  ;;  %v2199_v60 = vsel %vm1911_vm3, %v2197_v62, %v2198_v52  ;;  %v2202_v1 = vsel %vm1911_vm3, %v2200_v59, %v2201_v38  ;;  %v15140_v54 = vld [vmem:[#allocation37_spill] sm:$0xff] }
 0x2ff   : > { %v2228_v27 = vadd.f32 %v2190_v16, %v2136_v56  ;;  %v2205_v48 = vsel %vm1911_vm3, %v2203_v63, %v2204_v25  ;;  %v2208_v58 = vsel %vm1911_vm3, %v2206_v31, %v2207_v61  ;;  %v2229_v33 = vadd.f32 %v2189_v37, %v2137_v29 }
 0x300   : > { %v2230_v26 = vadd.f32 %v2193_v34, %v2138_v4  ;;  %v2211_v15 = vsel %vm1911_vm3, %v2209_v53, %v2210_v36  ;;  %v2231_v40 = vadd.f32 %v2192_v5, %v2139_v12  ;;  %v2232_v20 = vadd.f32 %v2196_v9, %v2140_v46  ;;  %v15143_v34 = vld [vmem:[#allocation43_spill] sm:$0xff] }
 0x301   : > { %v2233_v14 = vadd.f32 %v2195_v24, %v2141_v43  ;;  %v2234_v10 = vadd.f32 %v2199_v60, %v2142_v45  ;;  %v2235_v39 = vadd.f32 %v2198_v52, %v2143_v22  ;;  %v2236_v3 = vadd.f32 %v2202_v1, %v2144_v35 }
 0x302   : > { %v2237_v18 = vadd.f32 %v2201_v38, %v2145_v21  ;;  %v2238_v23 = vadd.f32 %v2205_v48, %v2146_v51  ;;  %v2239_v44 = vadd.f32 %v2204_v25, %v2147_v57  ;;  %v2248_v56 = vmul.f32 %v15132_v50, %v15140_v54  ;;  %v15141_v21 = vld [vmem:[#allocation98_spill] sm:$0xff]  ;;  %v15142_v57 = vld [vmem:[#allocation36_spill] sm:$0xff]  ;;  %v15145_v25 = vld [vmem:[#allocation41_spill] sm:$0xff] }
 0x303   : > { %v2249_v63 = vmul.f32 %v15140_v54, %v10637_v13  ;;  %v2240_v31 = vadd.f32 %v2208_v58, %v2148_v0  ;;  %v2250_v29 = vmul.f32 %v15140_v54, %v15133_v41  ;;  %v2251_v4 = vmul.f32 %v15140_v54, %v10588_v30  ;;  %v15144_v41 = vld [vmem:[#allocation42_spill] sm:$0xff] }
 0x304   : > { %v2252_v12 = vmul.f32 %v15140_v54, %v15134_v11  ;;  %v2253_v38 = vmul.f32 %v15140_v54, %v10652_v32  ;;  %v2254_v46 = vmul.f32 %v15135_v19, %v15140_v54  ;;  %v2255_v43 = vmul.f32 %v15140_v54, %v10619_v2 }
 0x305   : > { %v2256_v45 = vmul.f32 %v15136_v7, %v15140_v54  ;;  %v2257_v22 = vmul.f32 %v15140_v54, %v10700_v17  ;;  %v2258_v35 = vmul.f32 %v15137_v6, %v15140_v54  ;;  %v2259_v51 = vmul.f32 %v15140_v54, %v15141_v21 }
 0x306   : > { %v2260_v0 = vmul.f32 %v15142_v57, %v15140_v54  ;;  %v2261_v50 = vmul.f32 %v15143_v34, %v15140_v54  ;;  %v2262_v11 = vmul.f32 %v15140_v54, %v15144_v41  ;;  %v2280_v19 = vrot.slane %v2248_v56, 1 }
 0x307   : > { %v2281_v7 = vrot.slane %v2249_v63, 1  ;;  %v2263_v8 = vmul.f32 %v15140_v54, %v15145_v25  ;;  %v2283_v37 = vrot.slane %v2250_v29, 1  ;;  %v2284_v28 = vrot.slane %v2251_v4, 1 }
 0x308   : > { %v2286_v6 = vrot.slane %v2252_v12, 1  ;;  %v2287_v5 = vrot.slane %v2253_v38, 1  ;;  %v2289_v47 = vrot.slane %v2254_v46, 1  ;;  %v2290_v24 = vrot.slane %v2255_v43, 1 }
 0x309   : > { %v2292_v62 = vrot.slane %v2256_v45, 1  ;;  %v2241_v52 = vadd.f32 %v2207_v61, %v2149_v55  ;;  %v2282_v59 = vsel %vm1911_vm3, %v2280_v19, %v2281_v7  ;;  %v2293_v16 = vrot.slane %v2257_v22, 1 }
 0x30a   : > { %v2295_v53 = vrot.slane %v2258_v35, 1  ;;  %v2242_v9 = vadd.f32 %v2211_v15, %v2150_v49  ;;  %v2296_v60 = vrot.slane %v2259_v51, 1  ;;  %v2298_v1 = vrot.slane %v2260_v0, 1 }
 0x30b   : > { %v2299_v48 = vrot.slane %v2261_v50, 1  ;;  %v2243_v58 = vadd.f32 %v2210_v36, %v2151_v42  ;;  %v2285_v56 = vsel %vm1911_vm3, %v2283_v37, %v2284_v28  ;;  %v2301_v54 = vrot.slane %v2262_v11, 1  ;;  %v15147_v50 = vld [vmem:[#allocation38_spill] sm:$0xff] }
 0x30c   : > { %v2302_v63 = vrot.slane %v2263_v8, 1  ;;  %v2288_v29 = vsel %vm1911_vm3, %v2286_v6, %v2287_v5  ;;  %v2291_v4 = vsel %vm1911_vm3, %v2289_v47, %v2290_v24  ;;  %v2294_v12 = vsel %vm1911_vm3, %v2292_v62, %v2293_v16  ;;  %v11000_v6 = vld [vmem:[%s14463_s6 + $0x10] sm:$0x1f]  ;;  %v15154_v47 = vld [vmem:[#allocation60_spill] sm:$0xff] }
 0x30d   : > { %v2320_v55 = vadd.f32 %v2282_v59, %v2228_v27  ;;  %v2297_v61 = vsel %vm1911_vm3, %v2295_v53, %v2296_v60  ;;  %v2300_v38 = vsel %vm1911_vm3, %v2298_v1, %v2299_v48  ;;  %v2321_v49 = vadd.f32 %v2281_v7, %v2229_v33  ;;  %v10974_v27 = vld [vmem:[%s14463_s6] sm:$0x1f]  ;;  %15153 = vst [vmem:[#allocation28_spill] sm:$0xff] %v11000_v6  ;;  %v15155_v59 = vld [vmem:[#allocation63_spill] sm:$0xff]  ;;  %v15156_v53 = vld [vmem:[#allocation24_spill] sm:$0xff] }
 0x30e   : > { %v2322_v15 = vadd.f32 %v2285_v56, %v2230_v26  ;;  %v2303_v46 = vsel %vm1911_vm3, %v2301_v54, %v2302_v63  ;;  %v2323_v42 = vadd.f32 %v2284_v28, %v2231_v40  ;;  %v2324_v36 = vadd.f32 %v2288_v29, %v2232_v20  ;;  %15146 = vst [vmem:[#allocation25_spill] sm:$0xff] %v10974_v27  ;;  %v10981_v20 = vld [vmem:[%s14463_s6 + $0x8] sm:$0x1f] }
 0x30f   : > { %v2325_v43 = vadd.f32 %v2287_v5, %v2233_v14  ;;  %v2326_v45 = vadd.f32 %v2291_v4, %v2234_v10  ;;  %v2327_v22 = vadd.f32 %v2290_v24, %v2235_v39  ;;  %v2328_v35 = vadd.f32 %v2294_v12, %v2236_v3  ;;  %15148 = vst [vmem:[#allocation27_spill] sm:$0xff] %v10981_v20  ;;  %v10985_v10 = vld [vmem:[#allocation2 + $0x20] sm:$0xff]  ;;  %v10988_v3 = vld [vmem:[#allocation2 + $0x38] sm:$0xff] }
 0x310   : > { %v2329_v51 = vadd.f32 %v2293_v16, %v2237_v18  ;;  %v2330_v57 = vadd.f32 %v2297_v61, %v2238_v23  ;;  %v2331_v0 = vadd.f32 %v2296_v60, %v2239_v44  ;;  %v2332_v34 = vadd.f32 %v2300_v38, %v2240_v31  ;;  %15149 = vst [vmem:[#allocation29_spill] sm:$0xff] %v10985_v10  ;;  %v15151_v23 = vld [vmem:[#allocation93_spill] sm:$0xff] }
 0x311   : > { %v2339_v33 = vrot.slane %v10974_v27, %v15147_v50  ;;  %v2333_v26 = vadd.f32 %v2299_v48, %v2241_v52  ;;  %v2334_v41 = vadd.f32 %v2303_v46, %v2242_v9  ;;  %v2335_v40 = vadd.f32 %v2302_v63, %v2243_v58  ;;  %15150 = vst [vmem:[#allocation26_spill] sm:$0xff] %v10988_v3  ;;  %v15152_v31 = vld [vmem:[#allocation85_spill] sm:$0xff] }
 0x312   : > { %v2391_v14 = vrot.slane %v10981_v20, %v15147_v50  ;;  %v2443_v5 = vrot.slane %v11000_v6, %v15147_v50  ;;  %v11006_v24 = vrot.slane %v15154_v47, %v15147_v50  ;;  %v11010_v16 = vrot.slane %v15155_v59, %v15147_v50 }
 0x313   : > { %v2340_v39 = vmul.f32 %v10985_v10, %v2339_v33  ;;  %v2341_v18 = vmul.f32 %v10988_v3, %v2339_v33  ;;  %v2342_v44 = vmul.f32 %v2339_v33, %v15151_v23  ;;  %v2343_v11 = vmul.f32 %v2339_v33, %v15152_v31 }
 0x314   : > { %v2344_v19 = vmul.f32 %v2339_v33, %v10637_v13  ;;  %v2345_v7 = vmul.f32 %v2339_v33, %v10588_v30  ;;  %v2346_v25 = vmul.f32 %v2339_v33, %v10652_v32  ;;  %v2347_v8 = vmul.f32 %v2339_v33, %v10619_v2 }
 0x315   : > { %v2356_v37 = vrot.slane %v2340_v39, 2  ;;  %v2357_v28 = vrot.slane %v2341_v18, 2  ;;  %v2358_v62 = vrot.slane %v2342_v44, 2  ;;  %v2359_v52 = vrot.slane %v2343_v11, 2 }
 0x316   : > { %v11014_v9 = vrot.slane %v10974_v27, %v15156_v53  ;;  %v2360_v60 = vrot.slane %v2344_v19, 2  ;;  %v2361_v1 = vrot.slane %v2345_v7, 2  ;;  %v2362_v48 = vrot.slane %v2346_v25, 2 }
 0x317   : > { %v2363_v58 = vrot.slane %v2347_v8, 2  ;;  %v2372_v56 = vadd.f32 %v2356_v37, %v2320_v55  ;;  %v2373_v54 = vadd.f32 %v2356_v37, %v2321_v49  ;;  %v2374_v63 = vadd.f32 %v2357_v28, %v2322_v15 }
 0x318   : > { %v2375_v29 = vadd.f32 %v2357_v28, %v2323_v42  ;;  %v2376_v4 = vadd.f32 %v2358_v62, %v2324_v36  ;;  %v2377_v12 = vadd.f32 %v2358_v62, %v2325_v43  ;;  %v2378_v61 = vadd.f32 %v2359_v52, %v2326_v45 }
 0x319   : > { %v2379_v38 = vadd.f32 %v2359_v52, %v2327_v22  ;;  %v2380_v46 = vadd.f32 %v2360_v60, %v2328_v35  ;;  %v2381_v33 = vadd.f32 %v2360_v60, %v2329_v51  ;;  %v2382_v39 = vadd.f32 %v2361_v1, %v2330_v57 }
 0x31a   : > { %v2383_v18 = vadd.f32 %v2361_v1, %v2331_v0  ;;  %v2392_v44 = vmul.f32 %v10988_v3, %v2391_v14  ;;  %v2393_v11 = vmul.f32 %v2391_v14, %v15151_v23  ;;  %v2394_v19 = vmul.f32 %v2391_v14, %v15152_v31 }
 0x31b   : > { %v2395_v7 = vmul.f32 %v2391_v14, %v10637_v13  ;;  %v2396_v55 = vmul.f32 %v2391_v14, %v10588_v30  ;;  %v2397_v49 = vmul.f32 %v2391_v14, %v10652_v32  ;;  %v2398_v15 = vmul.f32 %v2391_v14, %v10619_v2 }
 0x31c   : > { %v2399_v42 = vmul.f32 %v2391_v14, %v10700_v17  ;;  %v2384_v36 = vadd.f32 %v2362_v48, %v2332_v34  ;;  %v2385_v43 = vadd.f32 %v2362_v48, %v2333_v26  ;;  %v2386_v45 = vadd.f32 %v2363_v58, %v2334_v41 }
 0x31d   : > { %v2408_v22 = vrot.slane %v2392_v44, 2  ;;  %v2387_v35 = vadd.f32 %v2363_v58, %v2335_v40  ;;  %v2409_v51 = vrot.slane %v2393_v11, 2  ;;  %v2410_v57 = vrot.slane %v2394_v19, 2 }
 0x31e   : > { %v2411_v0 = vrot.slane %v2395_v7, 2  ;;  %v2412_v25 = vrot.slane %v2396_v55, 2  ;;  %v2413_v8 = vrot.slane %v2397_v49, 2  ;;  %v2414_v37 = vrot.slane %v2398_v15, 2 }
 0x31f   : > { %v2415_v28 = vrot.slane %v2399_v42, 2  ;;  %v2424_v47 = vadd.f32 %v2408_v22, %v2372_v56  ;;  %v2425_v62 = vadd.f32 %v2408_v22, %v2373_v54  ;;  %v2426_v52 = vadd.f32 %v2409_v51, %v2374_v63 }
 0x320   : > { %v2427_v59 = vadd.f32 %v2409_v51, %v2375_v29  ;;  %v2428_v60 = vadd.f32 %v2410_v57, %v2376_v4  ;;  %v2429_v1 = vadd.f32 %v2410_v57, %v2377_v12  ;;  %v2430_v50 = vadd.f32 %v2411_v0, %v2378_v61 }
 0x321   : > { %v2431_v14 = vadd.f32 %v2411_v0, %v2379_v38  ;;  %v2432_v34 = vadd.f32 %v2412_v25, %v2380_v46  ;;  %v2433_v26 = vadd.f32 %v2412_v25, %v2381_v33  ;;  %v2434_v41 = vadd.f32 %v2413_v8, %v2382_v39 }
 0x322   : > { %v2435_v48 = vadd.f32 %v2413_v8, %v2383_v18  ;;  %v2444_v40 = vmul.f32 %v2443_v5, %v15151_v23  ;;  %v2445_v58 = vmul.f32 %v2443_v5, %v15152_v31  ;;  %v2446_v44 = vmul.f32 %v2443_v5, %v10637_v13 }
 0x323   : > { %v2447_v11 = vmul.f32 %v2443_v5, %v10588_v30  ;;  %v2448_v56 = vmul.f32 %v2443_v5, %v10652_v32  ;;  %v2449_v54 = vmul.f32 %v2443_v5, %v10619_v2  ;;  %v2450_v63 = vmul.f32 %v2443_v5, %v10700_v17 }
 0x324   : > { %v2451_v29 = vmul.f32 %v2443_v5, %v15141_v21  ;;  %v2436_v4 = vadd.f32 %v2414_v37, %v2384_v36  ;;  %v2437_v12 = vadd.f32 %v2414_v37, %v2385_v43  ;;  %v2438_v61 = vadd.f32 %v2415_v28, %v2386_v45 }
 0x325   : > { %v2439_v38 = vadd.f32 %v2415_v28, %v2387_v35  ;;  %v2460_v46 = vrot.slane %v2444_v40, 2  ;;  %v2461_v33 = vrot.slane %v2445_v58, 2  ;;  %v2462_v39 = vrot.slane %v2446_v44, 2 }
 0x326   : > { %v2463_v18 = vrot.slane %v2447_v11, 2  ;;  %v2464_v19 = vrot.slane %v2448_v56, 2  ;;  %v2465_v7 = vrot.slane %v2449_v54, 2  ;;  %v2466_v55 = vrot.slane %v2450_v63, 2 }
 0x327   : > { %v2467_v49 = vrot.slane %v2451_v29, 2  ;;  %v2476_v15 = vadd.f32 %v2460_v46, %v2424_v47  ;;  %v2477_v42 = vadd.f32 %v2460_v46, %v2425_v62  ;;  %v2478_v22 = vadd.f32 %v2461_v33, %v2426_v52 }
 0x328   : > { %v2479_v51 = vadd.f32 %v2461_v33, %v2427_v59  ;;  %v2480_v57 = vadd.f32 %v2462_v39, %v2428_v60  ;;  %v2481_v0 = vadd.f32 %v2462_v39, %v2429_v1  ;;  %v2482_v25 = vadd.f32 %v2463_v18, %v2430_v50  ;;  %v11046_v59 = vld [vmem:[#allocation2 + $0x110] sm:$0xff] }
 0x329   : > { %v2483_v5 = vadd.f32 %v2463_v18, %v2431_v14  ;;  %v2484_v36 = vadd.f32 %v2464_v19, %v2432_v34  ;;  %v2485_v43 = vadd.f32 %v2464_v19, %v2433_v26  ;;  %v2486_v45 = vadd.f32 %v2465_v7, %v2434_v41  ;;  %15157 = vst [vmem:[#allocation30_spill] sm:$0xff] %v11046_v59 }
 0x32a   : > { %v2487_v35 = vadd.f32 %v2465_v7, %v2435_v48  ;;  %v2496_v8 = vmul.f32 %v11006_v24, %v15152_v31  ;;  %v2497_v37 = vmul.f32 %v11006_v24, %v10637_v13  ;;  %v2498_v28 = vmul.f32 %v11006_v24, %v10588_v30 }
 0x32b   : > { %v2499_v47 = vmul.f32 %v11006_v24, %v10652_v32  ;;  %v2500_v50 = vmul.f32 %v11006_v24, %v10619_v2  ;;  %v2501_v62 = vmul.f32 %v11006_v24, %v10700_v17  ;;  %v2502_v52 = vmul.f32 %v11006_v24, %v15141_v21 }
 0x32c   : > { %v2503_v60 = vmul.f32 %v11046_v59, %v11006_v24  ;;  %v2488_v1 = vadd.f32 %v2466_v55, %v2436_v4  ;;  %v2489_v14 = vadd.f32 %v2466_v55, %v2437_v12  ;;  %v2490_v34 = vadd.f32 %v2467_v49, %v2438_v61 }
 0x32d   : > { %v2491_v26 = vadd.f32 %v2467_v49, %v2439_v38  ;;  %v2512_v41 = vrot.slane %v2496_v8, 2  ;;  %v2513_v48 = vrot.slane %v2497_v37, 2  ;;  %v2514_v40 = vrot.slane %v2498_v28, 2 }
 0x32e   : > { %v2515_v58 = vrot.slane %v2499_v47, 2  ;;  %v2516_v44 = vrot.slane %v2500_v50, 2  ;;  %v2517_v11 = vrot.slane %v2501_v62, 2  ;;  %v2518_v56 = vrot.slane %v2502_v52, 2  ;;  %v11073_v52 = vld [vmem:[#allocation2 + $0x28] sm:$0xff] }
 0x32f   : > { %v2519_v54 = vrot.slane %v2503_v60, 2  ;;  %v2528_v63 = vadd.f32 %v2512_v41, %v2476_v15  ;;  %v2529_v29 = vadd.f32 %v2512_v41, %v2477_v42  ;;  %v2530_v46 = vadd.f32 %v2513_v48, %v2478_v22  ;;  %15159 = vst [vmem:[#allocation46_spill] sm:$0xff] %v11073_v52 }
 0x330   : > { %v2531_v33 = vadd.f32 %v2513_v48, %v2479_v51  ;;  %v2532_v39 = vadd.f32 %v2514_v40, %v2480_v57  ;;  %v2533_v18 = vadd.f32 %v2514_v40, %v2481_v0  ;;  %v2534_v19 = vadd.f32 %v2515_v58, %v2482_v25  ;;  %v11064_v57 = vld [vmem:[#allocation2 + $0x128] sm:$0xff] }
 0x331   : > { %v2535_v24 = vadd.f32 %v2515_v58, %v2483_v5  ;;  %v2536_v4 = vadd.f32 %v2516_v44, %v2484_v36  ;;  %v2537_v12 = vadd.f32 %v2516_v44, %v2485_v43  ;;  %v2538_v61 = vadd.f32 %v2517_v11, %v2486_v45  ;;  %15158 = vst [vmem:[#allocation31_spill] sm:$0xff] %v11064_v57  ;;  %v11089_v44 = vld [vmem:[#allocation2 + $0x70] sm:$0xff] }
 0x332   : > { %v2539_v38 = vadd.f32 %v2517_v11, %v2487_v35  ;;  %v2548_v7 = vmul.f32 %v11010_v16, %v10637_v13  ;;  %v2549_v55 = vmul.f32 %v11010_v16, %v10588_v30  ;;  %v2550_v49 = vmul.f32 %v11010_v16, %v10652_v32  ;;  %15162 = vst [vmem:[#allocation77_spill] sm:$0xff] %v11089_v44 }
 0x333   : > { %v2551_v15 = vmul.f32 %v11010_v16, %v10619_v2  ;;  %v2552_v42 = vmul.f32 %v11010_v16, %v10700_v17  ;;  %v2553_v22 = vmul.f32 %v11010_v16, %v15141_v21  ;;  %v2554_v51 = vmul.f32 %v11046_v59, %v11010_v16 }
 0x334   : > { %v11068_v0 = vmul.f32 %v11064_v57, %v11010_v16  ;;  %v2540_v25 = vadd.f32 %v2518_v56, %v2488_v1  ;;  %v2541_v5 = vadd.f32 %v2518_v56, %v2489_v14  ;;  %v2542_v36 = vadd.f32 %v2519_v54, %v2490_v34  ;;  %v11083_v34 = vld [vmem:[#allocation2 + $0x40] sm:$0xff] }
 0x335   : > { %v11070_v43 = vadd.f32 %v2519_v54, %v2491_v26  ;;  %v2564_v45 = vrot.slane %v2548_v7, 2  ;;  %v2565_v35 = vrot.slane %v2549_v55, 2  ;;  %v2566_v8 = vrot.slane %v2550_v49, 2  ;;  %15160 = vst [vmem:[#allocation74_spill] sm:$0xff] %v11083_v34  ;;  %v11085_v26 = vld [vmem:[#allocation2 + $0x58] sm:$0xff] }
 0x336   : > { %v2567_v37 = vrot.slane %v2551_v15, 2  ;;  %v2568_v28 = vrot.slane %v2552_v42, 2  ;;  %v2569_v47 = vrot.slane %v2553_v22, 2  ;;  %v2570_v50 = vrot.slane %v2554_v51, 2  ;;  %15161 = vst [vmem:[#allocation76_spill] sm:$0xff] %v11085_v26  ;;  %v11115_v15 = vld [vmem:[#allocation2 + $0xa0] sm:$0xff] }
 0x337   : > { %v2571_v62 = vrot.slane %v11068_v0, 2  ;;  %v11075_v60 = vadd.f32 %v2564_v45, %v2528_v63  ;;  %v11077_v16 = vadd.f32 %v2564_v45, %v2529_v29  ;;  %v11079_v1 = vadd.f32 %v2565_v35, %v2530_v46  ;;  %v11121_v51 = vld [vmem:[#allocation2 + $0xb8] sm:$0xff] }
 0x338   : > { %v11081_v14 = vadd.f32 %v2565_v35, %v2531_v33  ;;  %v11087_v41 = vadd.f32 %v2566_v8, %v2532_v39  ;;  %v2585_v48 = vadd.f32 %v2566_v8, %v2533_v18  ;;  %v2586_v40 = vadd.f32 %v2567_v37, %v2534_v19  ;;  %15163 = vst [vmem:[#allocation78_spill] sm:$0xff] %v11121_v51 }
 0x339   : > { %v2587_v58 = vadd.f32 %v2567_v37, %v2535_v24  ;;  %v2588_v11 = vadd.f32 %v2568_v28, %v2536_v4  ;;  %v2589_v56 = vadd.f32 %v2568_v28, %v2537_v12  ;;  %v2590_v54 = vadd.f32 %v2569_v47, %v2538_v61 }
 0x33a   : > { %v2591_v63 = vadd.f32 %v2569_v47, %v2539_v38  ;;  %v2592_v29 = vadd.f32 %v2570_v50, %v2540_v25  ;;  %v2593_v46 = vadd.f32 %v2570_v50, %v2541_v5  ;;  %v2600_v33 = vmul.f32 %v10985_v10, %v11014_v9  ;;  %v11109_v38 = vld [vmem:[#allocation2 + $0x88] sm:$0xff]  ;;  %v11127_v5 = vld [vmem:[#allocation2 + $0xd0] sm:$0xff] }
 0x33b   : > { %v2601_v7 = vmul.f32 %v11014_v9, %v11073_v52  ;;  %v2602_v39 = vmul.f32 %v10988_v3, %v11014_v9  ;;  %v2603_v18 = vmul.f32 %v11014_v9, %v11083_v34  ;;  %v2604_v19 = vmul.f32 %v11014_v9, %v15151_v23 }
 0x33c   : > { %v2605_v24 = vmul.f32 %v11014_v9, %v11085_v26  ;;  %v2606_v4 = vmul.f32 %v11014_v9, %v15152_v31  ;;  %v2607_v12 = vmul.f32 %v11014_v9, %v11089_v44  ;;  %v2608_v61 = vmul.f32 %v11014_v9, %v10637_v13 }
 0x33d   : > { %v2609_v55 = vmul.f32 %v11109_v38, %v11014_v9  ;;  %v2610_v49 = vmul.f32 %v11014_v9, %v10588_v30  ;;  %v2611_v42 = vmul.f32 %v11115_v15, %v11014_v9  ;;  %v2612_v22 = vmul.f32 %v11014_v9, %v10652_v32 }
 0x33e   : > { %v2613_v0 = vmul.f32 %v11121_v51, %v11014_v9  ;;  %v2614_v25 = vmul.f32 %v11014_v9, %v10619_v2  ;;  %v2615_v45 = vmul.f32 %v11127_v5, %v11014_v9  ;;  %v2633_v35 = vrot.slane %v2600_v33, 3 }
 0x33f   : > { %v2634_v8 = vrot.slane %v2601_v7, 3  ;;  %v2636_v37 = vrot.slane %v2602_v39, 3  ;;  %v2637_v28 = vrot.slane %v2603_v18, 3  ;;  %v2639_v47 = vrot.slane %v2604_v19, 3 }
 0x340   : > { %v2640_v50 = vrot.slane %v2605_v24, 3  ;;  %v2642_v52 = vrot.slane %v2606_v4, 3  ;;  %v2643_v10 = vrot.slane %v2607_v12, 3  ;;  %v2645_v27 = vrot.slane %v2608_v61, 3 }
 0x341   : > { %v2646_v57 = vrot.slane %v2609_v55, 3  ;;  %v2594_v59 = vadd.f32 %v2571_v62, %v2542_v36  ;;  %v2648_v21 = vrot.slane %v2610_v49, 3  ;;  %v2649_v17 = vrot.slane %v2611_v42, 3 }
 0x342   : > { %v2635_v2 = vsel %vm2632_vm5, %v2633_v35, %v2634_v8  ;;  %v2638_v51 = vsel %vm2632_vm5, %v2636_v37, %v2637_v28  ;;  %v2651_v32 = vrot.slane %v2612_v22, 3  ;;  %v2652_v9 = vrot.slane %v2613_v0, 3  ;;  %v15168_v28 = vld [vmem:[#allocation99_spill] sm:$0xff] }
 0x343   : > { %v2595_v33 = vadd.f32 %v2571_v62, %v11070_v43  ;;  %v2641_v7 = vsel %vm2632_vm5, %v2639_v47, %v2640_v50  ;;  %v2654_v39 = vrot.slane %v2614_v25, 3  ;;  %v2655_v18 = vrot.slane %v2615_v45, 3  ;;  %v15166_v25 = vld [vmem:[#allocation78_spill] sm:$0xff] }
 0x344   : > { %v2644_v19 = vsel %vm2632_vm5, %v2642_v52, %v2643_v10  ;;  %v2647_v24 = vsel %vm2632_vm5, %v2645_v27, %v2646_v57  ;;  %v2650_v36 = vsel %vm2632_vm5, %v2648_v21, %v2649_v17  ;;  %v11139_v4 = vadd.f32 %v2633_v35, %v11075_v60  ;;  %v15167_v35 = vld [vmem:[#allocation96_spill] sm:$0xff]  ;;  %v11209_v50 = vld [vmem:[#allocation2 + $0xe8] sm:$0xff] }
 0x345   : > { %v2653_v12 = vsel %vm2632_vm5, %v2651_v32, %v2652_v9  ;;  %v11143_v61 = vadd.f32 %v2635_v2, %v11077_v16  ;;  %v11146_v43 = vadd.f32 %v2636_v37, %v11079_v1  ;;  %v11149_v62 = vadd.f32 %v2638_v51, %v11081_v14  ;;  %v15165_v51 = vld [vmem:[#allocation97_spill] sm:$0xff] }
 0x346   : > { %v2656_v10 = vsel %vm2632_vm5, %v2654_v39, %v2655_v18  ;;  %v11153_v57 = vadd.f32 %v2639_v47, %v11087_v41  ;;  %v11155_v17 = vadd.f32 %v2641_v7, %v2585_v48  ;;  %v11157_v60 = vadd.f32 %v2642_v52, %v2586_v40 }
 0x347   : > { %v11159_v55 = vadd.f32 %v2644_v19, %v2587_v58  ;;  %v11161_v49 = vadd.f32 %v2645_v27, %v2588_v11  ;;  %v11163_v2 = vadd.f32 %v2647_v24, %v2589_v56  ;;  %v11165_v16 = vadd.f32 %v2648_v21, %v2590_v54  ;;  %v11186_v21 = vld [vmem:[%s14463_s6 + $0x18] sm:$0x1f] }
 0x348   : > { %v11167_v1 = vadd.f32 %v2650_v36, %v2591_v63  ;;  %v11169_v14 = vadd.f32 %v2651_v32, %v2592_v29  ;;  %v11171_v42 = vadd.f32 %v2653_v12, %v2593_v46  ;;  %v2692_v41 = vrot.slane %v10981_v20, %v15156_v53  ;;  %15164 = vst [vmem:[#allocation79_spill] sm:$0xff] %v11186_v21 }
 0x349   : > { %v11175_v48 = vadd.f32 %v2654_v39, %v2594_v59  ;;  %v11177_v52 = vadd.f32 %v2656_v10, %v2595_v33  ;;  %v11181_v27 = vrot.slane %v11000_v6, %v15156_v53  ;;  %v11190_v32 = vrot.slane %v11186_v21, %v15156_v53 }
 0x34a   : > { %v2693_v40 = vmul.f32 %v10988_v3, %v2692_v41  ;;  %v2694_v59 = vmul.f32 %v2692_v41, %v11083_v34  ;;  %v2695_v58 = vmul.f32 %v2692_v41, %v15151_v23  ;;  %v2696_v11 = vmul.f32 %v2692_v41, %v11085_v26  ;;  %v11215_v3 = vld [vmem:[%s14463_s6 + $0x20] sm:$0x1f] }
 0x34b   : > { %v2697_v56 = vmul.f32 %v2692_v41, %v15152_v31  ;;  %v2698_v54 = vmul.f32 %v2692_v41, %v11089_v44  ;;  %v2699_v63 = vmul.f32 %v2692_v41, %v10637_v13  ;;  %v2700_v29 = vmul.f32 %v11109_v38, %v2692_v41  ;;  %15169 = vst [vmem:[#allocation75_spill] sm:$0xff] %v11215_v3 }
 0x34c   : > { %v2701_v46 = vmul.f32 %v2692_v41, %v10588_v30  ;;  %v2702_v22 = vmul.f32 %v11115_v15, %v2692_v41  ;;  %v2703_v0 = vmul.f32 %v2692_v41, %v15165_v51  ;;  %v2704_v45 = vmul.f32 %v15166_v25, %v2692_v41 }
 0x34d   : > { %v2705_v8 = vmul.f32 %v2692_v41, %v15167_v35  ;;  %v2706_v37 = vmul.f32 %v11127_v5, %v2692_v41  ;;  %v11207_v47 = vmul.f32 %v2692_v41, %v15168_v28  ;;  %v2708_v9 = vmul.f32 %v11209_v50, %v2692_v41  ;;  %v15171_v41 = vld [vmem:[#allocation32_spill] sm:$0xff] }
 0x34e   : > { %v2725_v33 = vrot.slane %v2693_v40, 3  ;;  %v2726_v7 = vrot.slane %v2694_v59, 3  ;;  %v2728_v39 = vrot.slane %v2695_v58, 3  ;;  %v2729_v18 = vrot.slane %v2696_v11, 3 }
 0x34f   : > { %v2731_v19 = vrot.slane %v2697_v56, 3  ;;  %v2732_v24 = vrot.slane %v2698_v54, 3  ;;  %v2734_v36 = vrot.slane %v2699_v63, 3  ;;  %v2735_v12 = vrot.slane %v2700_v29, 3 }
 0x350   : > { %v2737_v10 = vrot.slane %v2701_v46, 3  ;;  %v2738_v34 = vrot.slane %v2702_v22, 3  ;;  %v11219_v21 = vrot.slane %v11215_v3, %v15156_v53  ;;  %v11222_v40 = vsub.s32 4, %v15171_v41 }
 0x351   : > { %v2727_v59 = vsel %vm2632_vm5, %v2725_v33, %v2726_v7  ;;  %v2730_v58 = vsel %vm2632_vm5, %v2728_v39, %v2729_v18  ;;  %v2740_v11 = vrot.slane %v2703_v0, 3  ;;  %v2741_v56 = vrot.slane %v2704_v45, 3 }
 0x352   : > { %15170 = vst [vmem:[#allocation95_spill] sm:$0xff] %v11219_v21  ;;  %15172 = vst [vmem:[#allocation80_spill] sm:$0xff] %v11222_v40  ;;  %v2733_v54 = vsel %vm2632_vm5, %v2731_v19, %v2732_v24  ;;  %v2743_v63 = vrot.slane %v2705_v8, 3  ;;  %v2744_v29 = vrot.slane %v2706_v37, 3  ;;  %v2746_v46 = vrot.slane %v11207_v47, 3 }
 0x353   : > { %v2736_v22 = vsel %vm2632_vm5, %v2734_v36, %v2735_v12  ;;  %v2739_v53 = vsel %vm2632_vm5, %v2737_v10, %v2738_v34  ;;  %v2742_v3 = vsel %vm2632_vm5, %v2740_v11, %v2741_v56  ;;  %v2747_v41 = vrot.slane %v2708_v9, 3  ;;  %v11279_v12 = vld [vmem:[#allocation2 + $0x100] sm:$0xff] }
 0x354   : > { %v2745_v6 = vsel %vm2632_vm5, %v2743_v63, %v2744_v29  ;;  %v2765_v7 = vadd.f32 %v2725_v33, %v11139_v4  ;;  %v2766_v0 = vadd.f32 %v2727_v59, %v11143_v61  ;;  %v2767_v45 = vadd.f32 %v2728_v39, %v11146_v43  ;;  %15174 = vst [vmem:[#allocation81_spill] sm:$0xff] %v11279_v12 }
 0x355   : > { %v2748_v8 = vsel %vm2632_vm5, %v2746_v46, %v2747_v41  ;;  %v2768_v37 = vadd.f32 %v2730_v58, %v11149_v62  ;;  %v2769_v47 = vadd.f32 %v2731_v19, %v11153_v57  ;;  %v2770_v18 = vadd.f32 %v2733_v54, %v11155_v17  ;;  %v15173_v19 = vld [vmem:[#allocation98_spill] sm:$0xff] }
 0x356   : > { %v2771_v34 = vadd.f32 %v2734_v36, %v11157_v60  ;;  %v2772_v9 = vadd.f32 %v2736_v22, %v11159_v55  ;;  %v2773_v24 = vadd.f32 %v2737_v10, %v11161_v49  ;;  %v2774_v4 = vadd.f32 %v2739_v53, %v11163_v2 }
 0x357   : > { %v2775_v61 = vadd.f32 %v2740_v11, %v11165_v16  ;;  %v2776_v43 = vadd.f32 %v2742_v3, %v11167_v1  ;;  %v2777_v33 = vadd.f32 %v2743_v63, %v11169_v14  ;;  %v2778_v62 = vadd.f32 %v2745_v6, %v11171_v42 }
 0x358   : > { %v2785_v57 = vmul.f32 %v11181_v27, %v15151_v23  ;;  %v2786_v17 = vmul.f32 %v11181_v27, %v11085_v26  ;;  %v2787_v60 = vmul.f32 %v11181_v27, %v15152_v31  ;;  %v2788_v53 = vmul.f32 %v11181_v27, %v11089_v44 }
 0x359   : > { %v2789_v55 = vmul.f32 %v11181_v27, %v10637_v13  ;;  %v2790_v3 = vmul.f32 %v11109_v38, %v11181_v27  ;;  %v2791_v6 = vmul.f32 %v11181_v27, %v10588_v30  ;;  %v2792_v49 = vmul.f32 %v11115_v15, %v11181_v27 }
 0x35a   : > { %v2793_v2 = vmul.f32 %v11181_v27, %v15165_v51  ;;  %v2794_v16 = vmul.f32 %v15166_v25, %v11181_v27  ;;  %v2795_v1 = vmul.f32 %v11181_v27, %v15167_v35  ;;  %v2796_v14 = vmul.f32 %v11127_v5, %v11181_v27 }
 0x35b   : > { %v2797_v42 = vmul.f32 %v11181_v27, %v15168_v28  ;;  %v2798_v39 = vmul.f32 %v11209_v50, %v11181_v27  ;;  %v11277_v36 = vmul.f32 %v11181_v27, %v15173_v19  ;;  %v2800_v10 = vmul.f32 %v11279_v12, %v11181_v27 }
 0x35c   : > { %v2817_v41 = vrot.slane %v2785_v57, 3  ;;  %v2818_v59 = vrot.slane %v2786_v17, 3  ;;  %v2820_v58 = vrot.slane %v2787_v60, 3  ;;  %v2821_v11 = vrot.slane %v2788_v53, 3 }
 0x35d   : > { %v2823_v56 = vrot.slane %v2789_v55, 3  ;;  %v2824_v54 = vrot.slane %v2790_v3, 3  ;;  %v2826_v63 = vrot.slane %v2791_v6, 3  ;;  %v2827_v29 = vrot.slane %v2792_v49, 3 }
 0x35e   : > { %v2779_v22 = vadd.f32 %v2746_v46, %v11175_v48  ;;  %v2780_v26 = vadd.f32 %v2748_v8, %v11177_v52  ;;  %v2829_v23 = vrot.slane %v2793_v2, 3  ;;  %v2830_v20 = vrot.slane %v2794_v16, 3 }
 0x35f   : > { %v2819_v40 = vsel %vm2632_vm5, %v2817_v41, %v2818_v59  ;;  %v2822_v21 = vsel %vm2632_vm5, %v2820_v58, %v2821_v11  ;;  %v2832_v19 = vrot.slane %v2795_v1, 3  ;;  %v2833_v27 = vrot.slane %v2796_v14, 3 }
 0x360   : > { %v2825_v57 = vsel %vm2632_vm5, %v2823_v56, %v2824_v54  ;;  %v2835_v17 = vrot.slane %v2797_v42, 3  ;;  %v2836_v60 = vrot.slane %v2798_v39, 3  ;;  %v2838_v53 = vrot.slane %v11277_v36, 3 }
 0x361   : > { %v2828_v55 = vsel %vm2632_vm5, %v2826_v63, %v2827_v29  ;;  %v2831_v48 = vsel %vm2632_vm5, %v2829_v23, %v2830_v20  ;;  %v2834_v52 = vsel %vm2632_vm5, %v2832_v19, %v2833_v27  ;;  %v2839_v46 = vrot.slane %v2800_v10, 3 }
 0x362   : > { %v2837_v8 = vsel %vm2632_vm5, %v2835_v17, %v2836_v60  ;;  %v2857_v3 = vadd.f32 %v2817_v41, %v2765_v7  ;;  %v2858_v6 = vadd.f32 %v2819_v40, %v2766_v0  ;;  %v2859_v49 = vadd.f32 %v2820_v58, %v2767_v45 }
 0x363   : > { %v2840_v2 = vsel %vm2632_vm5, %v2838_v53, %v2839_v46  ;;  %v2860_v16 = vadd.f32 %v2822_v21, %v2768_v37  ;;  %v2861_v1 = vadd.f32 %v2823_v56, %v2769_v47  ;;  %v2862_v14 = vadd.f32 %v2825_v57, %v2770_v18 }
 0x364   : > { %v2863_v42 = vadd.f32 %v2826_v63, %v2771_v34  ;;  %v2864_v39 = vadd.f32 %v2828_v55, %v2772_v9  ;;  %v2865_v36 = vadd.f32 %v2829_v23, %v2773_v24  ;;  %v2866_v59 = vadd.f32 %v2831_v48, %v2774_v4  ;;  %v15175_v24 = vld [vmem:[#allocation98_spill] sm:$0xff] }
 0x365   : > { %v2867_v11 = vadd.f32 %v2832_v19, %v2775_v61  ;;  %v2868_v54 = vadd.f32 %v2834_v52, %v2776_v43  ;;  %v2869_v20 = vadd.f32 %v2835_v17, %v2777_v33  ;;  %v2870_v29 = vadd.f32 %v2837_v8, %v2778_v62  ;;  %v15176_v43 = vld [vmem:[#allocation30_spill] sm:$0xff]  ;;  %v11326_v62 = vld [vmem:[#allocation2 + $0x118] sm:$0xff] }
 0x366   : > { %v2877_v10 = vmul.f32 %v11190_v32, %v15152_v31  ;;  %v2878_v40 = vmul.f32 %v11190_v32, %v11089_v44  ;;  %v2879_v7 = vmul.f32 %v11190_v32, %v10637_v13  ;;  %v2880_v21 = vmul.f32 %v11109_v38, %v11190_v32  ;;  %15177 = vst [vmem:[#allocation82_spill] sm:$0xff] %v11326_v62 }
 0x367   : > { %v2881_v23 = vmul.f32 %v11190_v32, %v10588_v30  ;;  %v2882_v0 = vmul.f32 %v11115_v15, %v11190_v32  ;;  %v2883_v45 = vmul.f32 %v11190_v32, %v15165_v51  ;;  %v2884_v37 = vmul.f32 %v15166_v25, %v11190_v32 }
 0x368   : > { %v2885_v47 = vmul.f32 %v11190_v32, %v15167_v35  ;;  %v2886_v18 = vmul.f32 %v11127_v5, %v11190_v32  ;;  %v2887_v34 = vmul.f32 %v11190_v32, %v15168_v28  ;;  %v2888_v9 = vmul.f32 %v11209_v50, %v11190_v32 }
 0x369   : > { %v2889_v4 = vmul.f32 %v11190_v32, %v15175_v24  ;;  %v2890_v61 = vmul.f32 %v11279_v12, %v11190_v32  ;;  %v11324_v33 = vmul.f32 %v15176_v43, %v11190_v32  ;;  %v2892_v19 = vmul.f32 %v11326_v62, %v11190_v32 }
 0x36a   : > { %v2909_v41 = vrot.slane %v2877_v10, 3  ;;  %v2910_v58 = vrot.slane %v2878_v40, 3  ;;  %v2912_v56 = vrot.slane %v2879_v7, 3  ;;  %v2913_v63 = vrot.slane %v2880_v21, 3 }
 0x36b   : > { %v2915_v27 = vrot.slane %v2881_v23, 3  ;;  %v2916_v57 = vrot.slane %v2882_v0, 3  ;;  %v2918_v17 = vrot.slane %v2883_v45, 3  ;;  %v2919_v60 = vrot.slane %v2884_v37, 3 }
 0x36c   : > { %v2871_v55 = vadd.f32 %v2838_v53, %v2779_v22  ;;  %v2872_v48 = vadd.f32 %v2840_v2, %v2780_v26  ;;  %v2921_v52 = vrot.slane %v2885_v47, 3  ;;  %v2922_v46 = vrot.slane %v2886_v18, 3 }
 0x36d   : > { %v2911_v8 = vsel %vm2632_vm5, %v2909_v41, %v2910_v58  ;;  %v2914_v44 = vsel %vm2632_vm5, %v2912_v56, %v2913_v63  ;;  %v2924_v31 = vrot.slane %v2887_v34, 3  ;;  %v2925_v43 = vrot.slane %v2888_v9, 3 }
 0x36e   : > { %v2917_v32 = vsel %vm2632_vm5, %v2915_v27, %v2916_v57  ;;  %v2920_v10 = vsel %vm2632_vm5, %v2918_v17, %v2919_v60  ;;  %v2927_v40 = vrot.slane %v2889_v4, 3  ;;  %v2928_v7 = vrot.slane %v2890_v61, 3 }
 0x36f   : > { %v2923_v21 = vsel %vm2632_vm5, %v2921_v52, %v2922_v46  ;;  %v2926_v23 = vsel %vm2632_vm5, %v2924_v31, %v2925_v43  ;;  %v2930_v26 = vrot.slane %v11324_v33, 3  ;;  %v2931_v22 = vrot.slane %v2892_v19, 3  ;;  %v11339_v33 = vld [vmem:[#allocation2 + $0x130] sm:$0xff] }
 0x370   : > { %v2929_v53 = vsel %vm2632_vm5, %v2927_v40, %v2928_v7  ;;  %v2949_v2 = vadd.f32 %v2909_v41, %v2857_v3  ;;  %v2950_v0 = vadd.f32 %v2911_v8, %v2858_v6  ;;  %v2951_v45 = vadd.f32 %v2912_v56, %v2859_v49  ;;  %15178 = vst [vmem:[#allocation94_spill] sm:$0xff] %v11339_v33  ;;  %v15179_v19 = vld [vmem:[#allocation95_spill] sm:$0xff] }
 0x371   : > { %v2932_v37 = vsel %vm2632_vm5, %v2930_v26, %v2931_v22  ;;  %v2952_v47 = vadd.f32 %v2914_v44, %v2860_v16  ;;  %v2953_v18 = vadd.f32 %v2915_v27, %v2861_v1  ;;  %v2954_v34 = vadd.f32 %v2917_v32, %v2862_v14 }
 0x372   : > { %v2955_v9 = vadd.f32 %v2918_v17, %v2863_v42  ;;  %v2956_v4 = vadd.f32 %v2920_v10, %v2864_v39  ;;  %v2957_v61 = vadd.f32 %v2921_v52, %v2865_v36  ;;  %v2958_v58 = vadd.f32 %v2923_v21, %v2866_v59 }
 0x373   : > { %v2959_v63 = vadd.f32 %v2924_v31, %v2867_v11  ;;  %v2960_v57 = vadd.f32 %v2926_v23, %v2868_v54  ;;  %v2961_v43 = vadd.f32 %v2927_v40, %v2869_v20  ;;  %v2962_v60 = vadd.f32 %v2929_v53, %v2870_v29  ;;  %v15180_v11 = vld [vmem:[#allocation30_spill] sm:$0xff]  ;;  %v15181_v29 = vld [vmem:[#allocation31_spill] sm:$0xff] }
 0x374   : > { %v2969_v3 = vmul.f32 %v15179_v19, %v10637_v13  ;;  %v2970_v6 = vmul.f32 %v11109_v38, %v15179_v19  ;;  %v2971_v44 = vmul.f32 %v15179_v19, %v10588_v30  ;;  %v2972_v49 = vmul.f32 %v11115_v15, %v15179_v19 }
 0x375   : > { %v2973_v31 = vmul.f32 %v15179_v19, %v15165_v51  ;;  %v2974_v16 = vmul.f32 %v15166_v25, %v15179_v19  ;;  %v2975_v1 = vmul.f32 %v15179_v19, %v15167_v35  ;;  %v2976_v14 = vmul.f32 %v11127_v5, %v15179_v19 }
 0x376   : > { %v2977_v42 = vmul.f32 %v15179_v19, %v15168_v28  ;;  %v2978_v39 = vmul.f32 %v11209_v50, %v15179_v19  ;;  %v2979_v36 = vmul.f32 %v15179_v19, %v15175_v24  ;;  %v2980_v59 = vmul.f32 %v11279_v12, %v15179_v19 }
 0x377   : > { %v2981_v54 = vmul.f32 %v15180_v11, %v15179_v19  ;;  %v2982_v20 = vmul.f32 %v11326_v62, %v15179_v19  ;;  %v2983_v41 = vmul.f32 %v15181_v29, %v15179_v19  ;;  %v2984_v56 = vmul.f32 %v15179_v19, %v11339_v33 }
 0x378   : > { %v3001_v27 = vrot.slane %v2969_v3, 3  ;;  %v3002_v17 = vrot.slane %v2970_v6, 3  ;;  %v3004_v52 = vrot.slane %v2971_v44, 3  ;;  %v3005_v46 = vrot.slane %v2972_v49, 3 }
 0x379   : > { %v3007_v8 = vrot.slane %v2973_v31, 3  ;;  %v3008_v32 = vrot.slane %v2974_v16, 3  ;;  %v3010_v10 = vrot.slane %v2975_v1, 3  ;;  %v3011_v40 = vrot.slane %v2976_v14, 3 }
 0x37a   : > { %v2963_v7 = vadd.f32 %v2930_v26, %v2871_v55  ;;  %v2964_v21 = vadd.f32 %v2932_v37, %v2872_v48  ;;  %v3013_v23 = vrot.slane %v2977_v42, 3  ;;  %v3014_v22 = vrot.slane %v2978_v39, 3 }
 0x37b   : > { %v3003_v53 = vsel %vm2632_vm5, %v3001_v27, %v3002_v17  ;;  %v3006_v11 = vsel %vm2632_vm5, %v3004_v52, %v3005_v46  ;;  %v3016_v29 = vrot.slane %v2979_v36, 3  ;;  %v3017_v62 = vrot.slane %v2980_v59, 3  ;;  %v8648_v17 = vld [vmem:[%s14465_s8] sm:$0x7] }
 0x37c   : > { %v3009_v19 = vsel %vm2632_vm5, %v3007_v8, %v3008_v32  ;;  %v3012_v3 = vsel %vm2632_vm5, %v3010_v10, %v3011_v40  ;;  %v3019_v6 = vrot.slane %v2981_v54, 3  ;;  %v3020_v44 = vrot.slane %v2982_v20, 3 }
 0x37d   : > { %v3015_v49 = vsel %vm2632_vm5, %v3013_v23, %v3014_v22  ;;  %v3018_v31 = vsel %vm2632_vm5, %v3016_v29, %v3017_v62  ;;  %v3022_v55 = vrot.slane %v2983_v41, 3  ;;  %v3023_v48 = vrot.slane %v2984_v56, 3 }
 0x37e   : > { %v3021_v26 = vsel %vm2632_vm5, %v3019_v6, %v3020_v44  ;;  %v11380_v37 = vadd.f32 %v3001_v27, %v2949_v2  ;;  %v11382_v16 = vadd.f32 %v3003_v53, %v2950_v0  ;;  %v11384_v1 = vadd.f32 %v3004_v52, %v2951_v45  ;;  %v15191_v52 = vld [vmem:[#allocation35_spill] sm:$0xff]  ;;  %v15197_v53 = vld [vmem:[#allocation93_spill] sm:$0xff] }
 0x37f   : > { %v3024_v14 = vsel %vm2632_vm5, %v3022_v55, %v3023_v48  ;;  %v11387_v42 = vadd.f32 %v3006_v11, %v2952_v47  ;;  %v11389_v39 = vadd.f32 %v3007_v8, %v2953_v18  ;;  %v11391_v36 = vadd.f32 %v3009_v19, %v2954_v34  ;;  %v15193_v8 = vld [vmem:[#allocation29_spill] sm:$0xff] }
 0x380   : > { %v11393_v59 = vadd.f32 %v3010_v10, %v2955_v9  ;;  %v11395_v62 = vadd.f32 %v3012_v3, %v2956_v4  ;;  %v11397_v54 = vadd.f32 %v3013_v23, %v2957_v61  ;;  %v11399_v2 = vadd.f32 %v3015_v49, %v2958_v58  ;;  %v15182_v9 = vld [vmem:[#allocation80_spill] sm:$0xff]  ;;  %v15183_v4 = vld [vmem:[#allocation25_spill] sm:$0xff]  ;;  %v15184_v61 = vld [vmem:[#allocation27_spill] sm:$0xff] }
 0x381   : > { %v11401_v0 = vadd.f32 %v3016_v29, %v2959_v63  ;;  %v11403_v45 = vadd.f32 %v3018_v31, %v2960_v57  ;;  %v11405_v20 = vadd.f32 %v3019_v6, %v2961_v43  ;;  %v11407_v47 = vadd.f32 %v3021_v26, %v2962_v60  ;;  %v15185_v63 = vld [vmem:[#allocation28_spill] sm:$0xff]  ;;  %v15187_v57 = vld [vmem:[#allocation79_spill] sm:$0xff]  ;;  %v15194_v10 = vld [vmem:[#allocation46_spill] sm:$0xff] }
 0x382   : > { %v11409_v18 = vadd.f32 %v3022_v55, %v2963_v7  ;;  %v11411_v34 = vadd.f32 %v3024_v14, %v2964_v21  ;;  %v3060_v41 = vrot.slane %v15183_v4, %v15182_v9  ;;  %v11417_v58 = vrot.slane %v15184_v61, %v15182_v9  ;;  %v15189_v60 = vld [vmem:[#allocation75_spill] sm:$0xff]  ;;  %v15195_v7 = vld [vmem:[#allocation26_spill] sm:$0xff]  ;;  %v15198_v29 = vld [vmem:[#allocation76_spill] sm:$0xff] }
 0x383   : > { %v11421_v56 = vrot.slane %v15185_v63, %v15182_v9  ;;  %v11425_v43 = vrot.slane %v15187_v57, %v15182_v9  ;;  %v11429_v27 = vrot.slane %v15189_v60, %v15182_v9  ;;  %v11435_v46 = vrot.slane %v8648_v17, %v15191_v52  ;;  %v15196_v23 = vld [vmem:[#allocation74_spill] sm:$0xff]  ;;  %v15199_v3 = vld [vmem:[#allocation85_spill] sm:$0xff] }
 0x384   : > { %v3061_v32 = vmul.f32 %v15193_v8, %v3060_v41  ;;  %v3062_v40 = vmul.f32 %v3060_v41, %v15194_v10  ;;  %v3063_v21 = vmul.f32 %v15195_v7, %v3060_v41  ;;  %v3064_v22 = vmul.f32 %v3060_v41, %v15196_v23  ;;  %v15200_v44 = vld [vmem:[#allocation77_spill] sm:$0xff] }
 0x385   : > { %15186 = vst [vmem:[#allocation92_spill] sm:$0xff] %v11421_v56  ;;  %15188 = vst [vmem:[#allocation34_spill] sm:$0xff] %v11425_v43  ;;  %v3065_v11 = vmul.f32 %v3060_v41, %v15197_v53  ;;  %v3066_v19 = vmul.f32 %v3060_v41, %v15198_v29  ;;  %v3067_v6 = vmul.f32 %v3060_v41, %v15199_v3 }
 0x386   : > { %15190 = vst [vmem:[#allocation91_spill] sm:$0xff] %v11429_v27  ;;  %15192 = vst [vmem:[#allocation83_spill] sm:$0xff] %v11435_v46  ;;  %v3068_v49 = vmul.f32 %v3060_v41, %v15200_v44  ;;  %v3069_v31 = vmul.f32 %v3060_v41, %v10637_v13  ;;  %v3070_v55 = vmul.f32 %v11109_v38, %v3060_v41  ;;  %v3094_v57 = vrot.slane %v3061_v32, 4 }
 0x387   : > { %v3071_v48 = vmul.f32 %v3060_v41, %v10588_v30  ;;  %v3072_v26 = vmul.f32 %v11115_v15, %v3060_v41  ;;  %v3073_v14 = vmul.f32 %v3060_v41, %v15165_v51  ;;  %v3074_v4 = vmul.f32 %v15166_v25, %v3060_v41 }
 0x388   : > { %v3075_v61 = vmul.f32 %v3060_v41, %v15167_v35  ;;  %v3076_v63 = vmul.f32 %v11127_v5, %v3060_v41  ;;  %v3095_v60 = vrot.slane %v3062_v40, 4  ;;  %v3097_v17 = vrot.slane %v3063_v21, 4 }
 0x389   : > { %v3098_v8 = vrot.slane %v3064_v22, 4  ;;  %v3100_v10 = vrot.slane %v3065_v11, 4  ;;  %v3101_v7 = vrot.slane %v3066_v19, 4  ;;  %v3103_v9 = vrot.slane %v3067_v6, 4 }
 0x38a   : > { %v3104_v52 = vrot.slane %v3068_v49, 4  ;;  %v3096_v46 = vsel %vm3093_vm6, %v3094_v57, %v3095_v60  ;;  %v3106_v27 = vrot.slane %v3069_v31, 4  ;;  %v3107_v43 = vrot.slane %v3070_v55, 4 }
 0x38b   : > { %v3099_v33 = vsel %vm3093_vm6, %v3097_v17, %v3098_v8  ;;  %v3102_v12 = vsel %vm3093_vm6, %v3100_v10, %v3101_v7  ;;  %v3109_v56 = vrot.slane %v3071_v48, 4  ;;  %v3110_v41 = vrot.slane %v3072_v26, 4 }
 0x38c   : > { %v3105_v24 = vsel %vm3093_vm6, %v3103_v9, %v3104_v52  ;;  %v3108_v32 = vsel %vm3093_vm6, %v3106_v27, %v3107_v43  ;;  %v3112_v40 = vrot.slane %v3073_v14, 4  ;;  %v3113_v21 = vrot.slane %v3074_v4, 4 }
 0x38d   : > { %v3115_v22 = vrot.slane %v3075_v61, 4  ;;  %v3111_v11 = vsel %vm3093_vm6, %v3109_v56, %v3110_v41  ;;  %v3116_v19 = vrot.slane %v3076_v63, 4  ;;  %v3134_v6 = vadd.f32 %v3094_v57, %v11380_v37 }
 0x38e   : > { %v3135_v49 = vadd.f32 %v3096_v46, %v11382_v16  ;;  %v3114_v31 = vsel %vm3093_vm6, %v3112_v40, %v3113_v21  ;;  %v3136_v55 = vadd.f32 %v3097_v17, %v11384_v1  ;;  %v3137_v52 = vadd.f32 %v3099_v33, %v11387_v42 }
 0x38f   : > { %v3138_v48 = vadd.f32 %v3100_v10, %v11389_v39  ;;  %v3117_v43 = vsel %vm3093_vm6, %v3115_v22, %v3116_v19  ;;  %v3139_v26 = vadd.f32 %v3102_v12, %v11391_v36  ;;  %v3140_v14 = vadd.f32 %v3103_v9, %v11393_v59  ;;  %v8649_v36 = vld [vmem:[#allocation2 + $0x38] sm:$0xff] }
 0x390   : > { %v3141_v4 = vadd.f32 %v3105_v24, %v11395_v62  ;;  %v3142_v37 = vadd.f32 %v3106_v27, %v11397_v54  ;;  %v3143_v16 = vadd.f32 %v3108_v32, %v11399_v2  ;;  %v3144_v46 = vadd.f32 %v3109_v56, %v11401_v0 }
 0x391   : > { %v3145_v1 = vadd.f32 %v3111_v11, %v11403_v45  ;;  %v3146_v33 = vadd.f32 %v3112_v40, %v11405_v20  ;;  %v3147_v42 = vadd.f32 %v3114_v31, %v11407_v47  ;;  %v3148_v39 = vadd.f32 %v3115_v22, %v11409_v18 }
 0x392   : > { %v3149_v12 = vadd.f32 %v3117_v43, %v11411_v34  ;;  %v3154_v59 = vmul.f32 %v8649_v36, %v11417_v58  ;;  %v3155_v24 = vmul.f32 %v11417_v58, %v15196_v23  ;;  %v3156_v62 = vmul.f32 %v11417_v58, %v15197_v53 }
 0x393   : > { %v3157_v54 = vmul.f32 %v11417_v58, %v15198_v29  ;;  %v3158_v2 = vmul.f32 %v11417_v58, %v15199_v3  ;;  %v3159_v0 = vmul.f32 %v11417_v58, %v15200_v44  ;;  %v3160_v45 = vmul.f32 %v11417_v58, %v10637_v13 }
 0x394   : > { %v3161_v20 = vmul.f32 %v11109_v38, %v11417_v58  ;;  %v3162_v47 = vmul.f32 %v11417_v58, %v10588_v30  ;;  %v3163_v18 = vmul.f32 %v11115_v15, %v11417_v58  ;;  %v3164_v34 = vmul.f32 %v11417_v58, %v15165_v51 }
 0x395   : > { %v3165_v9 = vmul.f32 %v15166_v25, %v11417_v58  ;;  %v3166_v56 = vmul.f32 %v11417_v58, %v15167_v35  ;;  %v3167_v27 = vmul.f32 %v11127_v5, %v11417_v58  ;;  %v3168_v23 = vmul.f32 %v11417_v58, %v15168_v28 }
 0x396   : > { %v3169_v61 = vmul.f32 %v11209_v50, %v11417_v58  ;;  %v3186_v63 = vrot.slane %v3154_v59, 4  ;;  %v3187_v57 = vrot.slane %v3155_v24, 4  ;;  %v3189_v60 = vrot.slane %v3156_v62, 4 }
 0x397   : > { %v3190_v17 = vrot.slane %v3157_v54, 4  ;;  %v3192_v8 = vrot.slane %v3158_v2, 4  ;;  %v3193_v10 = vrot.slane %v3159_v0, 4  ;;  %v3195_v7 = vrot.slane %v3160_v45, 4 }
 0x398   : > { %v3196_v41 = vrot.slane %v3161_v20, 4  ;;  %v3188_v32 = vsel %vm3093_vm6, %v3186_v63, %v3187_v57  ;;  %v3198_v21 = vrot.slane %v3162_v47, 4  ;;  %v3199_v22 = vrot.slane %v3163_v18, 4 }
 0x399   : > { %v3191_v40 = vsel %vm3093_vm6, %v3189_v60, %v3190_v17  ;;  %v3194_v11 = vsel %vm3093_vm6, %v3192_v8, %v3193_v10  ;;  %v3201_v31 = vrot.slane %v3164_v34, 4  ;;  %v3202_v58 = vrot.slane %v3165_v9, 4 }
 0x39a   : > { %v3197_v19 = vsel %vm3093_vm6, %v3195_v7, %v3196_v41  ;;  %v3200_v43 = vsel %vm3093_vm6, %v3198_v21, %v3199_v22  ;;  %v3204_v36 = vrot.slane %v3166_v56, 4  ;;  %v3205_v59 = vrot.slane %v3167_v27, 4 }
 0x39b   : > { %v3207_v24 = vrot.slane %v3168_v23, 4  ;;  %v3203_v62 = vsel %vm3093_vm6, %v3201_v31, %v3202_v58  ;;  %v3208_v54 = vrot.slane %v3169_v61, 4  ;;  %v3226_v2 = vadd.f32 %v3186_v63, %v3134_v6  ;;  %v15201_v6 = vld [vmem:[#allocation92_spill] sm:$0xff] }
 0x39c   : > { %v3227_v0 = vadd.f32 %v3188_v32, %v3135_v49  ;;  %v3206_v45 = vsel %vm3093_vm6, %v3204_v36, %v3205_v59  ;;  %v3228_v20 = vadd.f32 %v3189_v60, %v3136_v55  ;;  %v3229_v47 = vadd.f32 %v3191_v40, %v3137_v52 }
 0x39d   : > { %v3230_v18 = vadd.f32 %v3192_v8, %v3138_v48  ;;  %v3209_v57 = vsel %vm3093_vm6, %v3207_v24, %v3208_v54  ;;  %v3231_v17 = vadd.f32 %v3194_v11, %v3139_v26  ;;  %v3232_v34 = vadd.f32 %v3195_v7, %v3140_v14 }
 0x39e   : > { %v3233_v9 = vadd.f32 %v3197_v19, %v3141_v4  ;;  %v3234_v10 = vadd.f32 %v3198_v21, %v3142_v37  ;;  %v3235_v41 = vadd.f32 %v3200_v43, %v3143_v16  ;;  %v3236_v56 = vadd.f32 %v3201_v31, %v3144_v46 }
 0x39f   : > { %v3237_v27 = vadd.f32 %v3203_v62, %v3145_v1  ;;  %v3238_v23 = vadd.f32 %v3204_v36, %v3146_v33  ;;  %v3239_v22 = vadd.f32 %v3206_v45, %v3147_v42  ;;  %v3240_v58 = vadd.f32 %v3207_v24, %v3148_v39  ;;  %v15202_v42 = vld [vmem:[#allocation98_spill] sm:$0xff] }
 0x3a0   : > { %v3241_v61 = vadd.f32 %v3209_v57, %v3149_v12  ;;  %v3246_v49 = vmul.f32 %v15201_v6, %v15197_v53  ;;  %v3247_v55 = vmul.f32 %v15201_v6, %v15198_v29  ;;  %v3248_v52 = vmul.f32 %v15201_v6, %v15199_v3  ;;  %v15203_v12 = vld [vmem:[#allocation81_spill] sm:$0xff] }
 0x3a1   : > { %v3249_v48 = vmul.f32 %v15201_v6, %v15200_v44  ;;  %v3250_v26 = vmul.f32 %v15201_v6, %v10637_v13  ;;  %v3251_v14 = vmul.f32 %v11109_v38, %v15201_v6  ;;  %v3252_v4 = vmul.f32 %v15201_v6, %v10588_v30 }
 0x3a2   : > { %v3253_v53 = vmul.f32 %v11115_v15, %v15201_v6  ;;  %v3254_v29 = vmul.f32 %v15201_v6, %v15165_v51  ;;  %v3255_v37 = vmul.f32 %v15166_v25, %v15201_v6  ;;  %v3256_v16 = vmul.f32 %v15201_v6, %v15167_v35 }
 0x3a3   : > { %v3257_v46 = vmul.f32 %v11127_v5, %v15201_v6  ;;  %v3258_v1 = vmul.f32 %v15201_v6, %v15168_v28  ;;  %v3259_v33 = vmul.f32 %v11209_v50, %v15201_v6  ;;  %v3260_v39 = vmul.f32 %v15201_v6, %v15202_v42 }
 0x3a4   : > { %v3261_v63 = vmul.f32 %v15203_v12, %v15201_v6  ;;  %v3278_v60 = vrot.slane %v3246_v49, 4  ;;  %v3279_v8 = vrot.slane %v3247_v55, 4  ;;  %v3281_v7 = vrot.slane %v3248_v52, 4 }
 0x3a5   : > { %v3282_v32 = vrot.slane %v3249_v48, 4  ;;  %v3284_v40 = vrot.slane %v3250_v26, 4  ;;  %v3285_v21 = vrot.slane %v3251_v14, 4  ;;  %v3287_v11 = vrot.slane %v3252_v4, 4 }
 0x3a6   : > { %v3288_v19 = vrot.slane %v3253_v53, 4  ;;  %v3280_v31 = vsel %vm3093_vm6, %v3278_v60, %v3279_v8  ;;  %v3290_v36 = vrot.slane %v3254_v29, 4  ;;  %v3291_v59 = vrot.slane %v3255_v37, 4 }
 0x3a7   : > { %v3283_v43 = vsel %vm3093_vm6, %v3281_v7, %v3282_v32  ;;  %v3286_v24 = vsel %vm3093_vm6, %v3284_v40, %v3285_v21  ;;  %v3293_v54 = vrot.slane %v3256_v16, 4  ;;  %v3294_v45 = vrot.slane %v3257_v46, 4 }
 0x3a8   : > { %v3289_v62 = vsel %vm3093_vm6, %v3287_v11, %v3288_v19  ;;  %v3292_v57 = vsel %vm3093_vm6, %v3290_v36, %v3291_v59  ;;  %v3296_v6 = vrot.slane %v3258_v1, 4  ;;  %v3297_v49 = vrot.slane %v3259_v33, 4 }
 0x3a9   : > { %v3299_v55 = vrot.slane %v3260_v39, 4  ;;  %v3295_v52 = vsel %vm3093_vm6, %v3293_v54, %v3294_v45  ;;  %v3300_v48 = vrot.slane %v3261_v63, 4  ;;  %v3318_v26 = vadd.f32 %v3278_v60, %v3226_v2  ;;  %v15204_v2 = vld [vmem:[#allocation34_spill] sm:$0xff] }
 0x3aa   : > { %v3319_v14 = vadd.f32 %v3280_v31, %v3227_v0  ;;  %v3298_v4 = vsel %vm3093_vm6, %v3296_v6, %v3297_v49  ;;  %v3320_v53 = vadd.f32 %v3281_v7, %v3228_v20  ;;  %v3321_v29 = vadd.f32 %v3283_v43, %v3229_v47 }
 0x3ab   : > { %v3322_v37 = vadd.f32 %v3284_v40, %v3230_v18  ;;  %v3301_v8 = vsel %vm3093_vm6, %v3299_v55, %v3300_v48  ;;  %v3323_v32 = vadd.f32 %v3286_v24, %v3231_v17  ;;  %v3324_v16 = vadd.f32 %v3287_v11, %v3232_v34 }
 0x3ac   : > { %v3325_v46 = vadd.f32 %v3289_v62, %v3233_v9  ;;  %v3326_v21 = vadd.f32 %v3290_v36, %v3234_v10  ;;  %v3327_v19 = vadd.f32 %v3292_v57, %v3235_v41  ;;  %v3328_v1 = vadd.f32 %v3293_v54, %v3236_v56 }
 0x3ad   : > { %v3329_v33 = vadd.f32 %v3295_v52, %v3237_v27  ;;  %v3330_v39 = vadd.f32 %v3296_v6, %v3238_v23  ;;  %v3331_v59 = vadd.f32 %v3298_v4, %v3239_v22  ;;  %v3332_v45 = vadd.f32 %v3299_v55, %v3240_v58  ;;  %v8650_v27 = vld [vmem:[#allocation2 + $0x110] sm:$0xff]  ;;  %v15205_v23 = vld [vmem:[#allocation82_spill] sm:$0xff] }
 0x3ae   : > { %v3333_v63 = vadd.f32 %v3301_v8, %v3241_v61  ;;  %v3338_v0 = vmul.f32 %v15204_v2, %v15199_v3  ;;  %v3339_v20 = vmul.f32 %v15204_v2, %v15200_v44  ;;  %v3340_v47 = vmul.f32 %v15204_v2, %v10637_v13 }
 0x3af   : > { %v3341_v18 = vmul.f32 %v11109_v38, %v15204_v2  ;;  %v3342_v17 = vmul.f32 %v15204_v2, %v10588_v30  ;;  %v3343_v34 = vmul.f32 %v11115_v15, %v15204_v2  ;;  %v3344_v9 = vmul.f32 %v15204_v2, %v15165_v51 }
 0x3b0   : > { %v3345_v3 = vmul.f32 %v15166_v25, %v15204_v2  ;;  %v3346_v44 = vmul.f32 %v15204_v2, %v15167_v35  ;;  %v3347_v10 = vmul.f32 %v11127_v5, %v15204_v2  ;;  %v3348_v38 = vmul.f32 %v15204_v2, %v15168_v28 }
 0x3b1   : > { %v3349_v41 = vmul.f32 %v11209_v50, %v15204_v2  ;;  %v3350_v15 = vmul.f32 %v15204_v2, %v15202_v42  ;;  %v3351_v56 = vmul.f32 %v15203_v12, %v15204_v2  ;;  %v3352_v25 = vmul.f32 %v8650_v27, %v15204_v2 }
 0x3b2   : > { %v3353_v22 = vmul.f32 %v15205_v23, %v15204_v2  ;;  %v3370_v58 = vrot.slane %v3338_v0, 4  ;;  %v3371_v5 = vrot.slane %v3339_v20, 4  ;;  %v3373_v61 = vrot.slane %v3340_v47, 4 }
 0x3b3   : > { %v3374_v60 = vrot.slane %v3341_v18, 4  ;;  %v3376_v7 = vrot.slane %v3342_v17, 4  ;;  %v3377_v40 = vrot.slane %v3343_v34, 4  ;;  %v3379_v11 = vrot.slane %v3344_v9, 4 }
 0x3b4   : > { %v3380_v31 = vrot.slane %v3345_v3, 4  ;;  %v3372_v43 = vsel %vm3093_vm6, %v3370_v58, %v3371_v5  ;;  %v3382_v24 = vrot.slane %v3346_v44, 4  ;;  %v3383_v62 = vrot.slane %v3347_v10, 4  ;;  %v8651_v5 = vld [vmem:[#allocation2 + $0x88] sm:$0xff] }
 0x3b5   : > { %v3375_v36 = vsel %vm3093_vm6, %v3373_v61, %v3374_v60  ;;  %v3378_v54 = vsel %vm3093_vm6, %v3376_v7, %v3377_v40  ;;  %v3385_v6 = vrot.slane %v3348_v38, 4  ;;  %v3386_v49 = vrot.slane %v3349_v41, 4  ;;  %v15207_v60 = vld [vmem:[#allocation94_spill] sm:$0xff] }
 0x3b6   : > { %v3381_v57 = vsel %vm3093_vm6, %v3379_v11, %v3380_v31  ;;  %v3384_v55 = vsel %vm3093_vm6, %v3382_v24, %v3383_v62  ;;  %v3388_v52 = vrot.slane %v3350_v15, 4  ;;  %v3389_v48 = vrot.slane %v3351_v56, 4 }
 0x3b7   : > { %v3391_v4 = vrot.slane %v3352_v25, 4  ;;  %v3387_v8 = vsel %vm3093_vm6, %v3385_v6, %v3386_v49  ;;  %v3392_v2 = vrot.slane %v3353_v22, 4  ;;  %v3410_v0 = vadd.f32 %v3370_v58, %v3318_v26  ;;  %v15206_v58 = vld [vmem:[#allocation91_spill] sm:$0xff] }
 0x3b8   : > { %v3411_v20 = vadd.f32 %v3372_v43, %v3319_v14  ;;  %v3390_v47 = vsel %vm3093_vm6, %v3388_v52, %v3389_v48  ;;  %v11594_v18 = vadd.f32 %v3373_v61, %v3320_v53  ;;  %v3413_v17 = vadd.f32 %v3375_v36, %v3321_v29 }
 0x3b9   : > { %v3414_v34 = vadd.f32 %v3376_v7, %v3322_v37  ;;  %v3393_v9 = vsel %vm3093_vm6, %v3391_v4, %v3392_v2  ;;  %v11597_v3 = vadd.f32 %v3378_v54, %v3323_v32  ;;  %v3416_v44 = vadd.f32 %v3379_v11, %v3324_v16  ;;  %v8652_v32 = vld [vmem:[#allocation2 + $0xa0] sm:$0xff] }
 0x3ba   : > { %v3417_v10 = vadd.f32 %v3381_v57, %v3325_v46  ;;  %v3418_v38 = vadd.f32 %v3382_v24, %v3326_v21  ;;  %v3419_v41 = vadd.f32 %v3384_v55, %v3327_v19  ;;  %v3420_v15 = vadd.f32 %v3385_v6, %v3328_v1  ;;  %v8653_v21 = vld [vmem:[#allocation2 + $0xb8] sm:$0xff] }
 0x3bb   : > { %v3421_v56 = vadd.f32 %v3387_v8, %v3329_v33  ;;  %v3422_v25 = vadd.f32 %v3388_v52, %v3330_v39  ;;  %v3423_v22 = vadd.f32 %v3390_v47, %v3331_v59  ;;  %v3424_v26 = vadd.f32 %v3391_v4, %v3332_v45  ;;  %v8654_v33 = vld [vmem:[#allocation2 + $0xd0] sm:$0xff] }
 0x3bc   : > { %v3425_v14 = vadd.f32 %v3393_v9, %v3333_v63  ;;  %v3430_v53 = vmul.f32 %v15206_v58, %v10637_v13  ;;  %v3431_v29 = vmul.f32 %v8651_v5, %v15206_v58  ;;  %v3432_v37 = vmul.f32 %v15206_v58, %v10588_v30  ;;  %v8655_v63 = vld [vmem:[#allocation2 + $0x128] sm:$0xff] }
 0x3bd   : > { %v3433_v16 = vmul.f32 %v8652_v32, %v15206_v58  ;;  %v3434_v46 = vmul.f32 %v15206_v58, %v15165_v51  ;;  %v3435_v19 = vmul.f32 %v8653_v21, %v15206_v58  ;;  %v3436_v1 = vmul.f32 %v15206_v58, %v15167_v35 }
 0x3be   : > { %v3437_v13 = vmul.f32 %v8654_v33, %v15206_v58  ;;  %v3438_v39 = vmul.f32 %v15206_v58, %v15168_v28  ;;  %v3439_v30 = vmul.f32 %v11209_v50, %v15206_v58  ;;  %v3440_v59 = vmul.f32 %v15206_v58, %v15202_v42 }
 0x3bf   : > { %v3441_v51 = vmul.f32 %v15203_v12, %v15206_v58  ;;  %v3442_v45 = vmul.f32 %v8650_v27, %v15206_v58  ;;  %v3443_v35 = vmul.f32 %v15205_v23, %v15206_v58  ;;  %v3444_v61 = vmul.f32 %v8655_v63, %v15206_v58 }
 0x3c0   : > { %v3445_v28 = vmul.f32 %v15206_v58, %v15207_v60  ;;  %v3462_v7 = vrot.slane %v3430_v53, 4  ;;  %v3463_v40 = vrot.slane %v3431_v29, 4  ;;  %v3465_v50 = vrot.slane %v3432_v37, 4  ;;  %v15208_v60 = vld [vmem:[#allocation83_spill] sm:$0xff] }
 0x3c1   : > { %v3466_v11 = vrot.slane %v3433_v16, 4  ;;  %v3468_v31 = vrot.slane %v3434_v46, 4  ;;  %v3469_v42 = vrot.slane %v3435_v19, 4  ;;  %v3471_v43 = vrot.slane %v3436_v1, 4 }
 0x3c2   : > { %v3472_v36 = vrot.slane %v3437_v13, 4  ;;  %v3464_v12 = vsel %vm3093_vm6, %v3462_v7, %v3463_v40  ;;  %v3474_v24 = vrot.slane %v3438_v39, 4  ;;  %v3475_v23 = vrot.slane %v3439_v30, 4 }
 0x3c3   : > { %v3467_v27 = vsel %vm3093_vm6, %v3465_v50, %v3466_v11  ;;  %v3470_v62 = vsel %vm3093_vm6, %v3468_v31, %v3469_v42  ;;  %v3477_v57 = vrot.slane %v3440_v59, 4  ;;  %v3478_v6 = vrot.slane %v3441_v51, 4 }
 0x3c4   : > { %v3473_v54 = vsel %vm3093_vm6, %v3471_v43, %v3472_v36  ;;  %v3476_v49 = vsel %vm3093_vm6, %v3474_v24, %v3475_v23  ;;  %v3480_v55 = vrot.slane %v3442_v45, 4  ;;  %v3481_v52 = vrot.slane %v3443_v35, 4 }
 0x3c5   : > { %v3483_v48 = vrot.slane %v3444_v61, 4  ;;  %v3479_v4 = vsel %vm3093_vm6, %v3477_v57, %v3478_v6  ;;  %v3484_v8 = vrot.slane %v3445_v28, 4  ;;  %v3502_v2 = vadd.f32 %v3462_v7, %v3410_v0 }
 0x3c6   : > { %v3503_v47 = vadd.f32 %v3464_v12, %v3411_v20  ;;  %v3482_v9 = vsel %vm3093_vm6, %v3480_v55, %v3481_v52  ;;  %v3504_v58 = vadd.f32 %v3465_v50, %v11594_v18  ;;  %v3505_v53 = vadd.f32 %v3467_v27, %v3413_v17 }
 0x3c7   : > { %v3506_v5 = vadd.f32 %v3468_v31, %v3414_v34  ;;  %v3485_v29 = vsel %vm3093_vm6, %v3483_v48, %v3484_v8  ;;  %v3507_v37 = vadd.f32 %v3470_v62, %v11597_v3  ;;  %v3508_v32 = vadd.f32 %v3471_v43, %v3416_v44  ;;  %v15213_v8 = vld [vmem:[#allocation73_spill] sm:$0xff] }
 0x3c8   : > { %v3509_v16 = vadd.f32 %v3473_v54, %v3417_v10  ;;  %v3510_v46 = vadd.f32 %v3474_v24, %v3418_v38  ;;  %v3511_v21 = vadd.f32 %v3476_v49, %v3419_v41  ;;  %v3512_v19 = vadd.f32 %v3477_v57, %v3420_v15 }
 0x3c9   : > { %v3513_v1 = vadd.f32 %v3479_v4, %v3421_v56  ;;  %v3514_v33 = vadd.f32 %v3480_v55, %v3422_v25  ;;  %v3515_v13 = vadd.f32 %v3482_v9, %v3423_v22  ;;  %v3516_v0 = vadd.f32 %v3483_v48, %v3424_v26  ;;  %v15215_v9 = vld [vmem:[#allocation44_spill] sm:$0xff] }
 0x3ca   : > { %v3517_v20 = vadd.f32 %v3485_v29, %v3425_v14  ;;  %v3535_v39 = vrot.slane %v3502_v2, 6  ;;  %v3536_v30 = vrot.slane %v3503_v47, 6  ;;  %v3538_v59 = vrot.slane %v3504_v58, 6  ;;  %v15214_v2 = vld [vmem:[#allocation54_spill] sm:$0xff]  ;;  %v15216_v58 = vld [vmem:[#allocation57_spill] sm:$0xff] }
 0x3cb   : > { %v3539_v18 = vrot.slane %v3505_v53, 6  ;;  %v3541_v17 = vrot.slane %v3506_v5, 6  ;;  %v3542_v34 = vrot.slane %v3507_v37, 6  ;;  %v3544_v51 = vrot.slane %v3508_v32, 6  ;;  %v15217_v5 = vld [vmem:[#allocation61_spill] sm:$0xff]  ;;  %v15219_v37 = vld [vmem:[#allocation66_spill] sm:$0xff] }
 0x3cc   : > { %v3545_v45 = vrot.slane %v3509_v16, 6  ;;  %v3537_v3 = vsel %vm3534_vm7, %v3535_v39, %v3536_v30  ;;  %v3547_v10 = vrot.slane %v3510_v46, 6  ;;  %v3548_v38 = vrot.slane %v3511_v21, 6  ;;  %v15221_v16 = vld [vmem:[#allocation47_spill] sm:$0xff] }
 0x3cd   : > { %v3540_v44 = vsel %vm3534_vm7, %v3538_v59, %v3539_v18  ;;  %v3543_v41 = vsel %vm3534_vm7, %v3541_v17, %v3542_v34  ;;  %v3550_v56 = vrot.slane %v3512_v19, 6  ;;  %v3551_v25 = vrot.slane %v3513_v1, 6  ;;  %v15222_v46 = vld [vmem:[#allocation55_spill] sm:$0xff]  ;;  %v15223_v19 = vld [vmem:[#allocation52_spill] sm:$0xff]  ;;  %v11681_v18 = vld [vmem:[#allocation2] sm:$0xff] }
 0x3ce   : > { %v3546_v15 = vsel %vm3534_vm7, %v3544_v51, %v3545_v45  ;;  %v3549_v22 = vsel %vm3534_vm7, %v3547_v10, %v3548_v38  ;;  %v3553_v26 = vrot.slane %v3514_v33, 6  ;;  %v3554_v14 = vrot.slane %v3515_v13, 6  ;;  %v15225_v33 = vld [vmem:[#allocation69_spill] sm:$0xff]  ;;  %v15227_v17 = vld [vmem:[#allocation70_spill] sm:$0xff]  ;;  %v15230_v10 = vld [vmem:[#allocation40_spill] sm:$0xff] }
 0x3cf   : > { %v3556_v35 = vrot.slane %v3516_v0, 6  ;;  %v3552_v63 = vsel %vm3534_vm7, %v3550_v56, %v3551_v25  ;;  %v3557_v61 = vrot.slane %v3517_v20, 6  ;;  %v3571_v28 = vadd.f32 %v15208_v60, %v3537_v3 }
 0x3d0   : > { %v3572_v7 = vadd.f32 %v15208_v60, %v3540_v44  ;;  %v3555_v40 = vsel %vm3534_vm7, %v3553_v26, %v3554_v14  ;;  %v3573_v50 = vadd.f32 %v15208_v60, %v3543_v41  ;;  %v3574_v11 = vadd.f32 %v15208_v60, %v3546_v15  ;;  %v15229_v44 = vld [vmem:[#allocation58_spill] sm:$0xff]  ;;  %v11697_v26 = vld [vmem:[#allocation2 + $0x50] sm:$0xff] }
 0x3d1   : > { %v11647_v31 = vadd.f32 %v15208_v60, %v3549_v22  ;;  %v3558_v42 = vsel %vm3534_vm7, %v3556_v35, %v3557_v61  ;;  %v11651_v43 = vadd.f32 %v15208_v60, %v3552_v63  ;;  %v11654_v36 = vadd.f32 %v15208_v60, %v3555_v40  ;;  %v11695_v22 = vld [vmem:[#allocation2 + $0x8] sm:$0xff]  ;;  %15235 = vst [vmem:[#allocation65_spill] sm:$0xff] %v11697_v26  ;;  %v15238_v63 = vld [vmem:[#allocation67_spill] sm:$0xff] }
 0x3d2   : > { %v3579_v12 = vadd.f32 3.0, %v3571_v28  ;;  %v11657_v27 = vadd.f32 %v15208_v60, %v3558_v42  ;;  %v3580_v24 = vadd.f32 3.0, %v3572_v7  ;;  %v3581_v23 = vadd.f32 3.0, %v3573_v50  ;;  %v11707_v40 = vld [vmem:[#allocation2 + $0x68] sm:$0xff]  ;;  %v11709_v42 = vld [vmem:[#allocation2 + $0x80] sm:$0xff] }
 0x3d3   : > { %15209 = vst [vmem:[#allocation87_spill] sm:$0xff] %v11647_v31  ;;  %15210 = vst [vmem:[#allocation84_spill] sm:$0xff] %v11651_v43  ;;  %v3582_v62 = vadd.f32 3.0, %v3574_v11  ;;  %v3583_v54 = vadd.f32 3.0, %v11647_v31  ;;  %v3584_v57 = vadd.f32 3.0, %v11651_v43  ;;  %v3585_v6 = vadd.f32 3.0, %v11654_v36 }
 0x3d4   : > { %15211 = vst [vmem:[#allocation88_spill] sm:$0xff] %v11654_v36  ;;  %15212 = vst [vmem:[#allocation86_spill] sm:$0xff] %v11657_v27  ;;  %v3587_v49 = vmax.f32 %v3579_v12, 0.0  ;;  %v3586_v55 = vadd.f32 3.0, %v11657_v27  ;;  %v3588_v52 = vmax.f32 %v3580_v24, 0.0  ;;  %v3589_v48 = vmax.f32 %v3581_v23, 0.0 }
 0x3d5   : > { %v3590_v4 = vmax.f32 %v3582_v62, 0.0  ;;  %v1619_v47 = vmul.f32 %v15214_v2, %v15213_v8  ;;  %v1620_v53 = vmul.f32 %v15216_v58, %v15215_v9  ;;  %v11668_v29 = vmul.f32 0.16666667, %v15217_v5  ;;  %15239 = vst [vmem:[#allocation36_spill] sm:$0xff] %v11707_v40  ;;  %15240 = vst [vmem:[#allocation43_spill] sm:$0xff] %v11709_v42  ;;  %v11739_v2 = vld [vmem:[#allocation2 + $0x48] sm:$0xff] }
 0x3d6   : > { %v11671_v32 = vmul.f32 0.16666667, %v15219_v37  ;;  %v1621_v21 = vmul.f32 %v15222_v46, %v15221_v16  ;;  %v11676_v1 = vmul.f32 0.16666667, %v15223_v19  ;;  %v11679_v13 = vmul.f32 0.16666667, %v15225_v33 }
 0x3d7   : > { %15218 = vst [vmem:[#allocation89_spill] sm:$0xff] %v11668_v29  ;;  %v3591_v0 = vmax.f32 %v3583_v54, 0.0  ;;  %v3592_v20 = vmax.f32 %v3584_v57, 0.0  ;;  %v3593_v39 = vmax.f32 %v3585_v6, 0.0  ;;  %v3594_v30 = vmax.f32 %v3586_v55, 0.0  ;;  %v11719_v54 = vld [vmem:[#allocation2 + $0x18] sm:$0xff] }
 0x3d8   : > { %15220 = vst [vmem:[#allocation90_spill] sm:$0xff] %v11671_v32  ;;  %15224 = vst [vmem:[#allocation51_spill] sm:$0xff] %v11676_v1  ;;  %v3595_v59 = vmin.f32 %v3587_v49, 6.0  ;;  %v11684_v34 = vmul.f32 0.16666667, %v15227_v17  ;;  %v3596_v51 = vmin.f32 %v3588_v52, 6.0  ;;  %v11688_v38 = vadd.f32 %v15230_v10, %v15229_v44 }
 0x3d9   : > { %15226 = vst [vmem:[#allocation64_spill] sm:$0xff] %v11679_v13  ;;  %v3597_v45 = vmin.f32 %v3589_v48, 6.0  ;;  %v3598_v3 = vmin.f32 %v3590_v4, 6.0  ;;  %v11691_v56 = vmul.f32 0.16666667, %v1619_v47  ;;  %v11701_v35 = vmin.f32 %v3591_v0, 6.0 }
 0x3da   : > { %15228 = vst [vmem:[#allocation62_spill] sm:$0xff] %v11684_v34  ;;  %15231 = vst [vmem:[#allocation59_spill] sm:$0xff] %v11688_v38  ;;  %v11693_v25 = vmul.f32 0.16666667, %v1620_v53  ;;  %v11699_v14 = vmul.f32 0.16666667, %v1621_v21  ;;  %v3704_v61 = vmul.f32 %v15238_v63, %v11681_v18  ;;  %v3705_v60 = vmul.f32 %v15238_v63, %v11695_v22 }
 0x3db   : > { %15233 = vst [vmem:[#allocation56_spill] sm:$0xff] %v11691_v56  ;;  %15237 = vst [vmem:[#allocation37_spill] sm:$0xff] %v11701_v35  ;;  %v11711_v12 = vmin.f32 %v3592_v20, 6.0  ;;  %v11713_v24 = vmin.f32 %v3593_v39, 6.0  ;;  %v11715_v23 = vmin.f32 %v3594_v30, 6.0  ;;  %v11717_v62 = vmul.f32 %v3595_v59, %v3571_v28  ;;  %v11721_v57 = vld [vmem:[#allocation2 + $0x98] sm:$0xff] }
 0x3dc   : > { %15234 = vst [vmem:[#allocation71_spill] sm:$0xff] %v11693_v25  ;;  %15236 = vst [vmem:[#allocation72_spill] sm:$0xff] %v11699_v14  ;;  %v11723_v6 = vmul.f32 %v3596_v51, %v3572_v7  ;;  %v11725_v49 = vmul.f32 %v3597_v45, %v3573_v50  ;;  %v11727_v55 = vmul.f32 %v3598_v3, %v3574_v11  ;;  %v11729_v52 = vld [vmem:[#allocation2 + $0x20] sm:$0xff]  ;;  %v11735_v28 = vld [vmem:[#allocation2 + $0x38] sm:$0xff] }
 0x3dd   : > { %15241 = vst [vmem:[#allocation42_spill] sm:$0xff] %v11711_v12  ;;  %15242 = vst [vmem:[#allocation41_spill] sm:$0xff] %v11713_v24  ;;  %v3706_v48 = vmul.f32 %v15238_v63, %v11719_v54  ;;  %v3707_v4 = vmul.f32 %v15238_v63, %v11729_v52  ;;  %v3709_v8 = vmul.f32 %v11735_v28, %v15238_v63  ;;  %v11745_v11 = vld [vmem:[#allocation2 + $0x60] sm:$0xff]  ;;  %v11751_v58 = vld [vmem:[#allocation2 + $0x78] sm:$0xff] }
 0x3de   : > { %15243 = vst [vmem:[#allocation60_spill] sm:$0xff] %v11715_v23  ;;  %15244 = vst [vmem:[#allocation63_spill] sm:$0xff] %v11717_v62  ;;  %v3710_v7 = vmul.f32 %v11739_v2, %v15238_v63  ;;  %v3711_v50 = vmul.f32 %v15238_v63, %v11697_v26  ;;  %v3712_v47 = vmul.f32 %v11745_v11, %v15238_v63  ;;  %v11757_v37 = vld [vmem:[#allocation2 + $0xb0] sm:$0xff]  ;;  %v11765_v19 = vld [vmem:[#allocation2 + $0xa8] sm:$0xff] }
 0x3df   : > { %15245 = vst [vmem:[#allocation97_spill] sm:$0xff] %v11719_v54  ;;  %15246 = vst [vmem:[#allocation78_spill] sm:$0xff] %v11723_v6  ;;  %v3713_v9 = vmul.f32 %v15238_v63, %v11707_v40  ;;  %v3714_v53 = vmul.f32 %v11751_v58, %v15238_v63  ;;  %v3715_v5 = vmul.f32 %v15238_v63, %v11709_v42  ;;  %v11759_v16 = vld [vmem:[#allocation2 + $0x90] sm:$0xff]  ;;  %v15254_v0 = vld [vmem:[#allocation68_spill] sm:$0xff] }
 0x3e0   : > { %15247 = vst [vmem:[#allocation96_spill] sm:$0xff] %v11725_v49  ;;  %15248 = vst [vmem:[#allocation99_spill] sm:$0xff] %v11727_v55  ;;  %v3716_v46 = vmul.f32 %v11759_v16, %v15238_v63  ;;  %v3717_v21 = vmul.f32 %v15238_v63, %v11721_v57  ;;  %v3718_v33 = vmul.f32 %v11765_v19, %v15238_v63  ;;  %v11771_v39 = vld [vmem:[#allocation2 + $0xc8] sm:$0xff]  ;;  %v11775_v59 = vld [vmem:[#allocation2 + $0x30] sm:$0xff] }
 0x3e1   : > { %15249 = vst [vmem:[#allocation95_spill] sm:$0xff] %v11729_v52  ;;  %15250 = vst [vmem:[#allocation30_spill] sm:$0xff] %v11735_v28  ;;  %v3724_v20 = vmul.f32 %v15254_v0, %v11719_v54  ;;  %v3725_v30 = vmul.f32 %v15254_v0, %v11729_v52  ;;  %v3726_v17 = vmul.f32 %v11775_v59, %v15254_v0  ;;  %v11791_v14 = vld [vmem:[#allocation2 + $0xc0] sm:$0xff]  ;;  %v15258_v52 = vld [vmem:[#allocation48_spill] sm:$0xff] }
 0x3e2   : > { %15251 = vst [vmem:[#allocation31_spill] sm:$0xff] %v11739_v2  ;;  %15252 = vst [vmem:[#allocation25_spill] sm:$0xff] %v11745_v11  ;;  %v3727_v51 = vmul.f32 %v11735_v28, %v15254_v0  ;;  %v3729_v45 = vmul.f32 %v15254_v0, %v11697_v26  ;;  %v3730_v3 = vmul.f32 %v11745_v11, %v15254_v0  ;;  %v11843_v38 = vld [vmem:[#allocation2 + $0xf8] sm:$0xff] }
 0x3e3   : > { %15253 = vst [vmem:[#allocation27_spill] sm:$0xff] %v11751_v58  ;;  %15255 = vst [vmem:[#allocation28_spill] sm:$0xff] %v11771_v39  ;;  %v3731_v44 = vmul.f32 %v15254_v0, %v11707_v40  ;;  %v3732_v10 = vmul.f32 %v11751_v58, %v15254_v0  ;;  %v3733_v15 = vmul.f32 %v15254_v0, %v11709_v42 }
 0x3e4   : > { %15256 = vst [vmem:[#allocation79_spill] sm:$0xff] %v11775_v59  ;;  %15257 = vst [vmem:[#allocation75_spill] sm:$0xff] %v11791_v14  ;;  %v3734_v25 = vmul.f32 %v11759_v16, %v15254_v0  ;;  %v3735_v56 = vmul.f32 %v15254_v0, %v11721_v57  ;;  %v3736_v34 = vmul.f32 %v11765_v19, %v15254_v0 }
 0x3e5   : > { %v3737_v13 = vmul.f32 %v15254_v0, %v11757_v37  ;;  %v3719_v1 = vmul.f32 %v15238_v63, %v11757_v37  ;;  %v3738_v32 = vmul.f32 %v15254_v0, %v11791_v14  ;;  %v3739_v29 = vmul.f32 %v15254_v0, %v11771_v39  ;;  %15262 = vst [vmem:[#allocation26_spill] sm:$0xff] %v11843_v38 }
 0x3e6   : > { %v3740_v55 = vadd.f32 %v3724_v20, %v3704_v61  ;;  %v3741_v49 = vadd.f32 %v3725_v30, %v3705_v60  ;;  %v3742_v6 = vadd.f32 %v3726_v17, %v3706_v48  ;;  %v3743_v62 = vadd.f32 %v3727_v51, %v3707_v4  ;;  %v11813_v60 = vld [vmem:[#allocation2 + $0xe0] sm:$0xff] }
 0x3e7   : > { %v3745_v23 = vadd.f32 %v3729_v45, %v3709_v8  ;;  %v3746_v27 = vadd.f32 %v3730_v3, %v3710_v7  ;;  %v3747_v24 = vadd.f32 %v3731_v44, %v3711_v50  ;;  %v3748_v36 = vadd.f32 %v3732_v10, %v3712_v47  ;;  %15259 = vst [vmem:[#allocation29_spill] sm:$0xff] %v11813_v60 }
 0x3e8   : > { %v3749_v12 = vadd.f32 %v3733_v15, %v3713_v9  ;;  %v3750_v43 = vadd.f32 %v3734_v25, %v3714_v53  ;;  %v3751_v35 = vadd.f32 %v3735_v56, %v3715_v5  ;;  %v3752_v31 = vadd.f32 %v3736_v34, %v3716_v46  ;;  %v11823_v34 = vld [vmem:[#allocation2 + $0xd8] sm:$0xff] }
 0x3e9   : > { %v3753_v41 = vadd.f32 %v3737_v13, %v3717_v21  ;;  %v3754_v63 = vadd.f32 %v3738_v32, %v3718_v33  ;;  %v3760_v54 = vmul.f32 %v11775_v59, %v15258_v52  ;;  %v3761_v0 = vmul.f32 %v11735_v28, %v15258_v52  ;;  %15260 = vst [vmem:[#allocation46_spill] sm:$0xff] %v11823_v34  ;;  %v15261_v59 = vld [vmem:[#allocation39_spill] sm:$0xff] }
 0x3ea   : > { %v3762_v61 = vmul.f32 %v11739_v2, %v15258_v52  ;;  %v3763_v48 = vmul.f32 %v15258_v52, %v11697_v26  ;;  %v3765_v15 = vmul.f32 %v15258_v52, %v11707_v40  ;;  %v3766_v32 = vmul.f32 %v11751_v58, %v15258_v52 }
 0x3eb   : > { %v3767_v13 = vmul.f32 %v15258_v52, %v11709_v42  ;;  %v3768_v56 = vmul.f32 %v11759_v16, %v15258_v52  ;;  %v3769_v25 = vmul.f32 %v15258_v52, %v11721_v57  ;;  %v3770_v4 = vmul.f32 %v11765_v19, %v15258_v52 }
 0x3ec   : > { %v3771_v8 = vmul.f32 %v15258_v52, %v11757_v37  ;;  %v3755_v7 = vadd.f32 %v3739_v29, %v3719_v1  ;;  %v3772_v50 = vmul.f32 %v15258_v52, %v11791_v14  ;;  %v3773_v47 = vmul.f32 %v15258_v52, %v11771_v39 }
 0x3ed   : > { %v3774_v9 = vmul.f32 %v15258_v52, %v11823_v34  ;;  %v3775_v53 = vmul.f32 %v15258_v52, %v11813_v60  ;;  %v3776_v5 = vadd.f32 %v3760_v54, %v3740_v55  ;;  %v3777_v46 = vadd.f32 %v3761_v0, %v3741_v49  ;;  %v11869_v55 = vld [vmem:[#allocation14 + $0x20] sm:$0x7f] }
 0x3ee   : > { %v3778_v21 = vadd.f32 %v3762_v61, %v3742_v6  ;;  %v3779_v33 = vadd.f32 %v3763_v48, %v3743_v62  ;;  %v3781_v20 = vadd.f32 %v3765_v15, %v3745_v23  ;;  %v3782_v30 = vadd.f32 %v3766_v32, %v3746_v27  ;;  %15264 = vst [vmem:[#allocation93_spill] sm:$0xff] %v11869_v55  ;;  %v11877_v48 = vld [vmem:[#allocation14 + $0x28] sm:$0x7f] }
 0x3ef   : > { %v3783_v17 = vadd.f32 %v3767_v13, %v3747_v24  ;;  %v3784_v29 = vadd.f32 %v3768_v56, %v3748_v36  ;;  %v3785_v1 = vadd.f32 %v3769_v25, %v3749_v12  ;;  %v3786_v51 = vadd.f32 %v3770_v4, %v3750_v43  ;;  %v11861_v12 = vld [vmem:[#allocation2 + $0xf0] sm:$0xff]  ;;  %15265 = vst [vmem:[#allocation76_spill] sm:$0xff] %v11877_v48 }
 0x3f0   : > { %v3787_v45 = vadd.f32 %v3771_v8, %v3751_v35  ;;  %v3788_v3 = vadd.f32 %v3772_v50, %v3752_v31  ;;  %v3789_v44 = vadd.f32 %v3773_v47, %v3753_v41  ;;  %v3790_v10 = vadd.f32 %v3774_v9, %v3754_v63  ;;  %15263 = vst [vmem:[#allocation74_spill] sm:$0xff] %v11861_v12  ;;  %v11879_v25 = vld [vmem:[#allocation14 + $0x30] sm:$0x7f] }
 0x3f1   : > { %v3796_v28 = vmul.f32 %v11739_v2, %v15261_v59  ;;  %v3797_v54 = vmul.f32 %v15261_v59, %v11697_v26  ;;  %v3798_v23 = vmul.f32 %v11745_v11, %v15261_v59  ;;  %v3799_v36 = vmul.f32 %v15261_v59, %v11707_v40  ;;  %15266 = vst [vmem:[#allocation85_spill] sm:$0xff] %v11879_v25  ;;  %v15267_v26 = vld [vmem:[#allocation33_spill] sm:$0xff] }
 0x3f2   : > { %v3801_v43 = vmul.f32 %v15261_v59, %v11709_v42  ;;  %v3802_v31 = vmul.f32 %v11759_v16, %v15261_v59  ;;  %v3803_v27 = vmul.f32 %v15261_v59, %v11721_v57  ;;  %v3804_v41 = vmul.f32 %v11765_v19, %v15261_v59 }
 0x3f3   : > { %v3805_v35 = vmul.f32 %v15261_v59, %v11757_v37  ;;  %v3791_v24 = vadd.f32 %v3775_v53, %v3755_v7  ;;  %v3806_v62 = vmul.f32 %v15261_v59, %v11791_v14  ;;  %v3807_v6 = vmul.f32 %v15261_v59, %v11771_v39 }
 0x3f4   : > { %v3808_v49 = vmul.f32 %v15261_v59, %v11823_v34  ;;  %v3809_v52 = vmul.f32 %v15261_v59, %v11813_v60  ;;  %v3810_v63 = vmul.f32 %v15261_v59, %v11861_v12  ;;  %v3811_v0 = vmul.f32 %v15261_v59, %v11843_v38 }
 0x3f5   : > { %v3812_v61 = vadd.f32 %v3796_v28, %v3776_v5  ;;  %v3813_v15 = vadd.f32 %v3797_v54, %v3777_v46  ;;  %v3814_v32 = vadd.f32 %v3798_v23, %v3778_v21  ;;  %v3815_v13 = vadd.f32 %v3799_v36, %v3779_v33 }
 0x3f6   : > { %v3817_v56 = vadd.f32 %v3801_v43, %v3781_v20  ;;  %v3818_v4 = vadd.f32 %v3802_v31, %v3782_v30  ;;  %v3819_v8 = vadd.f32 %v3803_v27, %v3783_v17  ;;  %v3820_v7 = vadd.f32 %v3804_v41, %v3784_v29  ;;  %v15269_v20 = vld [vmem:[#allocation50_spill] sm:$0xff]  ;;  %v11898_v29 = vld [vmem:[#allocation2 + $0x110] sm:$0xff] }
 0x3f7   : > { %v3821_v50 = vadd.f32 %v3805_v35, %v3785_v1  ;;  %v3822_v47 = vadd.f32 %v3806_v62, %v3786_v51  ;;  %v3823_v9 = vadd.f32 %v3807_v6, %v3787_v45  ;;  %v3824_v53 = vadd.f32 %v3808_v49, %v3788_v3  ;;  %15272 = vst [vmem:[#allocation81_spill] sm:$0xff] %v11898_v29 }
 0x3f8   : > { %v3831_v2 = vrot.slane %v11869_v55, %v15267_v26  ;;  %v3825_v59 = vadd.f32 %v3809_v52, %v3789_v44  ;;  %v3826_v28 = vadd.f32 %v3810_v63, %v3790_v10  ;;  %v3827_v5 = vadd.f32 %v3811_v0, %v3791_v24  ;;  %v15274_v52 = vld [vmem:[#allocation59_spill] sm:$0xff] }
 0x3f9   : > { %v3867_v46 = vrot.slane %v11877_v48, %v15267_v26  ;;  %v11888_v33 = vrot.slane %v11879_v25, %v15267_v26  ;;  %v11892_v30 = vmul.f32 %v15269_v20, %v11681_v18  ;;  %v11896_v17 = vmul.f32 %v15269_v20, %v11695_v22  ;;  %v11908_v22 = vld [vmem:[#allocation2 + $0x108] sm:$0xff] }
 0x3fa   : > { %v3832_v21 = vmul.f32 %v11745_v11, %v3831_v2  ;;  %v3833_v1 = vmul.f32 %v3831_v2, %v11707_v40  ;;  %v3834_v51 = vmul.f32 %v11751_v58, %v3831_v2  ;;  %v3835_v45 = vmul.f32 %v3831_v2, %v11709_v42  ;;  %15273 = vst [vmem:[#allocation34_spill] sm:$0xff] %v11908_v22 }
 0x3fb   : > { %15268 = vst [vmem:[#allocation77_spill] sm:$0xff] %v11888_v33  ;;  %15270 = vst [vmem:[#allocation92_spill] sm:$0xff] %v11892_v30  ;;  %v3836_v3 = vmul.f32 %v11759_v16, %v3831_v2  ;;  %v3837_v44 = vmul.f32 %v3831_v2, %v11721_v57  ;;  %v3838_v10 = vmul.f32 %v11765_v19, %v3831_v2 }
 0x3fc   : > { %15271 = vst [vmem:[#allocation98_spill] sm:$0xff] %v11896_v17  ;;  %v3839_v18 = vmul.f32 %v3831_v2, %v11757_v37  ;;  %v3840_v54 = vmul.f32 %v3831_v2, %v11791_v14  ;;  %v3841_v23 = vmul.f32 %v3831_v2, %v11771_v39  ;;  %v3842_v36 = vmul.f32 %v3831_v2, %v11823_v34 }
 0x3fd   : > { %v3843_v43 = vmul.f32 %v3831_v2, %v11813_v60  ;;  %v3844_v31 = vmul.f32 %v3831_v2, %v11861_v12  ;;  %v3845_v27 = vmul.f32 %v3831_v2, %v11843_v38  ;;  %v3846_v41 = vmul.f32 %v3831_v2, %v11908_v22 }
 0x3fe   : > { %v3847_v35 = vmul.f32 %v3831_v2, %v11898_v29  ;;  %v3848_v24 = vadd.f32 %v3832_v21, %v3812_v61  ;;  %v3849_v62 = vadd.f32 %v3833_v1, %v3813_v15  ;;  %v3850_v6 = vadd.f32 %v3834_v51, %v3814_v32  ;;  %v11919_v2 = vld [vmem:[#allocation2 + $0x120] sm:$0xff]  ;;  %v11921_v61 = vld [vmem:[#allocation2 + $0x128] sm:$0xff] }
 0x3ff   : > { %v3851_v49 = vadd.f32 %v3835_v45, %v3815_v13  ;;  %v3852_v63 = vadd.f32 %v3836_v3, %v15274_v52  ;;  %v3853_v0 = vadd.f32 %v3837_v44, %v3817_v56  ;;  %v3854_v26 = vadd.f32 %v3838_v10, %v3818_v4  ;;  %15275 = vst [vmem:[#allocation82_spill] sm:$0xff] %v11919_v2 }
 0x400   : > { %v3855_v25 = vadd.f32 %v3839_v18, %v3819_v8  ;;  %v3856_v48 = vadd.f32 %v3840_v54, %v3820_v7  ;;  %v3857_v55 = vadd.f32 %v3841_v23, %v3821_v50  ;;  %v3858_v17 = vadd.f32 %v3842_v36, %v3822_v47  ;;  %15276 = vst [vmem:[#allocation91_spill] sm:$0xff] %v11921_v61 }
 0x401   : > { %v3859_v30 = vadd.f32 %v3843_v43, %v3823_v9  ;;  %v3860_v40 = vadd.f32 %v3844_v31, %v3824_v53  ;;  %v3861_v11 = vadd.f32 %v3845_v27, %v3825_v59  ;;  %v3862_v20 = vadd.f32 %v3846_v41, %v3826_v28  ;;  %v15277_v59 = vld [vmem:[#allocation34_spill] sm:$0xff] }
 0x402   : > { %v3863_v33 = vadd.f32 %v3847_v35, %v3827_v5  ;;  %v3868_v22 = vmul.f32 %v11751_v58, %v3867_v46  ;;  %v3869_v15 = vmul.f32 %v3867_v46, %v11709_v42  ;;  %v3870_v32 = vmul.f32 %v11759_v16, %v3867_v46  ;;  %v15278_v58 = vld [vmem:[#allocation77_spill] sm:$0xff] }
 0x403   : > { %v3871_v13 = vmul.f32 %v3867_v46, %v11721_v57  ;;  %v3872_v56 = vmul.f32 %v11765_v19, %v3867_v46  ;;  %v3873_v4 = vmul.f32 %v3867_v46, %v11757_v37  ;;  %v3874_v8 = vmul.f32 %v3867_v46, %v11791_v14 }
 0x404   : > { %v3875_v7 = vmul.f32 %v3867_v46, %v11771_v39  ;;  %v3876_v50 = vmul.f32 %v3867_v46, %v11823_v34  ;;  %v3877_v47 = vmul.f32 %v3867_v46, %v11813_v60  ;;  %v3878_v9 = vmul.f32 %v3867_v46, %v11861_v12 }
 0x405   : > { %v3879_v53 = vmul.f32 %v3867_v46, %v11843_v38  ;;  %v3880_v28 = vmul.f32 %v3867_v46, %v15277_v59  ;;  %v3881_v5 = vmul.f32 %v3867_v46, %v11898_v29  ;;  %v3882_v21 = vmul.f32 %v3867_v46, %v11919_v2 }
 0x406   : > { %v3883_v1 = vmul.f32 %v3867_v46, %v11921_v61  ;;  %v3884_v51 = vadd.f32 %v3868_v22, %v3848_v24  ;;  %v3885_v45 = vadd.f32 %v3869_v15, %v3849_v62  ;;  %v3886_v3 = vadd.f32 %v3870_v32, %v3850_v6  ;;  %v11942_v22 = vld [vmem:[#allocation2 + $0x138] sm:$0xff]  ;;  %v11944_v24 = vld [vmem:[#allocation2 + $0x140] sm:$0xff] }
 0x407   : > { %v3887_v44 = vadd.f32 %v3871_v13, %v3851_v49  ;;  %v3888_v10 = vadd.f32 %v3872_v56, %v3852_v63  ;;  %v3889_v18 = vadd.f32 %v3873_v4, %v3853_v0  ;;  %v3890_v54 = vadd.f32 %v3874_v8, %v3854_v26  ;;  %15279 = vst [vmem:[#allocation94_spill] sm:$0xff] %v11942_v22 }
 0x408   : > { %v3891_v23 = vadd.f32 %v3875_v7, %v3855_v25  ;;  %v3892_v36 = vadd.f32 %v3876_v50, %v3856_v48  ;;  %v3893_v43 = vadd.f32 %v3877_v47, %v3857_v55  ;;  %v3894_v31 = vadd.f32 %v3878_v9, %v3858_v17  ;;  %15280 = vst [vmem:[#allocation83_spill] sm:$0xff] %v11944_v24 }
 0x409   : > { %v3895_v27 = vadd.f32 %v3879_v53, %v3859_v30  ;;  %v3896_v41 = vadd.f32 %v3880_v28, %v3860_v40  ;;  %v3897_v35 = vadd.f32 %v3881_v5, %v3861_v11  ;;  %v3898_v52 = vadd.f32 %v3882_v21, %v3862_v20  ;;  %v15281_v21 = vld [vmem:[#allocation97_spill] sm:$0xff] }
 0x40a   : > { %v11938_v42 = vadd.f32 %v3883_v1, %v3863_v33  ;;  %v3904_v46 = vmul.f32 %v11759_v16, %v15278_v58  ;;  %v3905_v26 = vmul.f32 %v15278_v58, %v11721_v57  ;;  %v3906_v55 = vmul.f32 %v11765_v19, %v15278_v58  ;;  %v15282_v1 = vld [vmem:[#allocation50_spill] sm:$0xff] }
 0x40b   : > { %v3907_v40 = vmul.f32 %v15278_v58, %v11757_v37  ;;  %v3908_v11 = vmul.f32 %v15278_v58, %v11791_v14  ;;  %v3909_v48 = vmul.f32 %v15278_v58, %v11771_v39  ;;  %v3910_v25 = vmul.f32 %v15278_v58, %v11823_v34  ;;  %v15293_v39 = vld [vmem:[#allocation49_spill] sm:$0xff] }
 0x40c   : > { %v3911_v33 = vmul.f32 %v15278_v58, %v11813_v60  ;;  %v3912_v20 = vmul.f32 %v15278_v58, %v11861_v12  ;;  %v3913_v30 = vmul.f32 %v15278_v58, %v11843_v38  ;;  %v3914_v17 = vmul.f32 %v15278_v58, %v15277_v59 }
 0x40d   : > { %v3915_v62 = vmul.f32 %v15278_v58, %v11898_v29  ;;  %v3916_v6 = vmul.f32 %v15278_v58, %v11919_v2  ;;  %v3917_v49 = vmul.f32 %v15278_v58, %v11921_v61  ;;  %v3918_v63 = vmul.f32 %v15278_v58, %v11942_v22  ;;  %v15283_v22 = vld [vmem:[#allocation95_spill] sm:$0xff] }
 0x40e   : > { %v3919_v0 = vmul.f32 %v15278_v58, %v11944_v24  ;;  %v3920_v15 = vadd.f32 %v3904_v46, %v3884_v51  ;;  %v3921_v32 = vadd.f32 %v3905_v26, %v3885_v45  ;;  %v3922_v13 = vadd.f32 %v3906_v55, %v3886_v3  ;;  %v15284_v58 = vld [vmem:[#allocation30_spill] sm:$0xff]  ;;  %v15285_v45 = vld [vmem:[#allocation31_spill] sm:$0xff] }
 0x40f   : > { %v3923_v56 = vadd.f32 %v3907_v40, %v3887_v44  ;;  %v3924_v4 = vadd.f32 %v3908_v11, %v3888_v10  ;;  %v3925_v8 = vadd.f32 %v3909_v48, %v3889_v18  ;;  %v3926_v7 = vadd.f32 %v3910_v25, %v3890_v54  ;;  %v15286_v44 = vld [vmem:[#allocation65_spill] sm:$0xff]  ;;  %v15291_v11 = vld [vmem:[#allocation92_spill] sm:$0xff]  ;;  %v15292_v25 = vld [vmem:[#allocation98_spill] sm:$0xff] }
 0x410   : > { %v3927_v50 = vadd.f32 %v3911_v33, %v3891_v23  ;;  %v3928_v47 = vadd.f32 %v3912_v20, %v3892_v36  ;;  %v3929_v9 = vadd.f32 %v3913_v30, %v3893_v43  ;;  %v3930_v53 = vadd.f32 %v3914_v17, %v3894_v31  ;;  %v15287_v18 = vld [vmem:[#allocation25_spill] sm:$0xff]  ;;  %v15288_v23 = vld [vmem:[#allocation36_spill] sm:$0xff]  ;;  %v15289_v43 = vld [vmem:[#allocation27_spill] sm:$0xff] }
 0x411   : > { %v3931_v28 = vadd.f32 %v3915_v62, %v3895_v27  ;;  %v3932_v5 = vadd.f32 %v3916_v6, %v3896_v41  ;;  %v3942_v61 = vmul.f32 %v15282_v1, %v15281_v21  ;;  %v3943_v2 = vmul.f32 %v15282_v1, %v15283_v22  ;;  %v15290_v27 = vld [vmem:[#allocation43_spill] sm:$0xff] }
 0x412   : > { %v3945_v51 = vmul.f32 %v15284_v58, %v15282_v1  ;;  %v3946_v3 = vmul.f32 %v15285_v45, %v15282_v1  ;;  %v3947_v10 = vmul.f32 %v15282_v1, %v15286_v44  ;;  %v3948_v54 = vmul.f32 %v15287_v18, %v15282_v1 }
 0x413   : > { %v3949_v36 = vmul.f32 %v15282_v1, %v15288_v23  ;;  %v3950_v31 = vmul.f32 %v15289_v43, %v15282_v1  ;;  %v3951_v41 = vmul.f32 %v15282_v1, %v15290_v27  ;;  %v3952_v46 = vmul.f32 %v11759_v16, %v15282_v1 }
 0x414   : > { %v11998_v26 = vmul.f32 %v15282_v1, %v11721_v57  ;;  %v3954_v55 = vmul.f32 %v11765_v19, %v15282_v1  ;;  %v12004_v40 = vmul.f32 %v15282_v1, %v11757_v37  ;;  %v3972_v48 = vrot.slane %v15291_v11, 1 }
 0x415   : > { %v3973_v33 = vrot.slane %v15292_v25, 1  ;;  %v3975_v20 = vrot.slane %v3942_v61, 1  ;;  %v3976_v30 = vrot.slane %v3943_v2, 1  ;;  %v3979_v17 = vrot.slane %v3945_v51, 1 }
 0x416   : > { %v3981_v62 = vrot.slane %v3946_v3, 1  ;;  %v3982_v6 = vrot.slane %v3947_v10, 1  ;;  %v3933_v24 = vadd.f32 %v3917_v49, %v3897_v35  ;;  %v3984_v29 = vrot.slane %v3948_v54, 1 }
 0x417   : > { %v3985_v59 = vrot.slane %v3949_v36, 1  ;;  %v3987_v38 = vrot.slane %v3950_v31, 1  ;;  %v3934_v12 = vadd.f32 %v3918_v63, %v3898_v52  ;;  %v3974_v60 = vsel %vm1911_vm3, %v3972_v48, %v3973_v33 }
 0x418   : > { %v3977_v34 = vsel %vm1911_vm3, %v3975_v20, %v3976_v30  ;;  %v3988_v1 = vrot.slane %v3951_v41, 1  ;;  %v15294_v14 = vrot.slane %v15293_v39, 1  ;;  %v3990_v25 = vrot.slane %v3952_v46, 1 }
 0x419   : > { %v3991_v2 = vrot.slane %v11998_v26, 1  ;;  %v3993_v61 = vrot.slane %v3954_v55, 1  ;;  %v3935_v51 = vadd.f32 %v3919_v0, %v11938_v42  ;;  %v3983_v35 = vsel %vm1911_vm3, %v3981_v62, %v3982_v6 }
 0x41a   : > { %v3980_v11 = vsel %vm1911_vm3, %v15294_v14, %v3979_v17  ;;  %v3986_v49 = vsel %vm1911_vm3, %v3984_v29, %v3985_v59  ;;  %v3994_v52 = vrot.slane %v12004_v40, 1  ;;  %v3989_v63 = vsel %vm1911_vm3, %v3987_v38, %v3988_v1  ;;  %v15295_v40 = vld [vmem:[#allocation53_spill] sm:$0xff] }
 0x41b   : > { %v3992_v3 = vsel %vm1911_vm3, %v3990_v25, %v3991_v2  ;;  %v4012_v10 = vadd.f32 %v3974_v60, %v3920_v15  ;;  %v4013_v39 = vadd.f32 %v3973_v33, %v3921_v32  ;;  %v4014_v54 = vadd.f32 %v3977_v34, %v3922_v13 }
 0x41c   : > { %v3995_v14 = vsel %vm1911_vm3, %v3993_v61, %v3994_v52  ;;  %v4015_v36 = vadd.f32 %v3976_v30, %v3923_v56  ;;  %v4016_v31 = vadd.f32 %v3980_v11, %v3924_v4  ;;  %v4017_v41 = vadd.f32 %v3979_v17, %v3925_v8 }
 0x41d   : > { %v4018_v46 = vadd.f32 %v3983_v35, %v3926_v7  ;;  %v4019_v42 = vadd.f32 %v3982_v6, %v3927_v50  ;;  %v4020_v0 = vadd.f32 %v3986_v49, %v3928_v47  ;;  %v4021_v26 = vadd.f32 %v3985_v59, %v3929_v9  ;;  %v15296_v47 = vld [vmem:[#allocation75_spill] sm:$0xff]  ;;  %v15298_v49 = vld [vmem:[#allocation45_spill] sm:$0xff] }
 0x41e   : > { %v4022_v55 = vadd.f32 %v3989_v63, %v3930_v53  ;;  %v4023_v29 = vadd.f32 %v3988_v1, %v3931_v28  ;;  %v4024_v48 = vadd.f32 %v3992_v3, %v3932_v5  ;;  %v4032_v38 = vmul.f32 %v15295_v40, %v15281_v21  ;;  %v15297_v53 = vld [vmem:[#allocation28_spill] sm:$0xff] }
 0x41f   : > { %v4033_v60 = vmul.f32 %v15295_v40, %v15283_v22  ;;  %v4035_v15 = vmul.f32 %v15284_v58, %v15295_v40  ;;  %v4036_v34 = vmul.f32 %v15285_v45, %v15295_v40  ;;  %v4037_v32 = vmul.f32 %v15295_v40, %v15286_v44 }
 0x420   : > { %v4038_v59 = vmul.f32 %v15287_v18, %v15295_v40  ;;  %v4039_v13 = vmul.f32 %v15295_v40, %v15288_v23  ;;  %v4040_v56 = vmul.f32 %v15289_v43, %v15295_v40  ;;  %v4041_v22 = vmul.f32 %v15295_v40, %v15290_v27 }
 0x421   : > { %v4042_v4 = vmul.f32 %v11759_v16, %v15295_v40  ;;  %v4043_v8 = vmul.f32 %v15295_v40, %v11721_v57  ;;  %v4044_v7 = vmul.f32 %v11765_v19, %v15295_v40  ;;  %v4045_v50 = vmul.f32 %v15295_v40, %v11757_v37 }
 0x422   : > { %v4046_v9 = vmul.f32 %v15295_v40, %v15296_v47  ;;  %v4047_v28 = vmul.f32 %v15295_v40, %v15297_v53  ;;  %v4064_v5 = vrot.slane %v4032_v38, 1  ;;  %v4065_v21 = vrot.slane %v4033_v60, 1 }
 0x423   : > { %v4068_v33 = vrot.slane %v4035_v15, 1  ;;  %v4070_v20 = vrot.slane %v4036_v34, 1  ;;  %v4071_v30 = vrot.slane %v4037_v32, 1  ;;  %v4073_v17 = vrot.slane %v4038_v59, 1 }
 0x424   : > { %v4074_v62 = vrot.slane %v4039_v13, 1  ;;  %v4076_v6 = vrot.slane %v4040_v56, 1  ;;  %v4077_v1 = vrot.slane %v4041_v22, 1  ;;  %v4025_v11 = vadd.f32 %v3991_v2, %v3933_v24 }
 0x425   : > { %v4026_v25 = vadd.f32 %v3995_v14, %v3934_v12  ;;  %v4066_v61 = vsel %vm1911_vm3, %v4064_v5, %v4065_v21  ;;  %v4079_v35 = vrot.slane %v4042_v4, 1  ;;  %v15299_v63 = vrot.slane %v15298_v49, 1 }
 0x426   : > { %v4072_v40 = vsel %vm1911_vm3, %v4070_v20, %v4071_v30  ;;  %v4080_v38 = vrot.slane %v4043_v8, 1  ;;  %v4082_v60 = vrot.slane %v4044_v7, 1  ;;  %v4075_v15 = vsel %vm1911_vm3, %v4073_v17, %v4074_v62 }
 0x427   : > { %v4069_v3 = vsel %vm1911_vm3, %v15299_v63, %v4068_v33  ;;  %v4083_v34 = vrot.slane %v4045_v50, 1  ;;  %v4085_v32 = vrot.slane %v4046_v9, 1  ;;  %v4086_v59 = vrot.slane %v4047_v28, 1  ;;  %v15305_v63 = vld [vmem:[#allocation46_spill] sm:$0xff] }
 0x428   : > { %v4027_v13 = vadd.f32 %v3994_v52, %v3935_v51  ;;  %v4078_v24 = vsel %vm1911_vm3, %v4076_v6, %v4077_v1  ;;  %v4081_v12 = vsel %vm1911_vm3, %v4079_v35, %v4080_v38  ;;  %v12059_v2 = vadd.f32 %v4066_v61, %v4012_v10 }
 0x429   : > { %v4084_v14 = vsel %vm1911_vm3, %v4082_v60, %v4083_v34  ;;  %v12062_v56 = vadd.f32 %v4065_v21, %v4013_v39  ;;  %v12064_v22 = vadd.f32 %v4069_v3, %v4014_v54  ;;  %v12066_v4 = vadd.f32 %v4068_v33, %v4015_v36 }
 0x42a   : > { %v4087_v8 = vsel %vm1911_vm3, %v4085_v32, %v4086_v59  ;;  %v12069_v7 = vadd.f32 %v4072_v40, %v4016_v31  ;;  %v12071_v50 = vadd.f32 %v4071_v30, %v4017_v41  ;;  %v12073_v51 = vadd.f32 %v4075_v15, %v4018_v46  ;;  %v12089_v31 = vld [vmem:[#allocation14 + $0x10] sm:$0x7f]  ;;  %v15306_v40 = vld [vmem:[#allocation29_spill] sm:$0xff] }
 0x42b   : > { %v12075_v52 = vadd.f32 %v4074_v62, %v4019_v42  ;;  %v12077_v10 = vadd.f32 %v4078_v24, %v4020_v0  ;;  %v12079_v9 = vadd.f32 %v4077_v1, %v4021_v26  ;;  %v12081_v39 = vadd.f32 %v4081_v12, %v4022_v55  ;;  %15300 = vst [vmem:[#allocation73_spill] sm:$0xff] %v12089_v31  ;;  %v15301_v41 = vld [vmem:[#allocation35_spill] sm:$0xff]  ;;  %v12097_v0 = vld [vmem:[#allocation14 + $0x18] sm:$0x7f]  ;;  %v15303_v55 = vld [vmem:[#allocation93_spill] sm:$0xff] }
 0x42c   : > { %v12083_v54 = vadd.f32 %v4080_v38, %v4023_v29  ;;  %v12085_v36 = vadd.f32 %v4084_v14, %v4024_v48  ;;  %v12087_v28 = vadd.f32 %v4083_v34, %v4025_v11  ;;  %v4123_v46 = vrot.slane %v12089_v31, %v15301_v41  ;;  %15302 = vst [vmem:[#allocation54_spill] sm:$0xff] %v12097_v0  ;;  %v15304_v48 = vld [vmem:[#allocation79_spill] sm:$0xff] }
 0x42d   : > { %v12093_v5 = vadd.f32 %v4087_v8, %v4026_v25  ;;  %v12095_v42 = vadd.f32 %v4086_v59, %v4027_v13  ;;  %v12101_v26 = vrot.slane %v12097_v0, %v15301_v41  ;;  %v12105_v29 = vrot.slane %v15303_v55, %v15301_v41  ;;  %v15307_v55 = vld [vmem:[#allocation76_spill] sm:$0xff]  ;;  %v15309_v0 = vld [vmem:[#allocation85_spill] sm:$0xff] }
 0x42e   : > { %v4124_v21 = vmul.f32 %v15304_v48, %v4123_v46  ;;  %v4125_v33 = vmul.f32 %v15284_v58, %v4123_v46  ;;  %v4126_v20 = vmul.f32 %v15285_v45, %v4123_v46  ;;  %v4127_v30 = vmul.f32 %v4123_v46, %v15286_v44 }
 0x42f   : > { %v4128_v17 = vmul.f32 %v15287_v18, %v4123_v46  ;;  %v4129_v62 = vmul.f32 %v4123_v46, %v15288_v23  ;;  %v4130_v6 = vmul.f32 %v15289_v43, %v4123_v46  ;;  %v4131_v1 = vmul.f32 %v4123_v46, %v15290_v27 }
 0x430   : > { %v4132_v11 = vmul.f32 %v11759_v16, %v4123_v46  ;;  %v4133_v25 = vmul.f32 %v4123_v46, %v11721_v57  ;;  %v4134_v61 = vmul.f32 %v11765_v19, %v4123_v46  ;;  %v4135_v58 = vmul.f32 %v4123_v46, %v11757_v37 }
 0x431   : > { %v4136_v35 = vmul.f32 %v4123_v46, %v15296_v47  ;;  %v12121_v49 = vmul.f32 %v4123_v46, %v15297_v53  ;;  %v4138_v3 = vmul.f32 %v4123_v46, %v15305_v63  ;;  %v12125_v38 = vmul.f32 %v4123_v46, %v15306_v40 }
 0x432   : > { %v4156_v60 = vrot.slane %v4124_v21, 1  ;;  %v4157_v15 = vrot.slane %v4125_v33, 1  ;;  %v4159_v34 = vrot.slane %v4126_v20, 1  ;;  %v4160_v32 = vrot.slane %v4127_v30, 1 }
 0x433   : > { %v4162_v59 = vrot.slane %v4128_v17, 1  ;;  %v4163_v13 = vrot.slane %v4129_v62, 1  ;;  %v4165_v24 = vrot.slane %v4130_v6, 1  ;;  %v4166_v12 = vrot.slane %v4131_v1, 1 }
 0x434   : > { %v4168_v14 = vrot.slane %v4132_v11, 1  ;;  %v4169_v8 = vrot.slane %v4133_v25, 1  ;;  %v12129_v48 = vrot.slane %v15307_v55, %v15301_v41  ;;  %v12133_v31 = vrot.slane %v15309_v0, %v15301_v41  ;;  %v12142_v0 = vld [vmem:[#allocation14] sm:$0x7f]  ;;  %v15312_v55 = vld [vmem:[#allocation38_spill] sm:$0xff] }
 0x435   : > { %v4158_v46 = vsel %vm1911_vm3, %v4156_v60, %v4157_v15  ;;  %v4161_v21 = vsel %vm1911_vm3, %v4159_v34, %v4160_v32  ;;  %v4171_v33 = vrot.slane %v4134_v61, 1  ;;  %v4172_v20 = vrot.slane %v4135_v58, 1  ;;  %15311 = vst [vmem:[#allocation61_spill] sm:$0xff] %v12142_v0 }
 0x436   : > { %15308 = vst [vmem:[#allocation44_spill] sm:$0xff] %v12129_v48  ;;  %15310 = vst [vmem:[#allocation57_spill] sm:$0xff] %v12133_v31  ;;  %v4164_v30 = vsel %vm1911_vm3, %v4162_v59, %v4163_v13  ;;  %v4174_v17 = vrot.slane %v4136_v35, 1  ;;  %v4175_v62 = vrot.slane %v12121_v49, 1  ;;  %v4177_v6 = vrot.slane %v4138_v3, 1 }
 0x437   : > { %v4167_v1 = vsel %vm1911_vm3, %v4165_v24, %v4166_v12  ;;  %v4170_v11 = vsel %vm1911_vm3, %v4168_v14, %v4169_v8  ;;  %v4178_v25 = vrot.slane %v12125_v38, 1  ;;  %v12146_v60 = vrot.slane %v12142_v0, %v15312_v55 }
 0x438   : > { %v4173_v61 = vsel %vm1911_vm3, %v4171_v33, %v4172_v20  ;;  %v4176_v58 = vsel %vm1911_vm3, %v4174_v17, %v4175_v62  ;;  %v4196_v35 = vadd.f32 %v4158_v46, %v12059_v2  ;;  %v4197_v49 = vadd.f32 %v4157_v15, %v12062_v56  ;;  %v15315_v46 = vld [vmem:[#allocation26_spill] sm:$0xff] }
 0x439   : > { %15313 = vst [vmem:[#allocation66_spill] sm:$0xff] %v12146_v60  ;;  %v4179_v3 = vsel %vm1911_vm3, %v4177_v6, %v4178_v25  ;;  %v4198_v34 = vadd.f32 %v4161_v21, %v12064_v22  ;;  %v4199_v38 = vadd.f32 %v4160_v32, %v12066_v4  ;;  %v4200_v59 = vadd.f32 %v4164_v30, %v12069_v7 }
 0x43a   : > { %v4201_v24 = vadd.f32 %v4163_v13, %v12071_v50  ;;  %v4202_v14 = vadd.f32 %v4167_v1, %v12073_v51  ;;  %v4203_v33 = vadd.f32 %v4166_v12, %v12075_v52  ;;  %v4204_v17 = vadd.f32 %v4170_v11, %v12077_v10  ;;  %v15314_v12 = vld [vmem:[#allocation74_spill] sm:$0xff] }
 0x43b   : > { %v4205_v2 = vadd.f32 %v4169_v8, %v12079_v9  ;;  %v4206_v56 = vadd.f32 %v4173_v61, %v12081_v39  ;;  %v4207_v15 = vadd.f32 %v4172_v20, %v12083_v54  ;;  %v4208_v22 = vadd.f32 %v4176_v58, %v12085_v36 }
 0x43c   : > { %v4216_v4 = vmul.f32 %v15285_v45, %v12101_v26  ;;  %v4217_v7 = vmul.f32 %v12101_v26, %v15286_v44  ;;  %v4218_v50 = vmul.f32 %v15287_v18, %v12101_v26  ;;  %v4219_v51 = vmul.f32 %v12101_v26, %v15288_v23 }
 0x43d   : > { %v4220_v52 = vmul.f32 %v15289_v43, %v12101_v26  ;;  %v4221_v10 = vmul.f32 %v12101_v26, %v15290_v27  ;;  %v4222_v9 = vmul.f32 %v11759_v16, %v12101_v26  ;;  %v4223_v45 = vmul.f32 %v12101_v26, %v11721_v57 }
 0x43e   : > { %v4224_v44 = vmul.f32 %v11765_v19, %v12101_v26  ;;  %v4225_v39 = vmul.f32 %v12101_v26, %v11757_v37  ;;  %v4226_v54 = vmul.f32 %v12101_v26, %v15296_v47  ;;  %v4227_v36 = vmul.f32 %v12101_v26, %v15297_v53 }
 0x43f   : > { %v4228_v32 = vmul.f32 %v12101_v26, %v15305_v63  ;;  %v12192_v13 = vmul.f32 %v12101_v26, %v15306_v40  ;;  %v4230_v8 = vmul.f32 %v12101_v26, %v15314_v12  ;;  %v12198_v21 = vmul.f32 %v12101_v26, %v15315_v46 }
 0x440   : > { %v4248_v20 = vrot.slane %v4216_v4, 1  ;;  %v4249_v30 = vrot.slane %v4217_v7, 1  ;;  %v4251_v6 = vrot.slane %v4218_v50, 1  ;;  %v4252_v1 = vrot.slane %v4219_v51, 1 }
 0x441   : > { %v4254_v11 = vrot.slane %v4220_v52, 1  ;;  %v4255_v61 = vrot.slane %v4221_v10, 1  ;;  %v4257_v58 = vrot.slane %v4222_v9, 1  ;;  %v4258_v41 = vrot.slane %v4223_v45, 1 }
 0x442   : > { %v4209_v0 = vadd.f32 %v4175_v62, %v12087_v28  ;;  %v4210_v55 = vadd.f32 %v4179_v3, %v12093_v5  ;;  %v4260_v60 = vrot.slane %v4224_v44, 1  ;;  %v4261_v31 = vrot.slane %v4225_v39, 1 }
 0x443   : > { %v4250_v48 = vsel %vm1911_vm3, %v4248_v20, %v4249_v30  ;;  %v4253_v12 = vsel %vm1911_vm3, %v4251_v6, %v4252_v1  ;;  %v4263_v26 = vrot.slane %v4226_v54, 1  ;;  %v4264_v46 = vrot.slane %v4227_v36, 1 }
 0x444   : > { %v4256_v4 = vsel %vm1911_vm3, %v4254_v11, %v4255_v61  ;;  %v4266_v7 = vrot.slane %v4228_v32, 1  ;;  %v4267_v50 = vrot.slane %v12192_v13, 1  ;;  %v4269_v51 = vrot.slane %v4230_v8, 1 }
 0x445   : > { %v4211_v52 = vadd.f32 %v4178_v25, %v12095_v42  ;;  %v4259_v28 = vsel %vm1911_vm3, %v4257_v58, %v4258_v41  ;;  %v4262_v5 = vsel %vm1911_vm3, %v4260_v60, %v4261_v31  ;;  %v4270_v62 = vrot.slane %v12198_v21, 1 }
 0x446   : > { %v4265_v3 = vsel %vm1911_vm3, %v4263_v26, %v4264_v46  ;;  %v4268_v10 = vsel %vm1911_vm3, %v4266_v7, %v4267_v50  ;;  %v4288_v9 = vadd.f32 %v4250_v48, %v4196_v35  ;;  %v4289_v45 = vadd.f32 %v4249_v30, %v4197_v49 }
 0x447   : > { %v4271_v44 = vsel %vm1911_vm3, %v4269_v51, %v4270_v62  ;;  %v4290_v39 = vadd.f32 %v4253_v12, %v4198_v34  ;;  %v4291_v54 = vadd.f32 %v4252_v1, %v4199_v38  ;;  %v4292_v36 = vadd.f32 %v4256_v4, %v4200_v59 }
 0x448   : > { %v4293_v32 = vadd.f32 %v4255_v61, %v4201_v24  ;;  %v4294_v13 = vadd.f32 %v4259_v28, %v4202_v14  ;;  %v4295_v42 = vadd.f32 %v4258_v41, %v4203_v33  ;;  %v4296_v25 = vadd.f32 %v4262_v5, %v4204_v17  ;;  %v15316_v14 = vld [vmem:[#allocation74_spill] sm:$0xff] }
 0x449   : > { %v4297_v8 = vadd.f32 %v4261_v31, %v4205_v2  ;;  %v4298_v20 = vadd.f32 %v4265_v3, %v4206_v56  ;;  %v4299_v60 = vadd.f32 %v4264_v46, %v4207_v15  ;;  %v4300_v6 = vadd.f32 %v4268_v10, %v4208_v22  ;;  %v15317_v17 = vld [vmem:[#allocation26_spill] sm:$0xff]  ;;  %v15319_v22 = vld [vmem:[#allocation81_spill] sm:$0xff] }
 0x44a   : > { %v4308_v21 = vmul.f32 %v15287_v18, %v12105_v29  ;;  %v4309_v48 = vmul.f32 %v12105_v29, %v15288_v23  ;;  %v4310_v35 = vmul.f32 %v15289_v43, %v12105_v29  ;;  %v4311_v49 = vmul.f32 %v12105_v29, %v15290_v27  ;;  %v15318_v56 = vld [vmem:[#allocation34_spill] sm:$0xff] }
 0x44b   : > { %v4312_v41 = vmul.f32 %v11759_v16, %v12105_v29  ;;  %v4313_v31 = vmul.f32 %v12105_v29, %v11721_v57  ;;  %v4314_v34 = vmul.f32 %v11765_v19, %v12105_v29  ;;  %v4315_v18 = vmul.f32 %v12105_v29, %v11757_v37 }
 0x44c   : > { %v4316_v23 = vmul.f32 %v12105_v29, %v15296_v47  ;;  %v4317_v38 = vmul.f32 %v12105_v29, %v15297_v53  ;;  %v4318_v59 = vmul.f32 %v12105_v29, %v15305_v63  ;;  %v4319_v24 = vmul.f32 %v12105_v29, %v15306_v40 }
 0x44d   : > { %v4320_v33 = vmul.f32 %v12105_v29, %v15316_v14  ;;  %v12241_v2 = vmul.f32 %v12105_v29, %v15317_v17  ;;  %v4322_v15 = vmul.f32 %v12105_v29, %v15318_v56  ;;  %v12247_v12 = vmul.f32 %v12105_v29, %v15319_v22 }
 0x44e   : > { %v4340_v46 = vrot.slane %v4308_v21, 1  ;;  %v4341_v30 = vrot.slane %v4309_v48, 1  ;;  %v4343_v1 = vrot.slane %v4310_v35, 1  ;;  %v4344_v11 = vrot.slane %v4311_v49, 1 }
 0x44f   : > { %v4346_v61 = vrot.slane %v4312_v41, 1  ;;  %v4347_v58 = vrot.slane %v4313_v31, 1  ;;  %v4349_v26 = vrot.slane %v4314_v34, 1  ;;  %v4350_v4 = vrot.slane %v4315_v18, 1 }
 0x450   : > { %v4301_v7 = vadd.f32 %v4267_v50, %v4209_v0  ;;  %v4302_v51 = vadd.f32 %v4271_v44, %v4210_v55  ;;  %v4352_v28 = vrot.slane %v4316_v23, 1  ;;  %v4353_v5 = vrot.slane %v4317_v38, 1 }
 0x451   : > { %v4342_v3 = vsel %vm1911_vm3, %v4340_v46, %v4341_v30  ;;  %v4345_v10 = vsel %vm1911_vm3, %v4343_v1, %v4344_v11  ;;  %v4355_v56 = vrot.slane %v4318_v59, 1  ;;  %v4356_v17 = vrot.slane %v4319_v24, 1 }
 0x452   : > { %v4348_v29 = vsel %vm1911_vm3, %v4346_v61, %v4347_v58  ;;  %v4358_v21 = vrot.slane %v4320_v33, 1  ;;  %v4359_v48 = vrot.slane %v12241_v2, 1  ;;  %v4361_v35 = vrot.slane %v4322_v15, 1 }
 0x453   : > { %v4303_v49 = vadd.f32 %v4270_v62, %v4211_v52  ;;  %v4351_v41 = vsel %vm1911_vm3, %v4349_v26, %v4350_v4  ;;  %v4354_v0 = vsel %vm1911_vm3, %v4352_v28, %v4353_v5  ;;  %v4362_v55 = vrot.slane %v12247_v12, 1  ;;  %v15320_v12 = vld [vmem:[#allocation44_spill] sm:$0xff] }
 0x454   : > { %v4357_v50 = vsel %vm1911_vm3, %v4355_v56, %v4356_v17  ;;  %v4360_v44 = vsel %vm1911_vm3, %v4358_v21, %v4359_v48  ;;  %v4380_v31 = vadd.f32 %v4342_v3, %v4288_v9  ;;  %v4381_v34 = vadd.f32 %v4341_v30, %v4289_v45 }
 0x455   : > { %v4363_v18 = vsel %vm1911_vm3, %v4361_v35, %v4362_v55  ;;  %v4382_v23 = vadd.f32 %v4345_v10, %v4290_v39  ;;  %v4383_v38 = vadd.f32 %v4344_v11, %v4291_v54  ;;  %v4384_v59 = vadd.f32 %v4348_v29, %v4292_v36 }
 0x456   : > { %v4385_v24 = vadd.f32 %v4347_v58, %v4293_v32  ;;  %v4386_v33 = vadd.f32 %v4351_v41, %v4294_v13  ;;  %v4387_v52 = vadd.f32 %v4350_v4, %v4295_v42  ;;  %v4388_v62 = vadd.f32 %v4354_v0, %v4296_v25  ;;  %v15321_v13 = vld [vmem:[#allocation26_spill] sm:$0xff] }
 0x457   : > { %v4389_v2 = vadd.f32 %v4353_v5, %v4297_v8  ;;  %v4390_v15 = vadd.f32 %v4357_v50, %v4298_v20  ;;  %v4391_v46 = vadd.f32 %v4356_v17, %v4299_v60  ;;  %v4392_v1 = vadd.f32 %v4360_v44, %v4300_v6  ;;  %v15322_v42 = vld [vmem:[#allocation34_spill] sm:$0xff]  ;;  %v15324_v8 = vld [vmem:[#allocation91_spill] sm:$0xff] }
 0x458   : > { %v4400_v56 = vmul.f32 %v15289_v43, %v15320_v12  ;;  %v4401_v9 = vmul.f32 %v15320_v12, %v15290_v27  ;;  %v4402_v45 = vmul.f32 %v11759_v16, %v15320_v12  ;;  %v4403_v39 = vmul.f32 %v15320_v12, %v11721_v57 }
 0x459   : > { %v4404_v54 = vmul.f32 %v11765_v19, %v15320_v12  ;;  %v4405_v36 = vmul.f32 %v15320_v12, %v11757_v37  ;;  %v4406_v32 = vmul.f32 %v15320_v12, %v15296_v47  ;;  %v4407_v43 = vmul.f32 %v15320_v12, %v15297_v53  ;;  %v15323_v53 = vld [vmem:[#allocation82_spill] sm:$0xff] }
 0x45a   : > { %v4408_v27 = vmul.f32 %v15320_v12, %v15305_v63  ;;  %v4409_v16 = vmul.f32 %v15320_v12, %v15306_v40  ;;  %v4410_v57 = vmul.f32 %v15320_v12, %v15316_v14  ;;  %v4411_v19 = vmul.f32 %v15320_v12, %v15321_v13 }
 0x45b   : > { %v4412_v37 = vmul.f32 %v15320_v12, %v15322_v42  ;;  %v12287_v47 = vmul.f32 %v15320_v12, %v15319_v22  ;;  %v4414_v25 = vmul.f32 %v15320_v12, %v15323_v53  ;;  %v12293_v20 = vmul.f32 %v15320_v12, %v15324_v8 }
 0x45c   : > { %v4432_v40 = vrot.slane %v4400_v56, 1  ;;  %v4433_v60 = vrot.slane %v4401_v9, 1  ;;  %v4435_v6 = vrot.slane %v4402_v45, 1  ;;  %v4436_v17 = vrot.slane %v4403_v39, 1 }
 0x45d   : > { %v4438_v30 = vrot.slane %v4404_v54, 1  ;;  %v4439_v11 = vrot.slane %v4405_v36, 1  ;;  %v4441_v61 = vrot.slane %v4406_v32, 1  ;;  %v4442_v58 = vrot.slane %v4407_v43, 1 }
 0x45e   : > { %v12295_v26 = vadd.f32 %v4359_v48, %v4301_v7  ;;  %v12297_v4 = vadd.f32 %v4363_v18, %v4302_v51  ;;  %v4444_v28 = vrot.slane %v4408_v27, 1  ;;  %v4445_v5 = vrot.slane %v4409_v16, 1  ;;  %v12341_v16 = vld [vmem:[#allocation2 + $0x98] sm:$0xff] }
 0x45f   : > { %v4434_v3 = vsel %vm1911_vm3, %v4432_v40, %v4433_v60  ;;  %v4437_v10 = vsel %vm1911_vm3, %v4435_v6, %v4436_v17  ;;  %v4447_v29 = vrot.slane %v4410_v57, 1  ;;  %v4448_v21 = vrot.slane %v4411_v19, 1  ;;  %v12357_v57 = vld [vmem:[#allocation2 + $0xc8] sm:$0xff] }
 0x460   : > { %v4440_v35 = vsel %vm1911_vm3, %v4438_v30, %v4439_v11  ;;  %v4450_v41 = vrot.slane %v4412_v37, 1  ;;  %v4451_v0 = vrot.slane %v12287_v47, 1  ;;  %v4453_v50 = vrot.slane %v4414_v25, 1  ;;  %15328 = vst [vmem:[#allocation52_spill] sm:$0xff] %v12357_v57  ;;  %v12363_v47 = vld [vmem:[#allocation2 + $0xe0] sm:$0xff]  ;;  %v15330_v30 = vld [vmem:[#allocation94_spill] sm:$0xff] }
 0x461   : > { %v12303_v44 = vadd.f32 %v4362_v55, %v4303_v49  ;;  %v4443_v7 = vsel %vm1911_vm3, %v4441_v61, %v4442_v58  ;;  %v4446_v51 = vsel %vm1911_vm3, %v4444_v28, %v4445_v5  ;;  %v4454_v48 = vrot.slane %v12293_v20, 1  ;;  %15329 = vst [vmem:[#allocation69_spill] sm:$0xff] %v12363_v47 }
 0x462   : > { %v4449_v18 = vsel %vm1911_vm3, %v4447_v29, %v4448_v21  ;;  %v4452_v12 = vsel %vm1911_vm3, %v4450_v41, %v4451_v0  ;;  %v12310_v56 = vadd.f32 %v4434_v3, %v4380_v31  ;;  %v12312_v9 = vadd.f32 %v4433_v60, %v4381_v34 }
 0x463   : > { %v4455_v45 = vsel %vm1911_vm3, %v4453_v50, %v4454_v48  ;;  %v12315_v39 = vadd.f32 %v4437_v10, %v4382_v23  ;;  %v12317_v49 = vadd.f32 %v4436_v17, %v4383_v38  ;;  %v12319_v55 = vadd.f32 %v4440_v35, %v4384_v59  ;;  %v12337_v38 = vld [vmem:[#allocation2 + $0x90] sm:$0xff]  ;;  %v15325_v59 = vld [vmem:[#allocation57_spill] sm:$0xff] }
 0x464   : > { %v12321_v54 = vadd.f32 %v4439_v11, %v4385_v24  ;;  %v12323_v36 = vadd.f32 %v4443_v7, %v4386_v33  ;;  %v12325_v32 = vadd.f32 %v4442_v58, %v4387_v52  ;;  %v12327_v43 = vadd.f32 %v4446_v51, %v4388_v62  ;;  %v12345_v52 = vld [vmem:[#allocation2 + $0xa8] sm:$0xff] }
 0x465   : > { %v12329_v31 = vadd.f32 %v4445_v5, %v4389_v2  ;;  %v12331_v34 = vadd.f32 %v4449_v18, %v4390_v15  ;;  %v12333_v27 = vadd.f32 %v4448_v21, %v4391_v46  ;;  %v12335_v23 = vadd.f32 %v4452_v12, %v4392_v1  ;;  %15326 = vst [vmem:[#allocation47_spill] sm:$0xff] %v12345_v52  ;;  %v12349_v2 = vld [vmem:[#allocation2 + $0xb0] sm:$0xff]  ;;  %v12353_v46 = vld [vmem:[#allocation2 + $0xc0] sm:$0xff] }
 0x466   : > { %v4492_v24 = vmul.f32 %v12337_v38, %v15325_v59  ;;  %v4493_v33 = vmul.f32 %v12341_v16, %v15325_v59  ;;  %v4494_v62 = vmul.f32 %v12345_v52, %v15325_v59  ;;  %v4495_v15 = vmul.f32 %v12349_v2, %v15325_v59  ;;  %15327 = vst [vmem:[#allocation55_spill] sm:$0xff] %v12353_v46 }
 0x467   : > { %v4496_v1 = vmul.f32 %v12353_v46, %v15325_v59  ;;  %v4497_v19 = vmul.f32 %v12357_v57, %v15325_v59  ;;  %v4498_v37 = vmul.f32 %v15325_v59, %v15305_v63  ;;  %v4499_v25 = vmul.f32 %v12363_v47, %v15325_v59 }
 0x468   : > { %v4500_v20 = vmul.f32 %v15325_v59, %v15316_v14  ;;  %v4501_v40 = vmul.f32 %v15325_v59, %v15321_v13  ;;  %v4502_v60 = vmul.f32 %v15325_v59, %v15322_v42  ;;  %v4503_v6 = vmul.f32 %v15325_v59, %v15319_v22  ;;  %v15331_v14 = vld [vmem:[#allocation83_spill] sm:$0xff] }
 0x469   : > { %v4504_v63 = vmul.f32 %v15325_v59, %v15323_v53  ;;  %v12379_v17 = vmul.f32 %v15325_v59, %v15324_v8  ;;  %v4506_v11 = vmul.f32 %v15325_v59, %v15330_v30  ;;  %v12385_v61 = vmul.f32 %v15325_v59, %v15331_v14  ;;  %v12468_v30 = vld [vmem:[#allocation2 + $0x48] sm:$0xff]  ;;  %v12472_v14 = vld [vmem:[#allocation2 + $0x50] sm:$0xff] }
 0x46a   : > { %v4524_v13 = vrot.slane %v4492_v24, 1  ;;  %v4525_v58 = vrot.slane %v4493_v33, 1  ;;  %v4527_v42 = vrot.slane %v4494_v62, 1  ;;  %v4528_v28 = vrot.slane %v4495_v15, 1  ;;  %15336 = vst [vmem:[#allocation67_spill] sm:$0xff] %v12472_v14 }
 0x46b   : > { %v4530_v5 = vrot.slane %v4496_v1, 1  ;;  %v4531_v22 = vrot.slane %v4497_v19, 1  ;;  %v4533_v3 = vrot.slane %v4498_v37, 1  ;;  %v4534_v10 = vrot.slane %v4499_v25, 1 }
 0x46c   : > { %v12388_v53 = vadd.f32 %v4451_v0, %v12295_v26  ;;  %v12391_v8 = vadd.f32 %v4455_v45, %v12297_v4  ;;  %v4536_v29 = vrot.slane %v4500_v20, 1  ;;  %v4537_v21 = vrot.slane %v4501_v40, 1  ;;  %v15332_v20 = vld [vmem:[#allocation66_spill] sm:$0xff] }
 0x46d   : > { %v4526_v35 = vsel %vm1911_vm3, %v4524_v13, %v4525_v58  ;;  %v4529_v41 = vsel %vm1911_vm3, %v4527_v42, %v4528_v28  ;;  %v4539_v50 = vrot.slane %v4502_v60, 1  ;;  %v4540_v7 = vrot.slane %v4503_v6, 1  ;;  %v12452_v60 = vld [vmem:[#allocation2 + $0x18] sm:$0xff] }
 0x46e   : > { %v4532_v51 = vsel %vm1911_vm3, %v4530_v5, %v4531_v22  ;;  %v4542_v18 = vrot.slane %v4504_v63, 1  ;;  %v4543_v12 = vrot.slane %v12379_v17, 1  ;;  %v4545_v59 = vrot.slane %v4506_v11, 1  ;;  %v12464_v63 = vld [vmem:[#allocation2 + $0x38] sm:$0xff] }
 0x46f   : > { %v12398_v26 = vadd.f32 %v4454_v48, %v12303_v44  ;;  %v4535_v4 = vsel %vm1911_vm3, %v4533_v3, %v4534_v10  ;;  %v4538_v0 = vsel %vm1911_vm3, %v4536_v29, %v4537_v21  ;;  %v14718_v45 = vrot.slane %v12385_v61, 1  ;;  %15335 = vst [vmem:[#allocation40_spill] sm:$0xff] %v12464_v63 }
 0x470   : > { %v4541_v24 = vsel %vm1911_vm3, %v4539_v50, %v4540_v7  ;;  %v4544_v33 = vsel %vm1911_vm3, %v4542_v18, %v4543_v12  ;;  %v12406_v62 = vadd.f32 %v4526_v35, %v12310_v56  ;;  %v12409_v15 = vadd.f32 %v4525_v58, %v12312_v9  ;;  %v12476_v58 = vld [vmem:[#allocation2 + $0x60] sm:$0xff] }
 0x471   : > { %v4547_v44 = vsel %vm1911_vm3, %v4545_v59, %v14718_v45  ;;  %v12415_v48 = vadd.f32 %v4529_v41, %v12315_v39  ;;  %v12418_v1 = vadd.f32 %v4528_v28, %v12317_v49  ;;  %v12421_v19 = vadd.f32 %v4532_v51, %v12319_v55  ;;  %v12480_v28 = vld [vmem:[#allocation2 + $0x68] sm:$0xff] }
 0x472   : > { %v12424_v37 = vadd.f32 %v4531_v22, %v12321_v54  ;;  %v12427_v56 = vadd.f32 %v4535_v4, %v12323_v36  ;;  %v12430_v9 = vadd.f32 %v4534_v10, %v12325_v32  ;;  %v12433_v25 = vadd.f32 %v4538_v0, %v12327_v43  ;;  %v8673_v36 = vld [vmem:[#allocation2] sm:$0xff]  ;;  %v12448_v32 = vld [vmem:[#allocation2 + $0x8] sm:$0xff]  ;;  %15337 = vst [vmem:[#allocation68_spill] sm:$0xff] %v12480_v28  ;;  %v12484_v22 = vld [vmem:[#allocation2 + $0x78] sm:$0xff] }
 0x473   : > { %v12436_v39 = vadd.f32 %v4537_v21, %v12329_v31  ;;  %v12439_v49 = vadd.f32 %v4541_v24, %v12331_v34  ;;  %v12442_v55 = vadd.f32 %v4540_v7, %v12333_v27  ;;  %v12445_v54 = vadd.f32 %v4544_v33, %v12335_v23  ;;  %15333 = vst [vmem:[#allocation70_spill] sm:$0xff] %v12448_v32  ;;  %v12456_v34 = vld [vmem:[#allocation2 + $0x20] sm:$0xff]  ;;  %v12460_v23 = vld [vmem:[#allocation2 + $0x30] sm:$0xff] }
 0x474   : > { %v4584_v40 = vmul.f32 %v8673_v36, %v15332_v20  ;;  %v4585_v43 = vmul.f32 %v12448_v32, %v15332_v20  ;;  %v4586_v31 = vmul.f32 %v12452_v60, %v15332_v20  ;;  %15334 = vst [vmem:[#allocation58_spill] sm:$0xff] %v12456_v34  ;;  %v4587_v27 = vmul.f32 %v12456_v34, %v15332_v20  ;;  %v12488_v10 = vld [vmem:[#allocation2 + $0x80] sm:$0xff] }
 0x475   : > { %v4588_v6 = vmul.f32 %v12460_v23, %v15332_v20  ;;  %v4589_v17 = vmul.f32 %v12464_v63, %v15332_v20  ;;  %v4590_v11 = vmul.f32 %v12468_v30, %v15332_v20  ;;  %v4591_v13 = vmul.f32 %v12472_v14, %v15332_v20  ;;  %15338 = vst [vmem:[#allocation48_spill] sm:$0xff] %v12488_v10 }
 0x476   : > { %v4592_v42 = vmul.f32 %v12476_v58, %v15332_v20  ;;  %v4593_v5 = vmul.f32 %v12480_v28, %v15332_v20  ;;  %v4594_v3 = vmul.f32 %v12484_v22, %v15332_v20  ;;  %v4595_v29 = vmul.f32 %v12488_v10, %v15332_v20 }
 0x477   : > { %v4596_v21 = vmul.f32 %v12337_v38, %v15332_v20  ;;  %v4597_v35 = vmul.f32 %v12341_v16, %v15332_v20  ;;  %v4598_v41 = vmul.f32 %v12345_v52, %v15332_v20  ;;  %v4599_v50 = vmul.f32 %v12349_v2, %v15332_v20 }
 0x478   : > { %v4616_v7 = vrot.slane %v4584_v40, 2  ;;  %v4617_v51 = vrot.slane %v4585_v43, 2  ;;  %v4619_v18 = vrot.slane %v4586_v31, 2  ;;  %v4620_v59 = vrot.slane %v4587_v27, 2 }
 0x479   : > { %v4622_v4 = vrot.slane %v4588_v6, 2  ;;  %v4623_v0 = vrot.slane %v4589_v17, 2  ;;  %v4625_v24 = vrot.slane %v4590_v11, 2  ;;  %v4626_v33 = vrot.slane %v4591_v13, 2 }
 0x47a   : > { %v4577_v36 = vadd.f32 %v4543_v12, %v12388_v53  ;;  %v4578_v45 = vadd.f32 %v4547_v44, %v12391_v8  ;;  %v4628_v32 = vrot.slane %v4592_v42, 2  ;;  %v4629_v47 = vrot.slane %v4593_v5, 2 }
 0x47b   : > { %v4618_v57 = vsel %vm1288_vm1, %v4616_v7, %v4617_v51  ;;  %v4621_v46 = vsel %vm1288_vm1, %v4619_v18, %v4620_v59  ;;  %v4631_v52 = vrot.slane %v4594_v3, 2  ;;  %v4632_v20 = vrot.slane %v4595_v29, 2  ;;  %v15341_v3 = vld [vmem:[#allocation38_spill] sm:$0xff] }
 0x47c   : > { %v4624_v40 = vsel %vm1288_vm1, %v4622_v4, %v4623_v0  ;;  %v4634_v43 = vrot.slane %v4596_v21, 2  ;;  %v4635_v31 = vrot.slane %v4597_v35, 2  ;;  %v4637_v27 = vrot.slane %v4598_v41, 2  ;;  %v12576_v21 = vld [vmem:[#allocation14 + $0x28] sm:$0x7f] }
 0x47d   : > { %v15339_v6 = vrot.slane %v12385_v61, 1  ;;  %v4627_v53 = vsel %vm1288_vm1, %v4625_v24, %v4626_v33  ;;  %v4630_v8 = vsel %vm1288_vm1, %v4628_v32, %v4629_v47  ;;  %v4638_v12 = vrot.slane %v4599_v50, 2  ;;  %15347 = vst [vmem:[#allocation50_spill] sm:$0xff] %v12576_v21 }
 0x47e   : > { %v4633_v44 = vsel %vm1288_vm1, %v4631_v52, %v4632_v20  ;;  %v4636_v11 = vsel %vm1288_vm1, %v4634_v43, %v4635_v31  ;;  %v12513_v13 = vadd.f32 %v4618_v57, %v12406_v62  ;;  %v12516_v42 = vadd.f32 %v4617_v51, %v12409_v15 }
 0x47f   : > { %v4579_v17 = vadd.f32 %v15339_v6, %v12398_v26  ;;  %v4639_v5 = vsel %vm1288_vm1, %v4637_v27, %v4638_v12  ;;  %v12520_v61 = vadd.f32 %v4621_v46, %v12415_v48  ;;  %v12523_v26 = vadd.f32 %v4620_v59, %v12418_v1  ;;  %v15351_v6 = vld [vmem:[#allocation52_spill] sm:$0xff] }
 0x480   : > { %v12526_v32 = vadd.f32 %v4624_v40, %v12421_v19  ;;  %v12529_v52 = vadd.f32 %v4623_v0, %v12424_v37  ;;  %v12532_v57 = vadd.f32 %v4627_v53, %v12427_v56  ;;  %v12535_v62 = vadd.f32 %v4626_v33, %v12430_v9 }
 0x481   : > { %v12538_v15 = vadd.f32 %v4630_v8, %v12433_v25  ;;  %v12541_v46 = vadd.f32 %v4629_v47, %v12436_v39  ;;  %v12544_v48 = vadd.f32 %v4633_v44, %v12439_v49  ;;  %v12547_v1 = vadd.f32 %v4632_v20, %v12442_v55  ;;  %v12558_v25 = vld [vmem:[#allocation14 + $0x8] sm:$0x7f]  ;;  %v15342_v39 = vld [vmem:[#allocation73_spill] sm:$0xff]  ;;  %v15349_v20 = vld [vmem:[#allocation47_spill] sm:$0xff] }
 0x482   : > { %v12550_v19 = vadd.f32 %v4636_v11, %v12445_v54  ;;  %v12552_v37 = vadd.f32 %v4635_v31, %v4577_v36  ;;  %v12554_v56 = vadd.f32 %v4639_v5, %v4578_v45  ;;  %v12556_v9 = vadd.f32 %v4638_v12, %v4579_v17  ;;  %15340 = vst [vmem:[#allocation39_spill] sm:$0xff] %v12558_v25  ;;  %v15343_v55 = vld [vmem:[#allocation54_spill] sm:$0xff]  ;;  %v12570_v54 = vld [vmem:[#allocation14 + $0x20] sm:$0x7f]  ;;  %v15350_v31 = vld [vmem:[#allocation55_spill] sm:$0xff] }
 0x483   : > { %v4675_v47 = vrot.slane %v12558_v25, %v15341_v3  ;;  %v12564_v49 = vrot.slane %v15342_v39, %v15341_v3  ;;  %v12568_v29 = vrot.slane %v15343_v55, %v15341_v3  ;;  %15345 = vst [vmem:[#allocation77_spill] sm:$0xff] %v12570_v54  ;;  %v12574_v45 = vrot.slane %v12570_v54, %v15341_v3 }
 0x484   : > { %v12580_v35 = vrot.slane %v12576_v21, %v15341_v3 }
 0x485   : > { %15344 = vst [vmem:[#allocation59_spill] sm:$0xff] %v12568_v29  ;;  %15346 = vst [vmem:[#allocation97_spill] sm:$0xff] %v12574_v45  ;;  %v4676_v41 = vmul.f32 %v12452_v60, %v4675_v47  ;;  %v4677_v50 = vmul.f32 %v12456_v34, %v4675_v47  ;;  %v4678_v7 = vmul.f32 %v12460_v23, %v4675_v47  ;;  %v12602_v34 = vld [vmem:[#allocation14 + $0x30] sm:$0x7f]  ;;  %v15354_v45 = vld [vmem:[#allocation24_spill] sm:$0xff] }
 0x486   : > { %15348 = vst [vmem:[#allocation95_spill] sm:$0xff] %v12580_v35  ;;  %v4679_v51 = vmul.f32 %v12464_v63, %v4675_v47  ;;  %v4680_v18 = vmul.f32 %v12468_v30, %v4675_v47  ;;  %v4681_v59 = vmul.f32 %v12472_v14, %v4675_v47  ;;  %v4682_v4 = vmul.f32 %v12476_v58, %v4675_v47  ;;  %v15355_v29 = vld [vmem:[#allocation61_spill] sm:$0xff] }
 0x487   : > { %v4683_v0 = vmul.f32 %v12480_v28, %v4675_v47  ;;  %v4684_v24 = vmul.f32 %v12484_v22, %v4675_v47  ;;  %v4685_v33 = vmul.f32 %v12488_v10, %v4675_v47  ;;  %v4686_v60 = vmul.f32 %v12337_v38, %v4675_v47  ;;  %15352 = vst [vmem:[#allocation30_spill] sm:$0xff] %v12602_v34 }
 0x488   : > { %v4687_v36 = vmul.f32 %v12341_v16, %v4675_v47  ;;  %v4688_v40 = vmul.f32 %v15349_v20, %v4675_v47  ;;  %v12596_v43 = vmul.f32 %v12349_v2, %v4675_v47  ;;  %v4690_v27 = vmul.f32 %v15350_v31, %v4675_v47 }
 0x489   : > { %v12600_v17 = vmul.f32 %v15351_v6, %v4675_v47  ;;  %v4708_v53 = vrot.slane %v4676_v41, 2  ;;  %v4709_v8 = vrot.slane %v4677_v50, 2  ;;  %v4711_v12 = vrot.slane %v4678_v7, 2 }
 0x48a   : > { %v4712_v44 = vrot.slane %v4679_v51, 2  ;;  %v4714_v11 = vrot.slane %v4680_v18, 2  ;;  %v4715_v5 = vrot.slane %v4681_v59, 2  ;;  %v4717_v39 = vrot.slane %v4682_v4, 2 }
 0x48b   : > { %v4718_v55 = vrot.slane %v4683_v0, 2  ;;  %v4720_v21 = vrot.slane %v4684_v24, 2  ;;  %v4721_v54 = vrot.slane %v4685_v33, 2  ;;  %v12606_v35 = vrot.slane %v12602_v34, %v15341_v3 }
 0x48c   : > { %v12610_v47 = vrot.slane %v15355_v29, %v15354_v45  ;;  %v4710_v41 = vsel %vm1288_vm1, %v4708_v53, %v4709_v8  ;;  %v4723_v50 = vrot.slane %v4686_v60, 2  ;;  %v4724_v7 = vrot.slane %v4687_v36, 2 }
 0x48d   : > { %15353 = vst [vmem:[#allocation31_spill] sm:$0xff] %v12606_v35  ;;  %v12615_v51 = vrot.slane %v12558_v25, %v15354_v45  ;;  %v4713_v18 = vsel %vm1288_vm1, %v4711_v12, %v4712_v44  ;;  %v4726_v59 = vrot.slane %v4688_v40, 2  ;;  %v4727_v4 = vrot.slane %v12596_v43, 2 }
 0x48e   : > { %15356 = vst [vmem:[#allocation65_spill] sm:$0xff] %v12610_v47  ;;  %v4729_v0 = vrot.slane %v4690_v27, 2  ;;  %v4716_v24 = vsel %vm1288_vm1, %v4714_v11, %v4715_v5  ;;  %v4719_v33 = vsel %vm1288_vm1, %v4717_v39, %v4718_v55  ;;  %v4722_v29 = vsel %vm1288_vm1, %v4720_v21, %v4721_v54 }
 0x48f   : > { %15357 = vst [vmem:[#allocation25_spill] sm:$0xff] %v12615_v51  ;;  %v4730_v53 = vrot.slane %v12600_v17, 2  ;;  %v4725_v60 = vsel %vm1288_vm1, %v4723_v50, %v4724_v7  ;;  %v4728_v36 = vsel %vm1288_vm1, %v4726_v59, %v4727_v4  ;;  %v4748_v3 = vadd.f32 %v4710_v41, %v12513_v13 }
 0x490   : > { %v4749_v12 = vadd.f32 %v4709_v8, %v12516_v42  ;;  %v4750_v43 = vadd.f32 %v4713_v18, %v12520_v61  ;;  %v4751_v27 = vadd.f32 %v4712_v44, %v12523_v26  ;;  %v4752_v11 = vadd.f32 %v4716_v24, %v12526_v32 }
 0x491   : > { %v4731_v40 = vsel %vm1288_vm1, %v4729_v0, %v4730_v53  ;;  %v4753_v21 = vadd.f32 %v4715_v5, %v12529_v52  ;;  %v4754_v17 = vadd.f32 %v4719_v33, %v12532_v57  ;;  %v4755_v39 = vadd.f32 %v4718_v55, %v12535_v62  ;;  %v12669_v55 = vld [vmem:[#allocation2 + $0xd8] sm:$0xff] }
 0x492   : > { %v4756_v50 = vadd.f32 %v4722_v29, %v12538_v15  ;;  %v4757_v13 = vadd.f32 %v4721_v54, %v12541_v46  ;;  %v4758_v42 = vadd.f32 %v4725_v60, %v12544_v48  ;;  %v4759_v8 = vadd.f32 %v4724_v7, %v12547_v1  ;;  %v15358_v7 = vld [vmem:[#allocation69_spill] sm:$0xff] }
 0x493   : > { %v4760_v61 = vadd.f32 %v4728_v36, %v12550_v19  ;;  %v4768_v26 = vmul.f32 %v12460_v23, %v12564_v49  ;;  %v4769_v32 = vmul.f32 %v12464_v63, %v12564_v49  ;;  %v4770_v52 = vmul.f32 %v12468_v30, %v12564_v49 }
 0x494   : > { %v4771_v57 = vmul.f32 %v12472_v14, %v12564_v49  ;;  %v4772_v62 = vmul.f32 %v12476_v58, %v12564_v49  ;;  %v4773_v15 = vmul.f32 %v12480_v28, %v12564_v49  ;;  %v4774_v46 = vmul.f32 %v12484_v22, %v12564_v49 }
 0x495   : > { %v4775_v23 = vmul.f32 %v12488_v10, %v12564_v49  ;;  %v4776_v48 = vmul.f32 %v12337_v38, %v12564_v49  ;;  %v4777_v1 = vmul.f32 %v12341_v16, %v12564_v49  ;;  %v4778_v19 = vmul.f32 %v15349_v20, %v12564_v49 }
 0x496   : > { %v4779_v54 = vmul.f32 %v12349_v2, %v12564_v49  ;;  %v4780_v44 = vmul.f32 %v15350_v31, %v12564_v49  ;;  %v12667_v5 = vmul.f32 %v15351_v6, %v12564_v49  ;;  %v4782_v41 = vmul.f32 %v12669_v55, %v12564_v49 }
 0x497   : > { %v12675_v18 = vmul.f32 %v15358_v7, %v12564_v49  ;;  %v4800_v59 = vrot.slane %v4768_v26, 2  ;;  %v4801_v0 = vrot.slane %v4769_v32, 2  ;;  %v4803_v24 = vrot.slane %v4770_v52, 2 }
 0x498   : > { %v4804_v33 = vrot.slane %v4771_v57, 2  ;;  %v4806_v29 = vrot.slane %v4772_v62, 2  ;;  %v4807_v60 = vrot.slane %v4773_v15, 2  ;;  %v4809_v36 = vrot.slane %v4774_v46, 2 }
 0x499   : > { %v4810_v25 = vrot.slane %v4775_v23, 2  ;;  %v4761_v34 = vadd.f32 %v4727_v4, %v12552_v37  ;;  %v4762_v45 = vadd.f32 %v4731_v40, %v12554_v56  ;;  %v4812_v51 = vrot.slane %v4776_v48, 2 }
 0x49a   : > { %v4813_v63 = vrot.slane %v4777_v1, 2  ;;  %v4763_v47 = vadd.f32 %v4730_v53, %v12556_v9  ;;  %v4802_v35 = vsel %vm1288_vm1, %v4800_v59, %v4801_v0  ;;  %v4815_v49 = vrot.slane %v4778_v19, 2 }
 0x49b   : > { %v4816_v7 = vrot.slane %v4779_v54, 2  ;;  %v4805_v26 = vsel %vm1288_vm1, %v4803_v24, %v4804_v33  ;;  %v4818_v32 = vrot.slane %v4780_v44, 2  ;;  %v4819_v52 = vrot.slane %v12667_v5, 2 }
 0x49c   : > { %v4821_v57 = vrot.slane %v4782_v41, 2  ;;  %v4808_v62 = vsel %vm1288_vm1, %v4806_v29, %v4807_v60  ;;  %v4811_v37 = vsel %vm1288_vm1, %v4809_v36, %v4810_v25  ;;  %v4814_v56 = vsel %vm1288_vm1, %v4812_v51, %v4813_v63 }
 0x49d   : > { %v4822_v4 = vrot.slane %v12675_v18, 2  ;;  %v4817_v9 = vsel %vm1288_vm1, %v4815_v49, %v4816_v7  ;;  %v4820_v53 = vsel %vm1288_vm1, %v4818_v32, %v4819_v52  ;;  %v4840_v40 = vadd.f32 %v4802_v35, %v4748_v3  ;;  %v15359_v18 = vld [vmem:[#allocation59_spill] sm:$0xff] }
 0x49e   : > { %v4841_v15 = vadd.f32 %v4801_v0, %v4749_v12  ;;  %v4842_v23 = vadd.f32 %v4805_v26, %v4750_v43  ;;  %v4843_v48 = vadd.f32 %v4804_v33, %v4751_v27  ;;  %v4844_v1 = vadd.f32 %v4808_v62, %v4752_v11 }
 0x49f   : > { %v4823_v46 = vsel %vm1288_vm1, %v4821_v57, %v4822_v4  ;;  %v4845_v19 = vadd.f32 %v4807_v60, %v4753_v21  ;;  %v4846_v54 = vadd.f32 %v4811_v37, %v4754_v17  ;;  %v4847_v44 = vadd.f32 %v4810_v25, %v4755_v39 }
 0x4a0   : > { %v4848_v5 = vadd.f32 %v4814_v56, %v4756_v50  ;;  %v4849_v41 = vadd.f32 %v4813_v63, %v4757_v13  ;;  %v4850_v59 = vadd.f32 %v4817_v9, %v4758_v42  ;;  %v4851_v51 = vadd.f32 %v4816_v7, %v4759_v8  ;;  %v15360_v50 = vld [vmem:[#allocation69_spill] sm:$0xff]  ;;  %v12720_v42 = vld [vmem:[#allocation2 + $0xf0] sm:$0xff] }
 0x4a1   : > { %v4852_v24 = vadd.f32 %v4820_v53, %v4760_v61  ;;  %v4860_v29 = vmul.f32 %v12468_v30, %v15359_v18  ;;  %v4861_v3 = vmul.f32 %v12472_v14, %v15359_v18  ;;  %v4862_v35 = vmul.f32 %v12476_v58, %v15359_v18  ;;  %15361 = vst [vmem:[#allocation36_spill] sm:$0xff] %v12720_v42  ;;  %v12724_v61 = vld [vmem:[#allocation2 + $0xf8] sm:$0xff] }
 0x4a2   : > { %v4863_v12 = vmul.f32 %v12480_v28, %v15359_v18  ;;  %v4864_v25 = vmul.f32 %v12484_v22, %v15359_v18  ;;  %v4865_v63 = vmul.f32 %v12488_v10, %v15359_v18  ;;  %v4866_v43 = vmul.f32 %v12337_v38, %v15359_v18  ;;  %15362 = vst [vmem:[#allocation27_spill] sm:$0xff] %v12724_v61 }
 0x4a3   : > { %v4867_v30 = vmul.f32 %v12341_v16, %v15359_v18  ;;  %v4868_v27 = vmul.f32 %v15349_v20, %v15359_v18  ;;  %v4869_v11 = vmul.f32 %v12349_v2, %v15359_v18  ;;  %v4870_v21 = vmul.f32 %v15350_v31, %v15359_v18 }
 0x4a4   : > { %v4871_v17 = vmul.f32 %v15351_v6, %v15359_v18  ;;  %v4872_v39 = vmul.f32 %v12669_v55, %v15359_v18  ;;  %v12718_v13 = vmul.f32 %v15360_v50, %v15359_v18  ;;  %v4874_v8 = vmul.f32 %v12720_v42, %v15359_v18 }
 0x4a5   : > { %v12728_v7 = vmul.f32 %v12724_v61, %v15359_v18  ;;  %v4892_v0 = vrot.slane %v4860_v29, 2  ;;  %v4893_v33 = vrot.slane %v4861_v3, 2  ;;  %v4895_v60 = vrot.slane %v4862_v35, 2 }
 0x4a6   : > { %v4896_v36 = vrot.slane %v4863_v12, 2  ;;  %v4898_v49 = vrot.slane %v4864_v25, 2  ;;  %v4899_v26 = vrot.slane %v4865_v63, 2  ;;  %v4901_v32 = vrot.slane %v4866_v43, 2 }
 0x4a7   : > { %v4902_v57 = vrot.slane %v4867_v30, 2  ;;  %v4853_v62 = vadd.f32 %v4819_v52, %v4761_v34  ;;  %v4854_v37 = vadd.f32 %v4823_v46, %v4762_v45  ;;  %v4904_v56 = vrot.slane %v4868_v27, 2 }
 0x4a8   : > { %v4905_v9 = vrot.slane %v4869_v11, 2  ;;  %v4855_v53 = vadd.f32 %v4822_v4, %v4763_v47  ;;  %v4894_v14 = vsel %vm1288_vm1, %v4892_v0, %v4893_v33  ;;  %v4907_v42 = vrot.slane %v4870_v21, 2 }
 0x4a9   : > { %v4908_v50 = vrot.slane %v4871_v17, 2  ;;  %v4897_v18 = vsel %vm1288_vm1, %v4895_v60, %v4896_v36  ;;  %v4910_v61 = vrot.slane %v4872_v39, 2  ;;  %v4911_v29 = vrot.slane %v12718_v13, 2  ;;  %v12774_v60 = vld [vmem:[#allocation2 + $0x110] sm:$0xff] }
 0x4aa   : > { %v4913_v3 = vrot.slane %v4874_v8, 2  ;;  %v4900_v35 = vsel %vm1288_vm1, %v4898_v49, %v4899_v26  ;;  %v4903_v12 = vsel %vm1288_vm1, %v4901_v32, %v4902_v57  ;;  %v4906_v34 = vsel %vm1288_vm1, %v4904_v56, %v4905_v9  ;;  %15368 = vst [vmem:[#allocation92_spill] sm:$0xff] %v12774_v60 }
 0x4ab   : > { %v4914_v45 = vrot.slane %v12728_v7, 2  ;;  %v4909_v47 = vsel %vm1288_vm1, %v4907_v42, %v4908_v50  ;;  %v4912_v52 = vsel %vm1288_vm1, %v4910_v61, %v4911_v29  ;;  %v4932_v4 = vadd.f32 %v4894_v14, %v4840_v40  ;;  %v15363_v7 = vld [vmem:[#allocation97_spill] sm:$0xff]  ;;  %v12770_v61 = vld [vmem:[#allocation2 + $0x108] sm:$0xff] }
 0x4ac   : > { %v4933_v46 = vadd.f32 %v4893_v33, %v4841_v15  ;;  %v4934_v63 = vadd.f32 %v4897_v18, %v4842_v23  ;;  %v4935_v43 = vadd.f32 %v4896_v36, %v4843_v48  ;;  %v4936_v30 = vadd.f32 %v4900_v35, %v4844_v1  ;;  %15367 = vst [vmem:[#allocation43_spill] sm:$0xff] %v12770_v61 }
 0x4ad   : > { %v4915_v25 = vsel %vm1288_vm1, %v4913_v3, %v4914_v45  ;;  %v4937_v27 = vadd.f32 %v4899_v26, %v4845_v19  ;;  %v4938_v11 = vadd.f32 %v4903_v12, %v4846_v54  ;;  %v4939_v21 = vadd.f32 %v4902_v57, %v4847_v44 }
 0x4ae   : > { %v4940_v17 = vadd.f32 %v4906_v34, %v4848_v5  ;;  %v4941_v39 = vadd.f32 %v4905_v9, %v4849_v41  ;;  %v4942_v13 = vadd.f32 %v4909_v47, %v4850_v59  ;;  %v4943_v8 = vadd.f32 %v4908_v50, %v4851_v51  ;;  %v15364_v5 = vld [vmem:[#allocation69_spill] sm:$0xff]  ;;  %v15365_v59 = vld [vmem:[#allocation36_spill] sm:$0xff] }
 0x4af   : > { %v4944_v0 = vadd.f32 %v4912_v52, %v4852_v24  ;;  %v4952_v42 = vmul.f32 %v12476_v58, %v15363_v7  ;;  %v4953_v14 = vmul.f32 %v12480_v28, %v15363_v7  ;;  %v4954_v40 = vmul.f32 %v12484_v22, %v15363_v7  ;;  %v15366_v24 = vld [vmem:[#allocation27_spill] sm:$0xff] }
 0x4b0   : > { %v4955_v15 = vmul.f32 %v12488_v10, %v15363_v7  ;;  %v4956_v23 = vmul.f32 %v12337_v38, %v15363_v7  ;;  %v4957_v48 = vmul.f32 %v12341_v16, %v15363_v7  ;;  %v4958_v1 = vmul.f32 %v15349_v20, %v15363_v7 }
 0x4b1   : > { %v4959_v58 = vmul.f32 %v12349_v2, %v15363_v7  ;;  %v4960_v19 = vmul.f32 %v15350_v31, %v15363_v7  ;;  %v4961_v54 = vmul.f32 %v15351_v6, %v15363_v7  ;;  %v4962_v44 = vmul.f32 %v12669_v55, %v15363_v7 }
 0x4b2   : > { %v4963_v41 = vmul.f32 %v15364_v5, %v15363_v7  ;;  %v4964_v51 = vmul.f32 %v15365_v59, %v15363_v7  ;;  %v12768_v50 = vmul.f32 %v15366_v24, %v15363_v7  ;;  %v4966_v33 = vmul.f32 %v12770_v61, %v15363_v7 }
 0x4b3   : > { %v12778_v36 = vmul.f32 %v12774_v60, %v15363_v7  ;;  %v4984_v49 = vrot.slane %v4952_v42, 2  ;;  %v4985_v26 = vrot.slane %v4953_v14, 2  ;;  %v4987_v32 = vrot.slane %v4954_v40, 2 }
 0x4b4   : > { %v4988_v57 = vrot.slane %v4955_v15, 2  ;;  %v4990_v56 = vrot.slane %v4956_v23, 2  ;;  %v4991_v9 = vrot.slane %v4957_v48, 2  ;;  %v4993_v18 = vrot.slane %v4958_v1, 2 }
 0x4b5   : > { %v4994_v3 = vrot.slane %v4959_v58, 2  ;;  %v4945_v35 = vadd.f32 %v4911_v29, %v4853_v62  ;;  %v4946_v12 = vadd.f32 %v4915_v25, %v4854_v37  ;;  %v4996_v34 = vrot.slane %v4960_v19, 2 }
 0x4b6   : > { %v4997_v47 = vrot.slane %v4961_v54, 2  ;;  %v4947_v52 = vadd.f32 %v4914_v45, %v4855_v53  ;;  %v4986_v28 = vsel %vm1288_vm1, %v4984_v49, %v4985_v26  ;;  %v4999_v61 = vrot.slane %v4962_v44, 2 }
 0x4b7   : > { %v5000_v24 = vrot.slane %v4963_v41, 2  ;;  %v4989_v7 = vsel %vm1288_vm1, %v4987_v32, %v4988_v57  ;;  %v5002_v60 = vrot.slane %v4964_v51, 2  ;;  %v5003_v42 = vrot.slane %v12768_v50, 2  ;;  %v12821_v32 = vld [vmem:[#allocation2 + $0x128] sm:$0xff] }
 0x4b8   : > { %v5005_v14 = vrot.slane %v4966_v33, 2  ;;  %v4992_v40 = vsel %vm1288_vm1, %v4990_v56, %v4991_v9  ;;  %v4995_v15 = vsel %vm1288_vm1, %v4993_v18, %v4994_v3  ;;  %v4998_v62 = vsel %vm1288_vm1, %v4996_v34, %v4997_v47  ;;  %15373 = vst [vmem:[#allocation98_spill] sm:$0xff] %v12821_v32 }
 0x4b9   : > { %v5006_v37 = vrot.slane %v12778_v36, 2  ;;  %v5001_v53 = vsel %vm1288_vm1, %v4999_v61, %v5000_v24  ;;  %v5004_v29 = vsel %vm1288_vm1, %v5002_v60, %v5003_v42  ;;  %v5024_v45 = vadd.f32 %v4986_v28, %v4932_v4  ;;  %v15369_v36 = vld [vmem:[#allocation95_spill] sm:$0xff]  ;;  %v8694_v60 = vld [vmem:[#allocation2 + $0x120] sm:$0xff] }
 0x4ba   : > { %v5025_v25 = vadd.f32 %v4985_v26, %v4933_v46  ;;  %v5026_v48 = vadd.f32 %v4989_v7, %v4934_v63  ;;  %v5027_v1 = vadd.f32 %v4988_v57, %v4935_v43  ;;  %v5028_v58 = vadd.f32 %v4992_v40, %v4936_v30 }
 0x4bb   : > { %v5007_v23 = vsel %vm1288_vm1, %v5005_v14, %v5006_v37  ;;  %v5029_v19 = vadd.f32 %v4991_v9, %v4937_v27  ;;  %v5030_v54 = vadd.f32 %v4995_v15, %v4938_v11  ;;  %v5031_v44 = vadd.f32 %v4994_v3, %v4939_v21 }
 0x4bc   : > { %v5032_v41 = vadd.f32 %v4998_v62, %v4940_v17  ;;  %v5033_v51 = vadd.f32 %v4997_v47, %v4941_v39  ;;  %v5034_v50 = vadd.f32 %v5001_v53, %v4942_v13  ;;  %v5035_v33 = vadd.f32 %v5000_v24, %v4943_v8  ;;  %v15370_v17 = vld [vmem:[#allocation27_spill] sm:$0xff] }
 0x4bd   : > { %v5036_v49 = vadd.f32 %v5004_v29, %v4944_v0  ;;  %v5044_v61 = vmul.f32 %v12484_v22, %v15369_v36  ;;  %v5045_v28 = vmul.f32 %v12488_v10, %v15369_v36  ;;  %v5046_v4 = vmul.f32 %v12337_v38, %v15369_v36  ;;  %v15371_v13 = vld [vmem:[#allocation43_spill] sm:$0xff]  ;;  %v15372_v0 = vld [vmem:[#allocation92_spill] sm:$0xff] }
 0x4be   : > { %v5047_v46 = vmul.f32 %v12341_v16, %v15369_v36  ;;  %v5048_v63 = vmul.f32 %v15349_v20, %v15369_v36  ;;  %v5049_v43 = vmul.f32 %v12349_v2, %v15369_v36  ;;  %v5050_v30 = vmul.f32 %v15350_v31, %v15369_v36 }
 0x4bf   : > { %v5051_v22 = vmul.f32 %v15351_v6, %v15369_v36  ;;  %v5052_v27 = vmul.f32 %v12669_v55, %v15369_v36  ;;  %v5053_v11 = vmul.f32 %v15364_v5, %v15369_v36  ;;  %v5054_v21 = vmul.f32 %v15365_v59, %v15369_v36 }
 0x4c0   : > { %v5055_v39 = vmul.f32 %v15370_v17, %v15369_v36  ;;  %v5056_v8 = vmul.f32 %v15371_v13, %v15369_v36  ;;  %v12818_v24 = vmul.f32 %v15372_v0, %v15369_v36  ;;  %v5058_v26 = vmul.f32 %v8694_v60, %v15369_v36 }
 0x4c1   : > { %v12825_v57 = vmul.f32 %v12821_v32, %v15369_v36  ;;  %v5076_v56 = vrot.slane %v5044_v61, 2  ;;  %v5077_v9 = vrot.slane %v5045_v28, 2  ;;  %v5079_v18 = vrot.slane %v5046_v4, 2 }
 0x4c2   : > { %v5080_v3 = vrot.slane %v5047_v46, 2  ;;  %v5082_v34 = vrot.slane %v5048_v63, 2  ;;  %v5083_v47 = vrot.slane %v5049_v43, 2  ;;  %v5085_v7 = vrot.slane %v5050_v30, 2 }
 0x4c3   : > { %v5086_v14 = vrot.slane %v5051_v22, 2  ;;  %v5037_v40 = vadd.f32 %v5003_v42, %v4945_v35  ;;  %v5038_v15 = vadd.f32 %v5007_v23, %v4946_v12  ;;  %v5088_v62 = vrot.slane %v5052_v27, 2 }
 0x4c4   : > { %v5089_v53 = vrot.slane %v5053_v11, 2  ;;  %v5039_v29 = vadd.f32 %v5006_v37, %v4947_v52  ;;  %v5078_v10 = vsel %vm1288_vm1, %v5076_v56, %v5077_v9  ;;  %v5091_v0 = vrot.slane %v5054_v21, 2 }
 0x4c5   : > { %v5092_v13 = vrot.slane %v5055_v39, 2  ;;  %v5081_v36 = vsel %vm1288_vm1, %v5079_v18, %v5080_v3  ;;  %v5094_v32 = vrot.slane %v5056_v8, 2  ;;  %v5095_v61 = vrot.slane %v12818_v24, 2 }
 0x4c6   : > { %v5097_v28 = vrot.slane %v5058_v26, 2  ;;  %v5084_v4 = vsel %vm1288_vm1, %v5082_v34, %v5083_v47  ;;  %v5087_v46 = vsel %vm1288_vm1, %v5085_v7, %v5086_v14  ;;  %v5090_v35 = vsel %vm1288_vm1, %v5088_v62, %v5089_v53 }
 0x4c7   : > { %v5098_v12 = vrot.slane %v12825_v57, 2  ;;  %v5093_v52 = vsel %vm1288_vm1, %v5091_v0, %v5092_v13  ;;  %v5096_v42 = vsel %vm1288_vm1, %v5094_v32, %v5095_v61  ;;  %v5116_v37 = vadd.f32 %v5078_v10, %v5024_v45  ;;  %v15374_v57 = vld [vmem:[#allocation31_spill] sm:$0xff] }
 0x4c8   : > { %v5117_v23 = vadd.f32 %v5077_v9, %v5025_v25  ;;  %v5118_v43 = vadd.f32 %v5081_v36, %v5026_v48  ;;  %v5119_v30 = vadd.f32 %v5080_v3, %v5027_v1  ;;  %v5120_v22 = vadd.f32 %v5084_v4, %v5028_v58 }
 0x4c9   : > { %v5099_v63 = vsel %vm1288_vm1, %v5097_v28, %v5098_v12  ;;  %v5121_v27 = vadd.f32 %v5083_v47, %v5029_v19  ;;  %v5122_v11 = vadd.f32 %v5087_v46, %v5030_v54  ;;  %v5123_v21 = vadd.f32 %v5086_v14, %v5031_v44  ;;  %v15375_v54 = vld [vmem:[#allocation43_spill] sm:$0xff] }
 0x4ca   : > { %v5124_v39 = vadd.f32 %v5090_v35, %v5032_v41  ;;  %v5125_v8 = vadd.f32 %v5089_v53, %v5033_v51  ;;  %v5126_v24 = vadd.f32 %v5093_v52, %v5034_v50  ;;  %v5127_v26 = vadd.f32 %v5092_v13, %v5035_v33  ;;  %v15377_v50 = vld [vmem:[#allocation98_spill] sm:$0xff]  ;;  %v8696_v33 = vld [vmem:[#allocation2 + $0x138] sm:$0xff] }
 0x4cb   : > { %v5128_v56 = vadd.f32 %v5096_v42, %v5036_v49  ;;  %v5136_v0 = vmul.f32 %v12337_v38, %v15374_v57  ;;  %v5137_v10 = vmul.f32 %v12341_v16, %v15374_v57  ;;  %v5138_v45 = vmul.f32 %v15349_v20, %v15374_v57  ;;  %v12865_v49 = vld [vmem:[#allocation2 + $0x140] sm:$0xff] }
 0x4cc   : > { %v5139_v25 = vmul.f32 %v12349_v2, %v15374_v57  ;;  %v5140_v48 = vmul.f32 %v15350_v31, %v15374_v57  ;;  %v5141_v1 = vmul.f32 %v15351_v6, %v15374_v57  ;;  %v5142_v58 = vmul.f32 %v12669_v55, %v15374_v57  ;;  %v15376_v31 = vld [vmem:[#allocation92_spill] sm:$0xff] }
 0x4cd   : > { %v5143_v38 = vmul.f32 %v15364_v5, %v15374_v57  ;;  %v5144_v19 = vmul.f32 %v15365_v59, %v15374_v57  ;;  %v5145_v20 = vmul.f32 %v15370_v17, %v15374_v57  ;;  %v5146_v44 = vmul.f32 %v15375_v54, %v15374_v57 }
 0x4ce   : > { %v5147_v41 = vmul.f32 %v15376_v31, %v15374_v57  ;;  %v5148_v51 = vmul.f32 %v8694_v60, %v15374_v57  ;;  %v5149_v55 = vmul.f32 %v15377_v50, %v15374_v57  ;;  %v5150_v5 = vmul.f32 %v8696_v33, %v15374_v57  ;;  %v15379_v33 = vld [vmem:[#allocation70_spill] sm:$0xff] }
 0x4cf   : > { %v5151_v59 = vmul.f32 %v12865_v49, %v15374_v57  ;;  %v5168_v13 = vrot.slane %v5136_v0, 2  ;;  %v5169_v32 = vrot.slane %v5137_v10, 2  ;;  %v5171_v9 = vrot.slane %v5138_v45, 2 }
 0x4d0   : > { %v5172_v18 = vrot.slane %v5139_v25, 2  ;;  %v5174_v3 = vrot.slane %v5140_v48, 2  ;;  %v5175_v34 = vrot.slane %v5141_v1, 2  ;;  %v5177_v47 = vrot.slane %v5142_v58, 2 }
 0x4d1   : > { %v5178_v7 = vrot.slane %v5143_v38, 2  ;;  %v5129_v60 = vadd.f32 %v5095_v61, %v5037_v40  ;;  %v5130_v14 = vadd.f32 %v5099_v63, %v5038_v15  ;;  %v5180_v62 = vrot.slane %v5144_v19, 2 }
 0x4d2   : > { %v5181_v53 = vrot.slane %v5145_v20, 2  ;;  %v5131_v36 = vadd.f32 %v5098_v12, %v5039_v29  ;;  %v5170_v28 = vsel %vm1288_vm1, %v5168_v13, %v5169_v32  ;;  %v5183_v4 = vrot.slane %v5146_v44, 2 }
 0x4d3   : > { %v5184_v46 = vrot.slane %v5147_v41, 2  ;;  %v5173_v35 = vsel %vm1288_vm1, %v5171_v9, %v5172_v18  ;;  %v5186_v52 = vrot.slane %v5148_v51, 2  ;;  %v5187_v42 = vrot.slane %v5149_v55, 2  ;;  %v15378_v55 = vld [vmem:[#allocation65_spill] sm:$0xff] }
 0x4d4   : > { %v5189_v57 = vrot.slane %v5150_v5, 2  ;;  %v5176_v0 = vsel %vm1288_vm1, %v5174_v3, %v5175_v34  ;;  %v5179_v10 = vsel %vm1288_vm1, %v5177_v47, %v5178_v7  ;;  %v5182_v45 = vsel %vm1288_vm1, %v5180_v62, %v5181_v53 }
 0x4d5   : > { %v5190_v40 = vrot.slane %v5151_v59, 2  ;;  %v5185_v15 = vsel %vm1288_vm1, %v5183_v4, %v5184_v46  ;;  %v5188_v29 = vsel %vm1288_vm1, %v5186_v52, %v5187_v42  ;;  %v5208_v61 = vadd.f32 %v5170_v28, %v5116_v37  ;;  %v15380_v59 = vld [vmem:[#allocation58_spill] sm:$0xff] }
 0x4d6   : > { %v5209_v12 = vadd.f32 %v5169_v32, %v5117_v23  ;;  %v5210_v25 = vadd.f32 %v5173_v35, %v5118_v43  ;;  %v5211_v48 = vadd.f32 %v5172_v18, %v5119_v30  ;;  %v5212_v1 = vadd.f32 %v5176_v0, %v5120_v22  ;;  %v15381_v23 = vld [vmem:[#allocation40_spill] sm:$0xff]  ;;  %v15382_v43 = vld [vmem:[#allocation67_spill] sm:$0xff] }
 0x4d7   : > { %v5191_v63 = vsel %vm1288_vm1, %v5189_v57, %v5190_v40  ;;  %v5213_v58 = vadd.f32 %v5175_v34, %v5121_v27  ;;  %v5214_v38 = vadd.f32 %v5179_v10, %v5122_v11  ;;  %v5215_v19 = vadd.f32 %v5178_v7, %v5123_v21  ;;  %v15383_v22 = vld [vmem:[#allocation68_spill] sm:$0xff] }
 0x4d8   : > { %v5216_v20 = vadd.f32 %v5182_v45, %v5124_v39  ;;  %v5217_v54 = vadd.f32 %v5181_v53, %v5125_v8  ;;  %v5218_v44 = vadd.f32 %v5185_v15, %v5126_v24  ;;  %v5219_v41 = vadd.f32 %v5184_v46, %v5127_v26  ;;  %v15384_v11 = vld [vmem:[#allocation48_spill] sm:$0xff] }
 0x4d9   : > { %v5220_v51 = vadd.f32 %v5188_v29, %v5128_v56  ;;  %v5228_v5 = vmul.f32 %v15379_v33, %v15378_v55  ;;  %v5229_v37 = vmul.f32 %v15380_v59, %v15378_v55  ;;  %v5230_v13 = vmul.f32 %v15381_v23, %v15378_v55 }
 0x4da   : > { %v5231_v30 = vmul.f32 %v15382_v43, %v15378_v55  ;;  %v5232_v27 = vmul.f32 %v15383_v22, %v15378_v55  ;;  %v5233_v21 = vmul.f32 %v15384_v11, %v15378_v55  ;;  %v5234_v39 = vmul.f32 %v12341_v16, %v15378_v55 }
 0x4db   : > { %v5235_v8 = vmul.f32 %v12349_v2, %v15378_v55  ;;  %v5221_v24 = vadd.f32 %v5187_v42, %v5129_v60  ;;  %v5244_v26 = vrot.slane %v5228_v5, 3  ;;  %v5245_v56 = vrot.slane %v5229_v37, 3 }
 0x4dc   : > { %v5246_v32 = vrot.slane %v5230_v13, 3  ;;  %v5222_v9 = vadd.f32 %v5191_v63, %v5130_v14  ;;  %v5223_v18 = vadd.f32 %v5190_v40, %v5131_v36  ;;  %v5247_v3 = vrot.slane %v5231_v30, 3  ;;  %v15385_v14 = vld [vmem:[#allocation25_spill] sm:$0xff] }
 0x4dd   : > { %v5248_v34 = vrot.slane %v5232_v27, 3  ;;  %v5249_v47 = vrot.slane %v5233_v21, 3  ;;  %v5250_v7 = vrot.slane %v5234_v39, 3  ;;  %v5251_v62 = vrot.slane %v5235_v8, 3 }
 0x4de   : > { %v5260_v53 = vadd.f32 %v5244_v26, %v5208_v61  ;;  %v5261_v28 = vadd.f32 %v5244_v26, %v5209_v12  ;;  %v5262_v4 = vadd.f32 %v5245_v56, %v5210_v25  ;;  %v5263_v46 = vadd.f32 %v5245_v56, %v5211_v48 }
 0x4df   : > { %v5264_v35 = vadd.f32 %v5246_v32, %v5212_v1  ;;  %v5265_v52 = vadd.f32 %v5246_v32, %v5213_v58  ;;  %v5266_v57 = vadd.f32 %v5247_v3, %v5214_v38  ;;  %v5267_v0 = vadd.f32 %v5247_v3, %v5215_v19 }
 0x4e0   : > { %v5268_v10 = vadd.f32 %v5248_v34, %v5216_v20  ;;  %v5269_v60 = vadd.f32 %v5248_v34, %v5217_v54  ;;  %v5270_v42 = vadd.f32 %v5249_v47, %v5218_v44  ;;  %v5271_v45 = vadd.f32 %v5249_v47, %v5219_v41  ;;  %v12910_v34 = vld [vmem:[#allocation14 + $0x18] sm:$0x7f] }
 0x4e1   : > { %v5272_v15 = vadd.f32 %v5250_v7, %v5220_v51  ;;  %v5280_v36 = vmul.f32 %v15380_v59, %v15385_v14  ;;  %v5281_v40 = vmul.f32 %v15381_v23, %v15385_v14  ;;  %v5282_v29 = vmul.f32 %v15382_v43, %v15385_v14  ;;  %15387 = vst [vmem:[#allocation49_spill] sm:$0xff] %v12910_v34 }
 0x4e2   : > { %v5283_v61 = vmul.f32 %v15383_v22, %v15385_v14  ;;  %v5284_v12 = vmul.f32 %v15384_v11, %v15385_v14  ;;  %v5285_v63 = vmul.f32 %v12341_v16, %v15385_v14  ;;  %v5286_v25 = vmul.f32 %v12349_v2, %v15385_v14 }
 0x4e3   : > { %v5287_v48 = vmul.f32 %v15351_v6, %v15385_v14  ;;  %v5273_v1 = vadd.f32 %v5250_v7, %v5221_v24  ;;  %v5274_v58 = vadd.f32 %v5251_v62, %v5222_v9  ;;  %v5296_v38 = vrot.slane %v5280_v36, 3  ;;  %v8698_v9 = vld [vmem:[#allocation14 + $0x10] sm:$0x7f]  ;;  %v15388_v7 = vld [vmem:[#allocation77_spill] sm:$0xff] }
 0x4e4   : > { %v5297_v19 = vrot.slane %v5281_v40, 3  ;;  %v5275_v20 = vadd.f32 %v5251_v62, %v5223_v18  ;;  %v5298_v54 = vrot.slane %v5282_v29, 3  ;;  %v5299_v44 = vrot.slane %v5283_v61, 3  ;;  %v15386_v18 = vld [vmem:[#allocation24_spill] sm:$0xff]  ;;  %v12939_v36 = vld [vmem:[#allocation2 + $0xe0] sm:$0xff] }
 0x4e5   : > { %v5300_v41 = vrot.slane %v5284_v12, 3  ;;  %v5301_v51 = vrot.slane %v5285_v63, 3  ;;  %v5302_v55 = vrot.slane %v5286_v25, 3  ;;  %v5303_v33 = vrot.slane %v5287_v48, 3  ;;  %15393 = vst [vmem:[#allocation28_spill] sm:$0xff] %v12939_v36  ;;  %v15394_v61 = vld [vmem:[#allocation80_spill] sm:$0xff] }
 0x4e6   : > { %v5312_v5 = vadd.f32 %v5296_v38, %v5260_v53  ;;  %v5313_v59 = vadd.f32 %v5296_v38, %v5261_v28  ;;  %v5314_v16 = vadd.f32 %v5297_v19, %v5262_v4  ;;  %v5315_v37 = vadd.f32 %v5297_v19, %v5263_v46  ;;  %v15389_v53 = vld [vmem:[#allocation50_spill] sm:$0xff]  ;;  %v8704_v29 = vld [vmem:[#allocation14] sm:$0x7f]  ;;  %v15395_v63 = vld [vmem:[#allocation39_spill] sm:$0xff] }
 0x4e7   : > { %v5316_v13 = vadd.f32 %v5298_v54, %v5264_v35  ;;  %v5317_v2 = vadd.f32 %v5298_v54, %v5265_v52  ;;  %v5318_v30 = vadd.f32 %v5299_v44, %v5266_v57  ;;  %v5319_v27 = vadd.f32 %v5299_v44, %v5267_v0  ;;  %v15390_v4 = vld [vmem:[#allocation30_spill] sm:$0xff] }
 0x4e8   : > { %v5320_v6 = vadd.f32 %v5300_v41, %v5268_v10  ;;  %v5321_v21 = vadd.f32 %v5300_v41, %v5269_v60  ;;  %v5322_v39 = vadd.f32 %v5301_v51, %v5270_v42  ;;  %v5323_v8 = vadd.f32 %v5301_v51, %v5271_v45  ;;  %v12930_v10 = vld [vmem:[#allocation2 + $0x98] sm:$0xff]  ;;  %v12933_v42 = vld [vmem:[#allocation2 + $0xb0] sm:$0xff] }
 0x4e9   : > { %v5324_v24 = vadd.f32 %v5302_v55, %v5272_v15  ;;  %v5325_v26 = vadd.f32 %v5302_v55, %v5273_v1  ;;  %v5326_v56 = vadd.f32 %v5303_v33, %v5274_v58  ;;  %v5327_v32 = vadd.f32 %v5303_v33, %v5275_v20  ;;  %15391 = vst [vmem:[#allocation53_spill] sm:$0xff] %v12933_v42  ;;  %v12936_v15 = vld [vmem:[#allocation2 + $0xc8] sm:$0xff] }
 0x4ea   : > { %v5331_v3 = vrot.slane %v8698_v9, %v15386_v18  ;;  %v5383_v47 = vrot.slane %v12910_v34, %v15386_v18  ;;  %v12916_v62 = vrot.slane %v15388_v7, %v15386_v18  ;;  %v12920_v28 = vrot.slane %v15389_v53, %v15386_v18  ;;  %15392 = vst [vmem:[#allocation75_spill] sm:$0xff] %v12936_v15 }
 0x4eb   : > { %v12924_v46 = vrot.slane %v15390_v4, %v15386_v18  ;;  %v12943_v12 = vrot.slane %v8704_v29, %v15394_v61  ;;  %v12947_v25 = vrot.slane %v15395_v63, %v15394_v61  ;;  %v12950_v48 = vrot.slane %v8698_v9, %v15394_v61 }
 0x4ec   : > { %v5332_v35 = vmul.f32 %v15381_v23, %v5331_v3  ;;  %v5333_v52 = vmul.f32 %v15382_v43, %v5331_v3  ;;  %v5334_v57 = vmul.f32 %v15383_v22, %v5331_v3  ;;  %v5335_v0 = vmul.f32 %v15384_v11, %v5331_v3 }
 0x4ed   : > { %v5336_v60 = vmul.f32 %v12930_v10, %v5331_v3  ;;  %v5337_v45 = vmul.f32 %v12933_v42, %v5331_v3  ;;  %v5338_v14 = vmul.f32 %v12936_v15, %v5331_v3  ;;  %v5339_v23 = vmul.f32 %v12939_v36, %v5331_v3  ;;  %15396 = vst [vmem:[#allocation45_spill] sm:$0xff] %v12950_v48 }
 0x4ee   : > { %v5348_v40 = vrot.slane %v5332_v35, 3  ;;  %v5349_v1 = vrot.slane %v5333_v52, 3  ;;  %v5350_v58 = vrot.slane %v5334_v57, 3  ;;  %v5351_v38 = vrot.slane %v5335_v0, 3 }
 0x4ef   : > { %v5352_v19 = vrot.slane %v5336_v60, 3  ;;  %v5353_v20 = vrot.slane %v5337_v45, 3  ;;  %v5354_v54 = vrot.slane %v5338_v14, 3  ;;  %v5355_v44 = vrot.slane %v5339_v23, 3 }
 0x4f0   : > { %v5364_v41 = vadd.f32 %v5348_v40, %v5312_v5  ;;  %v5365_v51 = vadd.f32 %v5348_v40, %v5313_v59  ;;  %v5366_v55 = vadd.f32 %v5349_v1, %v5314_v16  ;;  %v5367_v33 = vadd.f32 %v5349_v1, %v5315_v37 }
 0x4f1   : > { %v5368_v18 = vadd.f32 %v5350_v58, %v5316_v13  ;;  %v5369_v3 = vadd.f32 %v5350_v58, %v5317_v2  ;;  %v5370_v7 = vadd.f32 %v5351_v38, %v5318_v30  ;;  %v5371_v53 = vadd.f32 %v5351_v38, %v5319_v27 }
 0x4f2   : > { %v5372_v4 = vadd.f32 %v5352_v19, %v5320_v6  ;;  %v5373_v35 = vadd.f32 %v5352_v19, %v5321_v21  ;;  %v5374_v29 = vadd.f32 %v5353_v20, %v5322_v39  ;;  %v5375_v9 = vadd.f32 %v5353_v20, %v5323_v8  ;;  %v12960_v20 = vld [vmem:[#allocation2 + $0x68] sm:$0xff] }
 0x4f3   : > { %v5376_v63 = vadd.f32 %v5354_v54, %v5324_v24  ;;  %v5384_v52 = vmul.f32 %v15382_v43, %v5383_v47  ;;  %v5385_v57 = vmul.f32 %v15383_v22, %v5383_v47  ;;  %v5386_v0 = vmul.f32 %v15384_v11, %v5383_v47 }
 0x4f4   : > { %v5387_v5 = vmul.f32 %v12930_v10, %v5383_v47  ;;  %v5388_v59 = vmul.f32 %v12933_v42, %v5383_v47  ;;  %v5389_v16 = vmul.f32 %v12936_v15, %v5383_v47  ;;  %v5390_v37 = vmul.f32 %v12939_v36, %v5383_v47 }
 0x4f5   : > { %v5391_v13 = vmul.f32 %v15370_v17, %v5383_v47  ;;  %v5377_v2 = vadd.f32 %v5354_v54, %v5325_v26  ;;  %v5378_v30 = vadd.f32 %v5355_v44, %v5326_v56  ;;  %v5379_v27 = vadd.f32 %v5355_v44, %v5327_v32  ;;  %v12964_v44 = vld [vmem:[#allocation2 + $0x80] sm:$0xff] }
 0x4f6   : > { %v5400_v6 = vrot.slane %v5384_v52, 3  ;;  %v5401_v21 = vrot.slane %v5385_v57, 3  ;;  %v5402_v43 = vrot.slane %v5386_v0, 3  ;;  %v5403_v39 = vrot.slane %v5387_v5, 3 }
 0x4f7   : > { %v5404_v22 = vrot.slane %v5388_v59, 3  ;;  %v5405_v8 = vrot.slane %v5389_v16, 3  ;;  %v5406_v11 = vrot.slane %v5390_v37, 3  ;;  %v5407_v24 = vrot.slane %v5391_v13, 3 }
 0x4f8   : > { %v5416_v60 = vadd.f32 %v5400_v6, %v5364_v41  ;;  %v5417_v45 = vadd.f32 %v5400_v6, %v5365_v51  ;;  %v5418_v14 = vadd.f32 %v5401_v21, %v5366_v55  ;;  %v5419_v23 = vadd.f32 %v5401_v21, %v5367_v33 }
 0x4f9   : > { %v5420_v40 = vadd.f32 %v5402_v43, %v5368_v18  ;;  %v5421_v1 = vadd.f32 %v5402_v43, %v5369_v3  ;;  %v5422_v58 = vadd.f32 %v5403_v39, %v5370_v7  ;;  %v5423_v38 = vadd.f32 %v5403_v39, %v5371_v53 }
 0x4fa   : > { %v5424_v47 = vadd.f32 %v5404_v22, %v5372_v4  ;;  %v5425_v26 = vadd.f32 %v5404_v22, %v5373_v35  ;;  %v5426_v56 = vadd.f32 %v5405_v8, %v5374_v29  ;;  %v5427_v32 = vadd.f32 %v5405_v8, %v5375_v9 }
 0x4fb   : > { %v5428_v19 = vadd.f32 %v5406_v11, %v5376_v63  ;;  %v5436_v54 = vmul.f32 %v12960_v20, %v12916_v62  ;;  %v5437_v41 = vmul.f32 %v12964_v44, %v12916_v62  ;;  %v5438_v51 = vmul.f32 %v12930_v10, %v12916_v62 }
 0x4fc   : > { %v5439_v55 = vmul.f32 %v12933_v42, %v12916_v62  ;;  %v5440_v33 = vmul.f32 %v12936_v15, %v12916_v62  ;;  %v5441_v18 = vmul.f32 %v12939_v36, %v12916_v62  ;;  %v5442_v3 = vmul.f32 %v15370_v17, %v12916_v62 }
 0x4fd   : > { %v5443_v7 = vmul.f32 %v15376_v31, %v12916_v62  ;;  %v5429_v53 = vadd.f32 %v5406_v11, %v5377_v2  ;;  %v5430_v4 = vadd.f32 %v5407_v24, %v5378_v30  ;;  %v5431_v35 = vadd.f32 %v5407_v24, %v5379_v27 }
 0x4fe   : > { %v5452_v29 = vrot.slane %v5436_v54, 3  ;;  %v5453_v9 = vrot.slane %v5437_v41, 3  ;;  %v5454_v63 = vrot.slane %v5438_v51, 3  ;;  %v5455_v52 = vrot.slane %v5439_v55, 3 }
 0x4ff   : > { %v5456_v57 = vrot.slane %v5440_v33, 3  ;;  %v5457_v0 = vrot.slane %v5441_v18, 3  ;;  %v5458_v5 = vrot.slane %v5442_v3, 3  ;;  %v5459_v59 = vrot.slane %v5443_v7, 3 }
 0x500   : > { %v5468_v16 = vadd.f32 %v5452_v29, %v5416_v60  ;;  %v5469_v37 = vadd.f32 %v5452_v29, %v5417_v45  ;;  %v5470_v13 = vadd.f32 %v5453_v9, %v5418_v14  ;;  %v5471_v6 = vadd.f32 %v5453_v9, %v5419_v23 }
 0x501   : > { %v5472_v21 = vadd.f32 %v5454_v63, %v5420_v40  ;;  %v5473_v43 = vadd.f32 %v5454_v63, %v5421_v1  ;;  %v5474_v39 = vadd.f32 %v5455_v52, %v5422_v58  ;;  %v5475_v22 = vadd.f32 %v5455_v52, %v5423_v38 }
 0x502   : > { %v5476_v62 = vadd.f32 %v5456_v57, %v5424_v47  ;;  %v5477_v2 = vadd.f32 %v5456_v57, %v5425_v26  ;;  %v5478_v30 = vadd.f32 %v5457_v0, %v5426_v56  ;;  %v5479_v27 = vadd.f32 %v5457_v0, %v5427_v32 }
 0x503   : > { %v5480_v8 = vadd.f32 %v5458_v5, %v5428_v19  ;;  %v5488_v11 = vmul.f32 %v12964_v44, %v12920_v28  ;;  %v5489_v24 = vmul.f32 %v12930_v10, %v12920_v28  ;;  %v5490_v60 = vmul.f32 %v12933_v42, %v12920_v28 }
 0x504   : > { %v5491_v45 = vmul.f32 %v12936_v15, %v12920_v28  ;;  %v5492_v14 = vmul.f32 %v12939_v36, %v12920_v28  ;;  %v5493_v23 = vmul.f32 %v15370_v17, %v12920_v28  ;;  %v5494_v40 = vmul.f32 %v15376_v31, %v12920_v28 }
 0x505   : > { %v5495_v1 = vmul.f32 %v15377_v50, %v12920_v28  ;;  %v5481_v58 = vadd.f32 %v5458_v5, %v5429_v53  ;;  %v5482_v38 = vadd.f32 %v5459_v59, %v5430_v4  ;;  %v5483_v47 = vadd.f32 %v5459_v59, %v5431_v35 }
 0x506   : > { %v5504_v26 = vrot.slane %v5488_v11, 3  ;;  %v5505_v56 = vrot.slane %v5489_v24, 3  ;;  %v5506_v32 = vrot.slane %v5490_v60, 3  ;;  %v5507_v19 = vrot.slane %v5491_v45, 3  ;;  %v13016_v45 = vld [vmem:[#allocation2 + $0x28] sm:$0xff] }
 0x507   : > { %v5510_v54 = vrot.slane %v5494_v40, 3  ;;  %v5508_v41 = vrot.slane %v5492_v14, 3  ;;  %v5509_v51 = vrot.slane %v5493_v23, 3  ;;  %v5511_v55 = vrot.slane %v5495_v1, 3  ;;  %15398 = vst [vmem:[#allocation79_spill] sm:$0xff] %v13016_v45  ;;  %v13026_v23 = vld [vmem:[#allocation2 + $0x40] sm:$0xff] }
 0x508   : > { %v5520_v33 = vadd.f32 %v5504_v26, %v5468_v16  ;;  %v5521_v18 = vadd.f32 %v5504_v26, %v5469_v37  ;;  %v5522_v3 = vadd.f32 %v5505_v56, %v5470_v13  ;;  %v5523_v7 = vadd.f32 %v5505_v56, %v5471_v6  ;;  %15399 = vst [vmem:[#allocation46_spill] sm:$0xff] %v13026_v23  ;;  %v13028_v40 = vld [vmem:[#allocation2 + $0x58] sm:$0xff] }
 0x509   : > { %v5524_v29 = vadd.f32 %v5506_v32, %v5472_v21  ;;  %v5525_v9 = vadd.f32 %v5506_v32, %v5473_v43  ;;  %v5526_v63 = vadd.f32 %v5507_v19, %v5474_v39  ;;  %v5527_v52 = vadd.f32 %v5507_v19, %v5475_v22  ;;  %15400 = vst [vmem:[#allocation29_spill] sm:$0xff] %v13028_v40 }
 0x50a   : > { %v5528_v28 = vadd.f32 %v5508_v41, %v5476_v62  ;;  %v5529_v53 = vadd.f32 %v5508_v41, %v5477_v2  ;;  %v5530_v4 = vadd.f32 %v5509_v51, %v5478_v30  ;;  %v5531_v35 = vadd.f32 %v5509_v51, %v5479_v27  ;;  %v13048_v41 = vld [vmem:[#allocation2 + $0xa0] sm:$0xff] }
 0x50b   : > { %v5532_v57 = vadd.f32 %v5510_v54, %v5480_v8  ;;  %v5540_v0 = vmul.f32 %v12930_v10, %v12924_v46  ;;  %v5541_v5 = vmul.f32 %v12933_v42, %v12924_v46  ;;  %v5542_v59 = vmul.f32 %v12936_v15, %v12924_v46 }
 0x50c   : > { %v5543_v16 = vmul.f32 %v12939_v36, %v12924_v46  ;;  %v5544_v37 = vmul.f32 %v15370_v17, %v12924_v46  ;;  %v5545_v13 = vmul.f32 %v15376_v31, %v12924_v46  ;;  %v5546_v6 = vmul.f32 %v15377_v50, %v12924_v46  ;;  %v13014_v31 = vld [vmem:[#allocation2 + $0x10] sm:$0xff] }
 0x50d   : > { %v5547_v21 = vmul.f32 %v12865_v49, %v12924_v46  ;;  %v5533_v43 = vadd.f32 %v5510_v54, %v5481_v58  ;;  %v5534_v39 = vadd.f32 %v5511_v55, %v5482_v38  ;;  %v5535_v22 = vadd.f32 %v5511_v55, %v5483_v47  ;;  %15397 = vst [vmem:[#allocation93_spill] sm:$0xff] %v13014_v31  ;;  %v13046_v54 = vld [vmem:[#allocation2 + $0x88] sm:$0xff] }
 0x50e   : > { %v5556_v62 = vrot.slane %v5540_v0, 3  ;;  %v5557_v2 = vrot.slane %v5541_v5, 3  ;;  %v5558_v30 = vrot.slane %v5542_v59, 3  ;;  %v5561_v27 = vrot.slane %v5545_v13, 3  ;;  %v13080_v5 = vld [vmem:[#allocation2 + $0x70] sm:$0xff] }
 0x50f   : > { %v5562_v8 = vrot.slane %v5546_v6, 3  ;;  %v5559_v11 = vrot.slane %v5543_v16, 3  ;;  %v5560_v24 = vrot.slane %v5544_v37, 3  ;;  %v5563_v17 = vrot.slane %v5547_v21, 3  ;;  %15406 = vst [vmem:[#allocation26_spill] sm:$0xff] %v13080_v5 }
 0x510   : > { %v13012_v60 = vadd.f32 %v5556_v62, %v5520_v33  ;;  %v13018_v50 = vadd.f32 %v5556_v62, %v5521_v18  ;;  %v13020_v49 = vadd.f32 %v5557_v2, %v5522_v3  ;;  %v13022_v46 = vadd.f32 %v5557_v2, %v5523_v7  ;;  %v13056_v3 = vld [vmem:[#allocation2 + $0xb8] sm:$0xff]  ;;  %v13058_v7 = vld [vmem:[#allocation2 + $0x8] sm:$0xff] }
 0x511   : > { %v13024_v14 = vadd.f32 %v5558_v30, %v5524_v29  ;;  %v13030_v1 = vadd.f32 %v5558_v30, %v5525_v9  ;;  %v13032_v58 = vadd.f32 %v5559_v11, %v5526_v63  ;;  %v13034_v38 = vadd.f32 %v5559_v11, %v5527_v52  ;;  %15402 = vst [vmem:[#allocation85_spill] sm:$0xff] %v13058_v7  ;;  %v13064_v63 = vld [vmem:[#allocation2 + $0x50] sm:$0xff] }
 0x512   : > { %v13036_v47 = vadd.f32 %v5560_v24, %v5528_v28  ;;  %v13038_v26 = vadd.f32 %v5560_v24, %v5529_v53  ;;  %v13040_v56 = vadd.f32 %v5561_v27, %v5530_v4  ;;  %v13042_v32 = vadd.f32 %v5561_v27, %v5531_v35  ;;  %15403 = vst [vmem:[#allocation74_spill] sm:$0xff] %v13064_v63  ;;  %v13070_v53 = vld [vmem:[#allocation2 + $0x20] sm:$0xff]  ;;  %v13074_v35 = vld [vmem:[#allocation2 + $0x38] sm:$0xff] }
 0x513   : > { %v13044_v19 = vadd.f32 %v5562_v8, %v5532_v57  ;;  %v5585_v51 = vadd.f32 %v5562_v8, %v5533_v43  ;;  %v13050_v55 = vadd.f32 %v5563_v17, %v5534_v39  ;;  %v5593_v33 = vmul.f32 %v12943_v12, %v13014_v31  ;;  %15404 = vst [vmem:[#allocation81_spill] sm:$0xff] %v13070_v53 }
 0x514   : > { %v5595_v18 = vmul.f32 %v12943_v12, %v13016_v45  ;;  %v5592_v29 = vmul.f32 %v13058_v7, %v12943_v12  ;;  %v5597_v9 = vmul.f32 %v12943_v12, %v13026_v23  ;;  %v5598_v52 = vmul.f32 %v13064_v63, %v12943_v12  ;;  %15405 = vst [vmem:[#allocation44_spill] sm:$0xff] %v13074_v35 }
 0x515   : > { %15401 = vst [vmem:[#allocation76_spill] sm:$0xff] %v13050_v55  ;;  %v5599_v28 = vmul.f32 %v12943_v12, %v13028_v40  ;;  %v5594_v4 = vmul.f32 %v13070_v53, %v12943_v12  ;;  %v5596_v57 = vmul.f32 %v13074_v35, %v12943_v12  ;;  %v5600_v0 = vmul.f32 %v12960_v20, %v12943_v12 }
 0x516   : > { %v5601_v59 = vmul.f32 %v13080_v5, %v12943_v12  ;;  %v5602_v16 = vmul.f32 %v12964_v44, %v12943_v12  ;;  %v5603_v37 = vmul.f32 %v12943_v12, %v13046_v54  ;;  %v5604_v13 = vmul.f32 %v12930_v10, %v12943_v12 }
 0x517   : > { %v5605_v6 = vmul.f32 %v12943_v12, %v13048_v41  ;;  %v13094_v21 = vmul.f32 %v12933_v42, %v12943_v12  ;;  %v5607_v43 = vmul.f32 %v12943_v12, %v13056_v3  ;;  %v5625_v39 = vrot.slane %v5593_v33, 4 }
 0x518   : > { %v5628_v62 = vrot.slane %v5595_v18, 4  ;;  %v5624_v2 = vrot.slane %v5592_v29, 4  ;;  %v5631_v30 = vrot.slane %v5597_v9, 4  ;;  %v5633_v27 = vrot.slane %v5598_v52, 4 }
 0x519   : > { %v5634_v8 = vrot.slane %v5599_v28, 4  ;;  %v5587_v11 = vadd.f32 %v5563_v17, %v5535_v22  ;;  %v5627_v24 = vrot.slane %v5594_v4, 4  ;;  %v5636_v31 = vrot.slane %v5600_v0, 4 }
 0x51a   : > { %v5637_v7 = vrot.slane %v5601_v59, 4  ;;  %v5626_v34 = vsel %vm3093_vm6, %v5624_v2, %v5625_v39  ;;  %v5630_v61 = vrot.slane %v5596_v57, 4  ;;  %v5639_v36 = vrot.slane %v5602_v16, 4 }
 0x51b   : > { %v5640_v48 = vrot.slane %v5603_v37, 4  ;;  %v5629_v55 = vsel %vm3093_vm6, %v5627_v24, %v5628_v62  ;;  %v5642_v15 = vrot.slane %v5604_v13, 4  ;;  %v5643_v42 = vrot.slane %v5605_v6, 4  ;;  %v15410_v13 = vld [vmem:[#allocation75_spill] sm:$0xff] }
 0x51c   : > { %v5645_v12 = vrot.slane %v13094_v21, 4  ;;  %v5632_v33 = vsel %vm3093_vm6, %v5630_v61, %v5631_v30  ;;  %v5635_v18 = vsel %vm3093_vm6, %v5633_v27, %v5634_v8  ;;  %v5638_v22 = vsel %vm3093_vm6, %v5636_v31, %v5637_v7 }
 0x51d   : > { %v5646_v17 = vrot.slane %v5607_v43, 4  ;;  %v5641_v29 = vsel %vm3093_vm6, %v5639_v36, %v5640_v48  ;;  %v5644_v9 = vsel %vm3093_vm6, %v5642_v15, %v5643_v42  ;;  %v5664_v52 = vadd.f32 %v5624_v2, %v13012_v60 }
 0x51e   : > { %v5665_v28 = vadd.f32 %v5626_v34, %v13018_v50  ;;  %v5666_v57 = vadd.f32 %v5627_v24, %v13020_v49  ;;  %v5667_v0 = vadd.f32 %v5629_v55, %v13022_v46  ;;  %v5668_v59 = vadd.f32 %v5630_v61, %v13024_v14  ;;  %v15411_v24 = vld [vmem:[#allocation76_spill] sm:$0xff] }
 0x51f   : > { %v5647_v4 = vsel %vm3093_vm6, %v5645_v12, %v5646_v17  ;;  %v5669_v16 = vadd.f32 %v5632_v33, %v13030_v1  ;;  %v5670_v7 = vadd.f32 %v5633_v27, %v13032_v58  ;;  %v5671_v48 = vadd.f32 %v5635_v18, %v13034_v38 }
 0x520   : > { %v5672_v42 = vadd.f32 %v5636_v31, %v13036_v47  ;;  %v5673_v60 = vadd.f32 %v5638_v22, %v13038_v26  ;;  %v5674_v34 = vadd.f32 %v5639_v36, %v13040_v56  ;;  %v5675_v50 = vadd.f32 %v5641_v29, %v13042_v32  ;;  %v13128_v31 = vld [vmem:[#allocation2 + $0xd0] sm:$0xff] }
 0x521   : > { %v5676_v49 = vadd.f32 %v5642_v15, %v13044_v19  ;;  %v13120_v37 = vadd.f32 %v5644_v9, %v5585_v51  ;;  %v5684_v61 = vmul.f32 %v13070_v53, %v12947_v25  ;;  %v5685_v46 = vmul.f32 %v12947_v25, %v13016_v45  ;;  %15408 = vst [vmem:[#allocation82_spill] sm:$0xff] %v13128_v31  ;;  %v15409_v19 = vld [vmem:[#allocation53_spill] sm:$0xff] }
 0x522   : > { %v5687_v14 = vmul.f32 %v12947_v25, %v13026_v23  ;;  %v5688_v36 = vmul.f32 %v13064_v63, %v12947_v25  ;;  %v5689_v1 = vmul.f32 %v12947_v25, %v13028_v40  ;;  %v5690_v15 = vmul.f32 %v12960_v20, %v12947_v25 }
 0x523   : > { %15407 = vst [vmem:[#allocation34_spill] sm:$0xff] %v13120_v37  ;;  %v5691_v58 = vmul.f32 %v13080_v5, %v12947_v25  ;;  %v5686_v38 = vmul.f32 %v13074_v35, %v12947_v25  ;;  %v5692_v47 = vmul.f32 %v12964_v44, %v12947_v25  ;;  %v5693_v26 = vmul.f32 %v12947_v25, %v13046_v54 }
 0x524   : > { %v5694_v56 = vmul.f32 %v12930_v10, %v12947_v25  ;;  %v5695_v32 = vmul.f32 %v12947_v25, %v13048_v41  ;;  %v5696_v51 = vmul.f32 %v15409_v19, %v12947_v25  ;;  %v5697_v55 = vmul.f32 %v12947_v25, %v13056_v3 }
 0x525   : > { %v13154_v6 = vmul.f32 %v15410_v13, %v12947_v25  ;;  %v5699_v21 = vmul.f32 %v12947_v25, %v13128_v31  ;;  %v5716_v43 = vrot.slane %v5684_v61, 4  ;;  %v5717_v39 = vrot.slane %v5685_v46, 4 }
 0x526   : > { %v5720_v62 = vrot.slane %v5687_v14, 4  ;;  %v5722_v2 = vrot.slane %v5688_v36, 4  ;;  %v5723_v30 = vrot.slane %v5689_v1, 4  ;;  %v5725_v27 = vrot.slane %v5690_v15, 4 }
 0x527   : > { %v5726_v8 = vrot.slane %v5691_v58, 4  ;;  %v5678_v33 = vadd.f32 %v5645_v12, %v15411_v24  ;;  %v5719_v18 = vrot.slane %v5686_v38, 4  ;;  %v5728_v22 = vrot.slane %v5692_v47, 4 }
 0x528   : > { %v5729_v17 = vrot.slane %v5693_v26, 4  ;;  %v5679_v29 = vadd.f32 %v5647_v4, %v5587_v11  ;;  %v5718_v9 = vsel %vm3093_vm6, %v5716_v43, %v5717_v39  ;;  %v5731_v45 = vrot.slane %v5694_v56, 4 }
 0x529   : > { %v5732_v53 = vrot.slane %v5695_v32, 4  ;;  %v5721_v37 = vsel %vm3093_vm6, %v5719_v18, %v5720_v62  ;;  %v5734_v25 = vrot.slane %v5696_v51, 4  ;;  %v5735_v61 = vrot.slane %v5697_v55, 4 }
 0x52a   : > { %v5737_v46 = vrot.slane %v13154_v6, 4  ;;  %v5724_v14 = vsel %vm3093_vm6, %v5722_v2, %v5723_v30  ;;  %v5727_v36 = vsel %vm3093_vm6, %v5725_v27, %v5726_v8  ;;  %v5730_v12 = vsel %vm3093_vm6, %v5728_v22, %v5729_v17 }
 0x52b   : > { %v5738_v1 = vrot.slane %v5699_v21, 4  ;;  %v5733_v15 = vsel %vm3093_vm6, %v5731_v45, %v5732_v53  ;;  %v5736_v11 = vsel %vm3093_vm6, %v5734_v25, %v5735_v61  ;;  %v5756_v4 = vadd.f32 %v5716_v43, %v5664_v52  ;;  %v13168_v21 = vld [vmem:[#allocation2 + $0xe8] sm:$0xff]  ;;  %v15413_v53 = vld [vmem:[#allocation45_spill] sm:$0xff] }
 0x52c   : > { %v5757_v58 = vadd.f32 %v5718_v9, %v5665_v28  ;;  %v5758_v47 = vadd.f32 %v5719_v18, %v5666_v57  ;;  %v5759_v26 = vadd.f32 %v5721_v37, %v5667_v0  ;;  %v5760_v56 = vadd.f32 %v5722_v2, %v5668_v59  ;;  %15412 = vst [vmem:[#allocation91_spill] sm:$0xff] %v13168_v21 }
 0x52d   : > { %v5739_v38 = vsel %vm3093_vm6, %v5737_v46, %v5738_v1  ;;  %v5761_v32 = vadd.f32 %v5724_v14, %v5669_v16  ;;  %v5762_v51 = vadd.f32 %v5725_v27, %v5670_v7  ;;  %v5763_v55 = vadd.f32 %v5727_v36, %v5671_v48  ;;  %v15415_v14 = vld [vmem:[#allocation34_spill] sm:$0xff] }
 0x52e   : > { %v5764_v6 = vadd.f32 %v5728_v22, %v5672_v42  ;;  %v5765_v39 = vadd.f32 %v5730_v12, %v5673_v60  ;;  %v5766_v62 = vadd.f32 %v5731_v45, %v5674_v34  ;;  %v5767_v30 = vadd.f32 %v5733_v15, %v5675_v50 }
 0x52f   : > { %v5768_v8 = vadd.f32 %v5734_v25, %v5676_v49  ;;  %v5776_v24 = vmul.f32 %v13074_v35, %v15413_v53  ;;  %v5777_v52 = vmul.f32 %v15413_v53, %v13026_v23  ;;  %v5778_v28 = vmul.f32 %v13064_v63, %v15413_v53  ;;  %v15414_v49 = vld [vmem:[#allocation28_spill] sm:$0xff] }
 0x530   : > { %v5779_v57 = vmul.f32 %v15413_v53, %v13028_v40  ;;  %v5780_v0 = vmul.f32 %v12960_v20, %v15413_v53  ;;  %v5781_v45 = vmul.f32 %v13080_v5, %v15413_v53  ;;  %v5782_v59 = vmul.f32 %v12964_v44, %v15413_v53 }
 0x531   : > { %v5783_v16 = vmul.f32 %v15413_v53, %v13046_v54  ;;  %v5784_v7 = vmul.f32 %v12930_v10, %v15413_v53  ;;  %v5785_v48 = vmul.f32 %v15413_v53, %v13048_v41  ;;  %v5786_v42 = vmul.f32 %v15409_v19, %v15413_v53 }
 0x532   : > { %v5787_v60 = vmul.f32 %v15413_v53, %v13056_v3  ;;  %v5788_v34 = vmul.f32 %v15410_v13, %v15413_v53  ;;  %v5789_v50 = vmul.f32 %v15413_v53, %v13128_v31  ;;  %v5790_v37 = vmul.f32 %v15414_v49, %v15413_v53 }
 0x533   : > { %v5791_v43 = vmul.f32 %v15413_v53, %v13168_v21  ;;  %v5808_v2 = vrot.slane %v5776_v24, 4  ;;  %v5809_v27 = vrot.slane %v5777_v52, 4  ;;  %v5811_v18 = vrot.slane %v5778_v28, 4 }
 0x534   : > { %v5812_v22 = vrot.slane %v5779_v57, 4  ;;  %v5814_v17 = vrot.slane %v5780_v0, 4  ;;  %v5815_v9 = vrot.slane %v5781_v45, 4  ;;  %v5817_v25 = vrot.slane %v5782_v59, 4 }
 0x535   : > { %v5818_v61 = vrot.slane %v5783_v16, 4  ;;  %v5769_v36 = vadd.f32 %v5736_v11, %v15415_v14  ;;  %v5770_v12 = vadd.f32 %v5737_v46, %v5678_v33  ;;  %v5820_v1 = vrot.slane %v5784_v7, 4 }
 0x536   : > { %v5821_v15 = vrot.slane %v5785_v48, 4  ;;  %v5771_v23 = vadd.f32 %v5739_v38, %v5679_v29  ;;  %v5810_v35 = vsel %vm3093_vm6, %v5808_v2, %v5809_v27  ;;  %v5823_v49 = vrot.slane %v5786_v42, 4 }
 0x537   : > { %v5824_v31 = vrot.slane %v5787_v60, 4  ;;  %v5813_v53 = vsel %vm3093_vm6, %v5811_v18, %v5812_v22  ;;  %v5826_v24 = vrot.slane %v5788_v34, 4  ;;  %v5827_v52 = vrot.slane %v5789_v50, 4  ;;  %v15417_v50 = vld [vmem:[#allocation49_spill] sm:$0xff] }
 0x538   : > { %v5829_v28 = vrot.slane %v5790_v37, 4  ;;  %v5816_v57 = vsel %vm3093_vm6, %v5814_v17, %v5815_v9  ;;  %v5819_v0 = vsel %vm3093_vm6, %v5817_v25, %v5818_v61  ;;  %v5822_v45 = vsel %vm3093_vm6, %v5820_v1, %v5821_v15  ;;  %v13245_v37 = vld [vmem:[#allocation14 + $0x20] sm:$0x7f] }
 0x539   : > { %v5830_v11 = vrot.slane %v5791_v43, 4  ;;  %v5825_v33 = vsel %vm3093_vm6, %v5823_v49, %v5824_v31  ;;  %v5828_v29 = vsel %vm3093_vm6, %v5826_v24, %v5827_v52  ;;  %v13210_v46 = vadd.f32 %v5808_v2, %v5756_v4  ;;  %15418 = vst [vmem:[#allocation57_spill] sm:$0xff] %v13245_v37  ;;  %v13266_v43 = vld [vmem:[#allocation2 + $0x100] sm:$0xff] }
 0x53a   : > { %v13212_v38 = vadd.f32 %v5810_v35, %v5757_v58  ;;  %v13215_v16 = vadd.f32 %v5811_v18, %v5758_v47  ;;  %v13217_v7 = vadd.f32 %v5813_v53, %v5759_v26  ;;  %v13219_v48 = vadd.f32 %v5814_v17, %v5760_v56  ;;  %15424 = vst [vmem:[#allocation54_spill] sm:$0xff] %v13266_v43  ;;  %v15426_v53 = vld [vmem:[#allocation28_spill] sm:$0xff] }
 0x53b   : > { %v5831_v59 = vsel %vm3093_vm6, %v5829_v28, %v5830_v11  ;;  %v13221_v42 = vadd.f32 %v5816_v57, %v5761_v32  ;;  %v13223_v60 = vadd.f32 %v5817_v25, %v5762_v51  ;;  %v13225_v34 = vadd.f32 %v5819_v0, %v5763_v55  ;;  %v15416_v51 = vld [vmem:[#allocation80_spill] sm:$0xff] }
 0x53c   : > { %v13227_v31 = vadd.f32 %v5820_v1, %v5764_v6  ;;  %v13229_v4 = vadd.f32 %v5822_v45, %v5765_v39  ;;  %v13231_v35 = vadd.f32 %v5823_v49, %v5766_v62  ;;  %v13233_v58 = vadd.f32 %v5825_v33, %v5767_v30  ;;  %v13251_v39 = vld [vmem:[#allocation14 + $0x28] sm:$0x7f]  ;;  %v13257_v30 = vld [vmem:[#allocation14 + $0x30] sm:$0x7f] }
 0x53d   : > { %v13235_v47 = vadd.f32 %v5826_v24, %v5768_v8  ;;  %v13237_v26 = vadd.f32 %v5828_v29, %v5769_v36  ;;  %v13239_v56 = vadd.f32 %v5829_v28, %v5770_v12  ;;  %v13241_v32 = vadd.f32 %v5831_v59, %v5771_v23  ;;  %15419 = vst [vmem:[#allocation94_spill] sm:$0xff] %v13251_v39  ;;  %v15422_v8 = vld [vmem:[#allocation32_spill] sm:$0xff]  ;;  %v15425_v1 = vld [vmem:[#allocation82_spill] sm:$0xff] }
 0x53e   : > { %v5867_v55 = vrot.slane %v15417_v50, %v15416_v51  ;;  %v13249_v6 = vrot.slane %v13245_v37, %v15416_v51  ;;  %v13255_v62 = vrot.slane %v13251_v39, %v15416_v51  ;;  %15420 = vst [vmem:[#allocation83_spill] sm:$0xff] %v13257_v30  ;;  %v13261_v23 = vrot.slane %v13257_v30, %v15416_v51  ;;  %v13282_v28 = vld [vmem:[#allocation2 + $0xf8] sm:$0xff] }
 0x53f   : > { %v13264_v49 = vsub.s32 5, %v15422_v8  ;;  %15427 = vst [vmem:[#allocation47_spill] sm:$0xff] %v13282_v28 }
 0x540   : > { %15421 = vst [vmem:[#allocation66_spill] sm:$0xff] %v13261_v23  ;;  %v5868_v2 = vmul.f32 %v13064_v63, %v5867_v55  ;;  %v5869_v27 = vmul.f32 %v5867_v55, %v13028_v40  ;;  %v5870_v18 = vmul.f32 %v12960_v20, %v5867_v55  ;;  %v5871_v22 = vmul.f32 %v13080_v5, %v5867_v55 }
 0x541   : > { %15423 = vst [vmem:[#allocation73_spill] sm:$0xff] %v13264_v49  ;;  %v5872_v17 = vmul.f32 %v12964_v44, %v5867_v55  ;;  %v5873_v9 = vmul.f32 %v5867_v55, %v13046_v54  ;;  %v5874_v25 = vmul.f32 %v12930_v10, %v5867_v55  ;;  %v5875_v61 = vmul.f32 %v5867_v55, %v13048_v41 }
 0x542   : > { %v5876_v14 = vmul.f32 %v15409_v19, %v5867_v55  ;;  %v5877_v36 = vmul.f32 %v5867_v55, %v13056_v3  ;;  %v5878_v12 = vmul.f32 %v15410_v13, %v5867_v55  ;;  %v5879_v15 = vmul.f32 %v5867_v55, %v15425_v1 }
 0x543   : > { %v5880_v24 = vmul.f32 %v15426_v53, %v5867_v55  ;;  %v5881_v52 = vmul.f32 %v5867_v55, %v13168_v21  ;;  %v5882_v57 = vmul.f32 %v13282_v28, %v5867_v55  ;;  %v5883_v0 = vmul.f32 %v5867_v55, %v13266_v43 }
 0x544   : > { %v5900_v45 = vrot.slane %v5868_v2, 4  ;;  %v5901_v11 = vrot.slane %v5869_v27, 4  ;;  %v5903_v33 = vrot.slane %v5870_v18, 4  ;;  %v5904_v29 = vrot.slane %v5871_v22, 4 }
 0x545   : > { %v5906_v59 = vrot.slane %v5872_v17, 4  ;;  %v5907_v51 = vrot.slane %v5873_v9, 4  ;;  %v5909_v50 = vrot.slane %v5874_v25, 4  ;;  %v5910_v40 = vrot.slane %v5875_v61, 4 }
 0x546   : > { %v5902_v63 = vsel %vm3093_vm6, %v5900_v45, %v5901_v11  ;;  %v5905_v8 = vsel %vm3093_vm6, %v5903_v33, %v5904_v29  ;;  %v5912_v30 = vrot.slane %v5876_v14, 4  ;;  %v5913_v39 = vrot.slane %v5877_v36, 4 }
 0x547   : > { %v5908_v37 = vsel %vm3093_vm6, %v5906_v59, %v5907_v51  ;;  %v5911_v49 = vsel %vm3093_vm6, %v5909_v50, %v5910_v40  ;;  %v5915_v23 = vrot.slane %v5878_v12, 4  ;;  %v5916_v55 = vrot.slane %v5879_v15, 4 }
 0x548   : > { %v5914_v2 = vsel %vm3093_vm6, %v5912_v30, %v5913_v39  ;;  %v5918_v27 = vrot.slane %v5880_v24, 4  ;;  %v5919_v18 = vrot.slane %v5881_v52, 4  ;;  %v5921_v22 = vrot.slane %v5882_v57, 4  ;;  %v13340_v57 = vld [vmem:[#allocation2 + $0x110] sm:$0xff] }
 0x549   : > { %v5917_v17 = vsel %vm3093_vm6, %v5915_v23, %v5916_v55  ;;  %v5922_v9 = vrot.slane %v5883_v0, 4  ;;  %v5940_v25 = vadd.f32 %v5900_v45, %v13210_v46  ;;  %v5941_v61 = vadd.f32 %v5902_v63, %v13212_v38  ;;  %15429 = vst [vmem:[#allocation52_spill] sm:$0xff] %v13340_v57 }
 0x54a   : > { %v5920_v14 = vsel %vm3093_vm6, %v5918_v27, %v5919_v18  ;;  %v5942_v36 = vadd.f32 %v5903_v33, %v13215_v16  ;;  %v5943_v40 = vadd.f32 %v5905_v8, %v13217_v7  ;;  %v5944_v12 = vadd.f32 %v5906_v59, %v13219_v48 }
 0x54b   : > { %v5923_v39 = vsel %vm3093_vm6, %v5921_v22, %v5922_v9  ;;  %v5945_v15 = vadd.f32 %v5908_v37, %v13221_v42  ;;  %v5946_v24 = vadd.f32 %v5909_v50, %v13223_v60  ;;  %v5947_v52 = vadd.f32 %v5911_v49, %v13225_v34  ;;  %v13310_v37 = vld [vmem:[#allocation2 + $0x118] sm:$0xff] }
 0x54c   : > { %v5948_v46 = vadd.f32 %v5912_v30, %v13227_v31  ;;  %v5949_v63 = vadd.f32 %v5914_v2, %v13229_v4  ;;  %v5950_v38 = vadd.f32 %v5915_v23, %v13231_v35  ;;  %v5951_v16 = vadd.f32 %v5917_v17, %v13233_v58  ;;  %15428 = vst [vmem:[#allocation55_spill] sm:$0xff] %v13310_v37 }
 0x54d   : > { %v5952_v7 = vadd.f32 %v5918_v27, %v13235_v47  ;;  %v5953_v48 = vadd.f32 %v5920_v14, %v13237_v26  ;;  %v5954_v8 = vadd.f32 %v5921_v22, %v13239_v56  ;;  %v5955_v42 = vadd.f32 %v5923_v39, %v13241_v32 }
 0x54e   : > { %v5960_v60 = vmul.f32 %v12960_v20, %v13249_v6  ;;  %v5961_v34 = vmul.f32 %v13080_v5, %v13249_v6  ;;  %v5962_v31 = vmul.f32 %v12964_v44, %v13249_v6  ;;  %v5963_v4 = vmul.f32 %v13249_v6, %v13046_v54 }
 0x54f   : > { %v5964_v35 = vmul.f32 %v12930_v10, %v13249_v6  ;;  %v5965_v58 = vmul.f32 %v13249_v6, %v13048_v41  ;;  %v5966_v47 = vmul.f32 %v15409_v19, %v13249_v6  ;;  %v5967_v20 = vmul.f32 %v13249_v6, %v13056_v3 }
 0x550   : > { %v5968_v26 = vmul.f32 %v15410_v13, %v13249_v6  ;;  %v5969_v56 = vmul.f32 %v13249_v6, %v15425_v1  ;;  %v5970_v32 = vmul.f32 %v15426_v53, %v13249_v6  ;;  %v5971_v30 = vmul.f32 %v13249_v6, %v13168_v21 }
 0x551   : > { %v5972_v23 = vmul.f32 %v13282_v28, %v13249_v6  ;;  %v5973_v49 = vmul.f32 %v13249_v6, %v13266_v43  ;;  %v5974_v0 = vmul.f32 %v13340_v57, %v13249_v6  ;;  %v5975_v45 = vmul.f32 %v13249_v6, %v13310_v37 }
 0x552   : > { %v5992_v11 = vrot.slane %v5960_v60, 4  ;;  %v5993_v33 = vrot.slane %v5961_v34, 4  ;;  %v5995_v29 = vrot.slane %v5962_v31, 4  ;;  %v5996_v59 = vrot.slane %v5963_v4, 4 }
 0x553   : > { %v5998_v51 = vrot.slane %v5964_v35, 4  ;;  %v5999_v50 = vrot.slane %v5965_v58, 4  ;;  %v6001_v55 = vrot.slane %v5966_v47, 4  ;;  %v6002_v2 = vrot.slane %v5967_v20, 4 }
 0x554   : > { %v5994_v27 = vsel %vm3093_vm6, %v5992_v11, %v5993_v33  ;;  %v5997_v18 = vsel %vm3093_vm6, %v5995_v29, %v5996_v59  ;;  %v6004_v22 = vrot.slane %v5968_v26, 4  ;;  %v6005_v17 = vrot.slane %v5969_v56, 4 }
 0x555   : > { %v6000_v9 = vsel %vm3093_vm6, %v5998_v51, %v5999_v50  ;;  %v6003_v14 = vsel %vm3093_vm6, %v6001_v55, %v6002_v2  ;;  %v6007_v39 = vrot.slane %v5970_v32, 4  ;;  %v6008_v6 = vrot.slane %v5971_v30, 4 }
 0x556   : > { %v6006_v60 = vsel %vm3093_vm6, %v6004_v22, %v6005_v17  ;;  %v6010_v34 = vrot.slane %v5972_v23, 4  ;;  %v6011_v31 = vrot.slane %v5973_v49, 4  ;;  %v6013_v4 = vrot.slane %v5974_v0, 4 }
 0x557   : > { %v6009_v35 = vsel %vm3093_vm6, %v6007_v39, %v6008_v6  ;;  %v6014_v58 = vrot.slane %v5975_v45, 4  ;;  %v6032_v47 = vadd.f32 %v5992_v11, %v5940_v25  ;;  %v6033_v20 = vadd.f32 %v5994_v27, %v5941_v61  ;;  %v13354_v25 = vld [vmem:[#allocation2 + $0x130] sm:$0xff] }
 0x558   : > { %v6012_v33 = vsel %vm3093_vm6, %v6010_v34, %v6011_v31  ;;  %v6034_v26 = vadd.f32 %v5995_v29, %v5942_v36  ;;  %v6035_v56 = vadd.f32 %v5997_v18, %v5943_v40  ;;  %v6036_v59 = vadd.f32 %v5998_v51, %v5944_v12  ;;  %15430 = vst [vmem:[#allocation61_spill] sm:$0xff] %v13354_v25 }
 0x559   : > { %v6015_v50 = vsel %vm3093_vm6, %v6013_v4, %v6014_v58  ;;  %v6037_v2 = vadd.f32 %v6000_v9, %v5945_v15  ;;  %v6038_v32 = vadd.f32 %v6001_v55, %v5946_v24  ;;  %v6039_v30 = vadd.f32 %v6003_v14, %v5947_v52 }
 0x55a   : > { %v6040_v5 = vadd.f32 %v6004_v22, %v5948_v46  ;;  %v6041_v17 = vadd.f32 %v6006_v60, %v5949_v63  ;;  %v6042_v23 = vadd.f32 %v6007_v39, %v5950_v38  ;;  %v6043_v49 = vadd.f32 %v6009_v35, %v5951_v16  ;;  %v15431_v16 = vld [vmem:[#allocation55_spill] sm:$0xff] }
 0x55b   : > { %v6044_v0 = vadd.f32 %v6010_v34, %v5952_v7  ;;  %v6045_v37 = vadd.f32 %v6012_v33, %v5953_v48  ;;  %v6046_v6 = vadd.f32 %v6013_v4, %v5954_v8  ;;  %v6047_v45 = vadd.f32 %v6015_v50, %v5955_v42  ;;  %v13384_v7 = vld [vmem:[#allocation2 + $0x128] sm:$0xff] }
 0x55c   : > { %v6052_v61 = vmul.f32 %v12964_v44, %v13255_v62  ;;  %v6053_v36 = vmul.f32 %v13255_v62, %v13046_v54  ;;  %v6054_v40 = vmul.f32 %v12930_v10, %v13255_v62  ;;  %v6055_v12 = vmul.f32 %v13255_v62, %v13048_v41  ;;  %15432 = vst [vmem:[#allocation59_spill] sm:$0xff] %v13384_v7 }
 0x55d   : > { %v6056_v15 = vmul.f32 %v15409_v19, %v13255_v62  ;;  %v6057_v24 = vmul.f32 %v13255_v62, %v13056_v3  ;;  %v6058_v52 = vmul.f32 %v15410_v13, %v13255_v62  ;;  %v6059_v44 = vmul.f32 %v13255_v62, %v15425_v1 }
 0x55e   : > { %v6060_v46 = vmul.f32 %v15426_v53, %v13255_v62  ;;  %v6061_v10 = vmul.f32 %v13255_v62, %v13168_v21  ;;  %v6062_v63 = vmul.f32 %v13282_v28, %v13255_v62  ;;  %v6063_v19 = vmul.f32 %v13255_v62, %v13266_v43 }
 0x55f   : > { %v6064_v38 = vmul.f32 %v13340_v57, %v13255_v62  ;;  %v6065_v13 = vmul.f32 %v13255_v62, %v15431_v16  ;;  %v6066_v53 = vmul.f32 %v13384_v7, %v13255_v62  ;;  %v6067_v48 = vmul.f32 %v13255_v62, %v13354_v25 }
 0x560   : > { %v6084_v8 = vrot.slane %v6052_v61, 4  ;;  %v6085_v42 = vrot.slane %v6053_v36, 4  ;;  %v6087_v11 = vrot.slane %v6054_v40, 4  ;;  %v6088_v29 = vrot.slane %v6055_v12, 4 }
 0x561   : > { %v6090_v51 = vrot.slane %v6056_v15, 4  ;;  %v6091_v55 = vrot.slane %v6057_v24, 4  ;;  %v6093_v27 = vrot.slane %v6058_v52, 4  ;;  %v6094_v18 = vrot.slane %v6059_v44, 4 }
 0x562   : > { %v6086_v22 = vsel %vm3093_vm6, %v6084_v8, %v6085_v42  ;;  %v6089_v9 = vsel %vm3093_vm6, %v6087_v11, %v6088_v29  ;;  %v6096_v14 = vrot.slane %v6060_v46, 4  ;;  %v6097_v39 = vrot.slane %v6061_v10, 4 }
 0x563   : > { %v6092_v60 = vsel %vm3093_vm6, %v6090_v51, %v6091_v55  ;;  %v6095_v34 = vsel %vm3093_vm6, %v6093_v27, %v6094_v18  ;;  %v6099_v31 = vrot.slane %v6062_v63, 4  ;;  %v6100_v62 = vrot.slane %v6063_v19, 4  ;;  %v13448_v18 = vld [vmem:[#allocation2 + $0x140] sm:$0xff] }
 0x564   : > { %v6098_v4 = vsel %vm3093_vm6, %v6096_v14, %v6097_v39  ;;  %v6102_v35 = vrot.slane %v6064_v38, 4  ;;  %v6103_v58 = vrot.slane %v6065_v13, 4  ;;  %v6105_v33 = vrot.slane %v6066_v53, 4  ;;  %15436 = vst [vmem:[#allocation36_spill] sm:$0xff] %v13448_v18 }
 0x565   : > { %v6101_v50 = vsel %vm3093_vm6, %v6099_v31, %v6100_v62  ;;  %v6106_v61 = vrot.slane %v6067_v48, 4  ;;  %v6124_v36 = vadd.f32 %v6084_v8, %v6032_v47  ;;  %v6125_v40 = vadd.f32 %v6086_v22, %v6033_v20 }
 0x566   : > { %v6104_v12 = vsel %vm3093_vm6, %v6102_v35, %v6103_v58  ;;  %v13397_v15 = vadd.f32 %v6087_v11, %v6034_v26  ;;  %v6127_v24 = vadd.f32 %v6089_v9, %v6035_v56  ;;  %v6128_v52 = vadd.f32 %v6090_v51, %v6036_v59  ;;  %v13410_v56 = vld [vmem:[#allocation2 + $0x148] sm:$0xff]  ;;  %v13412_v59 = vld [vmem:[#allocation2 + $0x98] sm:$0xff] }
 0x567   : > { %v6107_v44 = vsel %vm3093_vm6, %v6105_v33, %v6106_v61  ;;  %v13400_v46 = vadd.f32 %v6092_v60, %v6037_v2  ;;  %v6130_v10 = vadd.f32 %v6093_v27, %v6038_v32  ;;  %v6131_v63 = vadd.f32 %v6095_v34, %v6039_v30  ;;  %15433 = vst [vmem:[#allocation97_spill] sm:$0xff] %v13410_v56  ;;  %v15434_v2 = vld [vmem:[#allocation66_spill] sm:$0xff]  ;;  %v13418_v30 = vld [vmem:[#allocation2 + $0xb0] sm:$0xff] }
 0x568   : > { %v6132_v19 = vadd.f32 %v6096_v14, %v6040_v5  ;;  %v6133_v38 = vadd.f32 %v6098_v4, %v6041_v17  ;;  %v6134_v13 = vadd.f32 %v6099_v31, %v6042_v23  ;;  %v6135_v53 = vadd.f32 %v6101_v50, %v6043_v49  ;;  %v13424_v23 = vld [vmem:[#allocation2 + $0xc8] sm:$0xff] }
 0x569   : > { %v13402_v42 = vadd.f32 %v6102_v35, %v6044_v0  ;;  %v13404_v47 = vadd.f32 %v6104_v12, %v6045_v37  ;;  %v13406_v20 = vadd.f32 %v6105_v33, %v6046_v6  ;;  %v13408_v26 = vadd.f32 %v6107_v44, %v6047_v45  ;;  %v13430_v6 = vld [vmem:[#allocation2 + $0xe0] sm:$0xff] }
 0x56a   : > { %v6144_v32 = vmul.f32 %v13412_v59, %v15434_v2  ;;  %v6145_v5 = vmul.f32 %v15434_v2, %v13048_v41  ;;  %v6146_v37 = vmul.f32 %v13418_v30, %v15434_v2  ;;  %v6147_v17 = vmul.f32 %v15434_v2, %v13056_v3  ;;  %15435 = vst [vmem:[#allocation69_spill] sm:$0xff] %v13430_v6 }
 0x56b   : > { %v6148_v49 = vmul.f32 %v13424_v23, %v15434_v2  ;;  %v6149_v0 = vmul.f32 %v15434_v2, %v15425_v1  ;;  %v6150_v45 = vmul.f32 %v13430_v6, %v15434_v2  ;;  %v6151_v48 = vmul.f32 %v15434_v2, %v13168_v21 }
 0x56c   : > { %v6152_v8 = vmul.f32 %v13282_v28, %v15434_v2  ;;  %v6153_v11 = vmul.f32 %v15434_v2, %v13266_v43  ;;  %v6154_v29 = vmul.f32 %v13340_v57, %v15434_v2  ;;  %v6155_v51 = vmul.f32 %v15434_v2, %v15431_v16 }
 0x56d   : > { %v6156_v55 = vmul.f32 %v13384_v7, %v15434_v2  ;;  %v6157_v27 = vmul.f32 %v15434_v2, %v13354_v25  ;;  %v6158_v22 = vmul.f32 %v13448_v18, %v15434_v2  ;;  %v6159_v9 = vmul.f32 %v15434_v2, %v13410_v56 }
 0x56e   : > { %v6176_v14 = vrot.slane %v6144_v32, 4  ;;  %v6177_v39 = vrot.slane %v6145_v5, 4  ;;  %v6179_v60 = vrot.slane %v6146_v37, 4  ;;  %v6180_v34 = vrot.slane %v6147_v17, 4 }
 0x56f   : > { %v6182_v31 = vrot.slane %v6148_v49, 4  ;;  %v6183_v62 = vrot.slane %v6149_v0, 4  ;;  %v6185_v4 = vrot.slane %v6150_v45, 4  ;;  %v6186_v35 = vrot.slane %v6151_v48, 4 }
 0x570   : > { %v6178_v58 = vsel %vm3093_vm6, %v6176_v14, %v6177_v39  ;;  %v6181_v33 = vsel %vm3093_vm6, %v6179_v60, %v6180_v34  ;;  %v6188_v50 = vrot.slane %v6152_v8, 4  ;;  %v6189_v61 = vrot.slane %v6153_v11, 4 }
 0x571   : > { %v6184_v12 = vsel %vm3093_vm6, %v6182_v31, %v6183_v62  ;;  %v6187_v44 = vsel %vm3093_vm6, %v6185_v4, %v6186_v35  ;;  %v6191_v18 = vrot.slane %v6154_v29, 4  ;;  %v6192_v2 = vrot.slane %v6155_v51, 4 }
 0x572   : > { %v6190_v32 = vsel %vm3093_vm6, %v6188_v50, %v6189_v61  ;;  %v6194_v5 = vrot.slane %v6156_v55, 4  ;;  %v6195_v37 = vrot.slane %v6157_v27, 4  ;;  %v6197_v17 = vrot.slane %v6158_v22, 4 }
 0x573   : > { %v6193_v49 = vsel %vm3093_vm6, %v6191_v18, %v6192_v2  ;;  %v6198_v0 = vrot.slane %v6159_v9, 4  ;;  %v13460_v45 = vadd.f32 %v6176_v14, %v6124_v36  ;;  %v13462_v48 = vadd.f32 %v6178_v58, %v6125_v40  ;;  %v15452_v58 = vld [vmem:[#allocation85_spill] sm:$0xff]  ;;  %v15455_v2 = vld [vmem:[#allocation79_spill] sm:$0xff] }
 0x574   : > { %v6196_v8 = vsel %vm3093_vm6, %v6194_v5, %v6195_v37  ;;  %v13466_v11 = vadd.f32 %v6179_v60, %v13397_v15  ;;  %v13468_v39 = vadd.f32 %v6181_v33, %v6127_v24  ;;  %v13470_v29 = vadd.f32 %v6182_v31, %v6128_v52  ;;  %v15446_v60 = vld [vmem:[#allocation94_spill] sm:$0xff]  ;;  %v15448_v31 = vld [vmem:[#allocation83_spill] sm:$0xff] }
 0x575   : > { %v6199_v51 = vsel %vm3093_vm6, %v6197_v17, %v6198_v0  ;;  %v13474_v55 = vadd.f32 %v6184_v12, %v13400_v46  ;;  %v13476_v27 = vadd.f32 %v6185_v4, %v6130_v10  ;;  %v13478_v36 = vadd.f32 %v6187_v44, %v6131_v63  ;;  %v13500_v63 = vld [vmem:[#allocation14] sm:$0x7f]  ;;  %v15450_v4 = vld [vmem:[#allocation32_spill] sm:$0xff]  ;;  %v15458_v0 = vld [vmem:[#allocation74_spill] sm:$0xff] }
 0x576   : > { %v13480_v40 = vadd.f32 %v6188_v50, %v6132_v19  ;;  %v13482_v22 = vadd.f32 %v6190_v32, %v6133_v38  ;;  %v13484_v9 = vadd.f32 %v6191_v18, %v6134_v13  ;;  %v13486_v15 = vadd.f32 %v6193_v49, %v6135_v53  ;;  %15437 = vst [vmem:[#allocation95_spill] sm:$0xff] %v13500_v63  ;;  %v15438_v19 = vld [vmem:[#allocation73_spill] sm:$0xff]  ;;  %v13504_v13 = vld [vmem:[#allocation14 + $0x8] sm:$0x7f] }
 0x577   : > { %v13489_v24 = vadd.f32 %v6194_v5, %v13402_v42  ;;  %v13492_v52 = vadd.f32 %v6196_v8, %v13404_v47  ;;  %v13495_v46 = vadd.f32 %v6197_v17, %v13406_v20  ;;  %v13498_v10 = vadd.f32 %v6199_v51, %v13408_v26  ;;  %15439 = vst [vmem:[#allocation27_spill] sm:$0xff] %v13504_v13  ;;  %v13510_v42 = vld [vmem:[#allocation14 + $0x10] sm:$0x7f]  ;;  %v13516_v20 = vld [vmem:[#allocation14 + $0x18] sm:$0x7f]  ;;  %v15444_v18 = vld [vmem:[#allocation57_spill] sm:$0xff] }
 0x578   : > { %v6235_v38 = vrot.slane %v13500_v63, %v15438_v19  ;;  %v13508_v53 = vrot.slane %v13504_v13, %v15438_v19  ;;  %15440 = vst [vmem:[#allocation31_spill] sm:$0xff] %v13510_v42  ;;  %v13514_v47 = vrot.slane %v13510_v42, %v15438_v19  ;;  %15442 = vst [vmem:[#allocation92_spill] sm:$0xff] %v13516_v20  ;;  %v13535_v35 = vsub.s32 6, %v15450_v4  ;;  %v15453_v50 = vld [vmem:[#allocation93_spill] sm:$0xff]  ;;  %v15456_v5 = vld [vmem:[#allocation44_spill] sm:$0xff] }
 0x579   : > { %v13520_v26 = vrot.slane %v13516_v20, %v15438_v19  ;;  %v13524_v14 = vrot.slane %v15444_v18, %v15438_v19  ;;  %v13528_v34 = vrot.slane %v15446_v60, %v15438_v19  ;;  %v13532_v62 = vrot.slane %v15448_v31, %v15438_v19  ;;  %v15454_v12 = vld [vmem:[#allocation81_spill] sm:$0xff]  ;;  %v15457_v17 = vld [vmem:[#allocation46_spill] sm:$0xff] }
 0x57a   : > { %15441 = vst [vmem:[#allocation43_spill] sm:$0xff] %v13514_v47  ;;  %15451 = vst [vmem:[#allocation40_spill] sm:$0xff] %v13535_v35  ;;  %v6236_v33 = vmul.f32 %v15452_v58, %v6235_v38  ;;  %v6237_v61 = vmul.f32 %v6235_v38, %v15453_v50  ;;  %v6238_v44 = vmul.f32 %v15454_v12, %v6235_v38  ;;  %v15459_v51 = vld [vmem:[#allocation29_spill] sm:$0xff]  ;;  %v13545_v18 = vld [vmem:[#allocation2 + $0x68] sm:$0xff] }
 0x57b   : > { %15443 = vst [vmem:[#allocation98_spill] sm:$0xff] %v13520_v26  ;;  %15445 = vst [vmem:[#allocation65_spill] sm:$0xff] %v13524_v14  ;;  %v6239_v32 = vmul.f32 %v6235_v38, %v15455_v2  ;;  %v6240_v37 = vmul.f32 %v15456_v5, %v6235_v38  ;;  %v6241_v49 = vmul.f32 %v6235_v38, %v15457_v17  ;;  %v15461_v31 = vld [vmem:[#allocation26_spill] sm:$0xff]  ;;  %v13549_v4 = vld [vmem:[#allocation2 + $0x80] sm:$0xff] }
 0x57c   : > { %15447 = vst [vmem:[#allocation70_spill] sm:$0xff] %v13528_v34  ;;  %15449 = vst [vmem:[#allocation58_spill] sm:$0xff] %v13532_v62  ;;  %v6242_v8 = vmul.f32 %v15458_v0, %v6235_v38  ;;  %v6243_v19 = vmul.f32 %v6235_v38, %v15459_v51  ;;  %v6244_v60 = vmul.f32 %v13545_v18, %v6235_v38  ;;  %v6269_v56 = vrot.slane %v6236_v33, 5 }
 0x57d   : > { %15460 = vst [vmem:[#allocation67_spill] sm:$0xff] %v13545_v18  ;;  %v6245_v58 = vmul.f32 %v15461_v31, %v6235_v38  ;;  %15462 = vst [vmem:[#allocation68_spill] sm:$0xff] %v13549_v4  ;;  %v6246_v50 = vmul.f32 %v13549_v4, %v6235_v38  ;;  %v6247_v20 = vmul.f32 %v6235_v38, %v13046_v54  ;;  %v6270_v62 = vrot.slane %v6237_v61, 5 }
 0x57e   : > { %v6248_v42 = vmul.f32 %v13412_v59, %v6235_v38  ;;  %v6249_v13 = vmul.f32 %v6235_v38, %v13048_v41  ;;  %v6250_v63 = vmul.f32 %v13418_v30, %v6235_v38  ;;  %v6251_v35 = vmul.f32 %v6235_v38, %v13056_v3 }
 0x57f   : > { %v6272_v25 = vrot.slane %v6238_v44, 5  ;;  %v6273_v7 = vrot.slane %v6239_v32, 5  ;;  %v6275_v34 = vrot.slane %v6240_v37, 5  ;;  %v6276_v16 = vrot.slane %v6241_v49, 5 }
 0x580   : > { %v6278_v57 = vrot.slane %v6242_v8, 5  ;;  %v6279_v14 = vrot.slane %v6243_v19, 5  ;;  %v6271_v43 = vsel %vm6268_vm8, %v6269_v56, %v6270_v62  ;;  %v6281_v26 = vrot.slane %v6244_v60, 5 }
 0x581   : > { %v6274_v28 = vsel %vm6268_vm8, %v6272_v25, %v6273_v7  ;;  %v6282_v21 = vrot.slane %v6245_v58, 5  ;;  %v6277_v6 = vsel %vm6268_vm8, %v6275_v34, %v6276_v16  ;;  %v6284_v1 = vrot.slane %v6246_v50, 5 }
 0x582   : > { %v6280_v47 = vsel %vm6268_vm8, %v6278_v57, %v6279_v14  ;;  %v6285_v38 = vrot.slane %v6247_v20, 5  ;;  %v6287_v61 = vrot.slane %v6248_v42, 5  ;;  %v6288_v44 = vrot.slane %v6249_v13, 5 }
 0x583   : > { %v6283_v33 = vsel %vm6268_vm8, %v6281_v26, %v6282_v21  ;;  %v6290_v32 = vrot.slane %v6250_v63, 5  ;;  %v6291_v49 = vrot.slane %v6251_v35, 5  ;;  %v6309_v62 = vadd.f32 %v6269_v56, %v13460_v45 }
 0x584   : > { %v6286_v37 = vsel %vm6268_vm8, %v6284_v1, %v6285_v38  ;;  %v6310_v7 = vadd.f32 %v6271_v43, %v13462_v48  ;;  %v6289_v8 = vsel %vm6268_vm8, %v6287_v61, %v6288_v44  ;;  %v6311_v16 = vadd.f32 %v6272_v25, %v13466_v11 }
 0x585   : > { %v6312_v14 = vadd.f32 %v6274_v28, %v13468_v39  ;;  %v6313_v20 = vadd.f32 %v6275_v34, %v13470_v29  ;;  %v6292_v21 = vsel %vm6268_vm8, %v6290_v32, %v6291_v49  ;;  %v6314_v13 = vadd.f32 %v6277_v6, %v13474_v55 }
 0x586   : > { %v6315_v63 = vadd.f32 %v6278_v57, %v13476_v27  ;;  %v6316_v42 = vadd.f32 %v6280_v47, %v13478_v36  ;;  %v6317_v56 = vadd.f32 %v6281_v26, %v13480_v40  ;;  %v6318_v43 = vadd.f32 %v6283_v33, %v13482_v22  ;;  %v15463_v47 = vld [vmem:[#allocation82_spill] sm:$0xff] }
 0x587   : > { %v6319_v45 = vadd.f32 %v6284_v1, %v13484_v9  ;;  %v6320_v25 = vadd.f32 %v6286_v37, %v13486_v15  ;;  %v6321_v28 = vadd.f32 %v6287_v61, %v13489_v24  ;;  %v6322_v48 = vadd.f32 %v6289_v8, %v13492_v52 }
 0x588   : > { %v6323_v11 = vadd.f32 %v6290_v32, %v13495_v46  ;;  %v6324_v6 = vadd.f32 %v6292_v21, %v13498_v10  ;;  %v6329_v57 = vmul.f32 %v15454_v12, %v13508_v53  ;;  %v6330_v39 = vmul.f32 %v13508_v53, %v15455_v2 }
 0x589   : > { %v6331_v29 = vmul.f32 %v15456_v5, %v13508_v53  ;;  %v6332_v1 = vmul.f32 %v13508_v53, %v15457_v17  ;;  %v6333_v55 = vmul.f32 %v15458_v0, %v13508_v53  ;;  %v6334_v27 = vmul.f32 %v13508_v53, %v15459_v51 }
 0x58a   : > { %v6335_v36 = vmul.f32 %v13545_v18, %v13508_v53  ;;  %v6336_v40 = vmul.f32 %v15461_v31, %v13508_v53  ;;  %v6337_v22 = vmul.f32 %v13549_v4, %v13508_v53  ;;  %v6338_v9 = vmul.f32 %v13508_v53, %v13046_v54 }
 0x58b   : > { %v6339_v15 = vmul.f32 %v13412_v59, %v13508_v53  ;;  %v6340_v24 = vmul.f32 %v13508_v53, %v13048_v41  ;;  %v6341_v52 = vmul.f32 %v13418_v30, %v13508_v53  ;;  %v6342_v46 = vmul.f32 %v13508_v53, %v13056_v3 }
 0x58c   : > { %v6343_v10 = vmul.f32 %v13424_v23, %v13508_v53  ;;  %v6344_v26 = vmul.f32 %v13508_v53, %v15463_v47  ;;  %v6361_v34 = vrot.slane %v6329_v57, 5  ;;  %v6362_v54 = vrot.slane %v6330_v39, 5 }
 0x58d   : > { %v6364_v35 = vrot.slane %v6331_v29, 5  ;;  %v6365_v12 = vrot.slane %v6332_v1, 5  ;;  %v6367_v2 = vrot.slane %v6333_v55, 5  ;;  %v6368_v5 = vrot.slane %v6334_v27, 5 }
 0x58e   : > { %v6370_v17 = vrot.slane %v6335_v36, 5  ;;  %v6371_v41 = vrot.slane %v6336_v40, 5  ;;  %v6363_v0 = vsel %vm6268_vm8, %v6361_v34, %v6362_v54  ;;  %v6373_v19 = vrot.slane %v6337_v22, 5  ;;  %v13657_v22 = vld [vmem:[#allocation2 + $0x40] sm:$0xff]  ;;  %v13689_v54 = vld [vmem:[#allocation2 + $0xb8] sm:$0xff] }
 0x58f   : > { %v6366_v51 = vsel %vm6268_vm8, %v6364_v35, %v6365_v12  ;;  %v6374_v3 = vrot.slane %v6338_v9, 5  ;;  %v6369_v60 = vsel %vm6268_vm8, %v6367_v2, %v6368_v5  ;;  %v6376_v58 = vrot.slane %v6339_v15, 5  ;;  %15465 = vst [vmem:[#allocation48_spill] sm:$0xff] %v13657_v22  ;;  %v15470_v5 = vld [vmem:[#allocation69_spill] sm:$0xff] }
 0x590   : > { %v6372_v31 = vsel %vm6268_vm8, %v6370_v17, %v6371_v41  ;;  %v6377_v53 = vrot.slane %v6340_v24, 5  ;;  %v6379_v38 = vrot.slane %v6341_v52, 5  ;;  %v6380_v33 = vrot.slane %v6342_v46, 5  ;;  %v13677_v24 = vld [vmem:[#allocation2 + $0x88] sm:$0xff]  ;;  %v15471_v41 = vld [vmem:[#allocation91_spill] sm:$0xff] }
 0x591   : > { %v6375_v50 = vsel %vm6268_vm8, %v6373_v19, %v6374_v3  ;;  %v6382_v61 = vrot.slane %v6343_v10, 5  ;;  %v6383_v32 = vrot.slane %v6344_v26, 5  ;;  %v13619_v37 = vadd.f32 %v6361_v34, %v6309_v62  ;;  %15469 = vst [vmem:[#allocation50_spill] sm:$0xff] %v13677_v24  ;;  %v13683_v10 = vld [vmem:[#allocation2 + $0xa0] sm:$0xff] }
 0x592   : > { %v6378_v44 = vsel %vm6268_vm8, %v6376_v58, %v6377_v53  ;;  %v13621_v49 = vadd.f32 %v6363_v0, %v6310_v7  ;;  %v6381_v8 = vsel %vm6268_vm8, %v6379_v38, %v6380_v33  ;;  %v13624_v21 = vadd.f32 %v6364_v35, %v6311_v16 }
 0x593   : > { %v13626_v57 = vadd.f32 %v6366_v51, %v6312_v14  ;;  %v13628_v39 = vadd.f32 %v6367_v2, %v6313_v20  ;;  %v6384_v29 = vsel %vm6268_vm8, %v6382_v61, %v6383_v32  ;;  %v13631_v1 = vadd.f32 %v6369_v60, %v6314_v13 }
 0x594   : > { %v13633_v55 = vadd.f32 %v6370_v17, %v6315_v63  ;;  %v13635_v27 = vadd.f32 %v6372_v31, %v6316_v42  ;;  %v13637_v62 = vadd.f32 %v6373_v19, %v6317_v56  ;;  %v13639_v7 = vadd.f32 %v6375_v50, %v6318_v43  ;;  %v13653_v63 = vld [vmem:[#allocation2 + $0x38] sm:$0xff]  ;;  %v15464_v42 = vld [vmem:[#allocation43_spill] sm:$0xff] }
 0x595   : > { %v13641_v36 = vadd.f32 %v6376_v58, %v6319_v45  ;;  %v13643_v16 = vadd.f32 %v6378_v44, %v6320_v25  ;;  %v13645_v14 = vadd.f32 %v6379_v38, %v6321_v28  ;;  %v13647_v20 = vadd.f32 %v6381_v8, %v6322_v48  ;;  %v13661_v45 = vld [vmem:[#allocation2 + $0x50] sm:$0xff]  ;;  %v13665_v28 = vld [vmem:[#allocation2 + $0x58] sm:$0xff] }
 0x596   : > { %v13649_v40 = vadd.f32 %v6382_v61, %v6323_v11  ;;  %v13651_v13 = vadd.f32 %v6384_v29, %v6324_v6  ;;  %v6421_v56 = vmul.f32 %v13653_v63, %v15464_v42  ;;  %v6422_v43 = vmul.f32 %v13657_v22, %v15464_v42  ;;  %15466 = vst [vmem:[#allocation25_spill] sm:$0xff] %v13661_v45  ;;  %v13671_v6 = vld [vmem:[#allocation2 + $0x70] sm:$0xff] }
 0x597   : > { %v6423_v25 = vmul.f32 %v13661_v45, %v15464_v42  ;;  %15467 = vst [vmem:[#allocation24_spill] sm:$0xff] %v13665_v28  ;;  %v6424_v48 = vmul.f32 %v13665_v28, %v15464_v42  ;;  %v6425_v11 = vmul.f32 %v13545_v18, %v15464_v42  ;;  %15468 = vst [vmem:[#allocation77_spill] sm:$0xff] %v13671_v6 }
 0x598   : > { %v6426_v9 = vmul.f32 %v13671_v6, %v15464_v42  ;;  %v6427_v15 = vmul.f32 %v13549_v4, %v15464_v42  ;;  %v6428_v52 = vmul.f32 %v13677_v24, %v15464_v42  ;;  %v6429_v46 = vmul.f32 %v13412_v59, %v15464_v42 }
 0x599   : > { %v6430_v26 = vmul.f32 %v13683_v10, %v15464_v42  ;;  %v6431_v34 = vmul.f32 %v13418_v30, %v15464_v42  ;;  %v6432_v35 = vmul.f32 %v13689_v54, %v15464_v42  ;;  %v6433_v12 = vmul.f32 %v13424_v23, %v15464_v42 }
 0x59a   : > { %v6434_v2 = vmul.f32 %v15464_v42, %v15463_v47  ;;  %v6435_v17 = vmul.f32 %v15470_v5, %v15464_v42  ;;  %v6436_v0 = vmul.f32 %v15464_v42, %v15471_v41  ;;  %v6453_v51 = vrot.slane %v6421_v56, 5 }
 0x59b   : > { %v6454_v19 = vrot.slane %v6422_v43, 5  ;;  %v6456_v3 = vrot.slane %v6423_v25, 5  ;;  %v6457_v60 = vrot.slane %v6424_v48, 5  ;;  %v6459_v31 = vrot.slane %v6425_v11, 5 }
 0x59c   : > { %v6460_v58 = vrot.slane %v6426_v9, 5  ;;  %v6462_v53 = vrot.slane %v6427_v15, 5  ;;  %v6463_v50 = vrot.slane %v6428_v52, 5  ;;  %v6465_v61 = vrot.slane %v6429_v46, 5 }
 0x59d   : > { %v6455_v38 = vsel %vm6268_vm8, %v6453_v51, %v6454_v19  ;;  %v6458_v33 = vsel %vm6268_vm8, %v6456_v3, %v6457_v60  ;;  %v6466_v47 = vrot.slane %v6430_v26, 5  ;;  %v6468_v8 = vrot.slane %v6431_v34, 5  ;;  %v15472_v19 = vld [vmem:[#allocation98_spill] sm:$0xff]  ;;  %v13747_v60 = vld [vmem:[#allocation2 + $0xd0] sm:$0xff] }
 0x59e   : > { %v6461_v44 = vsel %vm6268_vm8, %v6459_v31, %v6460_v58  ;;  %v6464_v32 = vsel %vm6268_vm8, %v6462_v53, %v6463_v50  ;;  %v6469_v29 = vrot.slane %v6432_v35, 5  ;;  %v6471_v56 = vrot.slane %v6433_v12, 5  ;;  %v15473_v50 = vld [vmem:[#allocation47_spill] sm:$0xff] }
 0x59f   : > { %v6467_v42 = vsel %vm6268_vm8, %v6465_v61, %v6466_v47  ;;  %v6472_v43 = vrot.slane %v6434_v2, 5  ;;  %v6474_v25 = vrot.slane %v6435_v17, 5  ;;  %v6475_v11 = vrot.slane %v6436_v0, 5 }
 0x5a0   : > { %v6470_v48 = vsel %vm6268_vm8, %v6468_v8, %v6469_v29  ;;  %v6493_v9 = vadd.f32 %v6453_v51, %v13619_v37  ;;  %v6494_v15 = vadd.f32 %v6455_v38, %v13621_v49  ;;  %v6495_v46 = vadd.f32 %v6456_v3, %v13624_v21 }
 0x5a1   : > { %v6473_v52 = vsel %vm6268_vm8, %v6471_v56, %v6472_v43  ;;  %v6496_v26 = vadd.f32 %v6458_v33, %v13626_v57  ;;  %v6497_v34 = vadd.f32 %v6459_v31, %v13628_v39  ;;  %v6476_v35 = vsel %vm6268_vm8, %v6474_v25, %v6475_v11  ;;  %v15474_v33 = vld [vmem:[#allocation54_spill] sm:$0xff] }
 0x5a2   : > { %v6498_v12 = vadd.f32 %v6461_v44, %v13631_v1  ;;  %v6499_v2 = vadd.f32 %v6462_v53, %v13633_v55  ;;  %v6500_v17 = vadd.f32 %v6464_v32, %v13635_v27  ;;  %v6501_v37 = vadd.f32 %v6465_v61, %v13637_v62 }
 0x5a3   : > { %v6502_v49 = vadd.f32 %v6467_v42, %v13639_v7  ;;  %v6503_v0 = vadd.f32 %v6468_v8, %v13641_v36  ;;  %v6504_v21 = vadd.f32 %v6470_v48, %v13643_v16  ;;  %v6505_v57 = vadd.f32 %v6471_v56, %v13645_v14 }
 0x5a4   : > { %v6506_v39 = vadd.f32 %v6473_v52, %v13647_v20  ;;  %v6507_v51 = vadd.f32 %v6474_v25, %v13649_v40  ;;  %v6508_v1 = vadd.f32 %v6476_v35, %v13651_v13  ;;  %v6513_v55 = vmul.f32 %v13661_v45, %v15472_v19 }
 0x5a5   : > { %v6514_v27 = vmul.f32 %v13665_v28, %v15472_v19  ;;  %v6515_v62 = vmul.f32 %v13545_v18, %v15472_v19  ;;  %v6516_v7 = vmul.f32 %v13671_v6, %v15472_v19  ;;  %v6517_v36 = vmul.f32 %v13549_v4, %v15472_v19 }
 0x5a6   : > { %v6518_v16 = vmul.f32 %v13677_v24, %v15472_v19  ;;  %v6519_v14 = vmul.f32 %v13412_v59, %v15472_v19  ;;  %v6520_v20 = vmul.f32 %v13683_v10, %v15472_v19  ;;  %v6521_v40 = vmul.f32 %v13418_v30, %v15472_v19 }
 0x5a7   : > { %v6522_v13 = vmul.f32 %v13689_v54, %v15472_v19  ;;  %v6523_v3 = vmul.f32 %v13424_v23, %v15472_v19  ;;  %v6524_v31 = vmul.f32 %v13747_v60, %v15472_v19  ;;  %v6525_v58 = vmul.f32 %v15470_v5, %v15472_v19 }
 0x5a8   : > { %v6526_v53 = vmul.f32 %v15472_v19, %v15471_v41  ;;  %v6527_v38 = vmul.f32 %v15473_v50, %v15472_v19  ;;  %v6528_v61 = vmul.f32 %v15472_v19, %v15474_v33  ;;  %v6545_v47 = vrot.slane %v6513_v55, 5 }
 0x5a9   : > { %v6546_v44 = vrot.slane %v6514_v27, 5  ;;  %v6548_v32 = vrot.slane %v6515_v62, 5  ;;  %v6549_v8 = vrot.slane %v6516_v7, 5  ;;  %v6551_v29 = vrot.slane %v6517_v36, 5 }
 0x5aa   : > { %v6552_v42 = vrot.slane %v6518_v16, 5  ;;  %v6554_v56 = vrot.slane %v6519_v14, 5  ;;  %v6555_v43 = vrot.slane %v6520_v20, 5  ;;  %v6557_v11 = vrot.slane %v6521_v40, 5 }
 0x5ab   : > { %v6547_v25 = vsel %vm6268_vm8, %v6545_v47, %v6546_v44  ;;  %v6550_v48 = vsel %vm6268_vm8, %v6548_v32, %v6549_v8  ;;  %v6558_v41 = vrot.slane %v6522_v13, 5  ;;  %v6560_v28 = vrot.slane %v6523_v3, 5 }
 0x5ac   : > { %v6553_v52 = vsel %vm6268_vm8, %v6551_v29, %v6552_v42  ;;  %v6556_v35 = vsel %vm6268_vm8, %v6554_v56, %v6555_v43  ;;  %v6561_v19 = vrot.slane %v6524_v31, 5  ;;  %v6563_v27 = vrot.slane %v6525_v58, 5 }
 0x5ad   : > { %v6559_v55 = vsel %vm6268_vm8, %v6557_v11, %v6558_v41  ;;  %v6564_v62 = vrot.slane %v6526_v53, 5  ;;  %v6566_v7 = vrot.slane %v6527_v38, 5  ;;  %v6567_v16 = vrot.slane %v6528_v61, 5 }
 0x5ae   : > { %v6562_v36 = vsel %vm6268_vm8, %v6560_v28, %v6561_v19  ;;  %v6585_v14 = vadd.f32 %v6545_v47, %v6493_v9  ;;  %v6586_v20 = vadd.f32 %v6547_v25, %v6494_v15  ;;  %v6587_v40 = vadd.f32 %v6548_v32, %v6495_v46  ;;  %v15475_v9 = vld [vmem:[#allocation65_spill] sm:$0xff]  ;;  %v15477_v32 = vld [vmem:[#allocation55_spill] sm:$0xff] }
 0x5af   : > { %v6565_v44 = vsel %vm6268_vm8, %v6563_v27, %v6564_v62  ;;  %v6588_v13 = vadd.f32 %v6550_v48, %v6496_v26  ;;  %v6589_v8 = vadd.f32 %v6551_v29, %v6497_v34  ;;  %v6568_v42 = vsel %vm6268_vm8, %v6566_v7, %v6567_v16 }
 0x5b0   : > { %v6590_v43 = vadd.f32 %v6553_v52, %v6498_v12  ;;  %v6591_v3 = vadd.f32 %v6554_v56, %v6499_v2  ;;  %v6592_v31 = vadd.f32 %v6556_v35, %v6500_v17  ;;  %v6593_v45 = vadd.f32 %v6557_v11, %v6501_v37 }
 0x5b1   : > { %v6594_v41 = vadd.f32 %v6559_v55, %v6502_v49  ;;  %v6595_v58 = vadd.f32 %v6560_v28, %v6503_v0  ;;  %v6596_v53 = vadd.f32 %v6562_v36, %v6504_v21  ;;  %v6597_v38 = vadd.f32 %v6563_v27, %v6505_v57  ;;  %v13789_v21 = vld [vmem:[#allocation2 + $0xe8] sm:$0xff] }
 0x5b2   : > { %v6598_v22 = vadd.f32 %v6565_v44, %v6506_v39  ;;  %v6599_v19 = vadd.f32 %v6566_v7, %v6507_v51  ;;  %v6600_v61 = vadd.f32 %v6568_v42, %v6508_v1  ;;  %v6605_v15 = vmul.f32 %v13545_v18, %v15475_v9  ;;  %v15476_v1 = vld [vmem:[#allocation52_spill] sm:$0xff] }
 0x5b3   : > { %v6606_v46 = vmul.f32 %v13671_v6, %v15475_v9  ;;  %v6607_v26 = vmul.f32 %v13549_v4, %v15475_v9  ;;  %v6608_v34 = vmul.f32 %v13677_v24, %v15475_v9  ;;  %v6609_v28 = vmul.f32 %v13412_v59, %v15475_v9 }
 0x5b4   : > { %v6610_v12 = vmul.f32 %v13683_v10, %v15475_v9  ;;  %v6611_v2 = vmul.f32 %v13418_v30, %v15475_v9  ;;  %v6612_v17 = vmul.f32 %v13689_v54, %v15475_v9  ;;  %v6613_v37 = vmul.f32 %v13424_v23, %v15475_v9 }
 0x5b5   : > { %v6614_v49 = vmul.f32 %v13747_v60, %v15475_v9  ;;  %v6615_v0 = vmul.f32 %v15470_v5, %v15475_v9  ;;  %v6616_v57 = vmul.f32 %v13789_v21, %v15475_v9  ;;  %v6617_v39 = vmul.f32 %v15473_v50, %v15475_v9 }
 0x5b6   : > { %v6618_v51 = vmul.f32 %v15475_v9, %v15474_v33  ;;  %v6619_v47 = vmul.f32 %v15476_v1, %v15475_v9  ;;  %v6620_v29 = vmul.f32 %v15475_v9, %v15477_v32  ;;  %v6637_v56 = vrot.slane %v6605_v15, 5 }
 0x5b7   : > { %v6638_v25 = vrot.slane %v6606_v46, 5  ;;  %v6640_v48 = vrot.slane %v6607_v26, 5  ;;  %v6641_v11 = vrot.slane %v6608_v34, 5  ;;  %v6643_v52 = vrot.slane %v6609_v28, 5 }
 0x5b8   : > { %v6644_v35 = vrot.slane %v6610_v12, 5  ;;  %v6646_v55 = vrot.slane %v6611_v2, 5  ;;  %v6647_v27 = vrot.slane %v6612_v17, 5  ;;  %v6649_v7 = vrot.slane %v6613_v37, 5 }
 0x5b9   : > { %v6639_v62 = vsel %vm6268_vm8, %v6637_v56, %v6638_v25  ;;  %v6642_v50 = vsel %vm6268_vm8, %v6640_v48, %v6641_v11  ;;  %v6650_v33 = vrot.slane %v6614_v49, 5  ;;  %v6652_v44 = vrot.slane %v6615_v0, 5 }
 0x5ba   : > { %v6645_v36 = vsel %vm6268_vm8, %v6643_v52, %v6644_v35  ;;  %v6648_v16 = vsel %vm6268_vm8, %v6646_v55, %v6647_v27  ;;  %v6653_v42 = vrot.slane %v6616_v57, 5  ;;  %v6655_v15 = vrot.slane %v6617_v39, 5 }
 0x5bb   : > { %v6651_v9 = vsel %vm6268_vm8, %v6649_v7, %v6650_v33  ;;  %v6656_v46 = vrot.slane %v6618_v51, 5  ;;  %v6658_v26 = vrot.slane %v6619_v47, 5  ;;  %v6659_v28 = vrot.slane %v6620_v29, 5 }
 0x5bc   : > { %v6654_v34 = vsel %vm6268_vm8, %v6652_v44, %v6653_v42  ;;  %v6677_v12 = vadd.f32 %v6637_v56, %v6585_v14  ;;  %v6678_v2 = vadd.f32 %v6639_v62, %v6586_v20  ;;  %v6679_v37 = vadd.f32 %v6640_v48, %v6587_v40  ;;  %v15478_v14 = vld [vmem:[#allocation70_spill] sm:$0xff]  ;;  %v15481_v48 = vld [vmem:[#allocation59_spill] sm:$0xff] }
 0x5bd   : > { %v6657_v17 = vsel %vm6268_vm8, %v6655_v15, %v6656_v46  ;;  %v6680_v49 = vadd.f32 %v6642_v50, %v6588_v13  ;;  %v6681_v25 = vadd.f32 %v6643_v52, %v6589_v8  ;;  %v6660_v11 = vsel %vm6268_vm8, %v6658_v26, %v6659_v28 }
 0x5be   : > { %v6682_v35 = vadd.f32 %v6645_v36, %v6590_v43  ;;  %v6683_v0 = vadd.f32 %v6646_v55, %v6591_v3  ;;  %v6684_v57 = vadd.f32 %v6648_v16, %v6592_v31  ;;  %v6685_v27 = vadd.f32 %v6649_v7, %v6593_v45  ;;  %v15482_v55 = vld [vmem:[#allocation61_spill] sm:$0xff] }
 0x5bf   : > { %v6686_v33 = vadd.f32 %v6651_v9, %v6594_v41  ;;  %v6687_v39 = vadd.f32 %v6652_v44, %v6595_v58  ;;  %v6688_v51 = vadd.f32 %v6654_v34, %v6596_v53  ;;  %v6689_v47 = vadd.f32 %v6655_v15, %v6597_v38  ;;  %v13829_v58 = vld [vmem:[#allocation2 + $0xf8] sm:$0xff]  ;;  %v13833_v38 = vld [vmem:[#allocation2 + $0x100] sm:$0xff] }
 0x5c0   : > { %v6690_v6 = vadd.f32 %v6657_v17, %v6598_v22  ;;  %v6691_v42 = vadd.f32 %v6658_v26, %v6599_v19  ;;  %v6692_v29 = vadd.f32 %v6660_v11, %v6600_v61  ;;  %v6697_v20 = vmul.f32 %v13549_v4, %v15478_v14  ;;  %15479 = vst [vmem:[#allocation30_spill] sm:$0xff] %v13829_v58 }
 0x5c1   : > { %v6698_v40 = vmul.f32 %v13677_v24, %v15478_v14  ;;  %v6699_v13 = vmul.f32 %v13412_v59, %v15478_v14  ;;  %v6700_v8 = vmul.f32 %v13683_v10, %v15478_v14  ;;  %v6701_v45 = vmul.f32 %v13418_v30, %v15478_v14  ;;  %15480 = vst [vmem:[#allocation39_spill] sm:$0xff] %v13833_v38 }
 0x5c2   : > { %v6702_v22 = vmul.f32 %v13689_v54, %v15478_v14  ;;  %v6703_v43 = vmul.f32 %v13424_v23, %v15478_v14  ;;  %v6704_v3 = vmul.f32 %v13747_v60, %v15478_v14  ;;  %v6705_v31 = vmul.f32 %v15470_v5, %v15478_v14 }
 0x5c3   : > { %v6706_v41 = vmul.f32 %v13789_v21, %v15478_v14  ;;  %v6707_v53 = vmul.f32 %v13829_v58, %v15478_v14  ;;  %v6708_v19 = vmul.f32 %v13833_v38, %v15478_v14  ;;  %v6709_v61 = vmul.f32 %v15476_v1, %v15478_v14 }
 0x5c4   : > { %v6710_v56 = vmul.f32 %v15478_v14, %v15477_v32  ;;  %v6711_v52 = vmul.f32 %v15481_v48, %v15478_v14  ;;  %v6712_v62 = vmul.f32 %v15478_v14, %v15482_v55  ;;  %v6729_v50 = vrot.slane %v6697_v20, 5 }
 0x5c5   : > { %v6730_v7 = vrot.slane %v6698_v40, 5  ;;  %v6732_v36 = vrot.slane %v6699_v13, 5  ;;  %v6733_v16 = vrot.slane %v6700_v8, 5  ;;  %v6735_v44 = vrot.slane %v6701_v45, 5 }
 0x5c6   : > { %v6736_v9 = vrot.slane %v6702_v22, 5  ;;  %v6738_v15 = vrot.slane %v6703_v43, 5  ;;  %v6739_v46 = vrot.slane %v6704_v3, 5  ;;  %v6741_v28 = vrot.slane %v6705_v31, 5 }
 0x5c7   : > { %v6731_v26 = vsel %vm6268_vm8, %v6729_v50, %v6730_v7  ;;  %v6734_v34 = vsel %vm6268_vm8, %v6732_v36, %v6733_v16  ;;  %v6742_v32 = vrot.slane %v6706_v41, 5  ;;  %v6744_v24 = vrot.slane %v6707_v53, 5 }
 0x5c8   : > { %v6737_v17 = vsel %vm6268_vm8, %v6735_v44, %v6736_v9  ;;  %v6740_v11 = vsel %vm6268_vm8, %v6738_v15, %v6739_v46  ;;  %v6745_v14 = vrot.slane %v6708_v19, 5  ;;  %v6747_v40 = vrot.slane %v6709_v61, 5 }
 0x5c9   : > { %v6743_v20 = vsel %vm6268_vm8, %v6741_v28, %v6742_v32  ;;  %v6748_v13 = vrot.slane %v6710_v56, 5  ;;  %v6750_v8 = vrot.slane %v6711_v52, 5  ;;  %v6751_v22 = vrot.slane %v6712_v62, 5 }
 0x5ca   : > { %v6746_v45 = vsel %vm6268_vm8, %v6744_v24, %v6745_v14  ;;  %v6769_v43 = vadd.f32 %v6729_v50, %v6677_v12  ;;  %v6770_v3 = vadd.f32 %v6731_v26, %v6678_v2  ;;  %v6771_v31 = vadd.f32 %v6732_v36, %v6679_v37  ;;  %v15483_v12 = vld [vmem:[#allocation58_spill] sm:$0xff] }
 0x5cb   : > { %v6749_v7 = vsel %vm6268_vm8, %v6747_v40, %v6748_v13  ;;  %v6772_v41 = vadd.f32 %v6734_v34, %v6680_v49  ;;  %v6773_v16 = vadd.f32 %v6735_v44, %v6681_v25  ;;  %v6752_v9 = vsel %vm6268_vm8, %v6750_v8, %v6751_v22 }
 0x5cc   : > { %v6774_v46 = vadd.f32 %v6737_v17, %v6682_v35  ;;  %v6775_v53 = vadd.f32 %v6738_v15, %v6683_v0  ;;  %v6776_v19 = vadd.f32 %v6740_v11, %v6684_v57  ;;  %v6777_v4 = vadd.f32 %v6741_v28, %v6685_v27 }
 0x5cd   : > { %v6778_v32 = vadd.f32 %v6743_v20, %v6686_v33  ;;  %v6779_v61 = vadd.f32 %v6744_v24, %v6687_v39  ;;  %v6780_v56 = vadd.f32 %v6746_v45, %v6688_v51  ;;  %v6781_v52 = vadd.f32 %v6747_v40, %v6689_v47  ;;  %v13875_v39 = vld [vmem:[#allocation2 + $0x118] sm:$0xff] }
 0x5ce   : > { %v6782_v18 = vadd.f32 %v6749_v7, %v6690_v6  ;;  %v6783_v14 = vadd.f32 %v6750_v8, %v6691_v42  ;;  %v6784_v62 = vadd.f32 %v6752_v9, %v6692_v29  ;;  %v6789_v2 = vmul.f32 %v13412_v59, %v15483_v12  ;;  %15484 = vst [vmem:[#allocation53_spill] sm:$0xff] %v13875_v39  ;;  %v15485_v47 = vld [vmem:[#allocation36_spill] sm:$0xff]  ;;  %v15486_v29 = vld [vmem:[#allocation97_spill] sm:$0xff] }
 0x5cf   : > { %v6790_v37 = vmul.f32 %v13683_v10, %v15483_v12  ;;  %v6791_v49 = vmul.f32 %v13418_v30, %v15483_v12  ;;  %v6792_v25 = vmul.f32 %v13689_v54, %v15483_v12  ;;  %v6793_v24 = vmul.f32 %v13424_v23, %v15483_v12 }
 0x5d0   : > { %v6794_v6 = vmul.f32 %v13747_v60, %v15483_v12  ;;  %v6795_v35 = vmul.f32 %v15470_v5, %v15483_v12  ;;  %v6796_v0 = vmul.f32 %v13789_v21, %v15483_v12  ;;  %v6797_v57 = vmul.f32 %v13829_v58, %v15483_v12 }
 0x5d1   : > { %v6798_v27 = vmul.f32 %v13833_v38, %v15483_v12  ;;  %v6799_v33 = vmul.f32 %v15476_v1, %v15483_v12  ;;  %v6800_v23 = vmul.f32 %v13875_v39, %v15483_v12  ;;  %v6801_v5 = vmul.f32 %v15481_v48, %v15483_v12 }
 0x5d2   : > { %v6802_v51 = vmul.f32 %v15483_v12, %v15482_v55  ;;  %v6803_v42 = vmul.f32 %v15485_v47, %v15483_v12  ;;  %v6804_v50 = vmul.f32 %v15483_v12, %v15486_v29  ;;  %v6821_v36 = vrot.slane %v6789_v2, 5  ;;  %v15488_v47 = vld [vmem:[#allocation95_spill] sm:$0xff] }
 0x5d3   : > { %v6822_v44 = vrot.slane %v6790_v37, 5  ;;  %v6824_v1 = vrot.slane %v6791_v49, 5  ;;  %v6825_v15 = vrot.slane %v6792_v25, 5  ;;  %v6827_v26 = vrot.slane %v6793_v24, 5 }
 0x5d4   : > { %v6828_v34 = vrot.slane %v6794_v6, 5  ;;  %v6830_v28 = vrot.slane %v6795_v35, 5  ;;  %v6831_v17 = vrot.slane %v6796_v0, 5  ;;  %v6833_v20 = vrot.slane %v6797_v57, 5 }
 0x5d5   : > { %v6823_v11 = vsel %vm6268_vm8, %v6821_v36, %v6822_v44  ;;  %v6826_v48 = vsel %vm6268_vm8, %v6824_v1, %v6825_v15  ;;  %v6834_v55 = vrot.slane %v6798_v27, 5  ;;  %v6836_v8 = vrot.slane %v6799_v33, 5  ;;  %v8745_v44 = vld [vmem:[%s14465_s8] sm:$0x7] }
 0x5d6   : > { %v6829_v40 = vsel %vm6268_vm8, %v6827_v26, %v6828_v34  ;;  %v6832_v13 = vsel %vm6268_vm8, %v6830_v28, %v6831_v17  ;;  %v6837_v45 = vrot.slane %v6800_v23, 5  ;;  %v6839_v7 = vrot.slane %v6801_v5, 5 }
 0x5d7   : > { %v6835_v22 = vsel %vm6268_vm8, %v6833_v20, %v6834_v55  ;;  %v6840_v9 = vrot.slane %v6802_v51, 5  ;;  %v6842_v12 = vrot.slane %v6803_v42, 5  ;;  %v6843_v37 = vrot.slane %v6804_v50, 5  ;;  %v8744_v50 = vld [vmem:[#allocation14 + $0x30] sm:$0x7f] }
 0x5d8   : > { %v6838_v2 = vsel %vm6268_vm8, %v6836_v8, %v6837_v45  ;;  %v13893_v49 = vadd.f32 %v6821_v36, %v6769_v43  ;;  %v13895_v25 = vadd.f32 %v6823_v11, %v6770_v3  ;;  %v13898_v6 = vadd.f32 %v6824_v1, %v6771_v31  ;;  %v15496_v1 = vld [vmem:[#allocation38_spill] sm:$0xff]  ;;  %v8748_v11 = vld [vmem:[#allocation2 + $0x20] sm:$0xff] }
 0x5d9   : > { %v6841_v24 = vsel %vm6268_vm8, %v6839_v7, %v6840_v9  ;;  %v13900_v35 = vadd.f32 %v6826_v48, %v6772_v41  ;;  %v13902_v0 = vadd.f32 %v6827_v26, %v6773_v16  ;;  %v6844_v57 = vsel %vm6268_vm8, %v6842_v12, %v6843_v37  ;;  %v8746_v26 = vld [vmem:[#allocation2 + $0x8] sm:$0xff]  ;;  %v15499_v45 = vld [vmem:[#allocation25_spill] sm:$0xff] }
 0x5da   : > { %v13905_v27 = vadd.f32 %v6829_v40, %v6774_v46  ;;  %v13907_v33 = vadd.f32 %v6830_v28, %v6775_v53  ;;  %v13909_v23 = vadd.f32 %v6832_v13, %v6776_v19  ;;  %v13911_v43 = vadd.f32 %v6833_v20, %v6777_v4  ;;  %v15487_v53 = vld [vmem:[#allocation40_spill] sm:$0xff]  ;;  %v15489_v4 = vld [vmem:[#allocation27_spill] sm:$0xff]  ;;  %v8749_v20 = vld [vmem:[#allocation2 + $0x28] sm:$0xff] }
 0x5db   : > { %v13913_v3 = vadd.f32 %v6835_v22, %v6778_v32  ;;  %v13915_v5 = vadd.f32 %v6836_v8, %v6779_v61  ;;  %v13917_v31 = vadd.f32 %v6838_v2, %v6780_v56  ;;  %v13919_v41 = vadd.f32 %v6839_v7, %v6781_v52  ;;  %v15490_v32 = vld [vmem:[#allocation31_spill] sm:$0xff]  ;;  %v15491_v56 = vld [vmem:[#allocation92_spill] sm:$0xff]  ;;  %v15502_v37 = vld [vmem:[#allocation77_spill] sm:$0xff] }
 0x5dc   : > { %v13921_v16 = vadd.f32 %v6841_v24, %v6782_v18  ;;  %v13923_v51 = vadd.f32 %v6842_v12, %v6783_v14  ;;  %v13925_v46 = vadd.f32 %v6844_v57, %v6784_v62  ;;  %v6880_v19 = vrot.slane %v15488_v47, %v15487_v53  ;;  %v8742_v18 = vld [vmem:[#allocation14 + $0x20] sm:$0x7f]  ;;  %v8743_v62 = vld [vmem:[#allocation14 + $0x28] sm:$0x7f]  ;;  %v8747_v28 = vld [vmem:[#allocation2 + $0x10] sm:$0xff] }
 0x5dd   : > { %v13931_v42 = vrot.slane %v15489_v4, %v15487_v53  ;;  %v13935_v61 = vrot.slane %v15490_v32, %v15487_v53  ;;  %v13939_v52 = vrot.slane %v15491_v56, %v15487_v53  ;;  %v13942_v14 = vrot.slane %v8742_v18, %v15487_v53  ;;  %v15498_v13 = vld [vmem:[#allocation48_spill] sm:$0xff]  ;;  %v15501_v12 = vld [vmem:[#allocation67_spill] sm:$0xff]  ;;  %v15504_v47 = vld [vmem:[#allocation50_spill] sm:$0xff] }
 0x5de   : > { %v13945_v29 = vrot.slane %v8743_v62, %v15487_v53  ;;  %v13948_v36 = vrot.slane %v8744_v50, %v15487_v53  ;;  %v13954_v15 = vrot.slane %v8745_v44, %v15496_v1  ;;  %v6881_v34 = vmul.f32 %v8746_v26, %v6880_v19  ;;  %v15500_v7 = vld [vmem:[#allocation24_spill] sm:$0xff] }
 0x5df   : > { %15492 = vst [vmem:[#allocation75_spill] sm:$0xff] %v13939_v52  ;;  %15493 = vst [vmem:[#allocation76_spill] sm:$0xff] %v13942_v14  ;;  %v6882_v17 = vmul.f32 %v8747_v28, %v6880_v19  ;;  %v6883_v48 = vmul.f32 %v8748_v11, %v6880_v19  ;;  %v6884_v55 = vmul.f32 %v8749_v20, %v6880_v19  ;;  %v15503_v57 = vld [vmem:[#allocation68_spill] sm:$0xff] }
 0x5e0   : > { %15494 = vst [vmem:[#allocation45_spill] sm:$0xff] %v13945_v29  ;;  %15495 = vst [vmem:[#allocation34_spill] sm:$0xff] %v13948_v36  ;;  %v6885_v40 = vmul.f32 %v13653_v63, %v6880_v19  ;;  %v6886_v8 = vmul.f32 %v15498_v13, %v6880_v19  ;;  %v6887_v22 = vmul.f32 %v15499_v45, %v6880_v19  ;;  %v6913_v50 = vrot.slane %v6881_v34, 6 }
 0x5e1   : > { %15497 = vst [vmem:[#allocation80_spill] sm:$0xff] %v13954_v15  ;;  %v6888_v9 = vmul.f32 %v15500_v7, %v6880_v19  ;;  %v6889_v2 = vmul.f32 %v15501_v12, %v6880_v19  ;;  %v6890_v24 = vmul.f32 %v15502_v37, %v6880_v19  ;;  %v6891_v53 = vmul.f32 %v15503_v57, %v6880_v19 }
 0x5e2   : > { %v6892_v4 = vmul.f32 %v15504_v47, %v6880_v19  ;;  %v6893_v32 = vmul.f32 %v13412_v59, %v6880_v19  ;;  %v6894_v56 = vmul.f32 %v13683_v10, %v6880_v19  ;;  %v6895_v18 = vmul.f32 %v13418_v30, %v6880_v19 }
 0x5e3   : > { %v6896_v62 = vmul.f32 %v13689_v54, %v6880_v19  ;;  %v6914_v44 = vrot.slane %v6882_v17, 6  ;;  %v6916_v26 = vrot.slane %v6883_v48, 6  ;;  %v6917_v28 = vrot.slane %v6884_v55, 6 }
 0x5e4   : > { %v6919_v1 = vrot.slane %v6885_v40, 6  ;;  %v6920_v15 = vrot.slane %v6886_v8, 6  ;;  %v6922_v36 = vrot.slane %v6887_v22, 6  ;;  %v6923_v29 = vrot.slane %v6888_v9, 6 }
 0x5e5   : > { %v6915_v39 = vsel %vm3534_vm7, %v6913_v50, %v6914_v44  ;;  %v6918_v14 = vsel %vm3534_vm7, %v6916_v26, %v6917_v28  ;;  %v6925_v38 = vrot.slane %v6889_v2, 6  ;;  %v6926_v59 = vrot.slane %v6890_v24, 6 }
 0x5e6   : > { %v6921_v58 = vsel %vm3534_vm7, %v6919_v1, %v6920_v15  ;;  %v6924_v30 = vsel %vm3534_vm7, %v6922_v36, %v6923_v29  ;;  %v6928_v52 = vrot.slane %v6891_v53, 6  ;;  %v6929_v19 = vrot.slane %v6892_v4, 6 }
 0x5e7   : > { %v6927_v34 = vsel %vm3534_vm7, %v6925_v38, %v6926_v59  ;;  %v6931_v17 = vrot.slane %v6893_v32, 6  ;;  %v6932_v48 = vrot.slane %v6894_v56, 6  ;;  %v6934_v55 = vrot.slane %v6895_v18, 6 }
 0x5e8   : > { %v6930_v40 = vsel %vm3534_vm7, %v6928_v52, %v6929_v19  ;;  %v6935_v8 = vrot.slane %v6896_v62, 6  ;;  %v6953_v22 = vadd.f32 %v6913_v50, %v13893_v49  ;;  %v6954_v9 = vadd.f32 %v6915_v39, %v13895_v25 }
 0x5e9   : > { %v6933_v2 = vsel %vm3534_vm7, %v6931_v17, %v6932_v48  ;;  %v6955_v15 = vadd.f32 %v6916_v26, %v13898_v6  ;;  %v6956_v29 = vadd.f32 %v6918_v14, %v13900_v35  ;;  %v6957_v24 = vadd.f32 %v6919_v1, %v13902_v0 }
 0x5ea   : > { %v6936_v53 = vsel %vm3534_vm7, %v6934_v55, %v6935_v8  ;;  %v6958_v4 = vadd.f32 %v6921_v58, %v13905_v27  ;;  %v6959_v32 = vadd.f32 %v6922_v36, %v13907_v33  ;;  %v6960_v56 = vadd.f32 %v6924_v30, %v13909_v23  ;;  %v14016_v36 = vld [vmem:[#allocation2 + $0xb0] sm:$0xff] }
 0x5eb   : > { %v6961_v49 = vadd.f32 %v6925_v38, %v13911_v43  ;;  %v6962_v39 = vadd.f32 %v6927_v34, %v13913_v3  ;;  %v6963_v25 = vadd.f32 %v6928_v52, %v13915_v5  ;;  %v6964_v6 = vadd.f32 %v6930_v40, %v13917_v31 }
 0x5ec   : > { %v6965_v35 = vadd.f32 %v6931_v17, %v13919_v41  ;;  %v6966_v0 = vadd.f32 %v6933_v2, %v13921_v16  ;;  %v6967_v14 = vadd.f32 %v6934_v55, %v13923_v51  ;;  %v6968_v58 = vadd.f32 %v6936_v53, %v13925_v46  ;;  %v14010_v51 = vld [vmem:[#allocation2 + $0x98] sm:$0xff] }
 0x5ed   : > { %v6973_v27 = vmul.f32 %v8748_v11, %v13931_v42  ;;  %v6974_v33 = vmul.f32 %v8749_v20, %v13931_v42  ;;  %v6975_v38 = vmul.f32 %v13653_v63, %v13931_v42  ;;  %v6976_v23 = vmul.f32 %v15498_v13, %v13931_v42  ;;  %v14022_v20 = vld [vmem:[#allocation2 + $0xc8] sm:$0xff] }
 0x5ee   : > { %v6977_v43 = vmul.f32 %v15499_v45, %v13931_v42  ;;  %v6978_v3 = vmul.f32 %v15500_v7, %v13931_v42  ;;  %v6979_v5 = vmul.f32 %v15501_v12, %v13931_v42  ;;  %v6980_v31 = vmul.f32 %v15502_v37, %v13931_v42 }
 0x5ef   : > { %v6981_v41 = vmul.f32 %v15503_v57, %v13931_v42  ;;  %v6982_v16 = vmul.f32 %v15504_v47, %v13931_v42  ;;  %v6983_v46 = vmul.f32 %v14010_v51, %v13931_v42  ;;  %v6984_v52 = vmul.f32 %v13683_v10, %v13931_v42 }
 0x5f0   : > { %v6985_v1 = vmul.f32 %v14016_v36, %v13931_v42  ;;  %v6986_v11 = vmul.f32 %v13689_v54, %v13931_v42  ;;  %v6987_v18 = vmul.f32 %v14022_v20, %v13931_v42  ;;  %v6988_v62 = vmul.f32 %v13747_v60, %v13931_v42 }
 0x5f1   : > { %v7005_v50 = vrot.slane %v6973_v27, 6  ;;  %v7006_v44 = vrot.slane %v6974_v33, 6  ;;  %v7008_v26 = vrot.slane %v6975_v38, 6  ;;  %v7009_v28 = vrot.slane %v6976_v23, 6 }
 0x5f2   : > { %v7011_v59 = vrot.slane %v6977_v43, 6  ;;  %v7012_v30 = vrot.slane %v6978_v3, 6  ;;  %v7014_v19 = vrot.slane %v6979_v5, 6  ;;  %v7015_v34 = vrot.slane %v6980_v31, 6 }
 0x5f3   : > { %v7007_v17 = vsel %vm3534_vm7, %v7005_v50, %v7006_v44  ;;  %v7010_v48 = vsel %vm3534_vm7, %v7008_v26, %v7009_v28  ;;  %v7017_v55 = vrot.slane %v6981_v41, 6  ;;  %v7018_v40 = vrot.slane %v6982_v16, 6 }
 0x5f4   : > { %v7013_v8 = vsel %vm3534_vm7, %v7011_v59, %v7012_v30  ;;  %v7016_v2 = vsel %vm3534_vm7, %v7014_v19, %v7015_v34  ;;  %v7020_v53 = vrot.slane %v6983_v46, 6  ;;  %v7021_v42 = vrot.slane %v6984_v52, 6  ;;  %v7779_v46 = vld [vmem:[%s14468_s11] sm:$0x3] }
 0x5f5   : > { %v7019_v27 = vsel %vm3534_vm7, %v7017_v55, %v7018_v40  ;;  %v7023_v33 = vrot.slane %v6985_v1, 6  ;;  %v7024_v38 = vrot.slane %v6986_v11, 6  ;;  %v7026_v23 = vrot.slane %v6987_v18, 6  ;;  %8462 = vmatpush3.msk.msra.mxu1 %vm3534_vm7, %v7779_v46 }
 0x5f6   : > { %v7022_v43 = vsel %vm3534_vm7, %v7020_v53, %v7021_v42  ;;  %v7027_v3 = vrot.slane %v6988_v62, 6  ;;  %v7045_v5 = vadd.f32 %v7005_v50, %v6953_v22  ;;  %v7046_v31 = vadd.f32 %v7007_v17, %v6954_v9 }
 0x5f7   : > { %v7025_v44 = vsel %vm3534_vm7, %v7023_v33, %v7024_v38  ;;  %v7047_v41 = vadd.f32 %v7008_v26, %v6955_v15  ;;  %v7048_v16 = vadd.f32 %v7010_v48, %v6956_v29  ;;  %v7049_v28 = vadd.f32 %v7011_v59, %v6957_v24 }
 0x5f8   : > { %v7028_v52 = vsel %vm3534_vm7, %v7026_v23, %v7027_v3  ;;  %v7050_v30 = vadd.f32 %v7013_v8, %v6958_v4  ;;  %v7051_v1 = vadd.f32 %v7014_v19, %v6959_v32  ;;  %v7052_v11 = vadd.f32 %v7016_v2, %v6960_v56 }
 0x5f9   : > { %v7053_v18 = vadd.f32 %v7017_v55, %v6961_v49  ;;  %v7054_v62 = vadd.f32 %v7019_v27, %v6962_v39  ;;  %v7055_v22 = vadd.f32 %v7020_v53, %v6963_v25  ;;  %v7056_v9 = vadd.f32 %v7022_v43, %v6964_v6 }
 0x5fa   : > { %v7057_v50 = vadd.f32 %v7023_v33, %v6965_v35  ;;  %v7058_v34 = vadd.f32 %v7025_v44, %v6966_v0  ;;  %v7059_v15 = vadd.f32 %v7026_v23, %v6967_v14  ;;  %v7060_v29 = vadd.f32 %v7028_v52, %v6968_v58  ;;  %v14068_v0 = vld [vmem:[#allocation2 + $0xe0] sm:$0xff] }
 0x5fb   : > { %v7065_v24 = vmul.f32 %v13653_v63, %v13935_v61  ;;  %v7066_v26 = vmul.f32 %v15498_v13, %v13935_v61  ;;  %v7067_v4 = vmul.f32 %v15499_v45, %v13935_v61  ;;  %v7068_v32 = vmul.f32 %v15500_v7, %v13935_v61 }
 0x5fc   : > { %v7069_v56 = vmul.f32 %v15501_v12, %v13935_v61  ;;  %v7070_v49 = vmul.f32 %v15502_v37, %v13935_v61  ;;  %v7071_v39 = vmul.f32 %v15503_v57, %v13935_v61  ;;  %v7072_v63 = vmul.f32 %v15504_v47, %v13935_v61 }
 0x5fd   : > { %v7073_v13 = vmul.f32 %v14010_v51, %v13935_v61  ;;  %v7074_v25 = vmul.f32 %v13683_v10, %v13935_v61  ;;  %v7075_v6 = vmul.f32 %v14016_v36, %v13935_v61  ;;  %v7076_v12 = vmul.f32 %v13689_v54, %v13935_v61 }
 0x5fe   : > { %v7077_v35 = vmul.f32 %v14022_v20, %v13935_v61  ;;  %v7078_v57 = vmul.f32 %v13747_v60, %v13935_v61  ;;  %v7079_v14 = vmul.f32 %v14068_v0, %v13935_v61  ;;  %v7080_v58 = vmul.f32 %v13789_v21, %v13935_v61 }
 0x5ff   : > { %v7097_v59 = vrot.slane %v7065_v24, 6  ;;  %v7098_v19 = vrot.slane %v7066_v26, 6  ;;  %v7100_v17 = vrot.slane %v7067_v4, 6  ;;  %v7101_v48 = vrot.slane %v7068_v32, 6 }
 0x600   : > { %v7103_v55 = vrot.slane %v7069_v56, 6  ;;  %v7104_v40 = vrot.slane %v7070_v49, 6  ;;  %v7106_v8 = vrot.slane %v7071_v39, 6  ;;  %v7107_v2 = vrot.slane %v7072_v63, 6 }
 0x601   : > { %v7099_v53 = vsel %vm3534_vm7, %v7097_v59, %v7098_v19  ;;  %v7102_v42 = vsel %vm3534_vm7, %v7100_v17, %v7101_v48  ;;  %v7109_v27 = vrot.slane %v7073_v13, 6  ;;  %v7110_v33 = vrot.slane %v7074_v25, 6 }
 0x602   : > { %v7105_v38 = vsel %vm3534_vm7, %v7103_v55, %v7104_v40  ;;  %v7108_v23 = vsel %vm3534_vm7, %v7106_v8, %v7107_v2  ;;  %v7112_v43 = vrot.slane %v7075_v6, 6  ;;  %v7113_v61 = vrot.slane %v7076_v12, 6 }
 0x603   : > { %v7111_v3 = vsel %vm3534_vm7, %v7109_v27, %v7110_v33  ;;  %v7115_v44 = vrot.slane %v7077_v35, 6  ;;  %v7116_v46 = vrot.slane %v7078_v57, 6  ;;  %v7118_v52 = vrot.slane %v7079_v14, 6 }
 0x604   : > { %v7114_v24 = vsel %vm3534_vm7, %v7112_v43, %v7113_v61  ;;  %v7119_v26 = vrot.slane %v7080_v58, 6  ;;  %v7137_v4 = vadd.f32 %v7097_v59, %v7045_v5  ;;  %v7138_v32 = vadd.f32 %v7099_v53, %v7046_v31  ;;  %v15505_v5 = vld [vmem:[#allocation75_spill] sm:$0xff] }
 0x605   : > { %v7117_v56 = vsel %vm3534_vm7, %v7115_v44, %v7116_v46  ;;  %v7139_v49 = vadd.f32 %v7100_v17, %v7047_v41  ;;  %v7140_v39 = vadd.f32 %v7102_v42, %v7048_v16  ;;  %v7141_v63 = vadd.f32 %v7103_v55, %v7049_v28  ;;  %v8754_v16 = vld [vmem:[#allocation2 + $0x68] sm:$0xff]  ;;  %v15507_v17 = vld [vmem:[#allocation39_spill] sm:$0xff] }
 0x606   : > { %v7120_v13 = vsel %vm3534_vm7, %v7118_v52, %v7119_v26  ;;  %v7142_v25 = vadd.f32 %v7105_v38, %v7050_v30  ;;  %v7143_v6 = vadd.f32 %v7106_v8, %v7051_v1  ;;  %v7144_v12 = vadd.f32 %v7108_v23, %v7052_v11  ;;  %v14089_v1 = vld [vmem:[#allocation2 + $0x80] sm:$0xff] }
 0x607   : > { %v7145_v19 = vadd.f32 %v7109_v27, %v7053_v18  ;;  %v7146_v48 = vadd.f32 %v7111_v3, %v7054_v62  ;;  %v7147_v35 = vadd.f32 %v7112_v43, %v7055_v22  ;;  %v7148_v57 = vadd.f32 %v7114_v24, %v7056_v9 }
 0x608   : > { %v7149_v14 = vadd.f32 %v7115_v44, %v7057_v50  ;;  %v7150_v40 = vadd.f32 %v7117_v56, %v7058_v34  ;;  %v7151_v2 = vadd.f32 %v7118_v52, %v7059_v15  ;;  %v7152_v58 = vadd.f32 %v7120_v13, %v7060_v29  ;;  %v15506_v29 = vld [vmem:[#allocation30_spill] sm:$0xff] }
 0x609   : > { %v7157_v31 = vmul.f32 %v15499_v45, %v15505_v5  ;;  %v7158_v41 = vmul.f32 %v15500_v7, %v15505_v5  ;;  %v7159_v28 = vmul.f32 %v8754_v16, %v15505_v5  ;;  %v7160_v30 = vmul.f32 %v15502_v37, %v15505_v5 }
 0x60a   : > { %v7161_v11 = vmul.f32 %v14089_v1, %v15505_v5  ;;  %v7162_v18 = vmul.f32 %v15504_v47, %v15505_v5  ;;  %v7163_v45 = vmul.f32 %v14010_v51, %v15505_v5  ;;  %v7164_v7 = vmul.f32 %v13683_v10, %v15505_v5 }
 0x60b   : > { %v7165_v62 = vmul.f32 %v14016_v36, %v15505_v5  ;;  %v7166_v22 = vmul.f32 %v13689_v54, %v15505_v5  ;;  %v7167_v9 = vmul.f32 %v14022_v20, %v15505_v5  ;;  %v7168_v50 = vmul.f32 %v13747_v60, %v15505_v5 }
 0x60c   : > { %v7169_v34 = vmul.f32 %v14068_v0, %v15505_v5  ;;  %v7170_v15 = vmul.f32 %v13789_v21, %v15505_v5  ;;  %v7171_v59 = vmul.f32 %v15506_v29, %v15505_v5  ;;  %v7172_v55 = vmul.f32 %v15507_v17, %v15505_v5 }
 0x60d   : > { %v7189_v8 = vrot.slane %v7157_v31, 6  ;;  %v7190_v53 = vrot.slane %v7158_v41, 6  ;;  %v7192_v42 = vrot.slane %v7159_v28, 6  ;;  %v7193_v27 = vrot.slane %v7160_v30, 6 }
 0x60e   : > { %v7195_v33 = vrot.slane %v7161_v11, 6  ;;  %v7196_v38 = vrot.slane %v7162_v18, 6  ;;  %v7198_v23 = vrot.slane %v7163_v45, 6  ;;  %v7199_v43 = vrot.slane %v7164_v7, 6 }
 0x60f   : > { %v7191_v61 = vsel %vm3534_vm7, %v7189_v8, %v7190_v53  ;;  %v7194_v3 = vsel %vm3534_vm7, %v7192_v42, %v7193_v27  ;;  %v7201_v44 = vrot.slane %v7165_v62, 6  ;;  %v7202_v46 = vrot.slane %v7166_v22, 6 }
 0x610   : > { %v7197_v52 = vsel %vm3534_vm7, %v7195_v33, %v7196_v38  ;;  %v7200_v24 = vsel %vm3534_vm7, %v7198_v23, %v7199_v43  ;;  %v7204_v26 = vrot.slane %v7167_v9, 6  ;;  %v7205_v56 = vrot.slane %v7168_v50, 6 }
 0x611   : > { %v7203_v13 = vsel %vm3534_vm7, %v7201_v44, %v7202_v46  ;;  %v7207_v5 = vrot.slane %v7169_v34, 6  ;;  %v7208_v31 = vrot.slane %v7170_v15, 6  ;;  %v7210_v41 = vrot.slane %v7171_v59, 6 }
 0x612   : > { %v7206_v28 = vsel %vm3534_vm7, %v7204_v26, %v7205_v56  ;;  %v7211_v30 = vrot.slane %v7172_v55, 6  ;;  %v7229_v11 = vadd.f32 %v7189_v8, %v7137_v4  ;;  %v7230_v18 = vadd.f32 %v7191_v61, %v7138_v32  ;;  %v15508_v4 = vld [vmem:[#allocation76_spill] sm:$0xff] }
 0x613   : > { %v7209_v45 = vsel %vm3534_vm7, %v7207_v5, %v7208_v31  ;;  %v7231_v7 = vadd.f32 %v7192_v42, %v7139_v49  ;;  %v7232_v62 = vadd.f32 %v7194_v3, %v7140_v39  ;;  %v7233_v22 = vadd.f32 %v7195_v33, %v7141_v63 }
 0x614   : > { %v7212_v53 = vsel %vm3534_vm7, %v7210_v41, %v7211_v30  ;;  %v7234_v27 = vadd.f32 %v7197_v52, %v7142_v25  ;;  %v7235_v9 = vadd.f32 %v7198_v23, %v7143_v6  ;;  %v7236_v50 = vadd.f32 %v7200_v24, %v7144_v12 }
 0x615   : > { %v7237_v38 = vadd.f32 %v7201_v44, %v7145_v19  ;;  %v7238_v43 = vadd.f32 %v7203_v13, %v7146_v48  ;;  %v7239_v34 = vadd.f32 %v7204_v26, %v7147_v35  ;;  %v7240_v15 = vadd.f32 %v7206_v28, %v7148_v57 }
 0x616   : > { %v7241_v59 = vadd.f32 %v7207_v5, %v7149_v14  ;;  %v7242_v46 = vadd.f32 %v7209_v45, %v7150_v40  ;;  %v7243_v56 = vadd.f32 %v7210_v41, %v7151_v2  ;;  %v7244_v55 = vadd.f32 %v7212_v53, %v7152_v58  ;;  %v14150_v14 = vld [vmem:[#allocation2 + $0x110] sm:$0xff]  ;;  %v15509_v40 = vld [vmem:[#allocation53_spill] sm:$0xff] }
 0x617   : > { %v7249_v32 = vmul.f32 %v8754_v16, %v15508_v4  ;;  %v7250_v49 = vmul.f32 %v15502_v37, %v15508_v4  ;;  %v7251_v39 = vmul.f32 %v14089_v1, %v15508_v4  ;;  %v7252_v63 = vmul.f32 %v15504_v47, %v15508_v4 }
 0x618   : > { %v7253_v25 = vmul.f32 %v14010_v51, %v15508_v4  ;;  %v7254_v6 = vmul.f32 %v13683_v10, %v15508_v4  ;;  %v7255_v12 = vmul.f32 %v14016_v36, %v15508_v4  ;;  %v7256_v19 = vmul.f32 %v13689_v54, %v15508_v4 }
 0x619   : > { %v7257_v37 = vmul.f32 %v14022_v20, %v15508_v4  ;;  %v7258_v48 = vmul.f32 %v13747_v60, %v15508_v4  ;;  %v7259_v47 = vmul.f32 %v14068_v0, %v15508_v4  ;;  %v7260_v35 = vmul.f32 %v13789_v21, %v15508_v4 }
 0x61a   : > { %v7261_v10 = vmul.f32 %v15506_v29, %v15508_v4  ;;  %v7262_v57 = vmul.f32 %v15507_v17, %v15508_v4  ;;  %v7263_v54 = vmul.f32 %v14150_v14, %v15508_v4  ;;  %v7264_v2 = vmul.f32 %v15509_v40, %v15508_v4 }
 0x61b   : > { %v7281_v58 = vrot.slane %v7249_v32, 6  ;;  %v7282_v16 = vrot.slane %v7250_v49, 6  ;;  %v7284_v8 = vrot.slane %v7251_v39, 6  ;;  %v7285_v42 = vrot.slane %v7252_v63, 6 }
 0x61c   : > { %v7287_v33 = vrot.slane %v7253_v25, 6  ;;  %v7288_v23 = vrot.slane %v7254_v6, 6  ;;  %v7290_v61 = vrot.slane %v7255_v12, 6  ;;  %v7291_v3 = vrot.slane %v7256_v19, 6 }
 0x61d   : > { %v7283_v44 = vsel %vm3534_vm7, %v7281_v58, %v7282_v16  ;;  %v7286_v52 = vsel %vm3534_vm7, %v7284_v8, %v7285_v42  ;;  %v7293_v24 = vrot.slane %v7257_v37, 6  ;;  %v7294_v26 = vrot.slane %v7258_v48, 6 }
 0x61e   : > { %v7289_v13 = vsel %vm3534_vm7, %v7287_v33, %v7288_v23  ;;  %v7292_v5 = vsel %vm3534_vm7, %v7290_v61, %v7291_v3  ;;  %v7296_v31 = vrot.slane %v7259_v47, 6  ;;  %v7297_v41 = vrot.slane %v7260_v35, 6 }
 0x61f   : > { %v7295_v28 = vsel %vm3534_vm7, %v7293_v24, %v7294_v26  ;;  %v7299_v30 = vrot.slane %v7261_v10, 6  ;;  %v7300_v45 = vrot.slane %v7262_v57, 6  ;;  %v7302_v53 = vrot.slane %v7263_v54, 6 }
 0x620   : > { %v7298_v4 = vsel %vm3534_vm7, %v7296_v31, %v7297_v41  ;;  %v7303_v32 = vrot.slane %v7264_v2, 6  ;;  %v7321_v49 = vadd.f32 %v7281_v58, %v7229_v11  ;;  %v7322_v39 = vadd.f32 %v7283_v44, %v7230_v18  ;;  %v15510_v11 = vld [vmem:[#allocation45_spill] sm:$0xff]  ;;  %v8757_v58 = vld [vmem:[#allocation2 + $0x88] sm:$0xff] }
 0x621   : > { %v7301_v63 = vsel %vm3534_vm7, %v7299_v30, %v7300_v45  ;;  %v7323_v25 = vadd.f32 %v7284_v8, %v7231_v7  ;;  %v7324_v6 = vadd.f32 %v7286_v52, %v7232_v62  ;;  %v7325_v12 = vadd.f32 %v7287_v33, %v7233_v22  ;;  %v8758_v22 = vld [vmem:[#allocation2 + $0xa0] sm:$0xff]  ;;  %v8760_v8 = vld [vmem:[#allocation2 + $0x128] sm:$0xff]  ;;  %v8761_v33 = vld [vmem:[#allocation2 + $0x130] sm:$0xff] }
 0x622   : > { %v7304_v19 = vsel %vm3534_vm7, %v7302_v53, %v7303_v32  ;;  %v7326_v37 = vadd.f32 %v7289_v13, %v7234_v27  ;;  %v7327_v48 = vadd.f32 %v7290_v61, %v7235_v9  ;;  %v7328_v47 = vadd.f32 %v7292_v5, %v7236_v50  ;;  %v8759_v50 = vld [vmem:[#allocation2 + $0xb8] sm:$0xff] }
 0x623   : > { %v7329_v35 = vadd.f32 %v7293_v24, %v7237_v38  ;;  %v7330_v16 = vadd.f32 %v7295_v28, %v7238_v43  ;;  %v7331_v10 = vadd.f32 %v7296_v31, %v7239_v34  ;;  %v7332_v57 = vadd.f32 %v7298_v4, %v7240_v15 }
 0x624   : > { %v7333_v54 = vadd.f32 %v7299_v30, %v7241_v59  ;;  %v7334_v42 = vadd.f32 %v7301_v63, %v7242_v46  ;;  %v7335_v23 = vadd.f32 %v7302_v53, %v7243_v56  ;;  %v7336_v2 = vadd.f32 %v7304_v19, %v7244_v55 }
 0x625   : > { %v7341_v18 = vmul.f32 %v14089_v1, %v15510_v11  ;;  %v7342_v7 = vmul.f32 %v8757_v58, %v15510_v11  ;;  %v7343_v62 = vmul.f32 %v14010_v51, %v15510_v11  ;;  %v7344_v27 = vmul.f32 %v8758_v22, %v15510_v11 }
 0x626   : > { %v7345_v9 = vmul.f32 %v14016_v36, %v15510_v11  ;;  %v7346_v38 = vmul.f32 %v8759_v50, %v15510_v11  ;;  %v7347_v43 = vmul.f32 %v14022_v20, %v15510_v11  ;;  %v7348_v1 = vmul.f32 %v13747_v60, %v15510_v11 }
 0x627   : > { %v7349_v34 = vmul.f32 %v14068_v0, %v15510_v11  ;;  %v7350_v15 = vmul.f32 %v13789_v21, %v15510_v11  ;;  %v7351_v59 = vmul.f32 %v15506_v29, %v15510_v11  ;;  %v7352_v46 = vmul.f32 %v15507_v17, %v15510_v11 }
 0x628   : > { %v7353_v56 = vmul.f32 %v14150_v14, %v15510_v11  ;;  %v7354_v55 = vmul.f32 %v15509_v40, %v15510_v11  ;;  %v7355_v60 = vmul.f32 %v8760_v8, %v15510_v11  ;;  %v7356_v61 = vmul.f32 %v8761_v33, %v15510_v11 }
 0x629   : > { %v7373_v3 = vrot.slane %v7341_v18, 6  ;;  %v7374_v44 = vrot.slane %v7342_v7, 6  ;;  %v7376_v52 = vrot.slane %v7343_v62, 6  ;;  %v7377_v24 = vrot.slane %v7344_v27, 6 }
 0x62a   : > { %v7379_v26 = vrot.slane %v7345_v9, 6  ;;  %v7380_v13 = vrot.slane %v7346_v38, 6  ;;  %v7382_v5 = vrot.slane %v7347_v43, 6  ;;  %v7383_v31 = vrot.slane %v7348_v1, 6 }
 0x62b   : > { %v7375_v41 = vsel %vm3534_vm7, %v7373_v3, %v7374_v44  ;;  %v7378_v28 = vsel %vm3534_vm7, %v7376_v52, %v7377_v24  ;;  %v7385_v30 = vrot.slane %v7349_v34, 6  ;;  %v7386_v45 = vrot.slane %v7350_v15, 6 }
 0x62c   : > { %v7381_v53 = vsel %vm3534_vm7, %v7379_v26, %v7380_v13  ;;  %v7384_v4 = vsel %vm3534_vm7, %v7382_v5, %v7383_v31  ;;  %v7388_v32 = vrot.slane %v7351_v59, 6  ;;  %v7389_v63 = vrot.slane %v7352_v46, 6 }
 0x62d   : > { %v7387_v19 = vsel %vm3534_vm7, %v7385_v30, %v7386_v45  ;;  %v7391_v11 = vrot.slane %v7353_v56, 6  ;;  %v7392_v18 = vrot.slane %v7354_v55, 6  ;;  %v7394_v58 = vrot.slane %v7355_v60, 6 }
 0x62e   : > { %v7390_v7 = vsel %vm3534_vm7, %v7388_v32, %v7389_v63  ;;  %v7395_v62 = vrot.slane %v7356_v61, 6  ;;  %v7413_v27 = vadd.f32 %v7373_v3, %v7321_v49  ;;  %v7414_v9 = vadd.f32 %v7375_v41, %v7322_v39  ;;  %v15511_v49 = vld [vmem:[#allocation34_spill] sm:$0xff] }
 0x62f   : > { %v7393_v38 = vsel %vm3534_vm7, %v7391_v11, %v7392_v18  ;;  %v7415_v43 = vadd.f32 %v7376_v52, %v7323_v25  ;;  %v7416_v1 = vadd.f32 %v7378_v28, %v7324_v6  ;;  %v7417_v34 = vadd.f32 %v7379_v26, %v7325_v12 }
 0x630   : > { %v7396_v15 = vsel %vm3534_vm7, %v7394_v58, %v7395_v62  ;;  %v7418_v44 = vadd.f32 %v7381_v53, %v7326_v37  ;;  %v7419_v59 = vadd.f32 %v7382_v5, %v7327_v48  ;;  %v7420_v46 = vadd.f32 %v7384_v4, %v7328_v47  ;;  %v8762_v48 = vld [vmem:[#allocation2 + $0xd0] sm:$0xff] }
 0x631   : > { %v7421_v24 = vadd.f32 %v7385_v30, %v7329_v35  ;;  %v7422_v13 = vadd.f32 %v7387_v19, %v7330_v16  ;;  %v7423_v56 = vadd.f32 %v7388_v32, %v7331_v10  ;;  %v7424_v55 = vadd.f32 %v7390_v7, %v7332_v57 }
 0x632   : > { %v7425_v60 = vadd.f32 %v7391_v11, %v7333_v54  ;;  %v7426_v31 = vadd.f32 %v7393_v38, %v7334_v42  ;;  %v7427_v45 = vadd.f32 %v7394_v58, %v7335_v23  ;;  %v7428_v61 = vadd.f32 %v7396_v15, %v7336_v2 }
 0x633   : > { %v7433_v39 = vmul.f32 %v14010_v51, %v15511_v49  ;;  %v7434_v25 = vmul.f32 %v8758_v22, %v15511_v49  ;;  %v7435_v6 = vmul.f32 %v14016_v36, %v15511_v49  ;;  %v7436_v12 = vmul.f32 %v8759_v50, %v15511_v49 }
 0x634   : > { %v7437_v37 = vmul.f32 %v14022_v20, %v15511_v49  ;;  %v7438_v47 = vmul.f32 %v8762_v48, %v15511_v49  ;;  %v7439_v35 = vmul.f32 %v14068_v0, %v15511_v49  ;;  %v7440_v16 = vmul.f32 %v13789_v21, %v15511_v49  ;;  %v8763_v0 = vld [vmem:[#allocation2 + $0x140] sm:$0xff]  ;;  %v8764_v21 = vld [vmem:[#allocation2 + $0x148] sm:$0xff] }
 0x635   : > { %v7441_v51 = vmul.f32 %v15506_v29, %v15511_v49  ;;  %v7442_v36 = vmul.f32 %v15507_v17, %v15511_v49  ;;  %v7443_v10 = vmul.f32 %v14150_v14, %v15511_v49  ;;  %v7444_v20 = vmul.f32 %v15509_v40, %v15511_v49 }
 0x636   : > { %v7445_v57 = vmul.f32 %v8760_v8, %v15511_v49  ;;  %v7446_v54 = vmul.f32 %v8761_v33, %v15511_v49  ;;  %v7447_v42 = vmul.f32 %v8763_v0, %v15511_v49  ;;  %v7448_v23 = vmul.f32 %v8764_v21, %v15511_v49  ;;  %v15512_v21 = vld [vmem:[#allocation80_spill] sm:$0xff] }
 0x637   : > { %v7465_v29 = vrot.slane %v7433_v39, 6  ;;  %v7466_v2 = vrot.slane %v7434_v25, 6  ;;  %v7468_v22 = vrot.slane %v7435_v6, 6  ;;  %v7469_v17 = vrot.slane %v7436_v12, 6 }
 0x638   : > { %v7471_v50 = vrot.slane %v7437_v37, 6  ;;  %v7472_v3 = vrot.slane %v7438_v47, 6  ;;  %v7474_v14 = vrot.slane %v7439_v35, 6  ;;  %v7475_v52 = vrot.slane %v7440_v16, 6 }
 0x639   : > { %v7467_v40 = vsel %vm3534_vm7, %v7465_v29, %v7466_v2  ;;  %v7470_v8 = vsel %vm3534_vm7, %v7468_v22, %v7469_v17  ;;  %v7477_v26 = vrot.slane %v7441_v51, 6  ;;  %v7478_v33 = vrot.slane %v7442_v36, 6 }
 0x63a   : > { %v7473_v5 = vsel %vm3534_vm7, %v7471_v50, %v7472_v3  ;;  %v7476_v41 = vsel %vm3534_vm7, %v7474_v14, %v7475_v52  ;;  %v7480_v28 = vrot.slane %v7443_v10, 6  ;;  %v7481_v30 = vrot.slane %v7444_v20, 6 }
 0x63b   : > { %v7479_v53 = vsel %vm3534_vm7, %v7477_v26, %v7478_v33  ;;  %v7483_v4 = vrot.slane %v7445_v57, 6  ;;  %v7484_v32 = vrot.slane %v7446_v54, 6  ;;  %v7486_v63 = vrot.slane %v7447_v42, 6 }
 0x63c   : > { %v7482_v19 = vsel %vm3534_vm7, %v7480_v28, %v7481_v30  ;;  %v7487_v11 = vrot.slane %v7448_v23, 6  ;;  %v7505_v18 = vadd.f32 %v7465_v29, %v7413_v27  ;;  %v7506_v58 = vadd.f32 %v7467_v40, %v7414_v9 }
 0x63d   : > { %v7485_v7 = vsel %vm3534_vm7, %v7483_v4, %v7484_v32  ;;  %v7507_v62 = vadd.f32 %v7468_v22, %v7415_v43  ;;  %v7508_v38 = vadd.f32 %v7470_v8, %v7416_v1  ;;  %v7509_v15 = vadd.f32 %v7471_v50, %v7417_v34 }
 0x63e   : > { %v7488_v49 = vsel %vm3534_vm7, %v7486_v63, %v7487_v11  ;;  %v7510_v39 = vadd.f32 %v7473_v5, %v7418_v44  ;;  %v7511_v25 = vadd.f32 %v7474_v14, %v7419_v59  ;;  %v7512_v6 = vadd.f32 %v7476_v41, %v7420_v46 }
 0x63f   : > { %v7513_v12 = vadd.f32 %v7477_v26, %v7421_v24  ;;  %v7514_v37 = vadd.f32 %v7479_v53, %v7422_v13  ;;  %v7515_v48 = vadd.f32 %v7480_v28, %v7423_v56  ;;  %v7516_v47 = vadd.f32 %v7482_v19, %v7424_v55 }
 0x640   : > { %v7517_v35 = vadd.f32 %v7483_v4, %v7425_v60  ;;  %v7518_v16 = vadd.f32 %v7485_v7, %v7426_v31  ;;  %v7519_v51 = vadd.f32 %v7486_v63, %v7427_v45  ;;  %v7520_v36 = vadd.f32 %v7488_v49, %v7428_v61  ;;  %v15515_v49 = vld [vmem:[#allocation84_spill] sm:$0xff] }
 0x641   : > { %v7537_v27 = vrot.slane %v7505_v18, 5  ;;  %v7538_v9 = vrot.slane %v7506_v58, 5  ;;  %v7540_v10 = vrot.slane %v7507_v62, 5  ;;  %v7541_v20 = vrot.slane %v7508_v38, 5  ;;  %v15513_v62 = vld [vmem:[#allocation87_spill] sm:$0xff]  ;;  %v15514_v38 = vld [vmem:[#allocation37_spill] sm:$0xff] }
 0x642   : > { %v7543_v43 = vrot.slane %v7509_v15, 5  ;;  %v7544_v1 = vrot.slane %v7510_v39, 5  ;;  %v7546_v34 = vrot.slane %v7511_v25, 5  ;;  %v7547_v57 = vrot.slane %v7512_v6, 5  ;;  %v15516_v39 = vld [vmem:[#allocation42_spill] sm:$0xff] }
 0x643   : > { %v7539_v44 = vsel %vm6268_vm8, %v7537_v27, %v7538_v9  ;;  %v7542_v59 = vsel %vm6268_vm8, %v7540_v10, %v7541_v20  ;;  %v7549_v46 = vrot.slane %v7513_v12, 5  ;;  %v7550_v24 = vrot.slane %v7514_v37, 5  ;;  %v15517_v37 = vld [vmem:[#allocation88_spill] sm:$0xff]  ;;  %v15521_v10 = vld [vmem:[#allocation63_spill] sm:$0xff] }
 0x644   : > { %v7545_v13 = vsel %vm6268_vm8, %v7543_v43, %v7544_v1  ;;  %v7548_v56 = vsel %vm6268_vm8, %v7546_v34, %v7547_v57  ;;  %v7552_v55 = vrot.slane %v7515_v48, 5  ;;  %v7553_v60 = vrot.slane %v7516_v47, 5  ;;  %v15518_v48 = vld [vmem:[#allocation41_spill] sm:$0xff]  ;;  %v15520_v27 = vld [vmem:[#allocation60_spill] sm:$0xff]  ;;  %v15522_v43 = vld [vmem:[#allocation78_spill] sm:$0xff] }
 0x645   : > { %v7551_v31 = vsel %vm6268_vm8, %v7549_v46, %v7550_v24  ;;  %v7555_v45 = vrot.slane %v7517_v35, 5  ;;  %v7556_v61 = vrot.slane %v7518_v16, 5  ;;  %v7558_v54 = vrot.slane %v7519_v51, 5  ;;  %v15523_v57 = vld [vmem:[#allocation96_spill] sm:$0xff] }
 0x646   : > { %v7554_v0 = vsel %vm6268_vm8, %v7552_v55, %v7553_v60  ;;  %v7559_v42 = vrot.slane %v7520_v36, 5  ;;  %v7573_v23 = vadd.f32 %v15512_v21, %v7539_v44  ;;  %v7574_v29 = vadd.f32 %v15512_v21, %v7542_v59  ;;  %v15519_v36 = vld [vmem:[#allocation86_spill] sm:$0xff] }
 0x647   : > { %v7557_v2 = vsel %vm6268_vm8, %v7555_v45, %v7556_v61  ;;  %v7575_v22 = vadd.f32 %v15512_v21, %v7545_v13  ;;  %v7576_v17 = vadd.f32 %v15512_v21, %v7548_v56  ;;  %v7577_v50 = vadd.f32 %v15512_v21, %v7551_v31  ;;  %v15524_v13 = vld [vmem:[#allocation99_spill] sm:$0xff] }
 0x648   : > { %v7560_v3 = vsel %vm6268_vm8, %v7558_v54, %v7559_v42  ;;  %v7578_v14 = vadd.f32 %v15512_v21, %v7554_v0  ;;  %v7579_v52 = vadd.f32 %v15512_v21, %v7557_v2  ;;  %v7581_v40 = vadd.f32 3.0, %v7573_v23 }
 0x649   : > { %v7580_v8 = vadd.f32 %v15512_v21, %v7560_v3  ;;  %v7582_v26 = vadd.f32 3.0, %v7574_v29  ;;  %v7583_v33 = vadd.f32 3.0, %v7575_v22  ;;  %v7584_v5 = vadd.f32 3.0, %v7576_v17  ;;  %v15525_v21 = vld [vmem:[#allocation89_spill] sm:$0xff]  ;;  %v15526_v3 = vld [vmem:[#allocation90_spill] sm:$0xff] }
 0x64a   : > { %v7585_v41 = vadd.f32 3.0, %v7577_v50  ;;  %v7586_v28 = vadd.f32 3.0, %v7578_v14  ;;  %v7587_v30 = vadd.f32 3.0, %v7579_v52  ;;  %v7589_v53 = vmax.f32 %v7581_v40, 0.0 }
 0x64b   : > { %v7588_v4 = vadd.f32 3.0, %v7580_v8  ;;  %v7590_v32 = vmax.f32 %v7582_v26, 0.0  ;;  %v7591_v63 = vmax.f32 %v7583_v33, 0.0  ;;  %v7592_v19 = vmax.f32 %v7584_v5, 0.0 }
 0x64c   : > { %v7593_v11 = vmax.f32 %v7585_v41, 0.0  ;;  %v7594_v18 = vmax.f32 %v7586_v28, 0.0  ;;  %v7595_v58 = vmax.f32 %v7587_v30, 0.0  ;;  %v7597_v7 = vmin.f32 %v7589_v53, 6.0 }
 0x64d   : > { %v3607_v15 = vmul.f32 %v15514_v38, %v15513_v62  ;;  %v3608_v25 = vmul.f32 %v15516_v39, %v15515_v49  ;;  %v7598_v6 = vmin.f32 %v7590_v32, 6.0  ;;  %v7599_v12 = vmin.f32 %v7591_v63, 6.0 }
 0x64e   : > { %v3609_v47 = vmul.f32 %v15518_v48, %v15517_v37  ;;  %v7596_v35 = vmax.f32 %v7588_v4, 0.0  ;;  %v7600_v16 = vmin.f32 %v7592_v19, 6.0  ;;  %v7601_v51 = vmin.f32 %v7593_v11, 6.0  ;;  %v15529_v19 = vld [vmem:[#allocation62_spill] sm:$0xff] }
 0x64f   : > { %v3610_v9 = vmul.f32 %v15520_v27, %v15519_v36  ;;  %v14257_v20 = vmul.f32 0.16666667, %v15521_v10  ;;  %v14260_v1 = vmul.f32 0.16666667, %v15522_v43  ;;  %v7602_v34 = vmin.f32 %v7594_v18, 6.0 }
 0x650   : > { %v14263_v44 = vmul.f32 0.16666667, %v15523_v57  ;;  %v7603_v59 = vmin.f32 %v7595_v58, 6.0  ;;  %v7605_v46 = vmul.f32 %v7597_v7, %v7573_v23  ;;  %v7606_v24 = vmul.f32 %v7598_v6, %v7574_v29  ;;  %v15527_v29 = vld [vmem:[#allocation51_spill] sm:$0xff] }
 0x651   : > { %v14266_v56 = vmul.f32 0.16666667, %v15524_v13  ;;  %v14268_v55 = vmul.f32 0.16666667, %v3607_v15  ;;  %v14270_v60 = vmul.f32 0.16666667, %v3608_v25  ;;  %v7607_v31 = vmul.f32 %v7599_v12, %v7575_v22 }
 0x652   : > { %v14272_v45 = vmul.f32 0.16666667, %v3609_v47  ;;  %v7604_v61 = vmin.f32 %v7596_v35, 6.0  ;;  %v7608_v54 = vmul.f32 %v7600_v16, %v7576_v17  ;;  %v7609_v0 = vmul.f32 %v7601_v51, %v7577_v50  ;;  %v15528_v17 = vld [vmem:[#allocation64_spill] sm:$0xff]  ;;  %v15531_v35 = vld [vmem:[#allocation71_spill] sm:$0xff] }
 0x653   : > { %v7610_v42 = vmul.f32 %v7602_v34, %v7578_v14  ;;  %v7621_v2 = vsel %vm611_vm0, %v15525_v21, 0.0  ;;  %v7622_v23 = vsel %vm611_vm0, %v15526_v3, 0.0  ;;  %v7624_v40 = vsel %vm611_vm0, %v15527_v29, 0.0  ;;  %v15530_v15 = vld [vmem:[#allocation56_spill] sm:$0xff] }
 0x654   : > { %v7611_v26 = vmul.f32 %v7603_v59, %v7579_v52  ;;  %v14280_v33 = vmul.f32 0.16666667, %v7605_v46  ;;  %v14282_v5 = vmul.f32 0.16666667, %v7606_v24  ;;  %v7623_v22 = vadd.f32 %v7622_v23, %v7621_v2 }
 0x655   : > { %v14284_v41 = vmul.f32 0.16666667, %v7607_v31  ;;  %v7626_v50 = vsel %vm611_vm0, %v15528_v17, 0.0  ;;  %v7644_v14 = vsel %vm611_vm0, %v14257_v20, 0.0  ;;  %v7645_v28 = vsel %vm611_vm0, %v14260_v1, 0.0  ;;  %v15532_v31 = vld [vmem:[#allocation72_spill] sm:$0xff] }
 0x656   : > { %v14292_v30 = vmul.f32 0.16666667, %v7608_v54  ;;  %v7625_v53 = vadd.f32 %v7624_v40, %v7623_v22  ;;  %v7646_v52 = vadd.f32 %v7645_v28, %v7644_v14  ;;  %v7647_v4 = vsel %vm611_vm0, %v14263_v44, 0.0 }
 0x657   : > { %v7612_v32 = vmul.f32 %v7604_v61, %v7580_v8  ;;  %v14296_v63 = vmul.f32 0.16666667, %v7609_v0  ;;  %v7628_v11 = vsel %vm611_vm0, %v15529_v19, 0.0  ;;  %v7649_v18 = vsel %vm611_vm0, %v14266_v56, 0.0 }
 0x658   : > { %v7627_v58 = vadd.f32 %v7626_v50, %v7625_v53  ;;  %v7648_v7 = vadd.f32 %v7647_v4, %v7646_v52  ;;  %v7666_v62 = vsel %vm611_vm0, %v14280_v33, 0.0  ;;  %v7667_v38 = vsel %vm611_vm0, %v14282_v5, 0.0 }
 0x659   : > { %v7630_v49 = vsel %vm611_vm0, %v15530_v15, 0.0  ;;  %v7651_v8 = vsel %vm611_vm0, %v14268_v55, 0.0  ;;  %v7668_v39 = vadd.f32 %v7667_v38, %v7666_v62  ;;  %v7669_v25 = vsel %vm611_vm0, %v14284_v41, 0.0 }
 0x65a   : > { %v14312_v6 = vmul.f32 0.16666667, %v7610_v42  ;;  %v7629_v12 = vadd.f32 %v7628_v11, %v7627_v58  ;;  %v7650_v37 = vadd.f32 %v7649_v18, %v7648_v7  ;;  %v7671_v48 = vsel %vm611_vm0, %v14292_v30, 0.0 }
 0x65b   : > { %v14316_v47 = vmul.f32 0.16666667, %v3610_v9  ;;  %v7632_v16 = vsel %vm611_vm0, %v15531_v35, 0.0  ;;  %v7653_v51 = vsel %vm611_vm0, %v14270_v60, 0.0  ;;  %v7670_v36 = vadd.f32 %v7669_v25, %v7668_v39 }
 0x65c   : > { %v14322_v27 = vmul.f32 0.16666667, %v7611_v26  ;;  %v7631_v10 = vadd.f32 %v7630_v49, %v7629_v12  ;;  %v7652_v43 = vadd.f32 %v7651_v8, %v7650_v37  ;;  %v7673_v34 = vsel %vm611_vm0, %v14296_v63, 0.0 }
 0x65d   : > { %v7655_v57 = vsel %vm611_vm0, %v14272_v45, 0.0  ;;  %v7672_v59 = vadd.f32 %v7671_v48, %v7670_v36  ;;  %v14328_v9 = vmul.f32 0.16666667, %v7612_v32  ;;  %v7675_v13 = vsel %vm611_vm0, %v14312_v6, 0.0 }
 0x65e   : > { %v7633_v46 = vadd.f32 %v7632_v16, %v7631_v10  ;;  %v7654_v24 = vadd.f32 %v7653_v51, %v7652_v43  ;;  %v7634_v61 = vsel %vm611_vm0, %v15532_v31, 0.0  ;;  %v7657_v54 = vsel %vm611_vm0, %v14316_v47, 0.0  ;;  %v15533_v16 = vld [vmem:[#allocation32_spill] sm:$0xff] }
 0x65f   : > { %v7674_v0 = vadd.f32 %v7673_v34, %v7672_v59  ;;  %v7677_v23 = vsel %vm611_vm0, %v14322_v27, 0.0  ;;  %v7679_v50 = vsel %vm611_vm0, %v14328_v9, 0.0  ;;  %vm7691_vm9 = vcmp.eq.s32.totalorder %v15533_v16, 1 }
 0x660   : > { %v7635_v42 = vadd.f32 %v7634_v61, %v7633_v46  ;;  %v7656_v2 = vadd.f32 %v7655_v57, %v7654_v24  ;;  %vm7690_vm10 = vcmp.eq.s32.totalorder %v15533_v16, 0  ;;  %v8346_v57 = vld [vmem:[%s15534_s14] ss:$0 sm:$0xff]  ;;  %v7925_v61 = vld [vmem:[#allocation15 + $0x18] sm:$0xff]  ;;  %s8979_s14 = sshll.u32 %s9074_s15, 4  ;;  %s8980_s14 = int_to_ptr.vmem [resolvable:$false] %s8979_s14 }
 0x661   : > { %v7676_v40 = vadd.f32 %v7675_v13, %v7674_v0  ;;  %8466 = vmatprep.subr.mxu0 %v7925_v61  ;;  %v7923_v0 = vld [vmem:[#allocation15 + $0x8] sm:$0xff]  ;;  %s8981_s29 = scalar_lea.vmem %s8980_s14, 2048  ;;  %p8982_p7 = scmp.lt.s32.totalorder %s14410_s10, %s8980_s14 }
 0x662   : > { %v7636_v26 = vrot.slane %v7635_v42, 4  ;;  %v7658_v22 = vadd.f32 %v7657_v54, %v7656_v2  ;;  %v7924_v54 = vld [vmem:[#allocation15 + $0x10] sm:$0xff]  ;;  %v8348_v2 = vld [vmem:[%s15535_s28] ss:$0 sm:$0xff]  ;;  %p8983_p8 = scmp.lt.s32.totalorder %s8981_s29, %s8975_s2 }
 0x663   : > { %v7678_v14 = vadd.f32 %v7677_v23, %v7676_v40 }
 0x664   : > { %v7637_v28 = vadd.f32 %v7636_v26, %v7635_v42  ;;  %v7659_v53 = vrot.slane %v7658_v22, 4  ;;  %v7922_v42 = vld [vmem:[#allocation15] sm:$0xff]  ;;  %p8984_p6 = por %p8983_p8, %p8982_p7 }
 0x665   : > { %v7680_v52 = vadd.f32 %v7679_v50, %v7678_v14 }
 0x666   : > { %v7638_v4 = vrot.slane %v7637_v28, 2  ;;  %v7660_v32 = vadd.f32 %v7659_v53, %v7658_v22  ;;  %p8985_p12 = pnand %p8984_p6, %p8978_p3 }
 0x667   : > { %v7681_v11 = vrot.slane %v7680_v52, 4 }
 0x668   : > { %v7639_v18 = vadd.f32 %v7638_v4, %v7637_v28  ;;  %v7661_v58 = vrot.slane %v7660_v32, 2 }
 0x669   : > { %v7682_v7 = vadd.f32 %v7681_v11, %v7680_v52  ;;  %v15536_v52 = vld [vmem:[#allocation33_spill] sm:$0xff] }
 0x66a   : > { %v7662_v62 = vadd.f32 %v7661_v58, %v7660_v32  ;;  %v7640_v49 = vrot.slane %v7639_v18, 1  ;;  %v15537_v32 = vld [vmem:[#allocation35_spill] sm:$0xff] }
 0x66b   : > { %v7683_v38 = vrot.slane %v7682_v7, 2 }
 0x66c   : > { %v7663_v8 = vrot.slane %v7662_v62, 1  ;;  %v7641_v37 = vadd.f32 %v7640_v49, %v7639_v18  ;;  %v15538_v18 = vld [vmem:[#allocation38_spill] sm:$0xff] }
 0x66d   : > { %v7684_v39 = vadd.f32 %v7683_v38, %v7682_v7 }
 0x66e   : > { %v7664_v25 = vadd.f32 %v7663_v8, %v7662_v62  ;;  %v7643_v10 = vmul.f32 0.015625, %v7641_v37 }
 0x66f   : > { %v7685_v12 = vrot.slane %v7684_v39, 1 }
 0x670   : > { %v7665_v51 = vmul.f32 0.015625, %v7664_v25 }
 0x671   : > { %v7686_v48 = vadd.f32 %v7685_v12, %v7684_v39 }
 0x673   : > { %v7687_v36 = vmul.f32 0.015625, %v7686_v48 }
 0x675   : > { %v7692_v43 = vsel %vm7691_vm9, %v7665_v51, %v7687_v36 }
 0x676   : > { %v7693_v34 = vsel %vm7690_vm10, %v7643_v10, %v7692_v43 }
 0x677   : > { %8459 = vmatmul.mubr.msk.f32.vlgmr.msra.gmra.mxu0 %vm611_vm0, %v7693_v34 }
 0x678   : > { %8467 = vmatpush3.msra.mxu0 %v7925_v61 }
 0x679   : > { %8468 = vmatprep.subr.mxu0 %v7924_v54 }
 0x67a   : > { %8469 = vmatpush3.msra.mxu0 %v7924_v54 }
 0x67b   : > { %8470 = vmatprep.subr.mxu0 %v7923_v0 }
 0x67c   : > { %8471 = vmatpush3.msra.mxu0 %v7923_v0 }
 0x67d   : > { %8472 = vmatprep.subr.mxu0 %v7922_v42 }
 0x67e   : > { %8473 = vmatpush3.msra.mxu0 %v7922_v42 }
 0x737   : > { %v7774_v59 = vpop.f32.mrf.mxu0 }
 0x738   : > { %v7775_v46 = vadd.f32 %v8346_v57, %v7774_v59 }
 0x739   : > { %v8460_v24 = vpop.f32.mrf.mxu0 }
 0x73a   : > { %v7778_v13 = vmax.f32 %v7775_v46, 0.0 }
 0x73c   : > { %8464 = vmatmul.mubr.msk.f32.vlgmr.msra.gmra.mxu1 %vm7787_vm11, %v7778_v13  ;;  %v8071_v13 = vpop.permute.xlu1 %8070 }
 0x7fc   : > { %v7860_v23 = vpop.f32.mrf.mxu1 }
 0x7fd   : > { %v7861_v40 = vadd.f32 %v8348_v2, %v7860_v23  ;;  %v8075_v23 = vpop.permute.xlu1 %8074 }
 0x7fe   : > { %v8465_v26 = vpop.f32.mrf.mxu1 }
 0x7ff   : > { %v7864_v22 = vsub.f32 0.0, %v7861_v40 }
 0x801   : > { %v7865_v50 = vmul.f32 1.442695, %v7864_v22 }
 0x803   : > { %8622 = vpow2.f32 %v7865_v50 }
 0x810   : > { %v8623_v14 = vpop.eup %8622 }
 0x811   : > { %v7867_v28 = vadd.f32 1.0, %v8623_v14 }
 0x813   : > { %8624 = vrcp.f32 %v7867_v28 }
 0x820   : > { %v8625_v53 = vpop.eup %8624 }
 0x821   : > { %v7873_v4 = vrot.slane %v8625_v53, %v15536_v52  ;;  %v7885_v11 = vrot.slane %v8625_v53, %v15537_v32  ;;  %v7905_v58 = vrot.slane %v8625_v53, %v15538_v18 }
 0x823   : > { %v7874_v7 = vmul.f32 %v7873_v4, %v15525_v21  ;;  %v7886_v62 = vmul.f32 %v7885_v11, %v14257_v20  ;;  %v7875_v38 = vmul.f32 %v7873_v4, %v15526_v3  ;;  %v7887_v49 = vmul.f32 %v7885_v11, %v14260_v1 }
 0x824   : > { %v7876_v8 = vmul.f32 %v7873_v4, %v15527_v29  ;;  %v7888_v39 = vmul.f32 %v7885_v11, %v14263_v44  ;;  %v7906_v12 = vmul.f32 %v7905_v58, %v14280_v33  ;;  %v7877_v37 = vmul.f32 %v7873_v4, %v15528_v17 }
 0x825   : > { %v7894_v25 = vadd.f32 %v7886_v62, %v7874_v7  ;;  %v7889_v48 = vmul.f32 %v7885_v11, %v14266_v56  ;;  %v7895_v16 = vadd.f32 %v7887_v49, %v7875_v38  ;;  %v7907_v21 = vmul.f32 %v7905_v58, %v14282_v5  ;;  %v8079_v62 = vpop.permute.xlu1 %8078 }
 0x826   : > { %v7896_v51 = vadd.f32 %v7888_v39, %v7876_v8  ;;  %v7878_v20 = vmul.f32 %v7873_v4, %v15529_v19  ;;  %v7908_v1 = vmul.f32 %v7905_v58, %v14284_v41  ;;  %v7890_v29 = vmul.f32 %v7885_v11, %v14268_v55 }
 0x827   : > { %v7914_v3 = vadd.f32 %v7906_v12, %v7894_v25  ;;  %v7915_v36 = vadd.f32 %v7907_v21, %v7895_v16  ;;  %v7897_v44 = vadd.f32 %v7889_v48, %v7877_v37  ;;  %v7879_v10 = vmul.f32 %v7873_v4, %v15530_v15 }
 0x828   : > { %v7891_v33 = vmul.f32 %v7885_v11, %v14270_v60  ;;  %v7916_v56 = vadd.f32 %v7908_v1, %v7896_v51  ;;  %v7898_v17 = vadd.f32 %v7890_v29, %v7878_v20  ;;  %v7880_v5 = vmul.f32 %v7873_v4, %v15531_v35 }
 0x829   : > { %8474 = vmatprep.mubr.msk.f32.mxu0 %vm611_vm0, %v7914_v3  ;;  %v7909_v19 = vmul.f32 %v7905_v58, %v14292_v30  ;;  %v7892_v41 = vmul.f32 %v7885_v11, %v14272_v45  ;;  %v7910_v55 = vmul.f32 %v7905_v58, %v14296_v63  ;;  %v7881_v60 = vmul.f32 %v7873_v4, %v15532_v31  ;;  %v8073_v31 = vpop.permute.xlu0 %8072 }
 0x82a   : > { %8475 = vmatmul.mubr.msk.f32.vlgmr.msra.gmra.mxu0 %vm611_vm0, %v7915_v36  ;;  %v7899_v15 = vadd.f32 %v7891_v33, %v7879_v10  ;;  %v7893_v34 = vmul.f32 %v7885_v11, %v14316_v47  ;;  %v7911_v35 = vmul.f32 %v7905_v58, %v14312_v6  ;;  %v7912_v45 = vmul.f32 %v7905_v58, %v14322_v27  ;;  %v8351_v6 = vld [vmem:[%s15539_s25] ss:$0 sm:$0xff] }
 0x82b   : > { %8477 = vmatprep.mubr.msk.f32.mxu0 %vm611_vm0, %v7916_v56  ;;  %v7917_v43 = vadd.f32 %v7909_v19, %v7897_v44  ;;  %v7918_v57 = vadd.f32 %v7910_v55, %v7898_v17  ;;  %v7900_v59 = vadd.f32 %v7892_v41, %v7880_v5  ;;  %v7913_v63 = vmul.f32 %v7905_v58, %v14328_v9  ;;  %v8083_v19 = vpop.permute.xlu1 %8082 }
 0x82c   : > { %v7919_v30 = vadd.f32 %v7911_v35, %v7899_v15  ;;  %v7901_v46 = vadd.f32 %v7893_v34, %v7881_v60 }
 0x82d   : > { %v7920_v24 = vadd.f32 %v7912_v45, %v7900_v59  ;;  %v8077_v0 = vpop.permute.xlu0 %8076 }
 0x82e   : > { %8478 = vmatmul.mubr.msk.f32.gmra.mxu0 %vm611_vm0, %v7917_v43  ;;  %v7921_v47 = vadd.f32 %v7913_v63, %v7901_v46 }
 0x82f   : > { %8480 = vmatprep.mubr.msk.f32.mxu0 %vm611_vm0, %v7918_v57 }
 0x831   : > { %v8081_v32 = vpop.permute.xlu0 %8080 }
 0x832   : > { %8481 = vmatmul.mubr.msk.f32.gmra.mxu0 %vm611_vm0, %v7919_v30 }
 0x833   : > { %8483 = vmatprep.mubr.msk.f32.mxu0 %vm611_vm0, %v7920_v24 }
 0x835   : > { %v8085_v10 = vpop.permute.xlu0 %8084 }
 0x836   : > { %8484 = vmatmul.mubr.msk.f32.gmra.mxu0 %vm611_vm0, %v7921_v47 }
 0x8ea   : > { %v8476_v61 = vpop.f32.mrf.mxu0 }
 0x8eb   : > { %v8029_v27 = vadd.f32 %v8476_v61, %v8351_v6 }
 0x8ec   : > { %v8023_v54 = vpop.f32.mrf.mxu0 }
 0x8ed   : > { %v8095_v42 = vadd.f32 %v8073_v31, %v8029_v27  ;;  %v8024_v2 = vadd.f32 %v8351_v6, %v8023_v54 }
 0x8ee   : > { %v8479_v40 = vpop.f32.mrf.mxu0 }
 0x8ef   : > { %v8103_v9 = vadd.f32 3.0, %v8095_v42  ;;  %v8094_v26 = vadd.f32 %v8071_v13, %v8024_v2  ;;  %v8039_v22 = vadd.f32 %v8479_v40, %v8351_v6 }
 0x8f0   : > { %v8033_v50 = vpop.f32.mrf.mxu0 }
 0x8f1   : > { %v8111_v14 = vmax.f32 %v8103_v9, 0.0  ;;  %v8102_v28 = vadd.f32 3.0, %v8094_v26  ;;  %v8097_v53 = vadd.f32 %v8077_v0, %v8039_v22  ;;  %v8034_v52 = vadd.f32 %v8351_v6, %v8033_v50 }
 0x8f2   : > { %v8482_v4 = vpop.f32.mrf.mxu0 }
 0x8f3   : > { %v8119_v11 = vmin.f32 %v8111_v14, 6.0  ;;  %v8110_v18 = vmax.f32 %v8102_v28, 0.0  ;;  %v8105_v58 = vadd.f32 3.0, %v8097_v53  ;;  %v8096_v7 = vadd.f32 %v8075_v23, %v8034_v52 }
 0x8f4   : > { %v8049_v38 = vadd.f32 %v8482_v4, %v8351_v6  ;;  %v8043_v49 = vpop.f32.mrf.mxu0 }
 0x8f5   : > { %v8127_v8 = vmul.f32 %v8119_v11, %v8095_v42  ;;  %v8118_v39 = vmin.f32 %v8110_v18, 6.0  ;;  %v8113_v25 = vmax.f32 %v8105_v58, 0.0  ;;  %v8104_v12 = vadd.f32 3.0, %v8096_v7 }
 0x8f6   : > { %v8099_v37 = vadd.f32 %v8081_v32, %v8049_v38  ;;  %v8044_v48 = vadd.f32 %v8351_v6, %v8043_v49  ;;  %v8485_v16 = vpop.f32.mrf.mxu0 }
 0x8f7   : > { %v8135_v21 = vmul.f32 0.16666667, %v8127_v8  ;;  %v8126_v51 = vmul.f32 %v8118_v39, %v8094_v26  ;;  %v8121_v20 = vmin.f32 %v8113_v25, 6.0  ;;  %v8112_v3 = vmax.f32 %v8104_v12, 0.0 }
 0x8f8   : > { %v8107_v1 = vadd.f32 3.0, %v8099_v37  ;;  %v8098_v29 = vadd.f32 %v8079_v62, %v8044_v48  ;;  %v8059_v36 = vadd.f32 %v8485_v16, %v8351_v6  ;;  %v8053_v44 = vpop.f32.mrf.mxu0 }
 0x8f9   : > { %8144 = vst.msk [vmem:[%s14389_s26 + $0x8] sm:$0xff] %vm8142_vm12, %v8135_v21  ;;  %v8134_v33 = vmul.f32 0.16666667, %v8126_v51  ;;  %v8129_v56 = vmul.f32 %v8121_v20, %v8097_v53  ;;  %v8120_v17 = vmin.f32 %v8112_v3, 6.0  ;;  %v8054_v5 = vadd.f32 %v8351_v6, %v8053_v44 }
 0x8fa   : > { %v8115_v41 = vmax.f32 %v8107_v1, 0.0  ;;  %v8106_v55 = vadd.f32 3.0, %v8098_v29  ;;  %v8101_v43 = vadd.f32 %v8085_v10, %v8059_v36 }
 0x8fb   : > { %8143 = vst.msk [vmem:[%s14389_s26] sm:$0xff] %vm8142_vm12, %v8134_v33  ;;  %v8137_v15 = vmul.f32 0.16666667, %v8129_v56  ;;  %v8128_v60 = vmul.f32 %v8120_v17, %v8096_v7  ;;  %v8100_v34 = vadd.f32 %v8083_v19, %v8054_v5 }
 0x8fc   : > { %v8123_v57 = vmin.f32 %v8115_v41, 6.0  ;;  %v8114_v59 = vmax.f32 %v8106_v55, 0.0  ;;  %v8109_v35 = vadd.f32 3.0, %v8101_v43 }
 0x8fd   : > { %8146 = vst.msk [vmem:[%s14389_s26 + $0x18] sm:$0xff] %vm8142_vm12, %v8137_v15  ;;  %v8136_v45 = vmul.f32 0.16666667, %v8128_v60  ;;  %v8108_v30 = vadd.f32 3.0, %v8100_v34 }
 0x8fe   : > { %v8131_v46 = vmul.f32 %v8123_v57, %v8099_v37  ;;  %v8122_v24 = vmin.f32 %v8114_v59, 6.0  ;;  %v8117_v63 = vmax.f32 %v8109_v35, 0.0 }
 0x8ff   : > { %8145 = vst.msk [vmem:[%s14389_s26 + $0x10] sm:$0xff] %vm8142_vm12, %v8136_v45  ;;  %v8116_v47 = vmax.f32 %v8108_v30, 0.0 }
 0x900   : > { %v8139_v31 = vmul.f32 0.16666667, %v8131_v46  ;;  %v8130_v13 = vmul.f32 %v8122_v24, %v8098_v29  ;;  %v8125_v6 = vmin.f32 %v8117_v63, 6.0 }
 0x901   : > { %v8124_v61 = vmin.f32 %v8116_v47, 6.0 }
 0x902   : > { %8148 = vst.msk [vmem:[%s14389_s26 + $0x28] sm:$0xff] %vm8142_vm12, %v8139_v31  ;;  %v8138_v27 = vmul.f32 0.16666667, %v8130_v13  ;;  %v8133_v54 = vmul.f32 %v8125_v6, %v8101_v43 }
 0x903   : > { %v8132_v0 = vmul.f32 %v8124_v61, %v8100_v34 }
 0x904   : > { %8147 = vst.msk [vmem:[%s14389_s26 + $0x20] sm:$0xff] %vm8142_vm12, %v8138_v27  ;;  %v8141_v42 = vmul.f32 0.16666667, %v8133_v54 }
 0x905   : > { %v8140_v2 = vmul.f32 0.16666667, %v8132_v0 }
 0x906   : > { %8150 = vst.msk [vmem:[%s14389_s26 + $0x38] sm:$0xff] %vm8142_vm12, %v8141_v42 }
 0x907   : > { %8149 = vst.msk [vmem:[%s14389_s26 + $0x30] sm:$0xff] %vm8142_vm12, %v8140_v2 }
 0x908   : > { %8988 = shalt.err (!%p8985_p12)
}
 0x909   : > { %s8989_s13 = scalar_lea.hbm %s14408_s1, 1024  ;;  %s8993_s4 = scalar_lea.hbm %s15540_s27, 2048 }
 0x90a   : > { %p8990_p13 = scmp.ne.s32.totalorder %s14408_s1, %s8989_s13  ;;  %p8994_p2 = scmp.lt.s32.totalorder %s14408_s1, %s15540_s27 }
 0x90b   : > { %p8995_p5 = scmp.lt.s32.totalorder %s8993_s4, %s8989_s13 }
 0x90c   : > { %p8991_p4 = pnand %p8990_p13, %p15541_p11 }
 0x90d   : > { %p8996_p9 = por %p8995_p5, %p8994_p2 }
 0x90e   : > { %p8992_p0 = pneg %p8991_p4 }
 0x910   : > { %p8997_p10 = pnand %p8996_p9, %p8992_p0 }
 0x912   : > { %9000 = shalt.err (!%p8997_p10)
}
 0x913   : > { %s9075_s7 = smov 128   ;;  %s9076_s22 = smov 8  }
 0x914   : > { %8524 = dma.vmem_to_hbm [thread:$0]  (%p15541_p11), %s14410_s10, 1024, %s14408_s1, %s8152_s24, %s9075_s7, %s9075_s7, %s9076_s22  }
 0x915 PF: > { %s8180_s17 = sand.u32 1, %s9043_s18   ;;  %p15542_p1 = scmp.ne.s32.totalorder %s14873_s23, 0 }
 0x916   : > { %p15543_p3 = scmp.ge.s32.totalorder %s9055_s21, 2  ;;  %s8181_s2 = scalar_lea.sflag [#allocation5], %s8180_s17 }
 0x918   : > { %p8553_p7 = pnand %p15543_p3, %p15542_p1 }
 0x91a   : > { %p8554_p8 = pneg %p8553_p7 }
 0x91c   : > { %9038 = dma.done.wait (%p8554_p8), %s8181_s2, 1024  }
 0x91d   : > { %9040 = vsyncadd (%p8554_p8), %s8181_s2, 4294966272  ;;  %p32_p6 = scmp.ge.s32.totalorder %s9272_s16, 4   ;;  %s15544_s18 = smov %s9047_s19 }
 0x91e   : > { %s15545_s19 = smov %s9051_s20  ;;  %s15546_s20 = smov %s9284_s30 }
 0x91f   : > { %s15547_s21 = smov %s9272_s16  ;;  %34 = sbr.rel (!%p32_p6) target bundleno = 21 (0x15), region = 155 }
 0x924   :  { %8186 = vsyncpa [#allocation4], 1 }
 0x925   :  { %8188 = vsyncpa [#allocation4 + $0x1], 1 }
 0x926   :  { %8189 = vsyncpa [#allocation7], 1 }
 0x927   :  { %8190 = vsyncpa [#allocation10], 1 }
 0x928   :  { %8191 = vsyncpa [#allocation13], 1 }
 0x929   :  { %8192 = vsyncpa [#allocation16], 1 }
 0x92a   :  { %8193 = vsyncpa [#allocation5], 1 }
 0x92b   :  { %8195 = vsyncpa [#allocation5 + $0x1], 1 }

</bundles_post_ra>
